<compile_context>
chip_gen: v6e
topology: v6e:2x2x1
jax: 0.10.0
libtpu: 0.0.40
codegen_flags: <defaults>
</compile_context>

<pallas_src>
import jax
import jax.numpy as jnp
import numpy as np
from jax.experimental import pallas as pl
from jax.experimental.pallas import tpu as pltpu

NC = 3            # true input channels
NC_PAD = 4        # padded input channels (lane-dense 256-wide layer-1 rows)
NDF = 8           # base feature width
K = 4             # conv kernel size
IMG = 64          # input spatial size implied by the architecture
N_BATCH = 2
BN_EPS = 1e-5
LRELU_SLOPE = 0.2

# (Cin (padded for layer 1), Cout, H_in == W_in, use_batchnorm) per s2 conv.
LAYERS = (
    (NC_PAD,  NDF,     64, False),
    (NDF,     NDF * 2, 32, True),
    (NDF * 2, NDF * 4, 16, True),
    (NDF * 4, NDF * 8,  8, True),
)

# Every layer's concatenated weight matrix is (4*W*Cin, Wo*Cout) == (1024, 256).
BIGW_SHAPE = (K * IMG * NC_PAD, (IMG // 2) * NDF)


# --------------------------------------------------------------------------
# The fused kernel
# --------------------------------------------------------------------------
def _disc_kernel(*refs):
    """Entire Discriminator forward; all activations stay in VMEM/vregs."""
    *in_refs, o_ref, wbuf, dsem = refs
    it = iter(in_refs)

    x_ref = next(it)                                   # (N*64, 256) bf16 input
    bigw_hbm = [next(it) for _ in range(len(LAYERS))]  # HBM-resident conv weights

    # Kick off all conv-weight DMAs up-front; each one is waited right before
    # its layer's single fused weight matmul, so HBM transfer overlaps compute.
    copies = []
    for li in range(len(LAYERS)):
        cp = pltpu.make_async_copy(bigw_hbm[li], wbuf.at[li], dsem.at[li])
        cp.start()
        copies.append(cp)

    a = x_ref[...]                                     # bf16 row-format activation

    for li, (_cin, _cout, h, use_bn) in enumerate(LAYERS):
        r_even = next(it)[...]                         # (N*Ho, N*H) bf16 0/1
        r_odd = next(it)[...]
        if use_bn:
            p_ref = next(it)                           # (Wo*Cout, Wo*Cout) f32
            gamma_ref = next(it)                       # (1, Wo*Cout) f32
            beta_ref = next(it)                        # (1, Wo*Cout) f32

        ho = h // 2

        # Row gather: even rows feed k_i=1, odd rows feed k_i=2.  0/1 selectors
        # are exact in bf16; outputs kept f32 so the sublane shifts below act
        # on unpacked rows.
        even = jnp.dot(r_even, a, preferred_element_type=jnp.float32)
        odd = jnp.dot(r_odd, a, preferred_element_type=jnp.float32)
        rows, lanes = even.shape
        rid = jax.lax.broadcasted_iota(jnp.int32, (rows, lanes), 0)

        # k_i=0 needs source row 2*ho-1 == previous odd row (zero at the top of
        # every image); k_i=3 needs row 2*ho+2 == next even row (zero at the
        # bottom of every image).  Shift + mask instead of two more matmuls.
        prev_odd = jnp.where(rid % ho == 0, 0.0, jnp.roll(odd, 1, axis=0))
        next_even = jnp.where(rid % ho == ho - 1, 0.0, jnp.roll(even, -1, axis=0))

        rows_cat = jnp.concatenate(
            [prev_odd.astype(jnp.bfloat16), even.astype(jnp.bfloat16),
             odd.astype(jnp.bfloat16), next_even.astype(jnp.bfloat16)],
            axis=1)                                    # (N*Ho, 4*W*Cin) bf16

        # Single fused conv matmul against the prefetched, pre-scattered weights
        # (column gather, zero padding and channel contraction all inside).
        copies[li].wait()
        y = jnp.dot(rows_cat, wbuf[li], preferred_element_type=jnp.float32)

        if use_bn:
            # Training-mode BatchNorm2d with full-batch (biased) statistics.
            s1 = jnp.sum(y, axis=0, keepdims=True)                 # (1, Wo*Cout)
            s2 = jnp.sum(y * y, axis=0, keepdims=True)
            stats = jnp.dot(jnp.concatenate([s1, s2], axis=0), p_ref[...],
                            preferred_element_type=jnp.float32)    # (2, Wo*Cout)
            mean_e = stats[0:1, :]
            var_e = stats[1:2, :] - mean_e * mean_e
            scale = gamma_ref[...] * jax.lax.rsqrt(var_e + BN_EPS)
            shift = beta_ref[...] - mean_e * scale
            y = y * scale + shift

        y = jnp.where(y > 0, y, LRELU_SLOPE * y)       # LeakyReLU(0.2), f32
        a = y.astype(jnp.bfloat16)                     # bf16 carry to next layer

    # Final Conv(ndf*8 -> 1, k4, valid): the 4x4 window is the whole feature
    # map, so it reduces to an elementwise multiply + reductions.
    w5big = next(it)[...]                              # (N*4, 4*C5) f32
    nsel = next(it)[...]                               # (N, N*4)   f32
    rowsum = jnp.sum(a.astype(jnp.float32) * w5big, axis=1, keepdims=True)
    o_ref[...] = jnp.dot(nsel, rowsum, preferred_element_type=jnp.float32)


# --------------------------------------------------------------------------
# Parameters and pre-packed operator constants (built once, outside the kernel)
# --------------------------------------------------------------------------
def init_params(key):
    """Conv weights ~ N(0, 0.02) stored as (K, K, Cin, Cout); BN weight=1, bias=0."""
    cfg = [(NC, NDF), (NDF, NDF * 2), (NDF * 2, NDF * 4), (NDF * 4, NDF * 8),
           (NDF * 8, 1)]
    params = []
    for cin, cout in cfg:
        key, wkey = jax.random.split(key)
        w = 0.02 * jax.random.normal(wkey, (K, K, cin, cout), dtype=jnp.float32)
        params.append((w, jnp.ones((cout,), jnp.float32),
                       jnp.zeros((cout,), jnp.float32)))
    return params


def _even_odd_selectors(n, h):
    """0/1 matrices picking even (k_i=1) / odd (k_i=2) source rows per image."""
    ho = h // 2
    r_even = np.zeros((n * ho, n * h), np.float32)
    r_odd = np.zeros((n * ho, n * h), np.float32)
    for m in range(n * ho):
        r_even[m, 2 * m] = 1.0
        r_odd[m, 2 * m + 1] = 1.0
    return r_even, r_odd


def _big_weight_cat(wconv, w_in, cin, cout):
    """(4*W*Cin, Wo*Cout): BigW[ki*W*Cin + w*Cin + ci, wo*Cout + co] =
    W[ki, kj, ci, co] with w == 2*wo + kj - 1 (out-of-range -> zero pad)."""
    wo_n = w_in // 2
    big = np.zeros((K, w_in * cin, wo_n * cout), np.float32)
    for ki in range(K):
        for wo in range(wo_n):
            for kj in range(K):
                src = 2 * wo + kj - 1
                if 0 <= src < w_in:
                    big[ki, src * cin:(src + 1) * cin,
                        wo * cout:(wo + 1) * cout] = wconv[ki, kj]
    return big.reshape(K * w_in * cin, wo_n * cout)


def _bn_projection(wo_n, cout, count):
    """P = cmat @ emat: maps per-lane column sums to per-lane channel means."""
    p = np.zeros((wo_n * cout, wo_n * cout), np.float32)
    inv = 1.0 / count
    for wo_a in range(wo_n):
        for wo_b in range(wo_n):
            for c in range(cout):
                p[wo_a * cout + c, wo_b * cout + c] = inv
    return p


def build_constants(params, n):
    """Pre-packed operator matrices consumed by the fused kernel."""
    bigws = []
    others = []
    for li, (cin_p, cout, h, use_bn) in enumerate(LAYERS):
        w, gamma, beta = params[li]
        w_np = np.asarray(w)                           # (K, K, cin_true, cout)
        if w_np.shape[2] < cin_p:                      # zero-pad in-channels 3 -> 4
            w_np = np.pad(w_np, ((0, 0), (0, 0), (0, cin_p - w_np.shape[2]), (0, 0)))
        bw = _big_weight_cat(w_np, h, cin_p, cout)
        assert bw.shape == BIGW_SHAPE, bw.shape
        bigws.append(jnp.asarray(bw, jnp.bfloat16))

        r_even, r_odd = _even_odd_selectors(n, h)
        others.append(jnp.asarray(r_even, jnp.bfloat16))
        others.append(jnp.asarray(r_odd, jnp.bfloat16))
        if use_bn:
            ho = h // 2
            others.append(jnp.asarray(_bn_projection(ho, cout, n * ho * ho)))
            others.append(jnp.tile(jnp.asarray(gamma, jnp.float32), ho)[None, :])
            others.append(jnp.tile(jnp.asarray(beta, jnp.float32), ho)[None, :])

    # Final 4x4 valid conv, folded into the kernel epilogue.
    w5 = np.asarray(params[4][0])                      # (K, K, NDF*8, 1)
    c5 = NDF * 8
    w5big = np.zeros((n * K, K * c5), np.float32)
    nsel = np.zeros((n, n * K), np.float32)
    for nn in range(n):
        nsel[nn, nn * K:(nn + 1) * K] = 1.0
        for hh in range(K):
            for ww in range(K):
                w5big[nn * K + hh, ww * c5:(ww + 1) * c5] = w5[hh, ww, :, 0]
    others.append(jnp.asarray(w5big))
    others.append(jnp.asarray(nsel))
    return tuple(bigws), tuple(others)


def discriminator_forward(x_nchw, bigws, others):
    """x_nchw: (N, 3, 64, 64) float32 -> (N,) logits (PyTorch .view(-1))."""
    n = x_nchw.shape[0]
    # Row-format, channel-padded, bf16 input: A0[(n, h), (w*4 + c)] (256 lanes).
    x_nhwc = jnp.transpose(x_nchw, (0, 2, 3, 1))
    x_nhwc = jnp.pad(x_nhwc, ((0, 0), (0, 0), (0, 0), (0, NC_PAD - NC)))
    a0 = x_nhwc.reshape(n * IMG, IMG * NC_PAD).astype(jnp.bfloat16)

    inputs = (a0,) + tuple(bigws) + tuple(others)
    in_specs = ([pl.BlockSpec(memory_space=pltpu.MemorySpace.VMEM)]
                + [pl.BlockSpec(memory_space=pl.ANY)] * len(bigws)
                + [pl.BlockSpec(memory_space=pltpu.MemorySpace.VMEM)] * len(others))

    out = pl.pallas_call(
        _disc_kernel,
        out_shape=jax.ShapeDtypeStruct((n, 1), jnp.float32),
        in_specs=in_specs,
        out_specs=pl.BlockSpec(memory_space=pltpu.MemorySpace.VMEM),
        scratch_shapes=[
            pltpu.VMEM((len(LAYERS),) + BIGW_SHAPE, jnp.bfloat16),  # weight prefetch
            pltpu.SemaphoreType.DMA((len(LAYERS),)),
        ],
        compiler_params=pltpu.CompilerParams(vmem_limit_bytes=32 * 1024 * 1024),
    )(*inputs)
    return out.reshape(-1)


# --------------------------------------------------------------------------
# Pure-JAX reference (for an in-script sanity check)
# --------------------------------------------------------------------------
def _reference_forward(x_nchw, params):
    h = x_nchw
    strides = (2, 2, 2, 2, 1)
    pads = (1, 1, 1, 1, 0)
    for i, (w, gamma, beta) in enumerate(params):
        w_oihw = jnp.transpose(w, (3, 2, 0, 1))
        h = jax.lax.conv_general_dilated(
            h, w_oihw, window_strides=(strides[i], strides[i]),
            padding=((pads[i], pads[i]), (pads[i], pads[i])),
            dimension_numbers=("NCHW", "OIHW", "NCHW"),
            precision=jax.lax.Precision.HIGHEST)
        if i in (1, 2, 3):
            mean = jnp.mean(h, axis=(0, 2, 3), keepdims=True)
            var = jnp.mean((h - mean) ** 2, axis=(0, 2, 3), keepdims=True)
            h = (h - mean) * jax.lax.rsqrt(var + BN_EPS)
            h = h * gamma.reshape(1, -1, 1, 1) + beta.reshape(1, -1, 1, 1)
        if i < 4:
            h = jnp.where(h > 0, h, LRELU_SLOPE * h)
    return h.reshape(-1)


if __name__ == "__main__":
    key = jax.random.PRNGKey(0)
    key, xkey = jax.random.split(key)
    x = jax.random.normal(xkey, (N_BATCH, NC, IMG, IMG), dtype=jnp.float32)

    params = init_params(key)
    bigws, others = build_constants(params, N_BATCH)

    out = jax.jit(discriminator_forward)(x, bigws, others)
    out = jax.block_until_ready(out)
    assert out.shape == (N_BATCH,), out.shape

    # Sanity check vs. the f32 reference (kernel uses bf16 MXU operands with
    # f32 accumulation, so tolerances are loose but meaningful).
    ref = jax.block_until_ready(_reference_forward(x, params))
    np.testing.assert_allclose(np.asarray(out), np.asarray(ref),
                               rtol=5e-2, atol=5e-2)

    print("KERNEL_OK")
</pallas_src>

<mosaic_0001>
module attributes {stable_mosaic.version = 11 : i64} {
  func.func @_disc_kernel(%arg0: memref<128x256xbf16, #tpu.memory_space<vmem>>, %arg1: memref<1024x256xbf16, #tpu.memory_space<any>>, %arg2: memref<1024x256xbf16, #tpu.memory_space<any>>, %arg3: memref<1024x256xbf16, #tpu.memory_space<any>>, %arg4: memref<1024x256xbf16, #tpu.memory_space<any>>, %arg5: memref<64x128xbf16, #tpu.memory_space<vmem>>, %arg6: memref<64x128xbf16, #tpu.memory_space<vmem>>, %arg7: memref<32x64xbf16, #tpu.memory_space<vmem>>, %arg8: memref<32x64xbf16, #tpu.memory_space<vmem>>, %arg9: memref<256x256xf32, #tpu.memory_space<vmem>>, %arg10: memref<1x256xf32, #tpu.memory_space<vmem>>, %arg11: memref<1x256xf32, #tpu.memory_space<vmem>>, %arg12: memref<16x32xbf16, #tpu.memory_space<vmem>>, %arg13: memref<16x32xbf16, #tpu.memory_space<vmem>>, %arg14: memref<256x256xf32, #tpu.memory_space<vmem>>, %arg15: memref<1x256xf32, #tpu.memory_space<vmem>>, %arg16: memref<1x256xf32, #tpu.memory_space<vmem>>, %arg17: memref<8x16xbf16, #tpu.memory_space<vmem>>, %arg18: memref<8x16xbf16, #tpu.memory_space<vmem>>, %arg19: memref<256x256xf32, #tpu.memory_space<vmem>>, %arg20: memref<1x256xf32, #tpu.memory_space<vmem>>, %arg21: memref<1x256xf32, #tpu.memory_space<vmem>>, %arg22: memref<8x256xf32, #tpu.memory_space<vmem>>, %arg23: memref<2x8xf32, #tpu.memory_space<vmem>>, %arg24: memref<2x1xf32, #tpu.memory_space<vmem>>, %arg25: memref<4x1024x256xbf16, #tpu.memory_space<vmem>>, %arg26: memref<4x!tpu.dma_semaphore, #tpu.memory_space<semaphore_mem>>) attributes {dimension_semantics = [], scalar_prefetch = 0 : i64, scratch_operands = 2 : i64, tpu.core_type = #tpu.core_type<tc>} {
    %c0_i32 = arith.constant 0 : i32
    %c0_i32_0 = arith.constant 0 : i32
    %c0_i32_1 = arith.constant 0 : i32
    %c0_i32_2 = arith.constant 0 : i32
    %0 = tpu.memref_slice %arg25[%c0_i32, %c0_i32_1, %c0_i32_2] : memref<4x1024x256xbf16, #tpu.memory_space<vmem>> -> memref<1x1024x256xbf16, #tpu.memory_space<vmem>>
    %1 = tpu.memref_squeeze %0 : memref<1x1024x256xbf16, #tpu.memory_space<vmem>> -> memref<1024x256xbf16, #tpu.memory_space<vmem>>
    %2 = tpu.memref_slice %arg26[%c0_i32_0] : memref<4x!tpu.dma_semaphore, #tpu.memory_space<semaphore_mem>> -> memref<1x!tpu.dma_semaphore, #tpu.memory_space<semaphore_mem>>
    %3 = tpu.memref_squeeze %2 : memref<1x!tpu.dma_semaphore, #tpu.memory_space<semaphore_mem>> -> memref<!tpu.dma_semaphore, #tpu.memory_space<semaphore_mem>>
    tpu.enqueue_dma source(%arg1 : memref<1024x256xbf16, #tpu.memory_space<any>>) target(%1 : memref<1024x256xbf16, #tpu.memory_space<vmem>>) target_semaphore(%3 : memref<!tpu.dma_semaphore, #tpu.memory_space<semaphore_mem>>)
    %c1_i32 = arith.constant 1 : i32
    %c1_i32_3 = arith.constant 1 : i32
    %c0_i32_4 = arith.constant 0 : i32
    %c0_i32_5 = arith.constant 0 : i32
    %4 = tpu.memref_slice %arg25[%c1_i32, %c0_i32_4, %c0_i32_5] : memref<4x1024x256xbf16, #tpu.memory_space<vmem>> -> memref<1x1024x256xbf16, #tpu.memory_space<vmem>>
    %5 = tpu.memref_squeeze %4 : memref<1x1024x256xbf16, #tpu.memory_space<vmem>> -> memref<1024x256xbf16, #tpu.memory_space<vmem>>
    %6 = tpu.memref_slice %arg26[%c1_i32_3] : memref<4x!tpu.dma_semaphore, #tpu.memory_space<semaphore_mem>> -> memref<1x!tpu.dma_semaphore, #tpu.memory_space<semaphore_mem>>
    %7 = tpu.memref_squeeze %6 : memref<1x!tpu.dma_semaphore, #tpu.memory_space<semaphore_mem>> -> memref<!tpu.dma_semaphore, #tpu.memory_space<semaphore_mem>>
    tpu.enqueue_dma source(%arg2 : memref<1024x256xbf16, #tpu.memory_space<any>>) target(%5 : memref<1024x256xbf16, #tpu.memory_space<vmem>>) target_semaphore(%7 : memref<!tpu.dma_semaphore, #tpu.memory_space<semaphore_mem>>)
    %c2_i32 = arith.constant 2 : i32
    %c2_i32_6 = arith.constant 2 : i32
    %c0_i32_7 = arith.constant 0 : i32
    %c0_i32_8 = arith.constant 0 : i32
    %8 = tpu.memref_slice %arg25[%c2_i32, %c0_i32_7, %c0_i32_8] : memref<4x1024x256xbf16, #tpu.memory_space<vmem>> -> memref<1x1024x256xbf16, #tpu.memory_space<vmem>>
    %9 = tpu.memref_squeeze %8 : memref<1x1024x256xbf16, #tpu.memory_space<vmem>> -> memref<1024x256xbf16, #tpu.memory_space<vmem>>
    %10 = tpu.memref_slice %arg26[%c2_i32_6] : memref<4x!tpu.dma_semaphore, #tpu.memory_space<semaphore_mem>> -> memref<1x!tpu.dma_semaphore, #tpu.memory_space<semaphore_mem>>
    %11 = tpu.memref_squeeze %10 : memref<1x!tpu.dma_semaphore, #tpu.memory_space<semaphore_mem>> -> memref<!tpu.dma_semaphore, #tpu.memory_space<semaphore_mem>>
    tpu.enqueue_dma source(%arg3 : memref<1024x256xbf16, #tpu.memory_space<any>>) target(%9 : memref<1024x256xbf16, #tpu.memory_space<vmem>>) target_semaphore(%11 : memref<!tpu.dma_semaphore, #tpu.memory_space<semaphore_mem>>)
    %c3_i32 = arith.constant 3 : i32
    %c3_i32_9 = arith.constant 3 : i32
    %c0_i32_10 = arith.constant 0 : i32
    %c0_i32_11 = arith.constant 0 : i32
    %12 = tpu.memref_slice %arg25[%c3_i32, %c0_i32_10, %c0_i32_11] : memref<4x1024x256xbf16, #tpu.memory_space<vmem>> -> memref<1x1024x256xbf16, #tpu.memory_space<vmem>>
    %13 = tpu.memref_squeeze %12 : memref<1x1024x256xbf16, #tpu.memory_space<vmem>> -> memref<1024x256xbf16, #tpu.memory_space<vmem>>
    %14 = tpu.memref_slice %arg26[%c3_i32_9] : memref<4x!tpu.dma_semaphore, #tpu.memory_space<semaphore_mem>> -> memref<1x!tpu.dma_semaphore, #tpu.memory_space<semaphore_mem>>
    %15 = tpu.memref_squeeze %14 : memref<1x!tpu.dma_semaphore, #tpu.memory_space<semaphore_mem>> -> memref<!tpu.dma_semaphore, #tpu.memory_space<semaphore_mem>>
    tpu.enqueue_dma source(%arg4 : memref<1024x256xbf16, #tpu.memory_space<any>>) target(%13 : memref<1024x256xbf16, #tpu.memory_space<vmem>>) target_semaphore(%15 : memref<!tpu.dma_semaphore, #tpu.memory_space<semaphore_mem>>)
    %c0 = arith.constant 0 : index
    %c0_12 = arith.constant 0 : index
    %16 = vector.load %arg0[%c0, %c0_12] : memref<128x256xbf16, #tpu.memory_space<vmem>>, vector<128x256xbf16>
    %c0_13 = arith.constant 0 : index
    %c0_14 = arith.constant 0 : index
    %17 = vector.load %arg5[%c0_13, %c0_14] : memref<64x128xbf16, #tpu.memory_space<vmem>>, vector<64x128xbf16>
    %c0_15 = arith.constant 0 : index
    %c0_16 = arith.constant 0 : index
    %18 = vector.load %arg6[%c0_15, %c0_16] : memref<64x128xbf16, #tpu.memory_space<vmem>>, vector<64x128xbf16>
    %cst = arith.constant dense<0.000000e+00> : vector<64x256xf32>
    %19 = tpu.matmul %17, %16, %cst {dimension_numbers = #tpu.dot_dimension_numbers<[1], [0], [0], [1], [0, 0, 1, 1], [], []>} : vector<64x128xbf16>, vector<128x256xbf16>, vector<64x256xf32> -> vector<64x256xf32>
    %cst_17 = arith.constant dense<0.000000e+00> : vector<64x256xf32>
    %20 = tpu.matmul %18, %16, %cst_17 {dimension_numbers = #tpu.dot_dimension_numbers<[1], [0], [0], [1], [0, 0, 1, 1], [], []>} : vector<64x128xbf16>, vector<128x256xbf16>, vector<64x256xf32> -> vector<64x256xf32>
    %21 = tpu.iota {dimensions = array<i32: 0>} : vector<64x256xi32>
    %c32_i32 = arith.constant 32 : i32
    %c0_i32_18 = arith.constant 0 : i32
    %22 = arith.cmpi eq, %c32_i32, %c0_i32_18 : i32
    %c1_i32_19 = arith.constant 1 : i32
    %23 = arith.select %22, %c1_i32_19, %c32_i32 : i32
    %24 = vector.broadcast %23 : i32 to vector<64x256xi32>
    %25 = arith.remsi %21, %24 : vector<64x256xi32>
    %c0_i32_20 = arith.constant 0 : i32
    %26 = vector.broadcast %c0_i32_20 : i32 to vector<64x256xi32>
    %27 = arith.cmpi ne, %25, %26 : vector<64x256xi32>
    %c0_i32_21 = arith.constant 0 : i32
    %28 = vector.broadcast %c0_i32_21 : i32 to vector<64x256xi32>
    %29 = arith.cmpi slt, %25, %28 : vector<64x256xi32>
    %c0_i32_22 = arith.constant 0 : i32
    %30 = arith.cmpi slt, %23, %c0_i32_22 : i32
    %31 = vector.broadcast %30 : i1 to vector<64x256xi1>
    %32 = vector.broadcast %31 : vector<64x256xi1> to vector<64x256xi1>
    %33 = arith.xori %29, %32 : vector<64x256xi1>
    %34 = arith.andi %33, %27 : vector<64x256xi1>
    %35 = vector.broadcast %23 : i32 to vector<64x256xi32>
    %36 = arith.addi %25, %35 : vector<64x256xi32>
    %37 = arith.select %34, %36, %25 : vector<64x256xi1>, vector<64x256xi32>
    %c0_i32_23 = arith.constant 0 : i32
    %38 = vector.broadcast %c0_i32_23 : i32 to vector<64x256xi32>
    %39 = arith.cmpi eq, %37, %38 : vector<64x256xi32>
    %40 = vector.extract_strided_slice %20 {offsets = [63, 0], sizes = [1, 256], strides = [1, 1]} : vector<64x256xf32> to vector<1x256xf32>
    %41 = vector.extract_strided_slice %20 {offsets = [0, 0], sizes = [63, 256], strides = [1, 1]} : vector<64x256xf32> to vector<63x256xf32>
    %42 = tpu.concatenate %40, %41 in 0 : vector<1x256xf32>, vector<63x256xf32> -> vector<64x256xf32>
    %cst_24 = arith.constant 0.000000e+00 : f32
    %43 = vector.broadcast %cst_24 : f32 to vector<64x256xf32>
    %44 = arith.select %39, %43, %42 : vector<64x256xi1>, vector<64x256xf32>
    %c32_i32_25 = arith.constant 32 : i32
    %c0_i32_26 = arith.constant 0 : i32
    %45 = arith.cmpi eq, %c32_i32_25, %c0_i32_26 : i32
    %c1_i32_27 = arith.constant 1 : i32
    %46 = arith.select %45, %c1_i32_27, %c32_i32_25 : i32
    %47 = vector.broadcast %46 : i32 to vector<64x256xi32>
    %48 = arith.remsi %21, %47 : vector<64x256xi32>
    %c0_i32_28 = arith.constant 0 : i32
    %49 = vector.broadcast %c0_i32_28 : i32 to vector<64x256xi32>
    %50 = arith.cmpi ne, %48, %49 : vector<64x256xi32>
    %c0_i32_29 = arith.constant 0 : i32
    %51 = vector.broadcast %c0_i32_29 : i32 to vector<64x256xi32>
    %52 = arith.cmpi slt, %48, %51 : vector<64x256xi32>
    %c0_i32_30 = arith.constant 0 : i32
    %53 = arith.cmpi slt, %46, %c0_i32_30 : i32
    %54 = vector.broadcast %53 : i1 to vector<64x256xi1>
    %55 = vector.broadcast %54 : vector<64x256xi1> to vector<64x256xi1>
    %56 = arith.xori %52, %55 : vector<64x256xi1>
    %57 = arith.andi %56, %50 : vector<64x256xi1>
    %58 = vector.broadcast %46 : i32 to vector<64x256xi32>
    %59 = arith.addi %48, %58 : vector<64x256xi32>
    %60 = arith.select %57, %59, %48 : vector<64x256xi1>, vector<64x256xi32>
    %c31_i32 = arith.constant 31 : i32
    %61 = vector.broadcast %c31_i32 : i32 to vector<64x256xi32>
    %62 = arith.cmpi eq, %60, %61 : vector<64x256xi32>
    %63 = vector.extract_strided_slice %19 {offsets = [1, 0], sizes = [63, 256], strides = [1, 1]} : vector<64x256xf32> to vector<63x256xf32>
    %64 = vector.extract_strided_slice %19 {offsets = [0, 0], sizes = [1, 256], strides = [1, 1]} : vector<64x256xf32> to vector<1x256xf32>
    %65 = tpu.concatenate %63, %64 in 0 : vector<63x256xf32>, vector<1x256xf32> -> vector<64x256xf32>
    %cst_31 = arith.constant 0.000000e+00 : f32
    %66 = vector.broadcast %cst_31 : f32 to vector<64x256xf32>
    %67 = arith.select %62, %66, %65 : vector<64x256xi1>, vector<64x256xf32>
    %68 = arith.truncf %44 : vector<64x256xf32> to vector<64x256xbf16>
    %69 = arith.truncf %19 : vector<64x256xf32> to vector<64x256xbf16>
    %70 = arith.truncf %20 : vector<64x256xf32> to vector<64x256xbf16>
    %71 = arith.truncf %67 : vector<64x256xf32> to vector<64x256xbf16>
    %72 = tpu.concatenate %68, %69, %70, %71 in 1 : vector<64x256xbf16>, vector<64x256xbf16>, vector<64x256xbf16>, vector<64x256xbf16> -> vector<64x1024xbf16>
    %c0_i32_32 = arith.constant 0 : i32
    %c0_i32_33 = arith.constant 0 : i32
    %c0_i32_34 = arith.constant 0 : i32
    %c0_i32_35 = arith.constant 0 : i32
    %73 = tpu.memref_slice %arg25[%c0_i32_32, %c0_i32_34, %c0_i32_35] : memref<4x1024x256xbf16, #tpu.memory_space<vmem>> -> memref<1x1024x256xbf16, #tpu.memory_space<vmem>>
    %74 = tpu.memref_squeeze %73 : memref<1x1024x256xbf16, #tpu.memory_space<vmem>> -> memref<1024x256xbf16, #tpu.memory_space<vmem>>
    %75 = tpu.memref_slice %arg26[%c0_i32_33] : memref<4x!tpu.dma_semaphore, #tpu.memory_space<semaphore_mem>> -> memref<1x!tpu.dma_semaphore, #tpu.memory_space<semaphore_mem>>
    %76 = tpu.memref_squeeze %75 : memref<1x!tpu.dma_semaphore, #tpu.memory_space<semaphore_mem>> -> memref<!tpu.dma_semaphore, #tpu.memory_space<semaphore_mem>>
    tpu.wait_dma2 semaphore(%76 : memref<!tpu.dma_semaphore, #tpu.memory_space<semaphore_mem>>) src(%arg1 : memref<1024x256xbf16, #tpu.memory_space<any>>) dst(%74 : memref<1024x256xbf16, #tpu.memory_space<vmem>>)
    %c0_36 = arith.constant 0 : index
    %c0_37 = arith.constant 0 : index
    %c0_38 = arith.constant 0 : index
    %77 = vector.load %arg25[%c0_36, %c0_37, %c0_38] : memref<4x1024x256xbf16, #tpu.memory_space<vmem>>, vector<1x1024x256xbf16>
    %78 = vector.shape_cast %77 : vector<1x1024x256xbf16> to vector<1024x256xbf16>
    %cst_39 = arith.constant dense<0.000000e+00> : vector<64x256xf32>
    %79 = tpu.matmul %72, %78, %cst_39 {dimension_numbers = #tpu.dot_dimension_numbers<[1], [0], [0], [1], [0, 0, 1, 1], [], []>} : vector<64x1024xbf16>, vector<1024x256xbf16>, vector<64x256xf32> -> vector<64x256xf32>
    %cst_40 = arith.constant 0.000000e+00 : f32
    %80 = vector.broadcast %cst_40 : f32 to vector<64x256xf32>
    %81 = arith.cmpf ogt, %79, %80 : vector<64x256xf32>
    %cst_41 = arith.constant 2.000000e-01 : f32
    %82 = vector.broadcast %cst_41 : f32 to vector<64x256xf32>
    %83 = arith.mulf %82, %79 : vector<64x256xf32>
    %84 = arith.select %81, %79, %83 : vector<64x256xi1>, vector<64x256xf32>
    %85 = arith.truncf %84 : vector<64x256xf32> to vector<64x256xbf16>
    %c0_42 = arith.constant 0 : index
    %c0_43 = arith.constant 0 : index
    %86 = vector.load %arg7[%c0_42, %c0_43] : memref<32x64xbf16, #tpu.memory_space<vmem>>, vector<32x64xbf16>
    %c0_44 = arith.constant 0 : index
    %c0_45 = arith.constant 0 : index
    %87 = vector.load %arg8[%c0_44, %c0_45] : memref<32x64xbf16, #tpu.memory_space<vmem>>, vector<32x64xbf16>
    %cst_46 = arith.constant dense<0.000000e+00> : vector<32x256xf32>
    %88 = tpu.matmul %86, %85, %cst_46 {dimension_numbers = #tpu.dot_dimension_numbers<[1], [0], [0], [1], [0, 0, 1, 1], [], []>} : vector<32x64xbf16>, vector<64x256xbf16>, vector<32x256xf32> -> vector<32x256xf32>
    %cst_47 = arith.constant dense<0.000000e+00> : vector<32x256xf32>
    %89 = tpu.matmul %87, %85, %cst_47 {dimension_numbers = #tpu.dot_dimension_numbers<[1], [0], [0], [1], [0, 0, 1, 1], [], []>} : vector<32x64xbf16>, vector<64x256xbf16>, vector<32x256xf32> -> vector<32x256xf32>
    %90 = tpu.iota {dimensions = array<i32: 0>} : vector<32x256xi32>
    %c16_i32 = arith.constant 16 : i32
    %c0_i32_48 = arith.constant 0 : i32
    %91 = arith.cmpi eq, %c16_i32, %c0_i32_48 : i32
    %c1_i32_49 = arith.constant 1 : i32
    %92 = arith.select %91, %c1_i32_49, %c16_i32 : i32
    %93 = vector.broadcast %92 : i32 to vector<32x256xi32>
    %94 = arith.remsi %90, %93 : vector<32x256xi32>
    %c0_i32_50 = arith.constant 0 : i32
    %95 = vector.broadcast %c0_i32_50 : i32 to vector<32x256xi32>
    %96 = arith.cmpi ne, %94, %95 : vector<32x256xi32>
    %c0_i32_51 = arith.constant 0 : i32
    %97 = vector.broadcast %c0_i32_51 : i32 to vector<32x256xi32>
    %98 = arith.cmpi slt, %94, %97 : vector<32x256xi32>
    %c0_i32_52 = arith.constant 0 : i32
    %99 = arith.cmpi slt, %92, %c0_i32_52 : i32
    %100 = vector.broadcast %99 : i1 to vector<32x256xi1>
    %101 = vector.broadcast %100 : vector<32x256xi1> to vector<32x256xi1>
    %102 = arith.xori %98, %101 : vector<32x256xi1>
    %103 = arith.andi %102, %96 : vector<32x256xi1>
    %104 = vector.broadcast %92 : i32 to vector<32x256xi32>
    %105 = arith.addi %94, %104 : vector<32x256xi32>
    %106 = arith.select %103, %105, %94 : vector<32x256xi1>, vector<32x256xi32>
    %c0_i32_53 = arith.constant 0 : i32
    %107 = vector.broadcast %c0_i32_53 : i32 to vector<32x256xi32>
    %108 = arith.cmpi eq, %106, %107 : vector<32x256xi32>
    %109 = vector.extract_strided_slice %89 {offsets = [31, 0], sizes = [1, 256], strides = [1, 1]} : vector<32x256xf32> to vector<1x256xf32>
    %110 = vector.extract_strided_slice %89 {offsets = [0, 0], sizes = [31, 256], strides = [1, 1]} : vector<32x256xf32> to vector<31x256xf32>
    %111 = tpu.concatenate %109, %110 in 0 : vector<1x256xf32>, vector<31x256xf32> -> vector<32x256xf32>
    %cst_54 = arith.constant 0.000000e+00 : f32
    %112 = vector.broadcast %cst_54 : f32 to vector<32x256xf32>
    %113 = arith.select %108, %112, %111 : vector<32x256xi1>, vector<32x256xf32>
    %c16_i32_55 = arith.constant 16 : i32
    %c0_i32_56 = arith.constant 0 : i32
    %114 = arith.cmpi eq, %c16_i32_55, %c0_i32_56 : i32
    %c1_i32_57 = arith.constant 1 : i32
    %115 = arith.select %114, %c1_i32_57, %c16_i32_55 : i32
    %116 = vector.broadcast %115 : i32 to vector<32x256xi32>
    %117 = arith.remsi %90, %116 : vector<32x256xi32>
    %c0_i32_58 = arith.constant 0 : i32
    %118 = vector.broadcast %c0_i32_58 : i32 to vector<32x256xi32>
    %119 = arith.cmpi ne, %117, %118 : vector<32x256xi32>
    %c0_i32_59 = arith.constant 0 : i32
    %120 = vector.broadcast %c0_i32_59 : i32 to vector<32x256xi32>
    %121 = arith.cmpi slt, %117, %120 : vector<32x256xi32>
    %c0_i32_60 = arith.constant 0 : i32
    %122 = arith.cmpi slt, %115, %c0_i32_60 : i32
    %123 = vector.broadcast %122 : i1 to vector<32x256xi1>
    %124 = vector.broadcast %123 : vector<32x256xi1> to vector<32x256xi1>
    %125 = arith.xori %121, %124 : vector<32x256xi1>
    %126 = arith.andi %125, %119 : vector<32x256xi1>
    %127 = vector.broadcast %115 : i32 to vector<32x256xi32>
    %128 = arith.addi %117, %127 : vector<32x256xi32>
    %129 = arith.select %126, %128, %117 : vector<32x256xi1>, vector<32x256xi32>
    %c15_i32 = arith.constant 15 : i32
    %130 = vector.broadcast %c15_i32 : i32 to vector<32x256xi32>
    %131 = arith.cmpi eq, %129, %130 : vector<32x256xi32>
    %132 = vector.extract_strided_slice %88 {offsets = [1, 0], sizes = [31, 256], strides = [1, 1]} : vector<32x256xf32> to vector<31x256xf32>
    %133 = vector.extract_strided_slice %88 {offsets = [0, 0], sizes = [1, 256], strides = [1, 1]} : vector<32x256xf32> to vector<1x256xf32>
    %134 = tpu.concatenate %132, %133 in 0 : vector<31x256xf32>, vector<1x256xf32> -> vector<32x256xf32>
    %cst_61 = arith.constant 0.000000e+00 : f32
    %135 = vector.broadcast %cst_61 : f32 to vector<32x256xf32>
    %136 = arith.select %131, %135, %134 : vector<32x256xi1>, vector<32x256xf32>
    %137 = arith.truncf %113 : vector<32x256xf32> to vector<32x256xbf16>
    %138 = arith.truncf %88 : vector<32x256xf32> to vector<32x256xbf16>
    %139 = arith.truncf %89 : vector<32x256xf32> to vector<32x256xbf16>
    %140 = arith.truncf %136 : vector<32x256xf32> to vector<32x256xbf16>
    %141 = tpu.concatenate %137, %138, %139, %140 in 1 : vector<32x256xbf16>, vector<32x256xbf16>, vector<32x256xbf16>, vector<32x256xbf16> -> vector<32x1024xbf16>
    %c1_i32_62 = arith.constant 1 : i32
    %c1_i32_63 = arith.constant 1 : i32
    %c0_i32_64 = arith.constant 0 : i32
    %c0_i32_65 = arith.constant 0 : i32
    %142 = tpu.memref_slice %arg25[%c1_i32_62, %c0_i32_64, %c0_i32_65] : memref<4x1024x256xbf16, #tpu.memory_space<vmem>> -> memref<1x1024x256xbf16, #tpu.memory_space<vmem>>
    %143 = tpu.memref_squeeze %142 : memref<1x1024x256xbf16, #tpu.memory_space<vmem>> -> memref<1024x256xbf16, #tpu.memory_space<vmem>>
    %144 = tpu.memref_slice %arg26[%c1_i32_63] : memref<4x!tpu.dma_semaphore, #tpu.memory_space<semaphore_mem>> -> memref<1x!tpu.dma_semaphore, #tpu.memory_space<semaphore_mem>>
    %145 = tpu.memref_squeeze %144 : memref<1x!tpu.dma_semaphore, #tpu.memory_space<semaphore_mem>> -> memref<!tpu.dma_semaphore, #tpu.memory_space<semaphore_mem>>
    tpu.wait_dma2 semaphore(%145 : memref<!tpu.dma_semaphore, #tpu.memory_space<semaphore_mem>>) src(%arg2 : memref<1024x256xbf16, #tpu.memory_space<any>>) dst(%143 : memref<1024x256xbf16, #tpu.memory_space<vmem>>)
    %c1 = arith.constant 1 : index
    %c0_66 = arith.constant 0 : index
    %c0_67 = arith.constant 0 : index
    %146 = vector.load %arg25[%c1, %c0_66, %c0_67] : memref<4x1024x256xbf16, #tpu.memory_space<vmem>>, vector<1x1024x256xbf16>
    %147 = vector.shape_cast %146 : vector<1x1024x256xbf16> to vector<1024x256xbf16>
    %cst_68 = arith.constant dense<0.000000e+00> : vector<32x256xf32>
    %148 = tpu.matmul %141, %147, %cst_68 {dimension_numbers = #tpu.dot_dimension_numbers<[1], [0], [0], [1], [0, 0, 1, 1], [], []>} : vector<32x1024xbf16>, vector<1024x256xbf16>, vector<32x256xf32> -> vector<32x256xf32>
    %cst_69 = arith.constant dense<0.000000e+00> : vector<256xf32>
    %149 = vector.multi_reduction <add>, %148, %cst_69 [0] : vector<32x256xf32> to vector<256xf32>
    %150 = vector.shape_cast %149 : vector<256xf32> to vector<1x256xf32>
    %151 = arith.mulf %148, %148 : vector<32x256xf32>
    %cst_70 = arith.constant dense<0.000000e+00> : vector<256xf32>
    %152 = vector.multi_reduction <add>, %151, %cst_70 [0] : vector<32x256xf32> to vector<256xf32>
    %153 = vector.shape_cast %152 : vector<256xf32> to vector<1x256xf32>
    %154 = tpu.concatenate %150, %153 in 0 : vector<1x256xf32>, vector<1x256xf32> -> vector<2x256xf32>
    %c0_71 = arith.constant 0 : index
    %c0_72 = arith.constant 0 : index
    %155 = vector.load %arg9[%c0_71, %c0_72] : memref<256x256xf32, #tpu.memory_space<vmem>>, vector<256x256xf32>
    %cst_73 = arith.constant dense<0.000000e+00> : vector<2x256xf32>
    %156 = tpu.matmul %154, %155, %cst_73 {dimension_numbers = #tpu.dot_dimension_numbers<[1], [0], [0], [1], [0, 0, 1, 1], [], []>} : vector<2x256xf32>, vector<256x256xf32>, vector<2x256xf32> -> vector<2x256xf32>
    %157 = vector.extract_strided_slice %156 {offsets = [0, 0], sizes = [1, 256], strides = [1, 1]} : vector<2x256xf32> to vector<1x256xf32>
    %158 = vector.extract_strided_slice %156 {offsets = [1, 0], sizes = [1, 256], strides = [1, 1]} : vector<2x256xf32> to vector<1x256xf32>
    %159 = arith.mulf %157, %157 : vector<1x256xf32>
    %160 = arith.subf %158, %159 : vector<1x256xf32>
    %c0_74 = arith.constant 0 : index
    %c0_75 = arith.constant 0 : index
    %161 = vector.load %arg10[%c0_74, %c0_75] : memref<1x256xf32, #tpu.memory_space<vmem>>, vector<1x256xf32>
    %cst_76 = arith.constant 9.99999974E-6 : f32
    %162 = vector.broadcast %cst_76 : f32 to vector<1x256xf32>
    %163 = arith.addf %160, %162 : vector<1x256xf32>
    %164 = math.rsqrt %163 : vector<1x256xf32>
    %165 = arith.mulf %161, %164 : vector<1x256xf32>
    %c0_77 = arith.constant 0 : index
    %c0_78 = arith.constant 0 : index
    %166 = vector.load %arg11[%c0_77, %c0_78] : memref<1x256xf32, #tpu.memory_space<vmem>>, vector<1x256xf32>
    %167 = arith.mulf %157, %165 : vector<1x256xf32>
    %168 = arith.subf %166, %167 : vector<1x256xf32>
    %169 = vector.broadcast %165 : vector<1x256xf32> to vector<32x256xf32>
    %170 = arith.mulf %148, %169 : vector<32x256xf32>
    %171 = vector.broadcast %168 : vector<1x256xf32> to vector<32x256xf32>
    %172 = arith.addf %170, %171 : vector<32x256xf32>
    %cst_79 = arith.constant 0.000000e+00 : f32
    %173 = vector.broadcast %cst_79 : f32 to vector<32x256xf32>
    %174 = arith.cmpf ogt, %172, %173 : vector<32x256xf32>
    %cst_80 = arith.constant 2.000000e-01 : f32
    %175 = vector.broadcast %cst_80 : f32 to vector<32x256xf32>
    %176 = arith.mulf %175, %172 : vector<32x256xf32>
    %177 = arith.select %174, %172, %176 : vector<32x256xi1>, vector<32x256xf32>
    %178 = arith.truncf %177 : vector<32x256xf32> to vector<32x256xbf16>
    %c0_81 = arith.constant 0 : index
    %c0_82 = arith.constant 0 : index
    %179 = vector.load %arg12[%c0_81, %c0_82] : memref<16x32xbf16, #tpu.memory_space<vmem>>, vector<16x32xbf16>
    %c0_83 = arith.constant 0 : index
    %c0_84 = arith.constant 0 : index
    %180 = vector.load %arg13[%c0_83, %c0_84] : memref<16x32xbf16, #tpu.memory_space<vmem>>, vector<16x32xbf16>
    %cst_85 = arith.constant dense<0.000000e+00> : vector<16x256xf32>
    %181 = tpu.matmul %179, %178, %cst_85 {dimension_numbers = #tpu.dot_dimension_numbers<[1], [0], [0], [1], [0, 0, 1, 1], [], []>} : vector<16x32xbf16>, vector<32x256xbf16>, vector<16x256xf32> -> vector<16x256xf32>
    %cst_86 = arith.constant dense<0.000000e+00> : vector<16x256xf32>
    %182 = tpu.matmul %180, %178, %cst_86 {dimension_numbers = #tpu.dot_dimension_numbers<[1], [0], [0], [1], [0, 0, 1, 1], [], []>} : vector<16x32xbf16>, vector<32x256xbf16>, vector<16x256xf32> -> vector<16x256xf32>
    %183 = tpu.iota {dimensions = array<i32: 0>} : vector<16x256xi32>
    %c8_i32 = arith.constant 8 : i32
    %c0_i32_87 = arith.constant 0 : i32
    %184 = arith.cmpi eq, %c8_i32, %c0_i32_87 : i32
    %c1_i32_88 = arith.constant 1 : i32
    %185 = arith.select %184, %c1_i32_88, %c8_i32 : i32
    %186 = vector.broadcast %185 : i32 to vector<16x256xi32>
    %187 = arith.remsi %183, %186 : vector<16x256xi32>
    %c0_i32_89 = arith.constant 0 : i32
    %188 = vector.broadcast %c0_i32_89 : i32 to vector<16x256xi32>
    %189 = arith.cmpi ne, %187, %188 : vector<16x256xi32>
    %c0_i32_90 = arith.constant 0 : i32
    %190 = vector.broadcast %c0_i32_90 : i32 to vector<16x256xi32>
    %191 = arith.cmpi slt, %187, %190 : vector<16x256xi32>
    %c0_i32_91 = arith.constant 0 : i32
    %192 = arith.cmpi slt, %185, %c0_i32_91 : i32
    %193 = vector.broadcast %192 : i1 to vector<16x256xi1>
    %194 = vector.broadcast %193 : vector<16x256xi1> to vector<16x256xi1>
    %195 = arith.xori %191, %194 : vector<16x256xi1>
    %196 = arith.andi %195, %189 : vector<16x256xi1>
    %197 = vector.broadcast %185 : i32 to vector<16x256xi32>
    %198 = arith.addi %187, %197 : vector<16x256xi32>
    %199 = arith.select %196, %198, %187 : vector<16x256xi1>, vector<16x256xi32>
    %c0_i32_92 = arith.constant 0 : i32
    %200 = vector.broadcast %c0_i32_92 : i32 to vector<16x256xi32>
    %201 = arith.cmpi eq, %199, %200 : vector<16x256xi32>
    %202 = vector.extract_strided_slice %182 {offsets = [15, 0], sizes = [1, 256], strides = [1, 1]} : vector<16x256xf32> to vector<1x256xf32>
    %203 = vector.extract_strided_slice %182 {offsets = [0, 0], sizes = [15, 256], strides = [1, 1]} : vector<16x256xf32> to vector<15x256xf32>
    %204 = tpu.concatenate %202, %203 in 0 : vector<1x256xf32>, vector<15x256xf32> -> vector<16x256xf32>
    %cst_93 = arith.constant 0.000000e+00 : f32
    %205 = vector.broadcast %cst_93 : f32 to vector<16x256xf32>
    %206 = arith.select %201, %205, %204 : vector<16x256xi1>, vector<16x256xf32>
    %c8_i32_94 = arith.constant 8 : i32
    %c0_i32_95 = arith.constant 0 : i32
    %207 = arith.cmpi eq, %c8_i32_94, %c0_i32_95 : i32
    %c1_i32_96 = arith.constant 1 : i32
    %208 = arith.select %207, %c1_i32_96, %c8_i32_94 : i32
    %209 = vector.broadcast %208 : i32 to vector<16x256xi32>
    %210 = arith.remsi %183, %209 : vector<16x256xi32>
    %c0_i32_97 = arith.constant 0 : i32
    %211 = vector.broadcast %c0_i32_97 : i32 to vector<16x256xi32>
    %212 = arith.cmpi ne, %210, %211 : vector<16x256xi32>
    %c0_i32_98 = arith.constant 0 : i32
    %213 = vector.broadcast %c0_i32_98 : i32 to vector<16x256xi32>
    %214 = arith.cmpi slt, %210, %213 : vector<16x256xi32>
    %c0_i32_99 = arith.constant 0 : i32
    %215 = arith.cmpi slt, %208, %c0_i32_99 : i32
    %216 = vector.broadcast %215 : i1 to vector<16x256xi1>
    %217 = vector.broadcast %216 : vector<16x256xi1> to vector<16x256xi1>
    %218 = arith.xori %214, %217 : vector<16x256xi1>
    %219 = arith.andi %218, %212 : vector<16x256xi1>
    %220 = vector.broadcast %208 : i32 to vector<16x256xi32>
    %221 = arith.addi %210, %220 : vector<16x256xi32>
    %222 = arith.select %219, %221, %210 : vector<16x256xi1>, vector<16x256xi32>
    %c7_i32 = arith.constant 7 : i32
    %223 = vector.broadcast %c7_i32 : i32 to vector<16x256xi32>
    %224 = arith.cmpi eq, %222, %223 : vector<16x256xi32>
    %225 = vector.extract_strided_slice %181 {offsets = [1, 0], sizes = [15, 256], strides = [1, 1]} : vector<16x256xf32> to vector<15x256xf32>
    %226 = vector.extract_strided_slice %181 {offsets = [0, 0], sizes = [1, 256], strides = [1, 1]} : vector<16x256xf32> to vector<1x256xf32>
    %227 = tpu.concatenate %225, %226 in 0 : vector<15x256xf32>, vector<1x256xf32> -> vector<16x256xf32>
    %cst_100 = arith.constant 0.000000e+00 : f32
    %228 = vector.broadcast %cst_100 : f32 to vector<16x256xf32>
    %229 = arith.select %224, %228, %227 : vector<16x256xi1>, vector<16x256xf32>
    %230 = arith.truncf %206 : vector<16x256xf32> to vector<16x256xbf16>
    %231 = arith.truncf %181 : vector<16x256xf32> to vector<16x256xbf16>
    %232 = arith.truncf %182 : vector<16x256xf32> to vector<16x256xbf16>
    %233 = arith.truncf %229 : vector<16x256xf32> to vector<16x256xbf16>
    %234 = tpu.concatenate %230, %231, %232, %233 in 1 : vector<16x256xbf16>, vector<16x256xbf16>, vector<16x256xbf16>, vector<16x256xbf16> -> vector<16x1024xbf16>
    %c2_i32_101 = arith.constant 2 : i32
    %c2_i32_102 = arith.constant 2 : i32
    %c0_i32_103 = arith.constant 0 : i32
    %c0_i32_104 = arith.constant 0 : i32
    %235 = tpu.memref_slice %arg25[%c2_i32_101, %c0_i32_103, %c0_i32_104] : memref<4x1024x256xbf16, #tpu.memory_space<vmem>> -> memref<1x1024x256xbf16, #tpu.memory_space<vmem>>
    %236 = tpu.memref_squeeze %235 : memref<1x1024x256xbf16, #tpu.memory_space<vmem>> -> memref<1024x256xbf16, #tpu.memory_space<vmem>>
    %237 = tpu.memref_slice %arg26[%c2_i32_102] : memref<4x!tpu.dma_semaphore, #tpu.memory_space<semaphore_mem>> -> memref<1x!tpu.dma_semaphore, #tpu.memory_space<semaphore_mem>>
    %238 = tpu.memref_squeeze %237 : memref<1x!tpu.dma_semaphore, #tpu.memory_space<semaphore_mem>> -> memref<!tpu.dma_semaphore, #tpu.memory_space<semaphore_mem>>
    tpu.wait_dma2 semaphore(%238 : memref<!tpu.dma_semaphore, #tpu.memory_space<semaphore_mem>>) src(%arg3 : memref<1024x256xbf16, #tpu.memory_space<any>>) dst(%236 : memref<1024x256xbf16, #tpu.memory_space<vmem>>)
    %c2 = arith.constant 2 : index
    %c0_105 = arith.constant 0 : index
    %c0_106 = arith.constant 0 : index
    %239 = vector.load %arg25[%c2, %c0_105, %c0_106] : memref<4x1024x256xbf16, #tpu.memory_space<vmem>>, vector<1x1024x256xbf16>
    %240 = vector.shape_cast %239 : vector<1x1024x256xbf16> to vector<1024x256xbf16>
    %cst_107 = arith.constant dense<0.000000e+00> : vector<16x256xf32>
    %241 = tpu.matmul %234, %240, %cst_107 {dimension_numbers = #tpu.dot_dimension_numbers<[1], [0], [0], [1], [0, 0, 1, 1], [], []>} : vector<16x1024xbf16>, vector<1024x256xbf16>, vector<16x256xf32> -> vector<16x256xf32>
    %cst_108 = arith.constant dense<0.000000e+00> : vector<256xf32>
    %242 = vector.multi_reduction <add>, %241, %cst_108 [0] : vector<16x256xf32> to vector<256xf32>
    %243 = vector.shape_cast %242 : vector<256xf32> to vector<1x256xf32>
    %244 = arith.mulf %241, %241 : vector<16x256xf32>
    %cst_109 = arith.constant dense<0.000000e+00> : vector<256xf32>
    %245 = vector.multi_reduction <add>, %244, %cst_109 [0] : vector<16x256xf32> to vector<256xf32>
    %246 = vector.shape_cast %245 : vector<256xf32> to vector<1x256xf32>
    %247 = tpu.concatenate %243, %246 in 0 : vector<1x256xf32>, vector<1x256xf32> -> vector<2x256xf32>
    %c0_110 = arith.constant 0 : index
    %c0_111 = arith.constant 0 : index
    %248 = vector.load %arg14[%c0_110, %c0_111] : memref<256x256xf32, #tpu.memory_space<vmem>>, vector<256x256xf32>
    %cst_112 = arith.constant dense<0.000000e+00> : vector<2x256xf32>
    %249 = tpu.matmul %247, %248, %cst_112 {dimension_numbers = #tpu.dot_dimension_numbers<[1], [0], [0], [1], [0, 0, 1, 1], [], []>} : vector<2x256xf32>, vector<256x256xf32>, vector<2x256xf32> -> vector<2x256xf32>
    %250 = vector.extract_strided_slice %249 {offsets = [0, 0], sizes = [1, 256], strides = [1, 1]} : vector<2x256xf32> to vector<1x256xf32>
    %251 = vector.extract_strided_slice %249 {offsets = [1, 0], sizes = [1, 256], strides = [1, 1]} : vector<2x256xf32> to vector<1x256xf32>
    %252 = arith.mulf %250, %250 : vector<1x256xf32>
    %253 = arith.subf %251, %252 : vector<1x256xf32>
    %c0_113 = arith.constant 0 : index
    %c0_114 = arith.constant 0 : index
    %254 = vector.load %arg15[%c0_113, %c0_114] : memref<1x256xf32, #tpu.memory_space<vmem>>, vector<1x256xf32>
    %cst_115 = arith.constant 9.99999974E-6 : f32
    %255 = vector.broadcast %cst_115 : f32 to vector<1x256xf32>
    %256 = arith.addf %253, %255 : vector<1x256xf32>
    %257 = math.rsqrt %256 : vector<1x256xf32>
    %258 = arith.mulf %254, %257 : vector<1x256xf32>
    %c0_116 = arith.constant 0 : index
    %c0_117 = arith.constant 0 : index
    %259 = vector.load %arg16[%c0_116, %c0_117] : memref<1x256xf32, #tpu.memory_space<vmem>>, vector<1x256xf32>
    %260 = arith.mulf %250, %258 : vector<1x256xf32>
    %261 = arith.subf %259, %260 : vector<1x256xf32>
    %262 = vector.broadcast %258 : vector<1x256xf32> to vector<16x256xf32>
    %263 = arith.mulf %241, %262 : vector<16x256xf32>
    %264 = vector.broadcast %261 : vector<1x256xf32> to vector<16x256xf32>
    %265 = arith.addf %263, %264 : vector<16x256xf32>
    %cst_118 = arith.constant 0.000000e+00 : f32
    %266 = vector.broadcast %cst_118 : f32 to vector<16x256xf32>
    %267 = arith.cmpf ogt, %265, %266 : vector<16x256xf32>
    %cst_119 = arith.constant 2.000000e-01 : f32
    %268 = vector.broadcast %cst_119 : f32 to vector<16x256xf32>
    %269 = arith.mulf %268, %265 : vector<16x256xf32>
    %270 = arith.select %267, %265, %269 : vector<16x256xi1>, vector<16x256xf32>
    %271 = arith.truncf %270 : vector<16x256xf32> to vector<16x256xbf16>
    %c0_120 = arith.constant 0 : index
    %c0_121 = arith.constant 0 : index
    %272 = vector.load %arg17[%c0_120, %c0_121] : memref<8x16xbf16, #tpu.memory_space<vmem>>, vector<8x16xbf16>
    %c0_122 = arith.constant 0 : index
    %c0_123 = arith.constant 0 : index
    %273 = vector.load %arg18[%c0_122, %c0_123] : memref<8x16xbf16, #tpu.memory_space<vmem>>, vector<8x16xbf16>
    %cst_124 = arith.constant dense<0.000000e+00> : vector<8x256xf32>
    %274 = tpu.matmul %272, %271, %cst_124 {dimension_numbers = #tpu.dot_dimension_numbers<[1], [0], [0], [1], [0, 0, 1, 1], [], []>} : vector<8x16xbf16>, vector<16x256xbf16>, vector<8x256xf32> -> vector<8x256xf32>
    %cst_125 = arith.constant dense<0.000000e+00> : vector<8x256xf32>
    %275 = tpu.matmul %273, %271, %cst_125 {dimension_numbers = #tpu.dot_dimension_numbers<[1], [0], [0], [1], [0, 0, 1, 1], [], []>} : vector<8x16xbf16>, vector<16x256xbf16>, vector<8x256xf32> -> vector<8x256xf32>
    %276 = tpu.iota {dimensions = array<i32: 0>} : vector<8x256xi32>
    %c4_i32 = arith.constant 4 : i32
    %c0_i32_126 = arith.constant 0 : i32
    %277 = arith.cmpi eq, %c4_i32, %c0_i32_126 : i32
    %c1_i32_127 = arith.constant 1 : i32
    %278 = arith.select %277, %c1_i32_127, %c4_i32 : i32
    %279 = vector.broadcast %278 : i32 to vector<8x256xi32>
    %280 = arith.remsi %276, %279 : vector<8x256xi32>
    %c0_i32_128 = arith.constant 0 : i32
    %281 = vector.broadcast %c0_i32_128 : i32 to vector<8x256xi32>
    %282 = arith.cmpi ne, %280, %281 : vector<8x256xi32>
    %c0_i32_129 = arith.constant 0 : i32
    %283 = vector.broadcast %c0_i32_129 : i32 to vector<8x256xi32>
    %284 = arith.cmpi slt, %280, %283 : vector<8x256xi32>
    %c0_i32_130 = arith.constant 0 : i32
    %285 = arith.cmpi slt, %278, %c0_i32_130 : i32
    %286 = vector.broadcast %285 : i1 to vector<8x256xi1>
    %287 = vector.broadcast %286 : vector<8x256xi1> to vector<8x256xi1>
    %288 = arith.xori %284, %287 : vector<8x256xi1>
    %289 = arith.andi %288, %282 : vector<8x256xi1>
    %290 = vector.broadcast %278 : i32 to vector<8x256xi32>
    %291 = arith.addi %280, %290 : vector<8x256xi32>
    %292 = arith.select %289, %291, %280 : vector<8x256xi1>, vector<8x256xi32>
    %c0_i32_131 = arith.constant 0 : i32
    %293 = vector.broadcast %c0_i32_131 : i32 to vector<8x256xi32>
    %294 = arith.cmpi eq, %292, %293 : vector<8x256xi32>
    %295 = vector.extract_strided_slice %275 {offsets = [7, 0], sizes = [1, 256], strides = [1, 1]} : vector<8x256xf32> to vector<1x256xf32>
    %296 = vector.extract_strided_slice %275 {offsets = [0, 0], sizes = [7, 256], strides = [1, 1]} : vector<8x256xf32> to vector<7x256xf32>
    %297 = tpu.concatenate %295, %296 in 0 : vector<1x256xf32>, vector<7x256xf32> -> vector<8x256xf32>
    %cst_132 = arith.constant 0.000000e+00 : f32
    %298 = vector.broadcast %cst_132 : f32 to vector<8x256xf32>
    %299 = arith.select %294, %298, %297 : vector<8x256xi1>, vector<8x256xf32>
    %c4_i32_133 = arith.constant 4 : i32
    %c0_i32_134 = arith.constant 0 : i32
    %300 = arith.cmpi eq, %c4_i32_133, %c0_i32_134 : i32
    %c1_i32_135 = arith.constant 1 : i32
    %301 = arith.select %300, %c1_i32_135, %c4_i32_133 : i32
    %302 = vector.broadcast %301 : i32 to vector<8x256xi32>
    %303 = arith.remsi %276, %302 : vector<8x256xi32>
    %c0_i32_136 = arith.constant 0 : i32
    %304 = vector.broadcast %c0_i32_136 : i32 to vector<8x256xi32>
    %305 = arith.cmpi ne, %303, %304 : vector<8x256xi32>
    %c0_i32_137 = arith.constant 0 : i32
    %306 = vector.broadcast %c0_i32_137 : i32 to vector<8x256xi32>
    %307 = arith.cmpi slt, %303, %306 : vector<8x256xi32>
    %c0_i32_138 = arith.constant 0 : i32
    %308 = arith.cmpi slt, %301, %c0_i32_138 : i32
    %309 = vector.broadcast %308 : i1 to vector<8x256xi1>
    %310 = vector.broadcast %309 : vector<8x256xi1> to vector<8x256xi1>
    %311 = arith.xori %307, %310 : vector<8x256xi1>
    %312 = arith.andi %311, %305 : vector<8x256xi1>
    %313 = vector.broadcast %301 : i32 to vector<8x256xi32>
    %314 = arith.addi %303, %313 : vector<8x256xi32>
    %315 = arith.select %312, %314, %303 : vector<8x256xi1>, vector<8x256xi32>
    %c3_i32_139 = arith.constant 3 : i32
    %316 = vector.broadcast %c3_i32_139 : i32 to vector<8x256xi32>
    %317 = arith.cmpi eq, %315, %316 : vector<8x256xi32>
    %318 = vector.extract_strided_slice %274 {offsets = [1, 0], sizes = [7, 256], strides = [1, 1]} : vector<8x256xf32> to vector<7x256xf32>
    %319 = vector.extract_strided_slice %274 {offsets = [0, 0], sizes = [1, 256], strides = [1, 1]} : vector<8x256xf32> to vector<1x256xf32>
    %320 = tpu.concatenate %318, %319 in 0 : vector<7x256xf32>, vector<1x256xf32> -> vector<8x256xf32>
    %cst_140 = arith.constant 0.000000e+00 : f32
    %321 = vector.broadcast %cst_140 : f32 to vector<8x256xf32>
    %322 = arith.select %317, %321, %320 : vector<8x256xi1>, vector<8x256xf32>
    %323 = arith.truncf %299 : vector<8x256xf32> to vector<8x256xbf16>
    %324 = arith.truncf %274 : vector<8x256xf32> to vector<8x256xbf16>
    %325 = arith.truncf %275 : vector<8x256xf32> to vector<8x256xbf16>
    %326 = arith.truncf %322 : vector<8x256xf32> to vector<8x256xbf16>
    %327 = tpu.concatenate %323, %324, %325, %326 in 1 : vector<8x256xbf16>, vector<8x256xbf16>, vector<8x256xbf16>, vector<8x256xbf16> -> vector<8x1024xbf16>
    %c3_i32_141 = arith.constant 3 : i32
    %c3_i32_142 = arith.constant 3 : i32
    %c0_i32_143 = arith.constant 0 : i32
    %c0_i32_144 = arith.constant 0 : i32
    %328 = tpu.memref_slice %arg25[%c3_i32_141, %c0_i32_143, %c0_i32_144] : memref<4x1024x256xbf16, #tpu.memory_space<vmem>> -> memref<1x1024x256xbf16, #tpu.memory_space<vmem>>
    %329 = tpu.memref_squeeze %328 : memref<1x1024x256xbf16, #tpu.memory_space<vmem>> -> memref<1024x256xbf16, #tpu.memory_space<vmem>>
    %330 = tpu.memref_slice %arg26[%c3_i32_142] : memref<4x!tpu.dma_semaphore, #tpu.memory_space<semaphore_mem>> -> memref<1x!tpu.dma_semaphore, #tpu.memory_space<semaphore_mem>>
    %331 = tpu.memref_squeeze %330 : memref<1x!tpu.dma_semaphore, #tpu.memory_space<semaphore_mem>> -> memref<!tpu.dma_semaphore, #tpu.memory_space<semaphore_mem>>
    tpu.wait_dma2 semaphore(%331 : memref<!tpu.dma_semaphore, #tpu.memory_space<semaphore_mem>>) src(%arg4 : memref<1024x256xbf16, #tpu.memory_space<any>>) dst(%329 : memref<1024x256xbf16, #tpu.memory_space<vmem>>)
    %c3 = arith.constant 3 : index
    %c0_145 = arith.constant 0 : index
    %c0_146 = arith.constant 0 : index
    %332 = vector.load %arg25[%c3, %c0_145, %c0_146] : memref<4x1024x256xbf16, #tpu.memory_space<vmem>>, vector<1x1024x256xbf16>
    %333 = vector.shape_cast %332 : vector<1x1024x256xbf16> to vector<1024x256xbf16>
    %cst_147 = arith.constant dense<0.000000e+00> : vector<8x256xf32>
    %334 = tpu.matmul %327, %333, %cst_147 {dimension_numbers = #tpu.dot_dimension_numbers<[1], [0], [0], [1], [0, 0, 1, 1], [], []>} : vector<8x1024xbf16>, vector<1024x256xbf16>, vector<8x256xf32> -> vector<8x256xf32>
    %cst_148 = arith.constant dense<0.000000e+00> : vector<256xf32>
    %335 = vector.multi_reduction <add>, %334, %cst_148 [0] : vector<8x256xf32> to vector<256xf32>
    %336 = vector.shape_cast %335 : vector<256xf32> to vector<1x256xf32>
    %337 = arith.mulf %334, %334 : vector<8x256xf32>
    %cst_149 = arith.constant dense<0.000000e+00> : vector<256xf32>
    %338 = vector.multi_reduction <add>, %337, %cst_149 [0] : vector<8x256xf32> to vector<256xf32>
    %339 = vector.shape_cast %338 : vector<256xf32> to vector<1x256xf32>
    %340 = tpu.concatenate %336, %339 in 0 : vector<1x256xf32>, vector<1x256xf32> -> vector<2x256xf32>
    %c0_150 = arith.constant 0 : index
    %c0_151 = arith.constant 0 : index
    %341 = vector.load %arg19[%c0_150, %c0_151] : memref<256x256xf32, #tpu.memory_space<vmem>>, vector<256x256xf32>
    %cst_152 = arith.constant dense<0.000000e+00> : vector<2x256xf32>
    %342 = tpu.matmul %340, %341, %cst_152 {dimension_numbers = #tpu.dot_dimension_numbers<[1], [0], [0], [1], [0, 0, 1, 1], [], []>} : vector<2x256xf32>, vector<256x256xf32>, vector<2x256xf32> -> vector<2x256xf32>
    %343 = vector.extract_strided_slice %342 {offsets = [0, 0], sizes = [1, 256], strides = [1, 1]} : vector<2x256xf32> to vector<1x256xf32>
    %344 = vector.extract_strided_slice %342 {offsets = [1, 0], sizes = [1, 256], strides = [1, 1]} : vector<2x256xf32> to vector<1x256xf32>
    %345 = arith.mulf %343, %343 : vector<1x256xf32>
    %346 = arith.subf %344, %345 : vector<1x256xf32>
    %c0_153 = arith.constant 0 : index
    %c0_154 = arith.constant 0 : index
    %347 = vector.load %arg20[%c0_153, %c0_154] : memref<1x256xf32, #tpu.memory_space<vmem>>, vector<1x256xf32>
    %cst_155 = arith.constant 9.99999974E-6 : f32
    %348 = vector.broadcast %cst_155 : f32 to vector<1x256xf32>
    %349 = arith.addf %346, %348 : vector<1x256xf32>
    %350 = math.rsqrt %349 : vector<1x256xf32>
    %351 = arith.mulf %347, %350 : vector<1x256xf32>
    %c0_156 = arith.constant 0 : index
    %c0_157 = arith.constant 0 : index
    %352 = vector.load %arg21[%c0_156, %c0_157] : memref<1x256xf32, #tpu.memory_space<vmem>>, vector<1x256xf32>
    %353 = arith.mulf %343, %351 : vector<1x256xf32>
    %354 = arith.subf %352, %353 : vector<1x256xf32>
    %355 = vector.broadcast %351 : vector<1x256xf32> to vector<8x256xf32>
    %356 = arith.mulf %334, %355 : vector<8x256xf32>
    %357 = vector.broadcast %354 : vector<1x256xf32> to vector<8x256xf32>
    %358 = arith.addf %356, %357 : vector<8x256xf32>
    %cst_158 = arith.constant 0.000000e+00 : f32
    %359 = vector.broadcast %cst_158 : f32 to vector<8x256xf32>
    %360 = arith.cmpf ogt, %358, %359 : vector<8x256xf32>
    %cst_159 = arith.constant 2.000000e-01 : f32
    %361 = vector.broadcast %cst_159 : f32 to vector<8x256xf32>
    %362 = arith.mulf %361, %358 : vector<8x256xf32>
    %363 = arith.select %360, %358, %362 : vector<8x256xi1>, vector<8x256xf32>
    %364 = arith.truncf %363 : vector<8x256xf32> to vector<8x256xbf16>
    %c0_160 = arith.constant 0 : index
    %c0_161 = arith.constant 0 : index
    %365 = vector.load %arg22[%c0_160, %c0_161] : memref<8x256xf32, #tpu.memory_space<vmem>>, vector<8x256xf32>
    %c0_162 = arith.constant 0 : index
    %c0_163 = arith.constant 0 : index
    %366 = vector.load %arg23[%c0_162, %c0_163] : memref<2x8xf32, #tpu.memory_space<vmem>>, vector<2x8xf32>
    %367 = arith.extf %364 : vector<8x256xbf16> to vector<8x256xf32>
    %368 = arith.mulf %367, %365 : vector<8x256xf32>
    %cst_164 = arith.constant dense<0.000000e+00> : vector<8xf32>
    %369 = vector.multi_reduction <add>, %368, %cst_164 [1] : vector<8x256xf32> to vector<8xf32>
    %370 = vector.shape_cast %369 : vector<8xf32> to vector<8x1xf32>
    %cst_165 = arith.constant dense<0.000000e+00> : vector<2x1xf32>
    %371 = tpu.matmul %366, %370, %cst_165 {dimension_numbers = #tpu.dot_dimension_numbers<[1], [0], [0], [1], [0, 0, 1, 1], [], []>} : vector<2x8xf32>, vector<8x1xf32>, vector<2x1xf32> -> vector<2x1xf32>
    %c0_166 = arith.constant 0 : index
    %c0_167 = arith.constant 0 : index
    %372 = vector.load %arg24[%c0_166, %c0_167] : memref<2x1xf32, #tpu.memory_space<vmem>>, vector<2x1xf32>
    tpu.vector_store %arg24[%c0_166, %c0_167], %371 {strides = array<i32>} : memref<2x1xf32, #tpu.memory_space<vmem>>, vector<2x1xf32>,
    return
  }
}

</mosaic_0001>

<bundles_post_ra>
// kernel: discriminator_forward.1
= control target key start
LH: loop header
LB: loop body
LE: loop exit
PB: predicated region body
PF: predicated region fallthrough
CT: control target
= control target key end

     0   :  { %s11020_s0 = inlined_call_operand.vmem [shape: bf16[128,256], index: 0, kind: input, shape index: {}]   ;;  %s11021_s1 = inlined_call_operand.vmem [shape: bf16[1024,256], index: 1, kind: input, shape index: {}]   ;;  %s11022_s2 = inlined_call_operand.vmem [shape: bf16[1024,256], index: 2, kind: input, shape index: {}]   ;;  %s11023_s3 = inlined_call_operand.hbm [shape: bf16[1024,256], index: 3, kind: input, shape index: {}]   ;;  %s11024_s4 = inlined_call_operand.hbm [shape: bf16[1024,256], index: 4, kind: input, shape index: {}]   ;;  %s11025_s5 = inlined_call_operand.hbm [shape: bf16[64,128], index: 5, kind: input, shape index: {}]   ;;  %s11026_s6 = inlined_call_operand.hbm [shape: bf16[64,128], index: 6, kind: input, shape index: {}]   ;;  %s11027_s7 = inlined_call_operand.hbm [shape: bf16[32,64], index: 7, kind: input, shape index: {}]   ;;  %s11028_s8 = inlined_call_operand.hbm [shape: bf16[32,64], index: 8, kind: input, shape index: {}]   ;;  %s11029_s9 = inlined_call_operand.hbm [shape: f32[256,256], index: 9, kind: input, shape index: {}]   ;;  %s11030_s10 = inlined_call_operand.hbm [shape: f32[1,256], index: 10, kind: input, shape index: {}]   ;;  %s11031_s11 = inlined_call_operand.hbm [shape: f32[1,256], index: 11, kind: input, shape index: {}]   ;;  %s11032_s12 = inlined_call_operand.hbm [shape: bf16[16,32], index: 12, kind: input, shape index: {}]   ;;  %s11033_s13 = inlined_call_operand.hbm [shape: bf16[16,32], index: 13, kind: input, shape index: {}]   ;;  %s11034_s14 = inlined_call_operand.hbm [shape: f32[256,256], index: 14, kind: input, shape index: {}]   ;;  %s11035_s15 = inlined_call_operand.vmem [shape: f32[1,256], index: 15, kind: input, shape index: {}]   ;;  %s11036_s16 = inlined_call_operand.hbm [shape: f32[1,256], index: 16, kind: input, shape index: {}]   ;;  %s11037_s17 = inlined_call_operand.vmem [shape: bf16[8,16], index: 17, kind: input, shape index: {}]   ;;  %s11038_s18 = inlined_call_operand.hbm [shape: bf16[8,16], index: 18, kind: input, shape index: {}]   ;;  %s11039_s19 = inlined_call_operand.hbm [shape: f32[256,256], index: 19, kind: input, shape index: {}]   ;;  %s11040_s20 = inlined_call_operand.hbm [shape: f32[1,256], index: 20, kind: input, shape index: {}]   ;;  %s11041_s21 = inlined_call_operand.hbm [shape: f32[1,256], index: 21, kind: input, shape index: {}]   ;;  %s11042_s22 = inlined_call_operand.vmem [shape: f32[8,256], index: 22, kind: input, shape index: {}]   ;;  %s11043_s23 = inlined_call_operand.hbm [shape: f32[2,8], index: 23, kind: input, shape index: {}]   ;;  %s11044_s24 = inlined_call_operand.vmem [shape: f32[2,1], index: 24, kind: output, shape index: {}]  }
   0x1   :  { %11071 = sst [smem:[#allocation68_spill]] %s11020_s0 }
   0x2   :  { %11072 = sst [smem:[#allocation69_spill]] %s11021_s1 }
   0x3   :  { %11073 = sst [smem:[#allocation70_spill]] %s11022_s2 }
   0x4   :  { %11074 = sst [smem:[#allocation71_spill]] %s11023_s3 }
   0x5   :  { %11075 = sst [smem:[#allocation72_spill]] %s11024_s4 }
   0x6   :  { %11076 = sst [smem:[#allocation73_spill]] %s11025_s5 }
   0x7   :  { %11077 = sst [smem:[#allocation74_spill]] %s11026_s6 }
   0x8   :  { %11078 = sst [smem:[#allocation75_spill]] %s11027_s7 }
   0x9   :  { %11079 = sst [smem:[#allocation76_spill]] %s11028_s8 }
   0xa   :  { %29 = vsyncpa [#allocation5], 0 }
   0xb   :  { %30 = vsyncpa [#allocation7], 0 }
   0xc   :  { %31 = vsyncpa [#allocation10], 0 }
   0xd   :  { %32 = vsyncpa [#allocation13], 0 }
   0xe   :  { %33 = vsyncpa [#allocation16], 0 }
   0xf   :  { %34 = vsyncpa [#allocation19], 0 }
  0x10   :  { %35 = vsyncpa [#allocation22], 0 }
  0x11   :  { %36 = vsyncpa [#allocation25], 0 }
  0x12   :  { %37 = vsyncpa [#allocation28], 0  ;;  %s9002_s5 = smov [#allocation6]   ;;  %s9003_s27 = smov [#allocation9]  }
  0x13   :  { %s57_s26 = sshll.u32 %s9002_s5, 4  ;;  %s81_s28 = sshll.u32 %s9003_s27, 4  ;;  %s58_s26 = int_to_ptr.vmem [resolvable:$true] %s57_s26  ;;  %s82_s28 = int_to_ptr.vmem [resolvable:$true] %s81_s28 }
  0x14   :  { %s8624_s6 = scalar_lea.vmem %s58_s26, 512  ;;  %p8629_p1 = scmp.lt.s32.totalorder %s58_s26, %s58_s26 }
  0x15   :  { %p8625_p0 = scmp.ne.s32.totalorder %s58_s26, %s8624_s6  ;;  %p8630_p2 = scmp.lt.s32.totalorder %s8624_s6, %s8624_s6 }
  0x17   :  { %p8631_p3 = por %p8630_p2, %p8629_p1 }
  0x19   :  { %p8632_p4 = pnand %p8631_p3, %p8625_p0 }
  0x1b   :  { %8635 = shalt.err (!%p8632_p4)
}
  0x1c   :  { %s9004_s2 = smov 64   ;;  %s9005_s29 = smov 4  }
  0x1d   :  { %s11080_s30 = sld [smem:[#allocation74_spill]]  ;;  %s8644_s3 = scalar_lea.vmem %s82_s28, 256 }
  0x1e   :  { %p8645_p5 = scmp.ne.s32.totalorder %s82_s28, %s8644_s3  ;;  %p8649_p6 = scmp.lt.s32.totalorder %s82_s28, %s82_s28 }
  0x1f   :  { %p8650_p7 = scmp.lt.s32.totalorder %s8644_s3, %s8644_s3 }
  0x21   :  { %p8651_p8 = por %p8650_p7, %p8649_p6 }
  0x23   :  { %63 = dma.hbm_to_vmem [thread:$0]  %s11080_s30, 512, %s58_s26, [#allocation7], %s9004_s2, %s9004_s2, %s9005_s29  }
  0x24   :  { %p8652_p9 = pnand %p8651_p8, %p8645_p5 }
  0x26   :  { %8655 = shalt.err (!%p8652_p9)
}
  0x27   :  { %s11081_s4 = sld [smem:[#allocation76_spill]]  ;;  %s9006_s1 = smov [#allocation12]  }
  0x28   :  { %s106_s5 = sshll.u32 %s9006_s1, 4  ;;  %s9007_s27 = smov [#allocation15]   ;;  %s107_s5 = int_to_ptr.vmem [resolvable:$true] %s106_s5 }
  0x29   :  { %s125_s6 = sshll.u32 %s9007_s27, 4  ;;  %s8664_s26 = scalar_lea.vmem %s107_s5, 32  ;;  %s126_s6 = int_to_ptr.vmem [resolvable:$true] %s125_s6 }
  0x2a   :  { %p8665_p10 = scmp.ne.s32.totalorder %s107_s5, %s8664_s26  ;;  %p8669_p11 = scmp.lt.s32.totalorder %s107_s5, %s107_s5 }
  0x2b   :  { %p8670_p12 = scmp.lt.s32.totalorder %s8664_s26, %s8664_s26 }
  0x2d   :  { %87 = dma.hbm_to_vmem [thread:$0]  %s11081_s4, 256, %s82_s28, [#allocation10], %s9004_s2, %s9004_s2, %s9005_s29  }
  0x2e   :  { %p8671_p13 = por %p8670_p12, %p8669_p11 }
  0x30   :  { %p8672_p0 = pnand %p8671_p13, %p8665_p10 }
  0x32   :  { %8675 = shalt.err (!%p8672_p0)
}
  0x33   :  { %109 = dma.hbm_to_vmem [thread:$0]  %s11030_s10, 32, %s107_s5, [#allocation13]  }
  0x34   :  { %s8684_s30 = scalar_lea.vmem %s126_s6, 128  ;;  %p8689_p2 = scmp.lt.s32.totalorder %s126_s6, %s126_s6 }
  0x35   :  { %p8685_p1 = scmp.ne.s32.totalorder %s126_s6, %s8684_s30  ;;  %p8690_p3 = scmp.lt.s32.totalorder %s8684_s30, %s8684_s30 }
  0x37   :  { %p8691_p4 = por %p8690_p3, %p8689_p2 }
  0x39   :  { %p8692_p5 = pnand %p8691_p4, %p8685_p1 }
  0x3b   :  { %8695 = shalt.err (!%p8692_p5)
}
  0x3c   :  { %131 = dma.hbm_to_vmem [thread:$0]  %s11032_s12, 128, %s126_s6, [#allocation16], %s9004_s2, %s9004_s2, %s9005_s29  }
  0x3d   :  { %s9008_s25 = smov [#allocation18]   ;;  %s9009_s4 = smov [#allocation21]  }
  0x3e   :  { %s149_s8 = sshll.u32 %s9008_s25, 4  ;;  %s176_s1 = sshll.u32 %s9009_s4, 4  ;;  %s150_s8 = int_to_ptr.vmem [resolvable:$true] %s149_s8  ;;  %s177_s1 = int_to_ptr.vmem [resolvable:$true] %s176_s1 }
  0x3f   :  { %s8704_s10 = scalar_lea.vmem %s150_s8, 8192  ;;  %p8709_p7 = scmp.lt.s32.totalorder %s150_s8, %s150_s8 }
  0x40   :  { %p8705_p6 = scmp.ne.s32.totalorder %s150_s8, %s8704_s10  ;;  %p8710_p8 = scmp.lt.s32.totalorder %s8704_s10, %s8704_s10 }
  0x42   :  { %p8711_p9 = por %p8710_p8, %p8709_p7 }
  0x44   :  { %p8712_p10 = pnand %p8711_p9, %p8705_p6 }
  0x46   :  { %8715 = shalt.err (!%p8712_p10)
}
  0x47   :  { %s9010_s5 = smov 256   ;;  %s9011_s27 = smov 16  }
  0x48   :  { %155 = dma.hbm_to_vmem [thread:$0]  %s11034_s14, 8192, %s150_s8, [#allocation19], %s9010_s5, %s9010_s5, %s9011_s27  }
  0x49   :  { %s8724_s6 = scalar_lea.vmem %s177_s1, 64  ;;  %p8729_p12 = scmp.lt.s32.totalorder %s177_s1, %s177_s1 }
  0x4a   :  { %p8725_p11 = scmp.ne.s32.totalorder %s177_s1, %s8724_s6  ;;  %p8730_p13 = scmp.lt.s32.totalorder %s8724_s6, %s8724_s6 }
  0x4c   :  { %p8731_p0 = por %p8730_p13, %p8729_p12 }
  0x4e   :  { %p8732_p1 = pnand %p8731_p0, %p8725_p11 }
  0x50   :  { %8735 = shalt.err (!%p8732_p1)
}
  0x51   :  { %179 = dma.hbm_to_vmem [thread:$0]  %s11038_s18, 64, %s177_s1, [#allocation22]  }
  0x52   :  { %s9012_s30 = smov [#allocation24]   ;;  %s9013_s3 = smov [#allocation4]  }
  0x53   :  { %s198_s28 = sshll.u32 %s9012_s30, 4  ;;  %s45_s25 = sshll.u32 %s9013_s3, 4  ;;  %s199_s28 = int_to_ptr.vmem [resolvable:$true] %s198_s28  ;;  %s46_s25 = int_to_ptr.vmem [resolvable:$true] %s45_s25 }
  0x54   :  { %s8744_s4 = scalar_lea.vmem %s199_s28, 32  ;;  %p8749_p3 = scmp.lt.s32.totalorder %s199_s28, %s199_s28 }
  0x55   :  { %p8745_p2 = scmp.ne.s32.totalorder %s199_s28, %s8744_s4  ;;  %p8750_p4 = scmp.lt.s32.totalorder %s8744_s4, %s8744_s4 }
  0x57   :  { %p8751_p5 = por %p8750_p4, %p8749_p3 }
  0x59   :  { %p8752_p6 = pnand %p8751_p5, %p8745_p2 }
  0x5b   :  { %8755 = shalt.err (!%p8752_p6)
}
  0x5c   :  { %201 = dma.hbm_to_vmem [thread:$0]  %s11040_s20, 32, %s199_s28, [#allocation25]  }
  0x5d   :  { %s8764_s10 = scalar_lea.vmem %s46_s25, 512  ;;  %p8769_p8 = scmp.lt.s32.totalorder %s46_s25, %s46_s25 }
  0x5e   :  { %p8765_p7 = scmp.ne.s32.totalorder %s46_s25, %s8764_s10  ;;  %p8770_p9 = scmp.lt.s32.totalorder %s8764_s10, %s8764_s10 }
  0x60   :  { %p8771_p10 = por %p8770_p9, %p8769_p8 }
  0x62   :  { %p8772_p11 = pnand %p8771_p10, %p8765_p7 }
  0x64   :  { %8775 = shalt.err (!%p8772_p11)
}
  0x65   :  { %s11082_s26 = sld [smem:[#allocation73_spill]]  ;;  %s9014_s12 = smov [#allocation8]  }
  0x66   :  { %s69_s6 = sshll.u32 %s9014_s12, 4  ;;  %s9015_s0 = smov [#allocation11]   ;;  %s70_s6 = int_to_ptr.vmem [resolvable:$true] %s69_s6 }
  0x67   :  { %s93_s7 = sshll.u32 %s9015_s0, 4  ;;  %s8784_s20 = scalar_lea.vmem %s70_s6, 256  ;;  %s94_s7 = int_to_ptr.vmem [resolvable:$true] %s93_s7 }
  0x68   :  { %p8785_p12 = scmp.ne.s32.totalorder %s70_s6, %s8784_s20  ;;  %p8789_p13 = scmp.lt.s32.totalorder %s70_s6, %s70_s6 }
  0x69   :  { %p8790_p0 = scmp.lt.s32.totalorder %s8784_s20, %s8784_s20 }
  0x6b   :  { %51 = dma.hbm_to_vmem [thread:$0]  %s11082_s26, 512, %s46_s25, [#allocation5], %s9004_s2, %s9004_s2, %s9005_s29  }
  0x6c   :  { %p8791_p1 = por %p8790_p0, %p8789_p13 }
  0x6e   :  { %p8792_p2 = pnand %p8791_p1, %p8785_p12 }
  0x70   :  { %8795 = shalt.err (!%p8792_p2)
}
  0x71   :  { %s11083_s3 = sld [smem:[#allocation75_spill]]  ;;  %s8804_s25 = scalar_lea.vmem %s94_s7, 8192 }
  0x72   :  { %p8805_p3 = scmp.ne.s32.totalorder %s94_s7, %s8804_s25  ;;  %p8809_p4 = scmp.lt.s32.totalorder %s94_s7, %s94_s7 }
  0x73   :  { %p8810_p5 = scmp.lt.s32.totalorder %s8804_s25, %s8804_s25 }
  0x75   :  { %p8811_p6 = por %p8810_p5, %p8809_p4 }
  0x77   :  { %75 = dma.hbm_to_vmem [thread:$0]  %s11083_s3, 256, %s70_s6, [#allocation7], %s9004_s2, %s9004_s2, %s9005_s29  }
  0x78   :  { %p8812_p7 = pnand %p8811_p6, %p8805_p3 }
  0x7a   :  { %8815 = shalt.err (!%p8812_p7)
}
  0x7b   :  { %99 = dma.hbm_to_vmem [thread:$0]  %s11029_s9, 8192, %s94_s7, [#allocation10], %s9010_s5, %s9010_s5, %s9011_s27  }
  0x7c   :  { %s9016_s8 = smov [#allocation14]   ;;  %s9017_s18 = smov [#allocation17]  }
  0x7d   :  { %s116_s10 = sshll.u32 %s9016_s8, 4  ;;  %s137_s1 = sshll.u32 %s9017_s18, 4  ;;  %s117_s10 = int_to_ptr.vmem [resolvable:$true] %s116_s10  ;;  %s138_s1 = int_to_ptr.vmem [resolvable:$true] %s137_s1 }
  0x7e   :  { %s8824_s26 = scalar_lea.vmem %s117_s10, 32  ;;  %p8829_p9 = scmp.lt.s32.totalorder %s117_s10, %s117_s10 }
  0x7f   :  { %p8825_p8 = scmp.ne.s32.totalorder %s117_s10, %s8824_s26  ;;  %p8830_p10 = scmp.lt.s32.totalorder %s8824_s26, %s8824_s26 }
  0x81   :  { %p8831_p11 = por %p8830_p10, %p8829_p9 }
  0x83   :  { %p8832_p12 = pnand %p8831_p11, %p8825_p8 }
  0x85   :  { %8835 = shalt.err (!%p8832_p12)
}
  0x86   :  { %119 = dma.hbm_to_vmem [thread:$0]  %s11031_s11, 32, %s117_s10, [#allocation13]  }
  0x87   :  { %s8844_s0 = scalar_lea.vmem %s138_s1, 128  ;;  %p8849_p0 = scmp.lt.s32.totalorder %s138_s1, %s138_s1 }
  0x88   :  { %p8845_p13 = scmp.ne.s32.totalorder %s138_s1, %s8844_s0  ;;  %p8850_p1 = scmp.lt.s32.totalorder %s8844_s0, %s8844_s0 }
  0x8a   :  { %p8851_p2 = por %p8850_p1, %p8849_p0 }
  0x8c   :  { %p8852_p3 = pnand %p8851_p2, %p8845_p13 }
  0x8e   :  { %8855 = shalt.err (!%p8852_p3)
}
  0x8f   :  { %143 = dma.hbm_to_vmem [thread:$0]  %s11033_s13, 128, %s138_s1, [#allocation16], %s9004_s2, %s9004_s2, %s9005_s29  }
  0x90   :  { %s9018_s20 = smov [#allocation20]   ;;  %s9019_s28 = smov [#allocation23]  }
  0x91   :  { %s164_s30 = sshll.u32 %s9018_s20, 4  ;;  %s185_s3 = sshll.u32 %s9019_s28, 4  ;;  %s165_s30 = int_to_ptr.vmem [resolvable:$true] %s164_s30  ;;  %s186_s3 = int_to_ptr.vmem [resolvable:$true] %s185_s3 }
  0x92   :  { %s8864_s11 = scalar_lea.vmem %s165_s30, 32  ;;  %p8869_p5 = scmp.lt.s32.totalorder %s165_s30, %s165_s30 }
  0x93   :  { %p8865_p4 = scmp.ne.s32.totalorder %s165_s30, %s8864_s11  ;;  %p8870_p6 = scmp.lt.s32.totalorder %s8864_s11, %s8864_s11 }
  0x95   :  { %p8871_p7 = por %p8870_p6, %p8869_p5 }
  0x97   :  { %p8872_p8 = pnand %p8871_p7, %p8865_p4 }
  0x99   :  { %8875 = shalt.err (!%p8872_p8)
}
  0x9a   :  { %167 = dma.hbm_to_vmem [thread:$0]  %s11036_s16, 32, %s165_s30, [#allocation19]  }
  0x9b   :  { %s8884_s14 = scalar_lea.vmem %s186_s3, 8192  ;;  %p8889_p10 = scmp.lt.s32.totalorder %s186_s3, %s186_s3 }
  0x9c   :  { %p8885_p9 = scmp.ne.s32.totalorder %s186_s3, %s8884_s14  ;;  %p8890_p11 = scmp.lt.s32.totalorder %s8884_s14, %s8884_s14 }
  0x9e   :  { %p8891_p12 = por %p8890_p11, %p8889_p10 }
  0xa0   :  { %p8892_p13 = pnand %p8891_p12, %p8885_p9 }
  0xa2   :  { %8895 = shalt.err (!%p8892_p13)
}
  0xa3   :  { %191 = dma.hbm_to_vmem [thread:$0]  %s11039_s19, 8192, %s186_s3, [#allocation22], %s9010_s5, %s9010_s5, %s9011_s27  }
  0xa4   :  { %s9020_s29 = smov [#allocation26]   ;;  %s9021_s10 = smov [#allocation27]  }
  0xa5   :  { %s208_s8 = sshll.u32 %s9020_s29, 4  ;;  %s220_s18 = sshll.u32 %s9021_s10, 4  ;;  %s209_s8 = int_to_ptr.vmem [resolvable:$true] %s208_s8  ;;  %s221_s18 = int_to_ptr.vmem [resolvable:$true] %s220_s18 }
  0xa6   :  { %s8904_s16 = scalar_lea.vmem %s209_s8, 32  ;;  %p8909_p1 = scmp.lt.s32.totalorder %s209_s8, %s209_s8 }
  0xa7   :  { %p8905_p0 = scmp.ne.s32.totalorder %s209_s8, %s8904_s16  ;;  %p8910_p2 = scmp.lt.s32.totalorder %s8904_s16, %s8904_s16 }
  0xa9   :  { %p8911_p3 = por %p8910_p2, %p8909_p1 }
  0xab   :  { %p8912_p4 = pnand %p8911_p3, %p8905_p0 }
  0xad   :  { %8915 = shalt.err (!%p8912_p4)
}
  0xae   :  { %211 = dma.hbm_to_vmem [thread:$0]  %s11041_s21, 32, %s209_s8, [#allocation25]  }
  0xaf   :  { %s8924_s12 = scalar_lea.vmem %s221_s18, 32  ;;  %p8929_p6 = scmp.lt.s32.totalorder %s221_s18, %s221_s18 }
  0xb0   :  { %p8925_p5 = scmp.ne.s32.totalorder %s221_s18, %s8924_s12  ;;  %p8930_p7 = scmp.lt.s32.totalorder %s8924_s12, %s8924_s12 }
  0xb2   :  { %p8931_p8 = por %p8930_p7, %p8929_p6 }
  0xb4   :  { %p8932_p9 = pnand %p8931_p8, %p8925_p5 }
  0xb6   :  { %8935 = shalt.err (!%p8932_p9)
}
  0xb7   :  { %223 = dma.hbm_to_vmem [thread:$0]  %s11043_s23, 32, %s221_s18, [#allocation28]  }
  0xb8   :  { %8976 = dma.done.wait [#allocation5], 512  }
  0xb9   :  { %8977 = vsyncadd [#allocation5], 4294966784 }
  0xba   :  { %8978 = dma.done.wait [#allocation7], 768  }
  0xbb   :  { %8979 = vsyncadd [#allocation7], 4294966528 }
  0xbc   :  { %8980 = dma.done.wait [#allocation10], 8448  }
  0xbd   :  { %8981 = vsyncadd [#allocation10], 4294958848 }
  0xbe   :  { %8982 = dma.done.wait [#allocation13], 64  }
  0xbf   :  { %8983 = vsyncadd [#allocation13], 4294967232 }
  0xc0   :  { %8984 = dma.done.wait [#allocation16], 256  }
  0xc1   :  { %8985 = vsyncadd [#allocation16], 4294967040 }
  0xc2   :  { %8986 = dma.done.wait [#allocation19], 8224  }
  0xc3   :  { %8987 = vsyncadd [#allocation19], 4294959072 }
  0xc4   :  { %8988 = dma.done.wait [#allocation22], 8256  }
  0xc5   :  { %8989 = vsyncadd [#allocation22], 4294959040 }
  0xc6   :  { %8990 = dma.done.wait [#allocation25], 64  }
  0xc7   :  { %8991 = vsyncadd [#allocation25], 4294967232 }
  0xc8   :  { %8992 = dma.done.wait [#allocation28], 32  }
  0xc9   :  { %8993 = vsyncadd [#allocation28], 4294967264  ;;  %s11084_s27 = sld [smem:[#allocation69_spill]] }
  0xcf   :  { %v306_v0 = vld [vmem:[%s11084_s27] sm:$0xff]  ;;  %v308_v1 = vld [vmem:[%s11084_s27 + $0x8] sm:$0xff]  ;;  %v310_v2 = vld [vmem:[%s11084_s27 + $0x10] sm:$0xff] }
  0xd0   :  { %307 = vst [vmem:[#allocation2] sm:$0xff] %v306_v0  ;;  %309 = vst [vmem:[#allocation2 + $0x8] sm:$0xff] %v308_v1  ;;  %v312_v3 = vld [vmem:[%s11084_s27 + $0x18] sm:$0xff]  ;;  %v314_v4 = vld [vmem:[%s11084_s27 + $0x20] sm:$0xff] }
  0xd1   :  { %311 = vst [vmem:[#allocation2 + $0x10] sm:$0xff] %v310_v2  ;;  %v316_v5 = vld [vmem:[%s11084_s27 + $0x28] sm:$0xff]  ;;  %313 = vst [vmem:[#allocation2 + $0x18] sm:$0xff] %v312_v3  ;;  %v318_v6 = vld [vmem:[%s11084_s27 + $0x30] sm:$0xff] }
  0xd2   :  { %315 = vst [vmem:[#allocation2 + $0x20] sm:$0xff] %v314_v4  ;;  %317 = vst [vmem:[#allocation2 + $0x28] sm:$0xff] %v316_v5  ;;  %v320_v7 = vld [vmem:[%s11084_s27 + $0x38] sm:$0xff]  ;;  %v322_v8 = vld [vmem:[%s11084_s27 + $0x40] sm:$0xff] }
  0xd3   :  { %319 = vst [vmem:[#allocation2 + $0x30] sm:$0xff] %v318_v6  ;;  %321 = vst [vmem:[#allocation2 + $0x38] sm:$0xff] %v320_v7  ;;  %v324_v9 = vld [vmem:[%s11084_s27 + $0x48] sm:$0xff]  ;;  %v326_v10 = vld [vmem:[%s11084_s27 + $0x50] sm:$0xff] }
  0xd4   :  { %323 = vst [vmem:[#allocation2 + $0x40] sm:$0xff] %v322_v8  ;;  %v328_v11 = vld [vmem:[%s11084_s27 + $0x58] sm:$0xff]  ;;  %325 = vst [vmem:[#allocation2 + $0x48] sm:$0xff] %v324_v9  ;;  %v330_v12 = vld [vmem:[%s11084_s27 + $0x60] sm:$0xff] }
  0xd5   :  { %327 = vst [vmem:[#allocation2 + $0x50] sm:$0xff] %v326_v10  ;;  %329 = vst [vmem:[#allocation2 + $0x58] sm:$0xff] %v328_v11  ;;  %v332_v13 = vld [vmem:[%s11084_s27 + $0x68] sm:$0xff]  ;;  %v334_v14 = vld [vmem:[%s11084_s27 + $0x70] sm:$0xff] }
  0xd6   :  { %331 = vst [vmem:[#allocation2 + $0x60] sm:$0xff] %v330_v12  ;;  %333 = vst [vmem:[#allocation2 + $0x68] sm:$0xff] %v332_v13  ;;  %v336_v15 = vld [vmem:[%s11084_s27 + $0x78] sm:$0xff]  ;;  %v338_v16 = vld [vmem:[%s11084_s27 + $0x80] sm:$0xff] }
  0xd7   :  { %335 = vst [vmem:[#allocation2 + $0x70] sm:$0xff] %v334_v14  ;;  %v340_v17 = vld [vmem:[%s11084_s27 + $0x88] sm:$0xff]  ;;  %337 = vst [vmem:[#allocation2 + $0x78] sm:$0xff] %v336_v15  ;;  %v342_v18 = vld [vmem:[%s11084_s27 + $0x90] sm:$0xff] }
  0xd8   :  { %339 = vst [vmem:[#allocation2 + $0x80] sm:$0xff] %v338_v16  ;;  %341 = vst [vmem:[#allocation2 + $0x88] sm:$0xff] %v340_v17  ;;  %v344_v19 = vld [vmem:[%s11084_s27 + $0x98] sm:$0xff]  ;;  %v346_v20 = vld [vmem:[%s11084_s27 + $0xa0] sm:$0xff] }
  0xd9   :  { %343 = vst [vmem:[#allocation2 + $0x90] sm:$0xff] %v342_v18  ;;  %345 = vst [vmem:[#allocation2 + $0x98] sm:$0xff] %v344_v19  ;;  %v348_v21 = vld [vmem:[%s11084_s27 + $0xa8] sm:$0xff]  ;;  %v350_v22 = vld [vmem:[%s11084_s27 + $0xb0] sm:$0xff] }
  0xda   :  { %347 = vst [vmem:[#allocation2 + $0xa0] sm:$0xff] %v346_v20  ;;  %v352_v23 = vld [vmem:[%s11084_s27 + $0xb8] sm:$0xff]  ;;  %349 = vst [vmem:[#allocation2 + $0xa8] sm:$0xff] %v348_v21  ;;  %v354_v24 = vld [vmem:[%s11084_s27 + $0xc0] sm:$0xff] }
  0xdb   :  { %351 = vst [vmem:[#allocation2 + $0xb0] sm:$0xff] %v350_v22  ;;  %353 = vst [vmem:[#allocation2 + $0xb8] sm:$0xff] %v352_v23  ;;  %v356_v25 = vld [vmem:[%s11084_s27 + $0xc8] sm:$0xff]  ;;  %v358_v26 = vld [vmem:[%s11084_s27 + $0xd0] sm:$0xff] }
  0xdc   :  { %355 = vst [vmem:[#allocation2 + $0xc0] sm:$0xff] %v354_v24  ;;  %357 = vst [vmem:[#allocation2 + $0xc8] sm:$0xff] %v356_v25  ;;  %v360_v27 = vld [vmem:[%s11084_s27 + $0xd8] sm:$0xff]  ;;  %v362_v28 = vld [vmem:[%s11084_s27 + $0xe0] sm:$0xff] }
  0xdd   :  { %359 = vst [vmem:[#allocation2 + $0xd0] sm:$0xff] %v358_v26  ;;  %v364_v29 = vld [vmem:[%s11084_s27 + $0xe8] sm:$0xff]  ;;  %361 = vst [vmem:[#allocation2 + $0xd8] sm:$0xff] %v360_v27  ;;  %v366_v30 = vld [vmem:[%s11084_s27 + $0xf0] sm:$0xff] }
  0xde   :  { %363 = vst [vmem:[#allocation2 + $0xe0] sm:$0xff] %v362_v28  ;;  %365 = vst [vmem:[#allocation2 + $0xe8] sm:$0xff] %v364_v29  ;;  %v368_v31 = vld [vmem:[%s11084_s27 + $0xf8] sm:$0xff]  ;;  %v370_v32 = vld [vmem:[%s11084_s27 + $0x100] sm:$0xff] }
  0xdf   :  { %367 = vst [vmem:[#allocation2 + $0xf0] sm:$0xff] %v366_v30  ;;  %369 = vst [vmem:[#allocation2 + $0xf8] sm:$0xff] %v368_v31  ;;  %v372_v33 = vld [vmem:[%s11084_s27 + $0x108] sm:$0xff]  ;;  %v374_v34 = vld [vmem:[%s11084_s27 + $0x110] sm:$0xff] }
  0xe0   :  { %371 = vst [vmem:[#allocation2 + $0x100] sm:$0xff] %v370_v32  ;;  %v376_v35 = vld [vmem:[%s11084_s27 + $0x118] sm:$0xff]  ;;  %373 = vst [vmem:[#allocation2 + $0x108] sm:$0xff] %v372_v33  ;;  %v378_v36 = vld [vmem:[%s11084_s27 + $0x120] sm:$0xff] }
  0xe1   :  { %375 = vst [vmem:[#allocation2 + $0x110] sm:$0xff] %v374_v34  ;;  %377 = vst [vmem:[#allocation2 + $0x118] sm:$0xff] %v376_v35  ;;  %v380_v37 = vld [vmem:[%s11084_s27 + $0x128] sm:$0xff]  ;;  %v382_v38 = vld [vmem:[%s11084_s27 + $0x130] sm:$0xff] }
  0xe2   :  { %379 = vst [vmem:[#allocation2 + $0x120] sm:$0xff] %v378_v36  ;;  %381 = vst [vmem:[#allocation2 + $0x128] sm:$0xff] %v380_v37  ;;  %v384_v39 = vld [vmem:[%s11084_s27 + $0x138] sm:$0xff]  ;;  %v386_v40 = vld [vmem:[%s11084_s27 + $0x140] sm:$0xff] }
  0xe3   :  { %383 = vst [vmem:[#allocation2 + $0x130] sm:$0xff] %v382_v38  ;;  %v388_v41 = vld [vmem:[%s11084_s27 + $0x148] sm:$0xff]  ;;  %385 = vst [vmem:[#allocation2 + $0x138] sm:$0xff] %v384_v39  ;;  %v390_v42 = vld [vmem:[%s11084_s27 + $0x150] sm:$0xff] }
  0xe4   :  { %387 = vst [vmem:[#allocation2 + $0x140] sm:$0xff] %v386_v40  ;;  %389 = vst [vmem:[#allocation2 + $0x148] sm:$0xff] %v388_v41  ;;  %v392_v43 = vld [vmem:[%s11084_s27 + $0x158] sm:$0xff]  ;;  %v394_v44 = vld [vmem:[%s11084_s27 + $0x160] sm:$0xff] }
  0xe5   :  { %391 = vst [vmem:[#allocation2 + $0x150] sm:$0xff] %v390_v42  ;;  %393 = vst [vmem:[#allocation2 + $0x158] sm:$0xff] %v392_v43  ;;  %v396_v45 = vld [vmem:[%s11084_s27 + $0x168] sm:$0xff]  ;;  %v398_v46 = vld [vmem:[%s11084_s27 + $0x170] sm:$0xff] }
  0xe6   :  { %395 = vst [vmem:[#allocation2 + $0x160] sm:$0xff] %v394_v44  ;;  %v400_v47 = vld [vmem:[%s11084_s27 + $0x178] sm:$0xff]  ;;  %397 = vst [vmem:[#allocation2 + $0x168] sm:$0xff] %v396_v45  ;;  %v402_v48 = vld [vmem:[%s11084_s27 + $0x180] sm:$0xff] }
  0xe7   :  { %399 = vst [vmem:[#allocation2 + $0x170] sm:$0xff] %v398_v46  ;;  %401 = vst [vmem:[#allocation2 + $0x178] sm:$0xff] %v400_v47  ;;  %v404_v49 = vld [vmem:[%s11084_s27 + $0x188] sm:$0xff]  ;;  %v406_v50 = vld [vmem:[%s11084_s27 + $0x190] sm:$0xff] }
  0xe8   :  { %403 = vst [vmem:[#allocation2 + $0x180] sm:$0xff] %v402_v48  ;;  %405 = vst [vmem:[#allocation2 + $0x188] sm:$0xff] %v404_v49  ;;  %v408_v51 = vld [vmem:[%s11084_s27 + $0x198] sm:$0xff]  ;;  %v410_v52 = vld [vmem:[%s11084_s27 + $0x1a0] sm:$0xff] }
  0xe9   :  { %407 = vst [vmem:[#allocation2 + $0x190] sm:$0xff] %v406_v50  ;;  %v412_v53 = vld [vmem:[%s11084_s27 + $0x1a8] sm:$0xff]  ;;  %409 = vst [vmem:[#allocation2 + $0x198] sm:$0xff] %v408_v51  ;;  %v414_v54 = vld [vmem:[%s11084_s27 + $0x1b0] sm:$0xff] }
  0xea   :  { %411 = vst [vmem:[#allocation2 + $0x1a0] sm:$0xff] %v410_v52  ;;  %413 = vst [vmem:[#allocation2 + $0x1a8] sm:$0xff] %v412_v53  ;;  %v416_v55 = vld [vmem:[%s11084_s27 + $0x1b8] sm:$0xff]  ;;  %v418_v56 = vld [vmem:[%s11084_s27 + $0x1c0] sm:$0xff] }
  0xeb   :  { %415 = vst [vmem:[#allocation2 + $0x1b0] sm:$0xff] %v414_v54  ;;  %417 = vst [vmem:[#allocation2 + $0x1b8] sm:$0xff] %v416_v55  ;;  %v420_v57 = vld [vmem:[%s11084_s27 + $0x1c8] sm:$0xff]  ;;  %v422_v58 = vld [vmem:[%s11084_s27 + $0x1d0] sm:$0xff] }
  0xec   :  { %419 = vst [vmem:[#allocation2 + $0x1c0] sm:$0xff] %v418_v56  ;;  %v424_v59 = vld [vmem:[%s11084_s27 + $0x1d8] sm:$0xff]  ;;  %421 = vst [vmem:[#allocation2 + $0x1c8] sm:$0xff] %v420_v57  ;;  %v426_v60 = vld [vmem:[%s11084_s27 + $0x1e0] sm:$0xff] }
  0xed   :  { %423 = vst [vmem:[#allocation2 + $0x1d0] sm:$0xff] %v422_v58  ;;  %425 = vst [vmem:[#allocation2 + $0x1d8] sm:$0xff] %v424_v59  ;;  %v428_v61 = vld [vmem:[%s11084_s27 + $0x1e8] sm:$0xff]  ;;  %v430_v62 = vld [vmem:[%s11084_s27 + $0x1f0] sm:$0xff] }
  0xee   :  { %427 = vst [vmem:[#allocation2 + $0x1e0] sm:$0xff] %v426_v60  ;;  %429 = vst [vmem:[#allocation2 + $0x1e8] sm:$0xff] %v428_v61  ;;  %v432_v63 = vld [vmem:[%s11084_s27 + $0x1f8] sm:$0xff]  ;;  %v434_v0 = vld [vmem:[%s11084_s27 + $0x200] sm:$0xff] }
  0xef   :  { %431 = vst [vmem:[#allocation2 + $0x1f0] sm:$0xff] %v430_v62  ;;  %v436_v1 = vld [vmem:[%s11084_s27 + $0x208] sm:$0xff]  ;;  %433 = vst [vmem:[#allocation2 + $0x1f8] sm:$0xff] %v432_v63  ;;  %v438_v2 = vld [vmem:[%s11084_s27 + $0x210] sm:$0xff] }
  0xf0   :  { %435 = vst [vmem:[#allocation2 + $0x200] sm:$0xff] %v434_v0  ;;  %437 = vst [vmem:[#allocation2 + $0x208] sm:$0xff] %v436_v1  ;;  %v440_v3 = vld [vmem:[%s11084_s27 + $0x218] sm:$0xff]  ;;  %v442_v4 = vld [vmem:[%s11084_s27 + $0x220] sm:$0xff] }
  0xf1   :  { %439 = vst [vmem:[#allocation2 + $0x210] sm:$0xff] %v438_v2  ;;  %441 = vst [vmem:[#allocation2 + $0x218] sm:$0xff] %v440_v3  ;;  %v444_v5 = vld [vmem:[%s11084_s27 + $0x228] sm:$0xff]  ;;  %v446_v6 = vld [vmem:[%s11084_s27 + $0x230] sm:$0xff] }
  0xf2   :  { %443 = vst [vmem:[#allocation2 + $0x220] sm:$0xff] %v442_v4  ;;  %v448_v7 = vld [vmem:[%s11084_s27 + $0x238] sm:$0xff]  ;;  %445 = vst [vmem:[#allocation2 + $0x228] sm:$0xff] %v444_v5  ;;  %v450_v8 = vld [vmem:[%s11084_s27 + $0x240] sm:$0xff] }
  0xf3   :  { %447 = vst [vmem:[#allocation2 + $0x230] sm:$0xff] %v446_v6  ;;  %449 = vst [vmem:[#allocation2 + $0x238] sm:$0xff] %v448_v7  ;;  %v452_v9 = vld [vmem:[%s11084_s27 + $0x248] sm:$0xff]  ;;  %v454_v10 = vld [vmem:[%s11084_s27 + $0x250] sm:$0xff] }
  0xf4   :  { %451 = vst [vmem:[#allocation2 + $0x240] sm:$0xff] %v450_v8  ;;  %453 = vst [vmem:[#allocation2 + $0x248] sm:$0xff] %v452_v9  ;;  %v456_v11 = vld [vmem:[%s11084_s27 + $0x258] sm:$0xff]  ;;  %v458_v12 = vld [vmem:[%s11084_s27 + $0x260] sm:$0xff] }
  0xf5   :  { %455 = vst [vmem:[#allocation2 + $0x250] sm:$0xff] %v454_v10  ;;  %v460_v13 = vld [vmem:[%s11084_s27 + $0x268] sm:$0xff]  ;;  %457 = vst [vmem:[#allocation2 + $0x258] sm:$0xff] %v456_v11  ;;  %v462_v14 = vld [vmem:[%s11084_s27 + $0x270] sm:$0xff] }
  0xf6   :  { %459 = vst [vmem:[#allocation2 + $0x260] sm:$0xff] %v458_v12  ;;  %461 = vst [vmem:[#allocation2 + $0x268] sm:$0xff] %v460_v13  ;;  %v464_v15 = vld [vmem:[%s11084_s27 + $0x278] sm:$0xff]  ;;  %v466_v16 = vld [vmem:[%s11084_s27 + $0x280] sm:$0xff] }
  0xf7   :  { %463 = vst [vmem:[#allocation2 + $0x270] sm:$0xff] %v462_v14  ;;  %465 = vst [vmem:[#allocation2 + $0x278] sm:$0xff] %v464_v15  ;;  %v468_v17 = vld [vmem:[%s11084_s27 + $0x288] sm:$0xff]  ;;  %v470_v18 = vld [vmem:[%s11084_s27 + $0x290] sm:$0xff] }
  0xf8   :  { %467 = vst [vmem:[#allocation2 + $0x280] sm:$0xff] %v466_v16  ;;  %v472_v19 = vld [vmem:[%s11084_s27 + $0x298] sm:$0xff]  ;;  %469 = vst [vmem:[#allocation2 + $0x288] sm:$0xff] %v468_v17  ;;  %v474_v20 = vld [vmem:[%s11084_s27 + $0x2a0] sm:$0xff] }
  0xf9   :  { %471 = vst [vmem:[#allocation2 + $0x290] sm:$0xff] %v470_v18  ;;  %473 = vst [vmem:[#allocation2 + $0x298] sm:$0xff] %v472_v19  ;;  %v476_v21 = vld [vmem:[%s11084_s27 + $0x2a8] sm:$0xff]  ;;  %v478_v22 = vld [vmem:[%s11084_s27 + $0x2b0] sm:$0xff] }
  0xfa   :  { %475 = vst [vmem:[#allocation2 + $0x2a0] sm:$0xff] %v474_v20  ;;  %477 = vst [vmem:[#allocation2 + $0x2a8] sm:$0xff] %v476_v21  ;;  %v480_v23 = vld [vmem:[%s11084_s27 + $0x2b8] sm:$0xff]  ;;  %v482_v24 = vld [vmem:[%s11084_s27 + $0x2c0] sm:$0xff] }
  0xfb   :  { %479 = vst [vmem:[#allocation2 + $0x2b0] sm:$0xff] %v478_v22  ;;  %v484_v25 = vld [vmem:[%s11084_s27 + $0x2c8] sm:$0xff]  ;;  %481 = vst [vmem:[#allocation2 + $0x2b8] sm:$0xff] %v480_v23  ;;  %v486_v26 = vld [vmem:[%s11084_s27 + $0x2d0] sm:$0xff] }
  0xfc   :  { %483 = vst [vmem:[#allocation2 + $0x2c0] sm:$0xff] %v482_v24  ;;  %485 = vst [vmem:[#allocation2 + $0x2c8] sm:$0xff] %v484_v25  ;;  %v488_v27 = vld [vmem:[%s11084_s27 + $0x2d8] sm:$0xff]  ;;  %v490_v28 = vld [vmem:[%s11084_s27 + $0x2e0] sm:$0xff] }
  0xfd   :  { %487 = vst [vmem:[#allocation2 + $0x2d0] sm:$0xff] %v486_v26  ;;  %489 = vst [vmem:[#allocation2 + $0x2d8] sm:$0xff] %v488_v27  ;;  %v492_v29 = vld [vmem:[%s11084_s27 + $0x2e8] sm:$0xff]  ;;  %v494_v30 = vld [vmem:[%s11084_s27 + $0x2f0] sm:$0xff] }
  0xfe   :  { %491 = vst [vmem:[#allocation2 + $0x2e0] sm:$0xff] %v490_v28  ;;  %v496_v31 = vld [vmem:[%s11084_s27 + $0x2f8] sm:$0xff]  ;;  %493 = vst [vmem:[#allocation2 + $0x2e8] sm:$0xff] %v492_v29  ;;  %v498_v32 = vld [vmem:[%s11084_s27 + $0x300] sm:$0xff] }
  0xff   :  { %495 = vst [vmem:[#allocation2 + $0x2f0] sm:$0xff] %v494_v30  ;;  %497 = vst [vmem:[#allocation2 + $0x2f8] sm:$0xff] %v496_v31  ;;  %v500_v33 = vld [vmem:[%s11084_s27 + $0x308] sm:$0xff]  ;;  %v502_v34 = vld [vmem:[%s11084_s27 + $0x310] sm:$0xff] }
 0x100   :  { %499 = vst [vmem:[#allocation2 + $0x300] sm:$0xff] %v498_v32  ;;  %501 = vst [vmem:[#allocation2 + $0x308] sm:$0xff] %v500_v33  ;;  %v504_v35 = vld [vmem:[%s11084_s27 + $0x318] sm:$0xff]  ;;  %v506_v36 = vld [vmem:[%s11084_s27 + $0x320] sm:$0xff] }
 0x101   :  { %503 = vst [vmem:[#allocation2 + $0x310] sm:$0xff] %v502_v34  ;;  %v508_v37 = vld [vmem:[%s11084_s27 + $0x328] sm:$0xff]  ;;  %505 = vst [vmem:[#allocation2 + $0x318] sm:$0xff] %v504_v35  ;;  %v510_v38 = vld [vmem:[%s11084_s27 + $0x330] sm:$0xff] }
 0x102   :  { %507 = vst [vmem:[#allocation2 + $0x320] sm:$0xff] %v506_v36  ;;  %509 = vst [vmem:[#allocation2 + $0x328] sm:$0xff] %v508_v37  ;;  %v512_v39 = vld [vmem:[%s11084_s27 + $0x338] sm:$0xff]  ;;  %v514_v40 = vld [vmem:[%s11084_s27 + $0x340] sm:$0xff] }
 0x103   :  { %511 = vst [vmem:[#allocation2 + $0x330] sm:$0xff] %v510_v38  ;;  %513 = vst [vmem:[#allocation2 + $0x338] sm:$0xff] %v512_v39  ;;  %v516_v41 = vld [vmem:[%s11084_s27 + $0x348] sm:$0xff]  ;;  %v518_v42 = vld [vmem:[%s11084_s27 + $0x350] sm:$0xff] }
 0x104   :  { %515 = vst [vmem:[#allocation2 + $0x340] sm:$0xff] %v514_v40  ;;  %v520_v43 = vld [vmem:[%s11084_s27 + $0x358] sm:$0xff]  ;;  %517 = vst [vmem:[#allocation2 + $0x348] sm:$0xff] %v516_v41  ;;  %v522_v44 = vld [vmem:[%s11084_s27 + $0x360] sm:$0xff] }
 0x105   :  { %519 = vst [vmem:[#allocation2 + $0x350] sm:$0xff] %v518_v42  ;;  %521 = vst [vmem:[#allocation2 + $0x358] sm:$0xff] %v520_v43  ;;  %v524_v45 = vld [vmem:[%s11084_s27 + $0x368] sm:$0xff]  ;;  %v526_v46 = vld [vmem:[%s11084_s27 + $0x370] sm:$0xff] }
 0x106   :  { %523 = vst [vmem:[#allocation2 + $0x360] sm:$0xff] %v522_v44  ;;  %525 = vst [vmem:[#allocation2 + $0x368] sm:$0xff] %v524_v45  ;;  %v528_v47 = vld [vmem:[%s11084_s27 + $0x378] sm:$0xff]  ;;  %v530_v48 = vld [vmem:[%s11084_s27 + $0x380] sm:$0xff] }
 0x107   :  { %527 = vst [vmem:[#allocation2 + $0x370] sm:$0xff] %v526_v46  ;;  %v532_v49 = vld [vmem:[%s11084_s27 + $0x388] sm:$0xff]  ;;  %529 = vst [vmem:[#allocation2 + $0x378] sm:$0xff] %v528_v47  ;;  %v534_v50 = vld [vmem:[%s11084_s27 + $0x390] sm:$0xff] }
 0x108   :  { %531 = vst [vmem:[#allocation2 + $0x380] sm:$0xff] %v530_v48  ;;  %533 = vst [vmem:[#allocation2 + $0x388] sm:$0xff] %v532_v49  ;;  %v536_v51 = vld [vmem:[%s11084_s27 + $0x398] sm:$0xff]  ;;  %v538_v52 = vld [vmem:[%s11084_s27 + $0x3a0] sm:$0xff] }
 0x109   :  { %535 = vst [vmem:[#allocation2 + $0x390] sm:$0xff] %v534_v50  ;;  %537 = vst [vmem:[#allocation2 + $0x398] sm:$0xff] %v536_v51  ;;  %v540_v53 = vld [vmem:[%s11084_s27 + $0x3a8] sm:$0xff]  ;;  %v542_v54 = vld [vmem:[%s11084_s27 + $0x3b0] sm:$0xff] }
 0x10a   :  { %539 = vst [vmem:[#allocation2 + $0x3a0] sm:$0xff] %v538_v52  ;;  %v544_v55 = vld [vmem:[%s11084_s27 + $0x3b8] sm:$0xff]  ;;  %541 = vst [vmem:[#allocation2 + $0x3a8] sm:$0xff] %v540_v53  ;;  %v546_v56 = vld [vmem:[%s11084_s27 + $0x3c0] sm:$0xff] }
 0x10b   :  { %543 = vst [vmem:[#allocation2 + $0x3b0] sm:$0xff] %v542_v54  ;;  %545 = vst [vmem:[#allocation2 + $0x3b8] sm:$0xff] %v544_v55  ;;  %v548_v57 = vld [vmem:[%s11084_s27 + $0x3c8] sm:$0xff]  ;;  %v550_v58 = vld [vmem:[%s11084_s27 + $0x3d0] sm:$0xff] }
 0x10c   :  { %547 = vst [vmem:[#allocation2 + $0x3c0] sm:$0xff] %v546_v56  ;;  %549 = vst [vmem:[#allocation2 + $0x3c8] sm:$0xff] %v548_v57  ;;  %v552_v59 = vld [vmem:[%s11084_s27 + $0x3d8] sm:$0xff]  ;;  %v554_v60 = vld [vmem:[%s11084_s27 + $0x3e0] sm:$0xff] }
 0x10d   :  { %551 = vst [vmem:[#allocation2 + $0x3d0] sm:$0xff] %v550_v58  ;;  %v556_v61 = vld [vmem:[%s11084_s27 + $0x3e8] sm:$0xff]  ;;  %553 = vst [vmem:[#allocation2 + $0x3d8] sm:$0xff] %v552_v59  ;;  %v558_v62 = vld [vmem:[%s11084_s27 + $0x3f0] sm:$0xff] }
 0x10e   :  { %555 = vst [vmem:[#allocation2 + $0x3e0] sm:$0xff] %v554_v60  ;;  %557 = vst [vmem:[#allocation2 + $0x3e8] sm:$0xff] %v556_v61  ;;  %v560_v63 = vld [vmem:[%s11084_s27 + $0x3f8] sm:$0xff] }
 0x10f   :  { %559 = vst [vmem:[#allocation2 + $0x3f0] sm:$0xff] %v558_v62  ;;  %561 = vst [vmem:[#allocation2 + $0x3f8] sm:$0xff] %v560_v63 }
 0x110   :  { %569 = vsyncadd [#allocation3], 16384  ;;  %s11085_s19 = sld [smem:[#allocation70_spill]] }
 0x111   :  { %s11086_s16 = sld [smem:[#allocation68_spill]] }
 0x116   :  { %v605_v0 = vld [vmem:[%s11085_s19] sm:$0xff]  ;;  %v607_v1 = vld [vmem:[%s11085_s19 + $0x8] sm:$0xff]  ;;  %v609_v2 = vld [vmem:[%s11085_s19 + $0x10] sm:$0xff] }
 0x117   :  { %606 = vst [vmem:[#allocation2 + $0x400] sm:$0xff] %v605_v0  ;;  %608 = vst [vmem:[#allocation2 + $0x408] sm:$0xff] %v607_v1  ;;  %v611_v3 = vld [vmem:[%s11085_s19 + $0x18] sm:$0xff]  ;;  %v613_v4 = vld [vmem:[%s11085_s19 + $0x20] sm:$0xff] }
 0x118   :  { %610 = vst [vmem:[#allocation2 + $0x410] sm:$0xff] %v609_v2  ;;  %612 = vst [vmem:[#allocation2 + $0x418] sm:$0xff] %v611_v3  ;;  %v615_v5 = vld [vmem:[%s11085_s19 + $0x28] sm:$0xff]  ;;  %v617_v6 = vld [vmem:[%s11085_s19 + $0x30] sm:$0xff] }
 0x119   :  { %614 = vst [vmem:[#allocation2 + $0x420] sm:$0xff] %v613_v4  ;;  %v619_v7 = vld [vmem:[%s11085_s19 + $0x38] sm:$0xff]  ;;  %616 = vst [vmem:[#allocation2 + $0x428] sm:$0xff] %v615_v5  ;;  %v621_v8 = vld [vmem:[%s11085_s19 + $0x40] sm:$0xff] }
 0x11a   :  { %618 = vst [vmem:[#allocation2 + $0x430] sm:$0xff] %v617_v6  ;;  %620 = vst [vmem:[#allocation2 + $0x438] sm:$0xff] %v619_v7  ;;  %v623_v9 = vld [vmem:[%s11085_s19 + $0x48] sm:$0xff]  ;;  %v625_v10 = vld [vmem:[%s11085_s19 + $0x50] sm:$0xff] }
 0x11b   :  { %622 = vst [vmem:[#allocation2 + $0x440] sm:$0xff] %v621_v8  ;;  %624 = vst [vmem:[#allocation2 + $0x448] sm:$0xff] %v623_v9  ;;  %v627_v11 = vld [vmem:[%s11085_s19 + $0x58] sm:$0xff]  ;;  %v629_v12 = vld [vmem:[%s11085_s19 + $0x60] sm:$0xff] }
 0x11c   :  { %626 = vst [vmem:[#allocation2 + $0x450] sm:$0xff] %v625_v10  ;;  %v631_v13 = vld [vmem:[%s11085_s19 + $0x68] sm:$0xff]  ;;  %628 = vst [vmem:[#allocation2 + $0x458] sm:$0xff] %v627_v11  ;;  %v633_v14 = vld [vmem:[%s11085_s19 + $0x70] sm:$0xff] }
 0x11d   :  { %630 = vst [vmem:[#allocation2 + $0x460] sm:$0xff] %v629_v12  ;;  %632 = vst [vmem:[#allocation2 + $0x468] sm:$0xff] %v631_v13  ;;  %v635_v15 = vld [vmem:[%s11085_s19 + $0x78] sm:$0xff]  ;;  %v637_v16 = vld [vmem:[%s11085_s19 + $0x80] sm:$0xff] }
 0x11e   :  { %634 = vst [vmem:[#allocation2 + $0x470] sm:$0xff] %v633_v14  ;;  %636 = vst [vmem:[#allocation2 + $0x478] sm:$0xff] %v635_v15  ;;  %v639_v17 = vld [vmem:[%s11085_s19 + $0x88] sm:$0xff]  ;;  %v641_v18 = vld [vmem:[%s11085_s19 + $0x90] sm:$0xff] }
 0x11f   :  { %638 = vst [vmem:[#allocation2 + $0x480] sm:$0xff] %v637_v16  ;;  %v643_v19 = vld [vmem:[%s11085_s19 + $0x98] sm:$0xff]  ;;  %640 = vst [vmem:[#allocation2 + $0x488] sm:$0xff] %v639_v17  ;;  %v645_v20 = vld [vmem:[%s11085_s19 + $0xa0] sm:$0xff] }
 0x120   :  { %642 = vst [vmem:[#allocation2 + $0x490] sm:$0xff] %v641_v18  ;;  %644 = vst [vmem:[#allocation2 + $0x498] sm:$0xff] %v643_v19  ;;  %v647_v21 = vld [vmem:[%s11085_s19 + $0xa8] sm:$0xff]  ;;  %v649_v22 = vld [vmem:[%s11085_s19 + $0xb0] sm:$0xff] }
 0x121   :  { %646 = vst [vmem:[#allocation2 + $0x4a0] sm:$0xff] %v645_v20  ;;  %648 = vst [vmem:[#allocation2 + $0x4a8] sm:$0xff] %v647_v21  ;;  %v651_v23 = vld [vmem:[%s11085_s19 + $0xb8] sm:$0xff]  ;;  %v653_v24 = vld [vmem:[%s11085_s19 + $0xc0] sm:$0xff] }
 0x122   :  { %650 = vst [vmem:[#allocation2 + $0x4b0] sm:$0xff] %v649_v22  ;;  %v655_v25 = vld [vmem:[%s11085_s19 + $0xc8] sm:$0xff]  ;;  %652 = vst [vmem:[#allocation2 + $0x4b8] sm:$0xff] %v651_v23  ;;  %v657_v26 = vld [vmem:[%s11085_s19 + $0xd0] sm:$0xff] }
 0x123   :  { %654 = vst [vmem:[#allocation2 + $0x4c0] sm:$0xff] %v653_v24  ;;  %656 = vst [vmem:[#allocation2 + $0x4c8] sm:$0xff] %v655_v25  ;;  %v659_v27 = vld [vmem:[%s11085_s19 + $0xd8] sm:$0xff]  ;;  %v661_v28 = vld [vmem:[%s11085_s19 + $0xe0] sm:$0xff] }
 0x124   :  { %658 = vst [vmem:[#allocation2 + $0x4d0] sm:$0xff] %v657_v26  ;;  %660 = vst [vmem:[#allocation2 + $0x4d8] sm:$0xff] %v659_v27  ;;  %v663_v29 = vld [vmem:[%s11085_s19 + $0xe8] sm:$0xff]  ;;  %v665_v30 = vld [vmem:[%s11085_s19 + $0xf0] sm:$0xff] }
 0x125   :  { %662 = vst [vmem:[#allocation2 + $0x4e0] sm:$0xff] %v661_v28  ;;  %v667_v31 = vld [vmem:[%s11085_s19 + $0xf8] sm:$0xff]  ;;  %664 = vst [vmem:[#allocation2 + $0x4e8] sm:$0xff] %v663_v29  ;;  %v669_v32 = vld [vmem:[%s11085_s19 + $0x100] sm:$0xff] }
 0x126   :  { %666 = vst [vmem:[#allocation2 + $0x4f0] sm:$0xff] %v665_v30  ;;  %668 = vst [vmem:[#allocation2 + $0x4f8] sm:$0xff] %v667_v31  ;;  %v671_v33 = vld [vmem:[%s11085_s19 + $0x108] sm:$0xff]  ;;  %v673_v34 = vld [vmem:[%s11085_s19 + $0x110] sm:$0xff] }
 0x127   :  { %670 = vst [vmem:[#allocation2 + $0x500] sm:$0xff] %v669_v32  ;;  %672 = vst [vmem:[#allocation2 + $0x508] sm:$0xff] %v671_v33  ;;  %v675_v35 = vld [vmem:[%s11085_s19 + $0x118] sm:$0xff]  ;;  %v677_v36 = vld [vmem:[%s11085_s19 + $0x120] sm:$0xff] }
 0x128   :  { %674 = vst [vmem:[#allocation2 + $0x510] sm:$0xff] %v673_v34  ;;  %v679_v37 = vld [vmem:[%s11085_s19 + $0x128] sm:$0xff]  ;;  %676 = vst [vmem:[#allocation2 + $0x518] sm:$0xff] %v675_v35  ;;  %v681_v38 = vld [vmem:[%s11085_s19 + $0x130] sm:$0xff] }
 0x129   :  { %678 = vst [vmem:[#allocation2 + $0x520] sm:$0xff] %v677_v36  ;;  %680 = vst [vmem:[#allocation2 + $0x528] sm:$0xff] %v679_v37  ;;  %v683_v39 = vld [vmem:[%s11085_s19 + $0x138] sm:$0xff]  ;;  %v685_v40 = vld [vmem:[%s11085_s19 + $0x140] sm:$0xff] }
 0x12a   :  { %682 = vst [vmem:[#allocation2 + $0x530] sm:$0xff] %v681_v38  ;;  %684 = vst [vmem:[#allocation2 + $0x538] sm:$0xff] %v683_v39  ;;  %v687_v41 = vld [vmem:[%s11085_s19 + $0x148] sm:$0xff]  ;;  %v689_v42 = vld [vmem:[%s11085_s19 + $0x150] sm:$0xff] }
 0x12b   :  { %686 = vst [vmem:[#allocation2 + $0x540] sm:$0xff] %v685_v40  ;;  %v691_v43 = vld [vmem:[%s11085_s19 + $0x158] sm:$0xff]  ;;  %688 = vst [vmem:[#allocation2 + $0x548] sm:$0xff] %v687_v41  ;;  %v693_v44 = vld [vmem:[%s11085_s19 + $0x160] sm:$0xff] }
 0x12c   :  { %690 = vst [vmem:[#allocation2 + $0x550] sm:$0xff] %v689_v42  ;;  %692 = vst [vmem:[#allocation2 + $0x558] sm:$0xff] %v691_v43  ;;  %v695_v45 = vld [vmem:[%s11085_s19 + $0x168] sm:$0xff]  ;;  %v697_v46 = vld [vmem:[%s11085_s19 + $0x170] sm:$0xff] }
 0x12d   :  { %694 = vst [vmem:[#allocation2 + $0x560] sm:$0xff] %v693_v44  ;;  %696 = vst [vmem:[#allocation2 + $0x568] sm:$0xff] %v695_v45  ;;  %v699_v47 = vld [vmem:[%s11085_s19 + $0x178] sm:$0xff]  ;;  %v701_v48 = vld [vmem:[%s11085_s19 + $0x180] sm:$0xff] }
 0x12e   :  { %698 = vst [vmem:[#allocation2 + $0x570] sm:$0xff] %v697_v46  ;;  %v703_v49 = vld [vmem:[%s11085_s19 + $0x188] sm:$0xff]  ;;  %700 = vst [vmem:[#allocation2 + $0x578] sm:$0xff] %v699_v47  ;;  %v705_v50 = vld [vmem:[%s11085_s19 + $0x190] sm:$0xff] }
 0x12f   :  { %702 = vst [vmem:[#allocation2 + $0x580] sm:$0xff] %v701_v48  ;;  %704 = vst [vmem:[#allocation2 + $0x588] sm:$0xff] %v703_v49  ;;  %v707_v51 = vld [vmem:[%s11085_s19 + $0x198] sm:$0xff]  ;;  %v709_v52 = vld [vmem:[%s11085_s19 + $0x1a0] sm:$0xff] }
 0x130   :  { %706 = vst [vmem:[#allocation2 + $0x590] sm:$0xff] %v705_v50  ;;  %708 = vst [vmem:[#allocation2 + $0x598] sm:$0xff] %v707_v51  ;;  %v711_v53 = vld [vmem:[%s11085_s19 + $0x1a8] sm:$0xff]  ;;  %v713_v54 = vld [vmem:[%s11085_s19 + $0x1b0] sm:$0xff] }
 0x131   :  { %710 = vst [vmem:[#allocation2 + $0x5a0] sm:$0xff] %v709_v52  ;;  %v715_v55 = vld [vmem:[%s11085_s19 + $0x1b8] sm:$0xff]  ;;  %712 = vst [vmem:[#allocation2 + $0x5a8] sm:$0xff] %v711_v53  ;;  %v717_v56 = vld [vmem:[%s11085_s19 + $0x1c0] sm:$0xff] }
 0x132   :  { %714 = vst [vmem:[#allocation2 + $0x5b0] sm:$0xff] %v713_v54  ;;  %716 = vst [vmem:[#allocation2 + $0x5b8] sm:$0xff] %v715_v55  ;;  %v719_v57 = vld [vmem:[%s11085_s19 + $0x1c8] sm:$0xff]  ;;  %v721_v58 = vld [vmem:[%s11085_s19 + $0x1d0] sm:$0xff] }
 0x133   :  { %718 = vst [vmem:[#allocation2 + $0x5c0] sm:$0xff] %v717_v56  ;;  %720 = vst [vmem:[#allocation2 + $0x5c8] sm:$0xff] %v719_v57  ;;  %v723_v59 = vld [vmem:[%s11085_s19 + $0x1d8] sm:$0xff]  ;;  %v725_v60 = vld [vmem:[%s11085_s19 + $0x1e0] sm:$0xff] }
 0x134   :  { %722 = vst [vmem:[#allocation2 + $0x5d0] sm:$0xff] %v721_v58  ;;  %v727_v61 = vld [vmem:[%s11085_s19 + $0x1e8] sm:$0xff]  ;;  %724 = vst [vmem:[#allocation2 + $0x5d8] sm:$0xff] %v723_v59  ;;  %v729_v62 = vld [vmem:[%s11085_s19 + $0x1f0] sm:$0xff] }
 0x135   :  { %726 = vst [vmem:[#allocation2 + $0x5e0] sm:$0xff] %v725_v60  ;;  %728 = vst [vmem:[#allocation2 + $0x5e8] sm:$0xff] %v727_v61  ;;  %v731_v63 = vld [vmem:[%s11085_s19 + $0x1f8] sm:$0xff]  ;;  %v733_v0 = vld [vmem:[%s11085_s19 + $0x200] sm:$0xff] }
 0x136   :  { %730 = vst [vmem:[#allocation2 + $0x5f0] sm:$0xff] %v729_v62  ;;  %732 = vst [vmem:[#allocation2 + $0x5f8] sm:$0xff] %v731_v63  ;;  %v735_v1 = vld [vmem:[%s11085_s19 + $0x208] sm:$0xff]  ;;  %v737_v2 = vld [vmem:[%s11085_s19 + $0x210] sm:$0xff] }
 0x137   :  { %734 = vst [vmem:[#allocation2 + $0x600] sm:$0xff] %v733_v0  ;;  %v739_v3 = vld [vmem:[%s11085_s19 + $0x218] sm:$0xff]  ;;  %736 = vst [vmem:[#allocation2 + $0x608] sm:$0xff] %v735_v1  ;;  %v741_v4 = vld [vmem:[%s11085_s19 + $0x220] sm:$0xff] }
 0x138   :  { %738 = vst [vmem:[#allocation2 + $0x610] sm:$0xff] %v737_v2  ;;  %740 = vst [vmem:[#allocation2 + $0x618] sm:$0xff] %v739_v3  ;;  %v743_v5 = vld [vmem:[%s11085_s19 + $0x228] sm:$0xff]  ;;  %v745_v6 = vld [vmem:[%s11085_s19 + $0x230] sm:$0xff]  ;;  %v11048_v2 = vmov 0  }
 0x139   :  { %742 = vst [vmem:[#allocation2 + $0x620] sm:$0xff] %v741_v4  ;;  %744 = vst [vmem:[#allocation2 + $0x628] sm:$0xff] %v743_v5  ;;  %v747_v7 = vld [vmem:[%s11085_s19 + $0x238] sm:$0xff]  ;;  %v749_v8 = vld [vmem:[%s11085_s19 + $0x240] sm:$0xff]  ;;  %1063 = vmatprep.mubr.bf16.mxu0 %v11048_v2  ;;  %1160 = vmatprep.mubr.bf16.mxu1 %v11048_v2 }
 0x13a   :  { %746 = vst [vmem:[#allocation2 + $0x630] sm:$0xff] %v745_v6  ;;  %v751_v9 = vld [vmem:[%s11085_s19 + $0x248] sm:$0xff]  ;;  %748 = vst [vmem:[#allocation2 + $0x638] sm:$0xff] %v747_v7  ;;  %v753_v10 = vld [vmem:[%s11085_s19 + $0x250] sm:$0xff] }
 0x13b   :  { %750 = vst [vmem:[#allocation2 + $0x640] sm:$0xff] %v749_v8  ;;  %752 = vst [vmem:[#allocation2 + $0x648] sm:$0xff] %v751_v9  ;;  %v755_v11 = vld [vmem:[%s11085_s19 + $0x258] sm:$0xff]  ;;  %v757_v12 = vld [vmem:[%s11085_s19 + $0x260] sm:$0xff] }
 0x13c   :  { %754 = vst [vmem:[#allocation2 + $0x650] sm:$0xff] %v753_v10  ;;  %756 = vst [vmem:[#allocation2 + $0x658] sm:$0xff] %v755_v11  ;;  %v759_v13 = vld [vmem:[%s11085_s19 + $0x268] sm:$0xff]  ;;  %v761_v14 = vld [vmem:[%s11085_s19 + $0x270] sm:$0xff] }
 0x13d   :  { %758 = vst [vmem:[#allocation2 + $0x660] sm:$0xff] %v757_v12  ;;  %v763_v15 = vld [vmem:[%s11085_s19 + $0x278] sm:$0xff]  ;;  %760 = vst [vmem:[#allocation2 + $0x668] sm:$0xff] %v759_v13  ;;  %v765_v16 = vld [vmem:[%s11085_s19 + $0x280] sm:$0xff] }
 0x13e   :  { %762 = vst [vmem:[#allocation2 + $0x670] sm:$0xff] %v761_v14  ;;  %764 = vst [vmem:[#allocation2 + $0x678] sm:$0xff] %v763_v15  ;;  %v767_v17 = vld [vmem:[%s11085_s19 + $0x288] sm:$0xff]  ;;  %v769_v18 = vld [vmem:[%s11085_s19 + $0x290] sm:$0xff] }
 0x13f   :  { %766 = vst [vmem:[#allocation2 + $0x680] sm:$0xff] %v765_v16  ;;  %768 = vst [vmem:[#allocation2 + $0x688] sm:$0xff] %v767_v17  ;;  %v771_v19 = vld [vmem:[%s11085_s19 + $0x298] sm:$0xff]  ;;  %v773_v20 = vld [vmem:[%s11085_s19 + $0x2a0] sm:$0xff] }
 0x140   :  { %770 = vst [vmem:[#allocation2 + $0x690] sm:$0xff] %v769_v18  ;;  %v775_v21 = vld [vmem:[%s11085_s19 + $0x2a8] sm:$0xff]  ;;  %772 = vst [vmem:[#allocation2 + $0x698] sm:$0xff] %v771_v19  ;;  %v777_v22 = vld [vmem:[%s11085_s19 + $0x2b0] sm:$0xff] }
 0x141   :  { %774 = vst [vmem:[#allocation2 + $0x6a0] sm:$0xff] %v773_v20  ;;  %776 = vst [vmem:[#allocation2 + $0x6a8] sm:$0xff] %v775_v21  ;;  %v779_v23 = vld [vmem:[%s11085_s19 + $0x2b8] sm:$0xff]  ;;  %v781_v24 = vld [vmem:[%s11085_s19 + $0x2c0] sm:$0xff] }
 0x142   :  { %778 = vst [vmem:[#allocation2 + $0x6b0] sm:$0xff] %v777_v22  ;;  %780 = vst [vmem:[#allocation2 + $0x6b8] sm:$0xff] %v779_v23  ;;  %v783_v25 = vld [vmem:[%s11085_s19 + $0x2c8] sm:$0xff]  ;;  %v785_v26 = vld [vmem:[%s11085_s19 + $0x2d0] sm:$0xff] }
 0x143   :  { %782 = vst [vmem:[#allocation2 + $0x6c0] sm:$0xff] %v781_v24  ;;  %v787_v27 = vld [vmem:[%s11085_s19 + $0x2d8] sm:$0xff]  ;;  %784 = vst [vmem:[#allocation2 + $0x6c8] sm:$0xff] %v783_v25  ;;  %v789_v28 = vld [vmem:[%s11085_s19 + $0x2e0] sm:$0xff] }
 0x144   :  { %786 = vst [vmem:[#allocation2 + $0x6d0] sm:$0xff] %v785_v26  ;;  %788 = vst [vmem:[#allocation2 + $0x6d8] sm:$0xff] %v787_v27  ;;  %v791_v29 = vld [vmem:[%s11085_s19 + $0x2e8] sm:$0xff]  ;;  %v793_v30 = vld [vmem:[%s11085_s19 + $0x2f0] sm:$0xff] }
 0x145   :  { %790 = vst [vmem:[#allocation2 + $0x6e0] sm:$0xff] %v789_v28  ;;  %792 = vst [vmem:[#allocation2 + $0x6e8] sm:$0xff] %v791_v29  ;;  %v795_v31 = vld [vmem:[%s11085_s19 + $0x2f8] sm:$0xff]  ;;  %v797_v32 = vld [vmem:[%s11085_s19 + $0x300] sm:$0xff] }
 0x146   :  { %794 = vst [vmem:[#allocation2 + $0x6f0] sm:$0xff] %v793_v30  ;;  %v799_v33 = vld [vmem:[%s11085_s19 + $0x308] sm:$0xff]  ;;  %796 = vst [vmem:[#allocation2 + $0x6f8] sm:$0xff] %v795_v31  ;;  %v801_v34 = vld [vmem:[%s11085_s19 + $0x310] sm:$0xff] }
 0x147   :  { %798 = vst [vmem:[#allocation2 + $0x700] sm:$0xff] %v797_v32  ;;  %800 = vst [vmem:[#allocation2 + $0x708] sm:$0xff] %v799_v33  ;;  %v803_v35 = vld [vmem:[%s11085_s19 + $0x318] sm:$0xff]  ;;  %v805_v36 = vld [vmem:[%s11085_s19 + $0x320] sm:$0xff] }
 0x148   :  { %802 = vst [vmem:[#allocation2 + $0x710] sm:$0xff] %v801_v34  ;;  %804 = vst [vmem:[#allocation2 + $0x718] sm:$0xff] %v803_v35  ;;  %v807_v37 = vld [vmem:[%s11085_s19 + $0x328] sm:$0xff]  ;;  %v809_v38 = vld [vmem:[%s11085_s19 + $0x330] sm:$0xff] }
 0x149   :  { %806 = vst [vmem:[#allocation2 + $0x720] sm:$0xff] %v805_v36  ;;  %v811_v39 = vld [vmem:[%s11085_s19 + $0x338] sm:$0xff]  ;;  %808 = vst [vmem:[#allocation2 + $0x728] sm:$0xff] %v807_v37  ;;  %v813_v40 = vld [vmem:[%s11085_s19 + $0x340] sm:$0xff] }
 0x14a   :  { %810 = vst [vmem:[#allocation2 + $0x730] sm:$0xff] %v809_v38  ;;  %812 = vst [vmem:[#allocation2 + $0x738] sm:$0xff] %v811_v39  ;;  %v815_v41 = vld [vmem:[%s11085_s19 + $0x348] sm:$0xff]  ;;  %v817_v42 = vld [vmem:[%s11085_s19 + $0x350] sm:$0xff] }
 0x14b   :  { %814 = vst [vmem:[#allocation2 + $0x740] sm:$0xff] %v813_v40  ;;  %816 = vst [vmem:[#allocation2 + $0x748] sm:$0xff] %v815_v41  ;;  %v819_v43 = vld [vmem:[%s11085_s19 + $0x358] sm:$0xff]  ;;  %v821_v44 = vld [vmem:[%s11085_s19 + $0x360] sm:$0xff] }
 0x14c   :  { %818 = vst [vmem:[#allocation2 + $0x750] sm:$0xff] %v817_v42  ;;  %v823_v45 = vld [vmem:[%s11085_s19 + $0x368] sm:$0xff]  ;;  %820 = vst [vmem:[#allocation2 + $0x758] sm:$0xff] %v819_v43  ;;  %v825_v46 = vld [vmem:[%s11085_s19 + $0x370] sm:$0xff] }
 0x14d   :  { %822 = vst [vmem:[#allocation2 + $0x760] sm:$0xff] %v821_v44  ;;  %824 = vst [vmem:[#allocation2 + $0x768] sm:$0xff] %v823_v45  ;;  %v827_v47 = vld [vmem:[%s11085_s19 + $0x378] sm:$0xff]  ;;  %v829_v48 = vld [vmem:[%s11085_s19 + $0x380] sm:$0xff] }
 0x14e   :  { %826 = vst [vmem:[#allocation2 + $0x770] sm:$0xff] %v825_v46  ;;  %828 = vst [vmem:[#allocation2 + $0x778] sm:$0xff] %v827_v47  ;;  %v831_v49 = vld [vmem:[%s11085_s19 + $0x388] sm:$0xff]  ;;  %v833_v50 = vld [vmem:[%s11085_s19 + $0x390] sm:$0xff] }
 0x14f   :  { %830 = vst [vmem:[#allocation2 + $0x780] sm:$0xff] %v829_v48  ;;  %v835_v51 = vld [vmem:[%s11085_s19 + $0x398] sm:$0xff]  ;;  %832 = vst [vmem:[#allocation2 + $0x788] sm:$0xff] %v831_v49  ;;  %v837_v52 = vld [vmem:[%s11085_s19 + $0x3a0] sm:$0xff] }
 0x150   :  { %834 = vst [vmem:[#allocation2 + $0x790] sm:$0xff] %v833_v50  ;;  %836 = vst [vmem:[#allocation2 + $0x798] sm:$0xff] %v835_v51  ;;  %v839_v53 = vld [vmem:[%s11085_s19 + $0x3a8] sm:$0xff]  ;;  %v841_v54 = vld [vmem:[%s11085_s19 + $0x3b0] sm:$0xff] }
 0x151   :  { %838 = vst [vmem:[#allocation2 + $0x7a0] sm:$0xff] %v837_v52  ;;  %840 = vst [vmem:[#allocation2 + $0x7a8] sm:$0xff] %v839_v53  ;;  %v843_v55 = vld [vmem:[%s11085_s19 + $0x3b8] sm:$0xff]  ;;  %v845_v56 = vld [vmem:[%s11085_s19 + $0x3c0] sm:$0xff] }
 0x152   :  { %842 = vst [vmem:[#allocation2 + $0x7b0] sm:$0xff] %v841_v54  ;;  %v847_v57 = vld [vmem:[%s11085_s19 + $0x3c8] sm:$0xff]  ;;  %844 = vst [vmem:[#allocation2 + $0x7b8] sm:$0xff] %v843_v55  ;;  %v849_v58 = vld [vmem:[%s11085_s19 + $0x3d0] sm:$0xff] }
 0x153   :  { %846 = vst [vmem:[#allocation2 + $0x7c0] sm:$0xff] %v845_v56  ;;  %848 = vst [vmem:[#allocation2 + $0x7c8] sm:$0xff] %v847_v57  ;;  %v851_v59 = vld [vmem:[%s11085_s19 + $0x3d8] sm:$0xff]  ;;  %v853_v60 = vld [vmem:[%s11085_s19 + $0x3e0] sm:$0xff] }
 0x154   :  { %850 = vst [vmem:[#allocation2 + $0x7d0] sm:$0xff] %v849_v58  ;;  %852 = vst [vmem:[#allocation2 + $0x7d8] sm:$0xff] %v851_v59  ;;  %v855_v61 = vld [vmem:[%s11085_s19 + $0x3e8] sm:$0xff]  ;;  %v857_v62 = vld [vmem:[%s11085_s19 + $0x3f0] sm:$0xff] }
 0x155   :  { %854 = vst [vmem:[#allocation2 + $0x7e0] sm:$0xff] %v853_v60  ;;  %v859_v63 = vld [vmem:[%s11085_s19 + $0x3f8] sm:$0xff]  ;;  %856 = vst [vmem:[#allocation2 + $0x7e8] sm:$0xff] %v855_v61  ;;  %v7801_v3 = vld [vmem:[%s11086_s16 + $0x64] ss:$8 sps:$4 sm:$0xff]  }
 0x156   :  { %858 = vst [vmem:[#allocation2 + $0x7f0] sm:$0xff] %v857_v62  ;;  %860 = vst [vmem:[#allocation2 + $0x7f8] sm:$0xff] %v859_v63  ;;  %v7798_v0 = vld [vmem:[%s11086_s16 + $0x74] ss:$8 sps:$4 sm:$0xff]   ;;  %v7800_v1 = vld [vmem:[%s11086_s16 + $0x70] ss:$8 sps:$4 sm:$0xff]  }
 0x157   :  { %1031 = vmatprep.subr.bf16.mxu0 %v7798_v0  ;;  %1128 = vmatprep.subr.bf16.mxu1 %v7798_v0  ;;  %v7803_v4 = vld [vmem:[%s11086_s16 + $0x60] ss:$8 sps:$4 sm:$0xff]   ;;  %v7804_v5 = vld [vmem:[%s11086_s16 + $0x54] ss:$8 sps:$4 sm:$0xff]   ;;  %v7806_v6 = vld [vmem:[%s11086_s16 + $0x50] ss:$8 sps:$4 sm:$0xff]  }
 0x158   :  { %1032 = vmatpush1.bf16.msra.mxu0 %v7800_v1  ;;  %1129 = vmatpush1.bf16.msra.mxu1 %v7800_v1  ;;  %v7807_v7 = vld [vmem:[%s11086_s16 + $0x44] ss:$8 sps:$4 sm:$0xff]   ;;  %v7809_v8 = vld [vmem:[%s11086_s16 + $0x40] ss:$8 sps:$4 sm:$0xff]   ;;  %v7810_v9 = vld [vmem:[%s11086_s16 + $0x34] ss:$8 sps:$4 sm:$0xff]  }
 0x159   :  { %1033 = vmatprep.subr.bf16.mxu0 %v7801_v3  ;;  %1130 = vmatprep.subr.bf16.mxu1 %v7801_v3  ;;  %v7812_v10 = vld [vmem:[%s11086_s16 + $0x30] ss:$8 sps:$4 sm:$0xff]   ;;  %v7813_v11 = vld [vmem:[%s11086_s16 + $0x24] ss:$8 sps:$4 sm:$0xff]  }
 0x15c   :  { %1034 = vmatpush1.bf16.msra.mxu0 %v7803_v4  ;;  %1131 = vmatpush1.bf16.msra.mxu1 %v7803_v4 }
 0x15d   :  { %1035 = vmatprep.subr.bf16.mxu0 %v7804_v5  ;;  %1132 = vmatprep.subr.bf16.mxu1 %v7804_v5 }
 0x160   :  { %1036 = vmatpush1.bf16.msra.mxu0 %v7806_v6  ;;  %1133 = vmatpush1.bf16.msra.mxu1 %v7806_v6 }
 0x161   :  { %1037 = vmatprep.subr.bf16.mxu0 %v7807_v7  ;;  %1134 = vmatprep.subr.bf16.mxu1 %v7807_v7 }
 0x164   :  { %1038 = vmatpush1.bf16.msra.mxu0 %v7809_v8  ;;  %1135 = vmatpush1.bf16.msra.mxu1 %v7809_v8 }
 0x165   :  { %1039 = vmatprep.subr.bf16.mxu0 %v7810_v9  ;;  %1136 = vmatprep.subr.bf16.mxu1 %v7810_v9 }
 0x166   :  { %868 = vsyncadd [#allocation3 + $0x1], 16384  ;;  %v7815_v12 = vld [vmem:[%s11086_s16 + $0x20] ss:$8 sps:$4 sm:$0xff]   ;;  %v7816_v13 = vld [vmem:[%s11086_s16 + $0x14] ss:$8 sps:$4 sm:$0xff]   ;;  %v1201_v25 = vlaneseq }
 0x167   :  { %v7818_v14 = vld [vmem:[%s11086_s16 + $0x10] ss:$8 sps:$4 sm:$0xff]   ;;  %v7819_v15 = vld [vmem:[%s11086_s16 + $0x4] ss:$8 sps:$4 sm:$0xff]   ;;  %v7821_v16 = vld [vmem:[%s11086_s16] ss:$8 sps:$4 sm:$0xff]  }
 0x168   :  { %1040 = vmatpush1.bf16.msra.mxu0 %v7812_v10  ;;  %1137 = vmatpush1.bf16.msra.mxu1 %v7812_v10  ;;  %v7822_v17 = vld [vmem:[#allocation4] sm:$0xff]   ;;  %v7824_v19 = vld [vmem:[#allocation4 + $0x8] sm:$0xff]   ;;  %v7826_v21 = vld [vmem:[#allocation4 + $0x10] sm:$0xff]   ;;  %v10054_v26 = vshrl.u32 %v1201_v25, 7  ;;  %s9023_s16 = smov [#allocation2 + $0x800]   ;;  %s9024_s21 = smov [#allocation2 + $0xc00]  }
 0x169   :  { %1041 = vmatprep.subr.bf16.mxu0 %v7813_v11  ;;  %1138 = vmatprep.subr.bf16.mxu1 %v7813_v11  ;;  %v7823_v18 = vld [vmem:[#allocation6] sm:$0xff]   ;;  %v7825_v20 = vld [vmem:[#allocation6 + $0x8] sm:$0xff]   ;;  %v7827_v22 = vld [vmem:[#allocation6 + $0x10] sm:$0xff]   ;;  %s878_s5 = sshll.u32 %s9023_s16, 4  ;;  %s891_s23 = sshll.u32 %s9024_s21, 4  ;;  %s879_s5 = int_to_ptr.vmem [resolvable:$true] %s878_s5  ;;  %s892_s23 = int_to_ptr.vmem [resolvable:$true] %s891_s23 }
 0x16a   :  { %v7828_v23 = vld [vmem:[#allocation4 + $0x18] sm:$0xff]   ;;  %11087 = vst [vmem:[#allocation50_spill] sm:$0xff] %v10054_v26  ;;  %v10057_v27 = vadd.s32 24, %v10054_v26  ;;  %v10060_v28 = vadd.s32 32, %v10054_v26  ;;  %v10063_v29 = vadd.s32 56, %v10054_v26  ;;  %s8944_s6 = scalar_lea.vmem %s879_s5, 16384 }
 0x16b   :  { %v7829_v24 = vld [vmem:[#allocation6 + $0x18] sm:$0xff]   ;;  %p8945_p10 = scmp.ne.s32.totalorder %s879_s5, %s8944_s6  ;;  %s9025_s0 = smov [#allocation2]  }
 0x16c   :  { %1042 = vmatpush1.bf16.msra.mxu0 %v7815_v12  ;;  %1139 = vmatpush1.bf16.msra.mxu1 %v7815_v12  ;;  %11088 = vst [vmem:[#allocation51_spill] sm:$0xff] %v10063_v29  ;;  %s8946_s9 = sshll.u32 %s9025_s0, 4  ;;  %s8947_s9 = int_to_ptr.vmem [resolvable:$false] %s8946_s9 }
 0x16d   :  { %1043 = vmatprep.subr.bf16.mxu0 %v7816_v13  ;;  %1140 = vmatprep.subr.bf16.mxu1 %v7816_v13  ;;  %s8948_s27 = scalar_lea.vmem %s8947_s9, 65536  ;;  %p8949_p11 = scmp.lt.s32.totalorder %s879_s5, %s8947_s9 }
 0x16e   :  { %p8950_p12 = scmp.lt.s32.totalorder %s8948_s27, %s8944_s6 }
 0x170   :  { %1044 = vmatpush1.bf16.msra.mxu0 %v7818_v14  ;;  %1141 = vmatpush1.bf16.msra.mxu1 %v7818_v14  ;;  %p8951_p13 = por %p8950_p12, %p8949_p11 }
 0x171   :  { %1045 = vmatprep.subr.bf16.mxu0 %v7819_v15  ;;  %1142 = vmatprep.subr.bf16.mxu1 %v7819_v15 }
 0x172   :  { %p8952_p0 = pnand %p8951_p13, %p8945_p10 }
 0x174   :  { %1046 = vmatpush1.bf16.msra.mxu0 %v7821_v16  ;;  %1143 = vmatpush1.bf16.msra.mxu1 %v7821_v16 }
 0x177   :  { %1064 = vmatmul.mubr.bf16.vlgmr.msra.gmra.mxu0 %v7822_v17  ;;  %1161 = vmatmul.mubr.bf16.vlgmr.msra.gmra.mxu1 %v7823_v18 }
 0x178   :  { %1073 = vmatprep.mubr.bf16.mxu0 %v11048_v2  ;;  %1170 = vmatprep.mubr.bf16.mxu1 %v11048_v2 }
 0x17f   :  { %1074 = vmatmul.mubr.bf16.gmra.mxu0 %v7824_v19  ;;  %1171 = vmatmul.mubr.bf16.gmra.mxu1 %v7825_v20 }
 0x180   :  { %1083 = vmatprep.mubr.bf16.mxu0 %v11048_v2  ;;  %1180 = vmatprep.mubr.bf16.mxu1 %v11048_v2 }
 0x187   :  { %1084 = vmatmul.mubr.bf16.gmra.mxu0 %v7826_v21  ;;  %1181 = vmatmul.mubr.bf16.gmra.mxu1 %v7827_v22 }
 0x188   :  { %1093 = vmatprep.mubr.bf16.mxu0 %v11048_v2  ;;  %1190 = vmatprep.mubr.bf16.mxu1 %v11048_v2 }
 0x18f   :  { %1094 = vmatmul.mubr.bf16.gmra.mxu0 %v7828_v23  ;;  %1191 = vmatmul.mubr.bf16.gmra.mxu1 %v7829_v24 }
 0x190   :  { %8955 = shalt.err (!%p8952_p0)  }
 0x191   :  { %s11089_s30 = sld [smem:[#allocation71_spill]]  ;;  %v10069_v30 = vadd.s32 8, %v10054_v26  ;;  %v10072_v31 = vadd.s32 16, %v10054_v26  ;;  %s8964_s28 = scalar_lea.vmem %s892_s23, 16384 }
 0x192   :  { %p8965_p1 = scmp.ne.s32.totalorder %s892_s23, %s8964_s28  ;;  %p8969_p2 = scmp.lt.s32.totalorder %s892_s23, %s8947_s9 }
 0x193   :  { %11090 = vst [vmem:[#allocation52_spill] sm:$0xff] %v10069_v30  ;;  %11091 = vst [vmem:[#allocation53_spill] sm:$0xff] %v10072_v31  ;;  %p8970_p3 = scmp.lt.s32.totalorder %s8948_s27, %s8964_s28 }
 0x195   :  { %p8971_p4 = por %p8970_p3, %p8969_p2 }
 0x197   :  { %881 = dma.hbm_to_vmem [thread:$0]  %s11089_s30, 16384, %s879_s5, [#allocation3 + $0x2] }
 0x198   :  { %p8972_p5 = pnand %p8971_p4, %p8965_p1 }
 0x19a   :  { %8975 = shalt.err (!%p8972_p5)  }
 0x19b   :  { %s11092_s25 = sld [smem:[#allocation72_spill]]  ;;  %vm1334_vm0 = vcmask 1040384   ;;  %vm1421_vm1 = vcmask 1046528  }
 0x1a1   :  { %894 = dma.hbm_to_vmem [thread:$0]  %s11092_s25, 16384, %s892_s23, [#allocation3 + $0x3] }
 0x237   :  { %v10081_v36 = vpop.f32.mrf.mxu0  ;;  %v10083_v37 = vpop.f32.mrf.mxu1 }
 0x238   :  { %v11052_v42 = vrot.slane %v10083_v37, 7  ;;  %v11053_v56 = vrot.slane %v10081_v36, 1 }
 0x239   :  { %v10085_v38 = vpop.f32.mrf.mxu0  ;;  %v10087_v39 = vpop.f32.mrf.mxu1 }
 0x23a   :  { %v11050_v51 = vrot.slane %v10087_v39, 7  ;;  %v11051_v62 = vrot.slane %v10085_v38, 1 }
 0x23b   :  { %v10089_v40 = vpop.f32.mrf.mxu0  ;;  %v10091_v41 = vpop.f32.mrf.mxu1 }
 0x23c   :  { %v1337_v44 = vrot.slane %v10091_v41, 7  ;;  %v1423_v48 = vrot.slane %v10089_v40, 1 }
 0x23d   :  { %v10099_v46 = vpop.f32.mrf.mxu0  ;;  %v10101_v47 = vpop.f32.mrf.mxu1 }
 0x23e   :  { %v10107_v49 = vsel %vm1334_vm0, %v11052_v42, %v1337_v44  ;;  %v1339_v52 = vrot.slane %v10101_v47, 7  ;;  %v1426_v57 = vrot.slane %v10099_v46, 1  ;;  %v10135_v63 = vsel %vm1421_vm1, %v11053_v56, %v1423_v48 }
 0x23f   :  { %v10115_v54 = vpop.f32.mrf.mxu0  ;;  %v10117_v55 = vpop.f32.mrf.mxu1 }
 0x240   :  { %v1428_v58 = vrot.slane %v10115_v54, 1  ;;  %v10125_v59 = vsel %vm1334_vm0, %v11050_v51, %v1339_v52  ;;  %v1341_v4 = vrot.slane %v10117_v55, 7  ;;  %v10152_v8 = vsel %vm1421_vm1, %v11051_v62, %v1426_v57 }
 0x241   :  { %v10127_v60 = vpop.f32.mrf.mxu0  ;;  %v10129_v61 = vpop.f32.mrf.mxu1 }
 0x242   :  { %v10138_v0 = vsel %vm1421_vm1, %v1423_v48, %v1428_v58  ;;  %v1430_v1 = vrot.slane %v10127_v60, 1  ;;  %v1343_v5 = vrot.slane %v10129_v61, 7  ;;  %v10177_v21 = vsel %vm1334_vm0, %v1337_v44, %v1341_v4 }
 0x243   :  { %v10145_v6 = vpop.f32.mrf.mxu0  ;;  %v10147_v7 = vpop.f32.mrf.mxu1 }
 0x244   :  { %v10155_v9 = vsel %vm1421_vm1, %v1426_v57, %v1430_v1  ;;  %v1432_v10 = vrot.slane %v10145_v6, 1  ;;  %v1345_v13 = vrot.slane %v10147_v7, 7  ;;  %v10180_v22 = vsel %vm1334_vm0, %v1339_v52, %v1343_v5 }
 0x245   :  { %v10165_v15 = vpop.f32.mrf.mxu0  ;;  %v10167_v16 = vpop.f32.mrf.mxu1 }
 0x246   :  { %v10170_v17 = vsel %vm1421_vm1, %v1428_v58, %v1432_v10  ;;  %v1434_v18 = vrot.slane %v10165_v15, 1  ;;  %v1347_v20 = vrot.slane %v10167_v16, 7  ;;  %v10183_v23 = vsel %vm1334_vm0, %v1341_v4, %v1345_v13 }
 0x247   :  { %v10187_v25 = vpop.f32.mrf.mxu0  ;;  %v10189_v48 = vpop.f32.mrf.mxu1 }
 0x248   :  { %11093 = vst [vmem:[#allocation54_spill] sm:$0xff] %v10189_v48  ;;  %v10194_v58 = vsel %vm1421_vm1, %v1430_v1, %v1434_v18  ;;  %v10197_v44 = vsel %vm1334_vm0, %v1343_v5, %v1347_v20  ;;  %v1436_v52 = vrot.slane %v10187_v25, 1  ;;  %v1349_v2 = vrot.slane %v10189_v48, 7 }
 0x249   :  { %v10203_v35 = vpop.f32.mrf.mxu0  ;;  %v10205_v14 = vpop.f32.mrf.mxu1 }
 0x24a   :  { %11094 = vst [vmem:[#allocation55_spill] sm:$0xff] %v10205_v14  ;;  %v10208_v24 = vsel %vm1421_vm1, %v1432_v10, %v1436_v52  ;;  %v1438_v1 = vrot.slane %v10203_v35, 1  ;;  %v1351_v3 = vrot.slane %v10205_v14, 7  ;;  %v10213_v5 = vsel %vm1334_vm0, %v1345_v13, %v1349_v2 }
 0x24b   :  { %v10215_v45 = vpop.f32.mrf.mxu0  ;;  %v10217_v33 = vpop.f32.mrf.mxu1 }
 0x24c   :  { %11095 = vst [vmem:[#allocation56_spill] sm:$0xff] %v10217_v33  ;;  %v10220_v12 = vsel %vm1421_vm1, %v1434_v18, %v1438_v1  ;;  %v10223_v53 = vsel %vm1334_vm0, %v1347_v20, %v1351_v3  ;;  %v1353_v11 = vrot.slane %v10217_v33, 7  ;;  %v1440_v19 = vrot.slane %v10215_v45, 1 }
 0x24d   :  { %v10230_v13 = vpop.f32.mrf.mxu0  ;;  %v10232_v34 = vpop.f32.mrf.mxu1 }
 0x24e   :  { %11096 = vst [vmem:[#allocation57_spill] sm:$0xff] %v10232_v34  ;;  %v1355_v20 = vrot.slane %v10232_v34, 7  ;;  %v10239_v4 = vsel %vm1334_vm0, %v1349_v2, %v1353_v11  ;;  %v1442_v10 = vrot.slane %v10230_v13, 1  ;;  %v10258_v42 = vsel %vm1421_vm1, %v1436_v52, %v1440_v19 }
 0x24f   :  { %v10244_v57 = vpop.f32.mrf.mxu0  ;;  %v10246_v50 = vpop.f32.mrf.mxu1  ;;  %11099 = vst [vmem:[#allocation60_spill] sm:$0xff] %v10258_v42  ;;  %v11106_v34 = vrot.slane %v10081_v36, 1 }
 0x250   :  { %11097 = vst [vmem:[#allocation58_spill] sm:$0xff] %v10246_v50  ;;  %v10249_v32 = vsel %vm1334_vm0, %v1351_v3, %v1355_v20  ;;  %v1444_v51 = vrot.slane %v10244_v57, 1  ;;  %v1357_v18 = vrot.slane %v10246_v50, 7  ;;  %v10265_v31 = vsel %vm1421_vm1, %v1438_v1, %v1442_v10 }
 0x251   :  { %v10253_v62 = vpop.f32.mrf.mxu0  ;;  %v10255_v2 = vpop.f32.mrf.mxu1  ;;  %11101 = vst [vmem:[#allocation62_spill] sm:$0xff] %v10265_v31  ;;  %v11109_v31 = vrot.slane %v10085_v38, 1 }
 0x252   :  { %11098 = vst [vmem:[#allocation59_spill] sm:$0xff] %v10255_v2  ;;  %v10261_v43 = vsel %vm1421_vm1, %v1440_v19, %v1444_v51  ;;  %v1446_v56 = vrot.slane %v10253_v62, 1  ;;  %v10274_v33 = vsel %vm1334_vm0, %v1353_v11, %v1357_v18  ;;  %v1359_v3 = vrot.slane %v10255_v2, 7 }
 0x253   :  { %11100 = vst [vmem:[#allocation61_spill] sm:$0xff] %v10261_v43  ;;  %v10269_v30 = vpop.f32.mrf.mxu0  ;;  %v10271_v48 = vpop.f32.mrf.mxu1  ;;  %v11108_v43 = vrot.slane %v10083_v37, 7 }
 0x254   :  { %11102 = vst [vmem:[#allocation63_spill] sm:$0xff] %v10271_v48  ;;  %v10277_v52 = vsel %vm1421_vm1, %v1442_v10, %v1446_v56  ;;  %v1448_v19 = vrot.slane %v10269_v30, 1  ;;  %v1316_v42 = vrot.slane %v10271_v48, 7 }
 0x255   :  { %11103 = vst [vmem:[#allocation64_spill] sm:$0xff] %v10277_v52  ;;  %v10288_v11 = vpop.f32.mrf.mxu0  ;;  %v10290_v14 = vpop.f32.mrf.mxu1 }
 0x256   :  { %11104 = vst [vmem:[#allocation65_spill] sm:$0xff] %v10290_v14  ;;  %v10293_v10 = vsel %vm1421_vm1, %v1444_v51, %v1448_v19  ;;  %v10298_v29 = vsel %vm1421_vm1, %v1448_v19, %v11106_v34  ;;  %v1450_v1 = vrot.slane %v10288_v11, 1  ;;  %v10304_v52 = vsel %vm1334_vm0, %v1357_v18, %v1316_v42 }
 0x257   :  { %11105 = vst [vmem:[#allocation66_spill] sm:$0xff] %v10293_v10  ;;  %11107 = vst [vmem:[#allocation67_spill] sm:$0xff] %v10298_v29  ;;  %v10309_v50 = vsel %vm1334_vm0, %v1316_v42, %v11108_v43  ;;  %v1317_v51 = vrot.slane %v10290_v14, 7  ;;  %v10325_v29 = vsel %vm1334_vm0, %v1355_v20, %v1359_v3  ;;  %v11110_v43 = vrot.slane %v10087_v39, 7 }
 0x258   :  { %v10317_v19 = vsel %vm1421_vm1, %v1446_v56, %v1450_v1  ;;  %v10322_v18 = vsel %vm1421_vm1, %v1450_v1, %v11109_v31 }
 0x259   :  { %v10328_v42 = vsel %vm1334_vm0, %v1359_v3, %v1317_v51  ;;  %v1380_v48 = vsel %vm1334_vm0, %v1317_v51, %v11110_v43 }
 0x25a   :  { %8994 = dma.done.wait [#allocation3], 16384 }
 0x25b   :  { %8995 = vsyncadd [#allocation3], 4294950912  ;;  %v11111_v56 = vand.u32 31, %v10054_v26  ;;  %v7245_v31 = vpack.c.bf16 %v10125_v59, %v1380_v48  ;;  %v11112_v20 = vpack.c.bf16 %v10099_v46, %v10085_v38  ;;  %vm9026_vm3 = vmmov 1   ;;  %v7830_v1 = vld [vmem:[#allocation2 + $0x74] ss:$8 sps:$4 sm:$0xff]  }
 0x25c   :  { %v7832_v51 = vld [vmem:[#allocation2 + $0x174] ss:$8 sps:$4 sm:$0xff]   ;;  %2292 = vmatprep.subr.bf16.mxu0 %v7830_v1  ;;  %v7834_v43 = vld [vmem:[#allocation2 + $0x70] ss:$8 sps:$4 sm:$0xff]   ;;  %v7836_v59 = vld [vmem:[#allocation2 + $0x64] ss:$8 sps:$4 sm:$0xff]   ;;  %v11117_v3 = vpack.c.bf16 %v10165_v15, %v10127_v60  ;;  %v7253_v60 = vpack.c.bf16 %v10249_v32, %v10223_v53  ;;  %v11123_v32 = vpack.c.bf16 %v10230_v13, %v10203_v35 }
 0x25d   :  { %vm7750_vm2 = vcmp.ne.s32.totalorder %v11111_v56, 0  ;;  %2397 = vmatprep.mubr.bf16.mxu1 %v11112_v20  ;;  %v7835_v56 = vld [vmem:[#allocation2 + $0x170] ss:$8 sps:$4 sm:$0xff]   ;;  %2365 = vmatprep.subr.bf16.mxu1 %v7832_v51  ;;  %v7838_v38 = vld [vmem:[#allocation2 + $0x164] ss:$8 sps:$4 sm:$0xff]  }
 0x25e   :  { %vm10342_vm4 = vmpackc.low %vm9026_vm3, %vm7750_vm2  ;;  %2293 = vmatpush1.bf16.msra.mxu0 %v7834_v43  ;;  %2366 = vmatpush1.bf16.msra.mxu1 %v7835_v56  ;;  %v7840_v46 = vld [vmem:[#allocation2 + $0x60] ss:$8 sps:$4 sm:$0xff]   ;;  %v7842_v20 = vld [vmem:[#allocation2 + $0x54] ss:$8 sps:$4 sm:$0xff]  }
 0x25f   :  { %7246 = vmatprep.mubr.msk.bf16.mxu0 %vm10342_vm4, %v7245_v31  ;;  %2294 = vmatprep.subr.bf16.mxu0 %v7836_v59  ;;  %v7841_v48 = vld [vmem:[#allocation2 + $0x160] ss:$8 sps:$4 sm:$0xff]   ;;  %v7844_v34 = vld [vmem:[#allocation2 + $0x154] ss:$8 sps:$4 sm:$0xff]   ;;  %v7846_v26 = vld [vmem:[#allocation2 + $0x50] ss:$8 sps:$4 sm:$0xff]  }
 0x260   :  { %2367 = vmatprep.subr.bf16.mxu1 %v7838_v38  ;;  %v7847_v10 = vld [vmem:[#allocation2 + $0x150] ss:$8 sps:$4 sm:$0xff]   ;;  %v7848_v31 = vld [vmem:[#allocation2 + $0x44] ss:$8 sps:$4 sm:$0xff]   ;;  %v7852_v2 = vld [vmem:[#allocation2 + $0x40] ss:$8 sps:$4 sm:$0xff]  }
 0x261   :  { %v7850_v1 = vld [vmem:[#allocation2 + $0x144] ss:$8 sps:$4 sm:$0xff]   ;;  %v7853_v51 = vld [vmem:[#allocation2 + $0x140] ss:$8 sps:$4 sm:$0xff]   ;;  %v7854_v43 = vld [vmem:[#allocation2 + $0x34] ss:$8 sps:$4 sm:$0xff]  }
 0x262   :  { %2295 = vmatpush1.bf16.msra.mxu0 %v7840_v46  ;;  %2368 = vmatpush1.bf16.msra.mxu1 %v7841_v48  ;;  %v7856_v56 = vld [vmem:[#allocation2 + $0x134] ss:$8 sps:$4 sm:$0xff]   ;;  %v7858_v59 = vld [vmem:[#allocation2 + $0x30] ss:$8 sps:$4 sm:$0xff]   ;;  %v7860_v14 = vld [vmem:[#allocation2 + $0x24] ss:$8 sps:$4 sm:$0xff]  }
 0x263   :  { %2296 = vmatprep.subr.bf16.mxu0 %v7842_v20  ;;  %2369 = vmatprep.subr.bf16.mxu1 %v7844_v34  ;;  %v7859_v38 = vld [vmem:[#allocation2 + $0x130] ss:$8 sps:$4 sm:$0xff]   ;;  %v7862_v46 = vld [vmem:[#allocation2 + $0x124] ss:$8 sps:$4 sm:$0xff]   ;;  %v7864_v48 = vld [vmem:[#allocation2 + $0x20] ss:$8 sps:$4 sm:$0xff]  }
 0x264   :  { %v7865_v34 = vld [vmem:[#allocation2 + $0x120] ss:$8 sps:$4 sm:$0xff]   ;;  %v7866_v20 = vld [vmem:[#allocation2 + $0x14] ss:$8 sps:$4 sm:$0xff]   ;;  %v7950_v53 = vld [vmem:[#allocation2 + $0x230] ss:$8 sps:$4 sm:$0xff]  }
 0x265   :  { %v7944_v15 = vld [vmem:[#allocation2 + $0x240] ss:$8 sps:$4 sm:$0xff]   ;;  %v7962_v13 = vld [vmem:[#allocation2 + $0x210] ss:$8 sps:$4 sm:$0xff]  }
 0x266   :  { %2297 = vmatpush1.bf16.msra.mxu0 %v7846_v26  ;;  %2370 = vmatpush1.bf16.msra.mxu1 %v7847_v10  ;;  %v7868_v26 = vld [vmem:[#allocation2 + $0x114] ss:$8 sps:$4 sm:$0xff]   ;;  %v7870_v10 = vld [vmem:[#allocation2 + $0x10] ss:$8 sps:$4 sm:$0xff]   ;;  %v7959_v35 = vld [vmem:[#allocation2 + $0x320] ss:$8 sps:$4 sm:$0xff]  }
 0x267   :  { %2298 = vmatprep.subr.bf16.mxu0 %v7848_v31  ;;  %2371 = vmatprep.subr.bf16.mxu1 %v7850_v1  ;;  %v7871_v31 = vld [vmem:[#allocation2 + $0x110] ss:$8 sps:$4 sm:$0xff]   ;;  %v7872_v1 = vld [vmem:[#allocation2 + $0x4] ss:$8 sps:$4 sm:$0xff]  }
 0x26a   :  { %2299 = vmatpush1.bf16.msra.mxu0 %v7852_v2  ;;  %2372 = vmatpush1.bf16.msra.mxu1 %v7853_v51  ;;  %v7874_v2 = vld [vmem:[#allocation2 + $0x104] ss:$8 sps:$4 sm:$0xff]   ;;  %v7876_v51 = vld [vmem:[#allocation2] ss:$8 sps:$4 sm:$0xff]  }
 0x26b   :  { %2300 = vmatprep.subr.bf16.mxu0 %v7854_v43  ;;  %2373 = vmatprep.subr.bf16.mxu1 %v7856_v56  ;;  %v7877_v43 = vld [vmem:[#allocation2 + $0x100] ss:$8 sps:$4 sm:$0xff]   ;;  %v7878_v56 = vld [vmem:[#allocation2 + $0xf4] ss:$8 sps:$4 sm:$0xff]  }
 0x26e   :  { %2301 = vmatpush1.bf16.msra.mxu0 %v7858_v59  ;;  %2374 = vmatpush1.bf16.msra.mxu1 %v7859_v38  ;;  %v7880_v59 = vld [vmem:[#allocation2 + $0x1f4] ss:$8 sps:$4 sm:$0xff]   ;;  %v7882_v38 = vld [vmem:[#allocation2 + $0xf0] ss:$8 sps:$4 sm:$0xff]  }
 0x26f   :  { %2302 = vmatprep.subr.bf16.mxu0 %v7860_v14  ;;  %2375 = vmatprep.subr.bf16.mxu1 %v7862_v46  ;;  %v7883_v14 = vld [vmem:[#allocation2 + $0x1f0] ss:$8 sps:$4 sm:$0xff]   ;;  %v7884_v46 = vld [vmem:[#allocation2 + $0xe4] ss:$8 sps:$4 sm:$0xff]  }
 0x272   :  { %2303 = vmatpush1.bf16.msra.mxu0 %v7864_v48  ;;  %2376 = vmatpush1.bf16.msra.mxu1 %v7865_v34  ;;  %v7886_v48 = vld [vmem:[#allocation2 + $0x1e4] ss:$8 sps:$4 sm:$0xff]   ;;  %v7888_v34 = vld [vmem:[#allocation2 + $0xe0] ss:$8 sps:$4 sm:$0xff]  }
 0x273   :  { %2304 = vmatprep.subr.bf16.mxu0 %v7866_v20  ;;  %2377 = vmatprep.subr.bf16.mxu1 %v7868_v26  ;;  %v7889_v20 = vld [vmem:[#allocation2 + $0x1e0] ss:$8 sps:$4 sm:$0xff]   ;;  %v7890_v26 = vld [vmem:[#allocation2 + $0xd4] ss:$8 sps:$4 sm:$0xff]  }
 0x276   :  { %2305 = vmatpush1.bf16.msra.mxu0 %v7870_v10  ;;  %2378 = vmatpush1.bf16.msra.mxu1 %v7871_v31  ;;  %v7892_v10 = vld [vmem:[#allocation2 + $0x1d4] ss:$8 sps:$4 sm:$0xff]   ;;  %v7894_v31 = vld [vmem:[#allocation2 + $0xd0] ss:$8 sps:$4 sm:$0xff]  }
 0x277   :  { %2306 = vmatprep.subr.bf16.mxu0 %v7872_v1  ;;  %2379 = vmatprep.subr.bf16.mxu1 %v7874_v2  ;;  %v7895_v1 = vld [vmem:[#allocation2 + $0x1d0] ss:$8 sps:$4 sm:$0xff]   ;;  %v7896_v2 = vld [vmem:[#allocation2 + $0xc4] ss:$8 sps:$4 sm:$0xff]  }
 0x27a   :  { %2307 = vmatpush1.bf16.msra.mxu0 %v7876_v51  ;;  %2380 = vmatpush1.bf16.msra.mxu1 %v7877_v43  ;;  %v7898_v51 = vld [vmem:[#allocation2 + $0x1c4] ss:$8 sps:$4 sm:$0xff]   ;;  %v7900_v43 = vld [vmem:[#allocation2 + $0xc0] ss:$8 sps:$4 sm:$0xff]  }
 0x27b   :  { %2308 = vmatprep.subr.bf16.mxu0 %v7878_v56  ;;  %2381 = vmatprep.subr.bf16.mxu1 %v7880_v59  ;;  %v7901_v56 = vld [vmem:[#allocation2 + $0x1c0] ss:$8 sps:$4 sm:$0xff]   ;;  %v7902_v59 = vld [vmem:[#allocation2 + $0xb4] ss:$8 sps:$4 sm:$0xff]  }
 0x27e   :  { %2309 = vmatpush2.bf16.msra.mxu0 %v7882_v38  ;;  %2382 = vmatpush2.bf16.msra.mxu1 %v7883_v14  ;;  %v7904_v38 = vld [vmem:[#allocation2 + $0x1b4] ss:$8 sps:$4 sm:$0xff]   ;;  %v7906_v14 = vld [vmem:[#allocation2 + $0xb0] ss:$8 sps:$4 sm:$0xff]  }
 0x27f   :  { %2310 = vmatprep.subr.bf16.mxu0 %v7884_v46  ;;  %2383 = vmatprep.subr.bf16.mxu1 %v7886_v48  ;;  %v7907_v46 = vld [vmem:[#allocation2 + $0x1b0] ss:$8 sps:$4 sm:$0xff]   ;;  %v7908_v48 = vld [vmem:[#allocation2 + $0xa4] ss:$8 sps:$4 sm:$0xff]  }
 0x282   :  { %2311 = vmatpush2.bf16.msra.mxu0 %v7888_v34  ;;  %2384 = vmatpush2.bf16.msra.mxu1 %v7889_v20  ;;  %v7910_v34 = vld [vmem:[#allocation2 + $0x1a4] ss:$8 sps:$4 sm:$0xff]   ;;  %v7912_v20 = vld [vmem:[#allocation2 + $0xa0] ss:$8 sps:$4 sm:$0xff]  }
 0x283   :  { %2312 = vmatprep.subr.bf16.mxu0 %v7890_v26  ;;  %2385 = vmatprep.subr.bf16.mxu1 %v7892_v10  ;;  %v7913_v26 = vld [vmem:[#allocation2 + $0x1a0] ss:$8 sps:$4 sm:$0xff]   ;;  %v7914_v10 = vld [vmem:[#allocation2 + $0x94] ss:$8 sps:$4 sm:$0xff]  }
 0x286   :  { %2313 = vmatpush2.bf16.msra.mxu0 %v7894_v31  ;;  %2386 = vmatpush2.bf16.msra.mxu1 %v7895_v1  ;;  %v7916_v31 = vld [vmem:[#allocation2 + $0x194] ss:$8 sps:$4 sm:$0xff]   ;;  %v7918_v1 = vld [vmem:[#allocation2 + $0x90] ss:$8 sps:$4 sm:$0xff]  }
 0x287   :  { %2314 = vmatprep.subr.bf16.mxu0 %v7896_v2  ;;  %2387 = vmatprep.subr.bf16.mxu1 %v7898_v51  ;;  %v7919_v2 = vld [vmem:[#allocation2 + $0x190] ss:$8 sps:$4 sm:$0xff]   ;;  %v7920_v51 = vld [vmem:[#allocation2 + $0x84] ss:$8 sps:$4 sm:$0xff]  }
 0x28a   :  { %2315 = vmatpush2.bf16.msra.mxu0 %v7900_v43  ;;  %2388 = vmatpush2.bf16.msra.mxu1 %v7901_v56  ;;  %v7922_v43 = vld [vmem:[#allocation2 + $0x184] ss:$8 sps:$4 sm:$0xff]   ;;  %v7924_v56 = vld [vmem:[#allocation2 + $0x80] ss:$8 sps:$4 sm:$0xff]  }
 0x28b   :  { %2316 = vmatprep.subr.bf16.mxu0 %v7902_v59  ;;  %2389 = vmatprep.subr.bf16.mxu1 %v7904_v38  ;;  %v7925_v59 = vld [vmem:[#allocation2 + $0x180] ss:$8 sps:$4 sm:$0xff]   ;;  %v7928_v38 = vld [vmem:[#allocation2 + $0x274] ss:$8 sps:$4 sm:$0xff]  }
 0x28e   :  { %2317 = vmatpush2.bf16.msra.mxu0 %v7906_v14  ;;  %2390 = vmatpush2.bf16.msra.mxu1 %v7907_v46  ;;  %v7931_v14 = vld [vmem:[#allocation2 + $0x374] ss:$8 sps:$4 sm:$0xff]   ;;  %v7249_v46 = vpack.c.bf16 %v10107_v49, %v10309_v50 }
 0x28f   :  { %2318 = vmatprep.subr.bf16.mxu0 %v7908_v48  ;;  %2391 = vmatprep.subr.bf16.mxu1 %v7910_v34  ;;  %v7926_v48 = vld [vmem:[#allocation2 + $0x270] ss:$8 sps:$4 sm:$0xff]   ;;  %v7940_v49 = vld [vmem:[#allocation2 + $0x254] ss:$8 sps:$4 sm:$0xff]  }
 0x290   :  { %v7929_v34 = vld [vmem:[#allocation2 + $0x370] ss:$8 sps:$4 sm:$0xff]   ;;  %v7943_v50 = vld [vmem:[#allocation2 + $0x354] ss:$8 sps:$4 sm:$0xff]  }
 0x292   :  { %2319 = vmatpush2.bf16.msra.mxu0 %v7912_v20  ;;  %2392 = vmatpush2.bf16.msra.mxu1 %v7913_v26  ;;  %v7934_v20 = vld [vmem:[#allocation2 + $0x264] ss:$8 sps:$4 sm:$0xff]  }
 0x293   :  { %2320 = vmatprep.subr.bf16.mxu0 %v7914_v10  ;;  %2393 = vmatprep.subr.bf16.mxu1 %v7916_v31  ;;  %v7937_v26 = vld [vmem:[#allocation2 + $0x364] ss:$8 sps:$4 sm:$0xff]   ;;  %v11115_v10 = vpack.c.bf16 %v10089_v40, %v10081_v36  ;;  %v7932_v31 = vld [vmem:[#allocation2 + $0x260] ss:$8 sps:$4 sm:$0xff]   ;;  %v11118_v36 = vand.u32 31, %v10060_v28  ;;  %v11121_v28 = vpack.c.bf16 %v10183_v23, %v10177_v21  ;;  %v7257_v23 = vpack.c.bf16 %v10239_v4, %v10213_v5 }
 0x294   :  { %v7946_v40 = vld [vmem:[#allocation2 + $0x244] ss:$8 sps:$4 sm:$0xff]   ;;  %v7953_v21 = vld [vmem:[#allocation2 + $0x330] ss:$8 sps:$4 sm:$0xff]   ;;  %v7964_v4 = vld [vmem:[#allocation2 + $0x214] ss:$8 sps:$4 sm:$0xff]  }
 0x295   :  { %vm7751_vm5 = vcmp.ne.s32.totalorder %v11118_v36, 0  ;;  %v7967_v5 = vld [vmem:[#allocation2 + $0x314] ss:$8 sps:$4 sm:$0xff]   ;;  %v7995_v36 = vld [vmem:[#allocation2 + $0x3c0] ss:$8 sps:$4 sm:$0xff]  }
 0x296   :  { %2321 = vmatpush2.bf16.msra.mxu0 %v7918_v1  ;;  %2394 = vmatpush2.bf16.msra.mxu1 %v7919_v2  ;;  %v7935_v1 = vld [vmem:[#allocation2 + $0x360] ss:$8 sps:$4 sm:$0xff]   ;;  %v11116_v2 = vpack.c.bf16 %v10197_v44, %v10180_v22  ;;  %vm10364_vm6 = vmpackc.low %vm9026_vm3, %vm7751_vm5  ;;  %v11122_v44 = vpack.c.bf16 %v10145_v6, %v10115_v54  ;;  %v7958_v54 = vld [vmem:[#allocation2 + $0x224] ss:$8 sps:$4 sm:$0xff]  }
 0x297   :  { %2322 = vmatprep.subr.bf16.mxu0 %v7920_v51  ;;  %2395 = vmatprep.subr.bf16.mxu1 %v7922_v43  ;;  %v7938_v51 = vld [vmem:[#allocation2 + $0x250] ss:$8 sps:$4 sm:$0xff]   ;;  %v7947_v22 = vld [vmem:[#allocation2 + $0x340] ss:$8 sps:$4 sm:$0xff]   ;;  %v7961_v6 = vld [vmem:[#allocation2 + $0x324] ss:$8 sps:$4 sm:$0xff]  }
 0x298   :  { %v7941_v43 = vld [vmem:[#allocation2 + $0x350] ss:$8 sps:$4 sm:$0xff]  }
 0x29a   :  { %2323 = vmatpush2.bf16.msra.mxu0 %v7924_v56  ;;  %2396 = vmatpush2.bf16.msra.mxu1 %v7925_v59  ;;  %v7949_v56 = vld [vmem:[#allocation2 + $0x344] ss:$8 sps:$4 sm:$0xff]   ;;  %v7998_v59 = vld [vmem:[#allocation2 + $0x2b0] ss:$8 sps:$4 sm:$0xff]  }
 0x29b   :  { %2438 = vmatprep.subr.bf16.mxu0 %v7928_v38  ;;  %2511 = vmatprep.subr.bf16.mxu1 %v7931_v14  ;;  %v7952_v38 = vld [vmem:[#allocation2 + $0x234] ss:$8 sps:$4 sm:$0xff]  }
 0x29c   :  { %v7955_v14 = vld [vmem:[#allocation2 + $0x334] ss:$8 sps:$4 sm:$0xff]  }
 0x29d   :  { %7250 = vmatmul.mubr.msk.bf16.vlgmr.msra.gmra.mxu0 %vm10342_vm4, %v7249_v46  ;;  %2398 = vmatmul.mubr.bf16.vlgmr.msra.gmra.mxu1 %v11115_v10  ;;  %v7956_v46 = vld [vmem:[#allocation2 + $0x220] ss:$8 sps:$4 sm:$0xff]   ;;  %v11127_v10 = vpack.c.bf16 %v10304_v52, %v10274_v33  ;;  %v11130_v33 = vpack.c.bf16 %v10155_v9, %v10152_v8  ;;  %v7982_v52 = vld [vmem:[#allocation2 + $0x2e4] ss:$8 sps:$4 sm:$0xff]   ;;  %v7986_v8 = vld [vmem:[#allocation2 + $0x2d0] ss:$8 sps:$4 sm:$0xff]  }
 0x29e   :  { %2439 = vmatpush1.bf16.msra.mxu0 %v7926_v48  ;;  %2512 = vmatpush1.bf16.msra.mxu1 %v7929_v34  ;;  %v11124_v48 = vpack.c.bf16 %v10215_v45, %v10187_v25  ;;  %v11125_v34 = vpack.c.bf16 %v10328_v42, %v10325_v29  ;;  %v7965_v45 = vld [vmem:[#allocation2 + $0x310] ss:$8 sps:$4 sm:$0xff]   ;;  %v7970_v25 = vld [vmem:[#allocation2 + $0x204] ss:$8 sps:$4 sm:$0xff]   ;;  %v7968_v29 = vld [vmem:[#allocation2 + $0x200] ss:$8 sps:$4 sm:$0xff]  }
 0x29f   :  { %2440 = vmatprep.subr.bf16.mxu0 %v7934_v20  ;;  %2513 = vmatprep.subr.bf16.mxu1 %v7937_v26  ;;  %v11126_v20 = vpack.c.bf16 %v10288_v11, %v10253_v62  ;;  %v7973_v26 = vld [vmem:[#allocation2 + $0x304] ss:$8 sps:$4 sm:$0xff]   ;;  %v7971_v62 = vld [vmem:[#allocation2 + $0x300] ss:$8 sps:$4 sm:$0xff]   ;;  %v7976_v11 = vld [vmem:[#allocation2 + $0x2f4] ss:$8 sps:$4 sm:$0xff]  }
 0x2a0   :  { %2334 = vmatprep.mubr.bf16.mxu0 %v11116_v2  ;;  %2407 = vmatprep.mubr.bf16.mxu1 %v11117_v3  ;;  %v7979_v42 = vld [vmem:[#allocation2 + $0x3f4] ss:$8 sps:$4 sm:$0xff]   ;;  %v7983_v2 = vld [vmem:[#allocation2 + $0x3e0] ss:$8 sps:$4 sm:$0xff]   ;;  %v7989_v9 = vld [vmem:[#allocation2 + $0x3d0] ss:$8 sps:$4 sm:$0xff]  }
 0x2a1   :  { %v7994_v3 = vld [vmem:[#allocation2 + $0x2c4] ss:$8 sps:$4 sm:$0xff]  }
 0x2a2   :  { %2441 = vmatpush1.bf16.msra.mxu0 %v7932_v31  ;;  %2514 = vmatpush1.bf16.msra.mxu1 %v7935_v1  ;;  %v11128_v31 = vpack.c.bf16 %v10269_v30, %v10244_v57  ;;  %v11129_v1 = vpack.c.bf16 %v10101_v47, %v10087_v39  ;;  %v7974_v30 = vld [vmem:[#allocation2 + $0x2f0] ss:$8 sps:$4 sm:$0xff]   ;;  %v7988_v39 = vld [vmem:[#allocation2 + $0x2d4] ss:$8 sps:$4 sm:$0xff]  }
 0x2a3   :  { %2442 = vmatprep.subr.bf16.mxu0 %v7940_v49  ;;  %2515 = vmatprep.subr.bf16.mxu1 %v7943_v50  ;;  %v7977_v57 = vld [vmem:[#allocation2 + $0x3f0] ss:$8 sps:$4 sm:$0xff]   ;;  %v7985_v49 = vld [vmem:[#allocation2 + $0x3e4] ss:$8 sps:$4 sm:$0xff]   ;;  %v7980_v50 = vld [vmem:[#allocation2 + $0x2e0] ss:$8 sps:$4 sm:$0xff]  }
 0x2a4   :  { %v7991_v47 = vld [vmem:[#allocation2 + $0x3d4] ss:$8 sps:$4 sm:$0xff]  }
 0x2a5   :  { %2335 = vmatmul.mubr.bf16.gmra.mxu0 %v11121_v28  ;;  %2408 = vmatmul.mubr.bf16.gmra.mxu1 %v11122_v44  ;;  %v8004_v28 = vld [vmem:[#allocation2 + $0x2a0] ss:$8 sps:$4 sm:$0xff]  }
 0x2a6   :  { %2443 = vmatpush1.bf16.msra.mxu0 %v7938_v51  ;;  %2516 = vmatpush1.bf16.msra.mxu1 %v7941_v43  ;;  %v7997_v51 = vld [vmem:[#allocation2 + $0x3c4] ss:$8 sps:$4 sm:$0xff]   ;;  %v7992_v43 = vld [vmem:[#allocation2 + $0x2c0] ss:$8 sps:$4 sm:$0xff]  }
 0x2a7   :  { %2444 = vmatprep.subr.bf16.mxu0 %v7946_v40  ;;  %2517 = vmatprep.subr.bf16.mxu1 %v7949_v56  ;;  %v8000_v40 = vld [vmem:[#allocation2 + $0x2b4] ss:$8 sps:$4 sm:$0xff]   ;;  %v8007_v44 = vld [vmem:[#allocation2 + $0x3a0] ss:$8 sps:$4 sm:$0xff]  }
 0x2a8   :  { %7254 = vmatprep.mubr.msk.bf16.mxu0 %vm10364_vm6, %v7253_v60  ;;  %2417 = vmatprep.mubr.bf16.mxu1 %v11123_v32  ;;  %v8003_v56 = vld [vmem:[#allocation2 + $0x3b4] ss:$8 sps:$4 sm:$0xff]   ;;  %v8001_v60 = vld [vmem:[#allocation2 + $0x3b0] ss:$8 sps:$4 sm:$0xff]  }
 0x2a9   :  { %v8010_v32 = vld [vmem:[#allocation2 + $0x290] ss:$8 sps:$4 sm:$0xff]  }
 0x2aa   :  { %2445 = vmatpush1.bf16.msra.mxu0 %v7944_v15  ;;  %2518 = vmatpush1.bf16.msra.mxu1 %v7947_v22  ;;  %v8006_v15 = vld [vmem:[#allocation2 + $0x2a4] ss:$8 sps:$4 sm:$0xff]  }
 0x2ab   :  { %2446 = vmatprep.subr.bf16.mxu0 %v7952_v38  ;;  %2519 = vmatprep.subr.bf16.mxu1 %v7955_v14  ;;  %v8009_v22 = vld [vmem:[#allocation2 + $0x3a4] ss:$8 sps:$4 sm:$0xff]   ;;  %v8012_v38 = vld [vmem:[#allocation2 + $0x294] ss:$8 sps:$4 sm:$0xff]  }
 0x2ac   :  { %v8015_v14 = vld [vmem:[#allocation2 + $0x394] ss:$8 sps:$4 sm:$0xff]  }
 0x2ad   :  { %7258 = vmatmul.mubr.msk.bf16.gmra.mxu0 %vm10364_vm6, %v7257_v23  ;;  %2418 = vmatmul.mubr.bf16.gmra.mxu1 %v11124_v48  ;;  %v8021_v23 = vld [vmem:[#allocation2 + $0x384] ss:$8 sps:$4 sm:$0xff]   ;;  %v7261_v48 = vpack.c.bf16 %v10220_v12, %v10194_v58  ;;  %v11135_v12 = vpack.c.bf16 %v10147_v7, %v10117_v55  ;;  %v11136_v58 = vld [vmem:[#allocation57_spill] sm:$0xff] }
 0x2ae   :  { %2447 = vmatpush1.bf16.msra.mxu0 %v7950_v53  ;;  %2520 = vmatpush1.bf16.msra.mxu1 %v7953_v21  ;;  %v8013_v53 = vld [vmem:[#allocation2 + $0x390] ss:$8 sps:$4 sm:$0xff]   ;;  %v8018_v21 = vld [vmem:[#allocation2 + $0x284] ss:$8 sps:$4 sm:$0xff]  }
 0x2af   :  { %2448 = vmatprep.subr.bf16.mxu0 %v7958_v54  ;;  %2521 = vmatprep.subr.bf16.mxu1 %v7961_v6  ;;  %v8016_v54 = vld [vmem:[#allocation2 + $0x280] ss:$8 sps:$4 sm:$0xff]  }
 0x2b0   :  { %2354 = vmatprep.mubr.bf16.mxu0 %v11125_v34  ;;  %2427 = vmatprep.mubr.bf16.mxu1 %v11126_v20  ;;  %v8019_v6 = vld [vmem:[#allocation2 + $0x380] ss:$8 sps:$4 sm:$0xff]   ;;  %v11139_v34 = vld [vmem:[#allocation64_spill] sm:$0xff] }
 0x2b1   :  { %v11142_v20 = vld [vmem:[#allocation51_spill] sm:$0xff]  ;;  %v11145_v55 = vld [vmem:[#allocation54_spill] sm:$0xff] }
 0x2b2   :  { %2449 = vmatpush1.bf16.msra.mxu0 %v7956_v46  ;;  %2522 = vmatpush1.bf16.msra.mxu1 %v7959_v35  ;;  %v11131_v46 = vand.u32 31, %v10057_v27  ;;  %v11132_v35 = vpack.c.bf16 %v10091_v41, %v10083_v37  ;;  %v11137_v37 = vld [vmem:[#allocation55_spill] sm:$0xff] }
 0x2b3   :  { %2450 = vmatprep.subr.bf16.mxu0 %v7964_v4  ;;  %2523 = vmatprep.subr.bf16.mxu1 %v7967_v5  ;;  %v11133_v4 = vpack.c.bf16 %v10138_v0, %v10135_v63  ;;  %v11134_v5 = vpack.c.bf16 %v10167_v16, %v10129_v61  ;;  %v11138_v41 = vpack.c.bf16 %v11136_v58, %v11137_v37  ;;  %v11140_v63 = vld [vmem:[#allocation62_spill] sm:$0xff]  ;;  %v11143_v61 = vand.u32 31, %v11142_v20 }
 0x2b4   :  { %vm7752_vm7 = vcmp.ne.s32.totalorder %v11131_v46, 31  ;;  %v11141_v0 = vpack.c.bf16 %v11139_v34, %v11140_v63  ;;  %v7269_v16 = vpack.c.bf16 %v10322_v18, %v10317_v19  ;;  %v11156_v19 = vld [vmem:[#allocation58_spill] sm:$0xff] }
 0x2b5   :  { %2355 = vmatmul.mubr.bf16.gmra.mxu0 %v11127_v10  ;;  %2428 = vmatmul.mubr.bf16.gmra.mxu1 %v11128_v31  ;;  %vm7260_vm8 = vmpackc.low %vm7752_vm7, %vm9026_vm3  ;;  %vm7753_vm9 = vcmp.ne.s32.totalorder %v11143_v61, 31  ;;  %v11151_v10 = vld [vmem:[#allocation59_spill] sm:$0xff] }
 0x2b6   :  { %2451 = vmatpush1.bf16.msra.mxu0 %v7962_v13  ;;  %2524 = vmatpush1.bf16.msra.mxu1 %v7965_v45  ;;  %v7265_v13 = vpack.c.bf16 %v10208_v24, %v10170_v17  ;;  %vm7268_vm10 = vmpackc.low %vm7753_vm9, %vm9026_vm3  ;;  %v11144_v17 = vld [vmem:[#allocation56_spill] sm:$0xff]  ;;  %v11147_v24 = vld [vmem:[#allocation61_spill] sm:$0xff] }
 0x2b7   :  { %2452 = vmatprep.subr.bf16.mxu0 %v7970_v25  ;;  %2525 = vmatprep.subr.bf16.mxu1 %v7973_v26  ;;  %v11146_v7 = vpack.c.bf16 %v11144_v17, %v11145_v55  ;;  %v11148_v45 = vld [vmem:[#allocation60_spill] sm:$0xff]  ;;  %v11150_v26 = vld [vmem:[#allocation65_spill] sm:$0xff] }
 0x2b8   :  { %2470 = vmatprep.mubr.bf16.mxu0 %v11129_v1  ;;  %2543 = vmatprep.mubr.bf16.mxu1 %v11130_v33  ;;  %v11149_v25 = vpack.c.bf16 %v11147_v24, %v11148_v45  ;;  %v11152_v31 = vpack.c.bf16 %v11150_v26, %v11151_v10  ;;  %v11158_v1 = vmov 0  }
 0x2ba   :  { %2453 = vmatpush1.bf16.msra.mxu0 %v7968_v29  ;;  %2526 = vmatpush1.bf16.msra.mxu1 %v7971_v62  ;;  %v11153_v29 = vld [vmem:[#allocation66_spill] sm:$0xff]  ;;  %v11154_v62 = vld [vmem:[#allocation67_spill] sm:$0xff] }
 0x2bb   :  { %2454 = vmatprep.subr.bf16.mxu0 %v7976_v11  ;;  %2527 = vmatprep.subr.bf16.mxu1 %v7979_v42  ;;  %v7273_v11 = vpack.c.bf16 %v11154_v62, %v11153_v29  ;;  %v11155_v42 = vld [vmem:[#allocation63_spill] sm:$0xff] }
 0x2bc   :  { %v11157_v18 = vpack.c.bf16 %v11155_v42, %v11156_v19 }
 0x2be   :  { %2455 = vmatpush2.bf16.msra.mxu0 %v7974_v30  ;;  %2528 = vmatpush2.bf16.msra.mxu1 %v7977_v57 }
 0x2bf   :  { %2456 = vmatprep.subr.bf16.mxu0 %v7982_v52  ;;  %2529 = vmatprep.subr.bf16.mxu1 %v7985_v49 }
 0x2c2   :  { %2457 = vmatpush2.bf16.msra.mxu0 %v7980_v50  ;;  %2530 = vmatpush2.bf16.msra.mxu1 %v7983_v2 }
 0x2c3   :  { %2458 = vmatprep.subr.bf16.mxu0 %v7988_v39  ;;  %2531 = vmatprep.subr.bf16.mxu1 %v7991_v47 }
 0x2c6   :  { %2459 = vmatpush2.bf16.msra.mxu0 %v7986_v8  ;;  %2532 = vmatpush2.bf16.msra.mxu1 %v7989_v9 }
 0x2c7   :  { %2460 = vmatprep.subr.bf16.mxu0 %v7994_v3  ;;  %2533 = vmatprep.subr.bf16.mxu1 %v7997_v51 }
 0x2ca   :  { %2461 = vmatpush2.bf16.msra.mxu0 %v7992_v43  ;;  %2534 = vmatpush2.bf16.msra.mxu1 %v7995_v36 }
 0x2cb   :  { %2462 = vmatprep.subr.bf16.mxu0 %v8000_v40  ;;  %2535 = vmatprep.subr.bf16.mxu1 %v8003_v56 }
 0x2ce   :  { %2463 = vmatpush2.bf16.msra.mxu0 %v7998_v59  ;;  %2536 = vmatpush2.bf16.msra.mxu1 %v8001_v60 }
 0x2cf   :  { %2464 = vmatprep.subr.bf16.mxu0 %v8006_v15  ;;  %2537 = vmatprep.subr.bf16.mxu1 %v8009_v22 }
 0x2d2   :  { %2465 = vmatpush2.bf16.msra.mxu0 %v8004_v28  ;;  %2538 = vmatpush2.bf16.msra.mxu1 %v8007_v44 }
 0x2d3   :  { %2466 = vmatprep.subr.bf16.mxu0 %v8012_v38  ;;  %2539 = vmatprep.subr.bf16.mxu1 %v8015_v14 }
 0x2d6   :  { %2467 = vmatpush2.bf16.msra.mxu0 %v8010_v32  ;;  %2540 = vmatpush2.bf16.msra.mxu1 %v8013_v53 }
 0x2d7   :  { %2468 = vmatprep.subr.bf16.mxu0 %v8018_v21  ;;  %2541 = vmatprep.subr.bf16.mxu1 %v8021_v23 }
 0x2da   :  { %2469 = vmatpush2.bf16.msra.mxu0 %v8016_v54  ;;  %2542 = vmatpush2.bf16.msra.mxu1 %v8019_v6 }
 0x2dd   :  { %2471 = vmatmul.mubr.bf16.vlgmr.msra.gmra.mxu0 %v11132_v35  ;;  %2544 = vmatmul.mubr.bf16.vlgmr.msra.gmra.mxu1 %v11133_v4 }
 0x2de   :  { %2480 = vmatprep.mubr.bf16.mxu0 %v11134_v5  ;;  %7262 = vmatprep.mubr.msk.bf16.mxu1 %vm7260_vm8, %v7261_v48 }
 0x2e5   :  { %2481 = vmatmul.mubr.bf16.gmra.mxu0 %v11135_v12  ;;  %7266 = vmatmul.mubr.msk.bf16.gmra.mxu1 %vm7260_vm8, %v7265_v13 }
 0x2e6   :  { %2490 = vmatprep.mubr.bf16.mxu0 %v11138_v41  ;;  %2563 = vmatprep.mubr.bf16.mxu1 %v11141_v0 }
 0x2ed   :  { %2491 = vmatmul.mubr.bf16.gmra.mxu0 %v11146_v7  ;;  %2564 = vmatmul.mubr.bf16.gmra.mxu1 %v11149_v25 }
 0x2ee   :  { %2500 = vmatprep.mubr.bf16.mxu0 %v11152_v31  ;;  %7270 = vmatprep.mubr.msk.bf16.mxu1 %vm7268_vm10, %v7269_v16 }
 0x2f5   :  { %2501 = vmatmul.mubr.bf16.gmra.mxu0 %v11157_v18  ;;  %7274 = vmatmul.mubr.msk.bf16.gmra.mxu1 %vm7268_vm10, %v7273_v11 }
 0x2f6   :  { %2697 = vmatprep.mubr.bf16.mxu1 %v11158_v1 }
 0x35d   :  { %v2326_v33 = vpop.f32.mrf.mxu0  ;;  %v2399_v30 = vpop.f32.mrf.mxu1 }
 0x35e   :  { %v2400_v57 = vadd.f32 %v2399_v30, %v2326_v33 }
 0x35f   :  { %v2328_v52 = vpop.f32.mrf.mxu0  ;;  %v2401_v49 = vpop.f32.mrf.mxu1 }
 0x360   :  { %v2402_v50 = vadd.f32 %v2401_v49, %v2328_v52 }
 0x361   :  { %v2330_v2 = vpop.f32.mrf.mxu0  ;;  %v2403_v39 = vpop.f32.mrf.mxu1 }
 0x362   :  { %v2404_v47 = vadd.f32 %v2403_v39, %v2330_v2 }
 0x363   :  { %v2332_v8 = vpop.f32.mrf.mxu0  ;;  %v2405_v9 = vpop.f32.mrf.mxu1 }
 0x364   :  { %v2406_v61 = vadd.f32 %v2405_v9, %v2332_v8 }
 0x365   :  { %v10451_v3 = vpop.f32.mrf.mxu0  ;;  %v10453_v51 = vpop.f32.mrf.mxu1 }
 0x367   :  { %v10455_v43 = vpop.f32.mrf.mxu0  ;;  %v10457_v36 = vpop.f32.mrf.mxu1 }
 0x369   :  { %v10459_v40 = vpop.f32.mrf.mxu0  ;;  %v10461_v56 = vpop.f32.mrf.mxu1 }
 0x36b   :  { %v10463_v59 = vpop.f32.mrf.mxu0  ;;  %v10465_v60 = vpop.f32.mrf.mxu1 }
 0x36d   :  { %v10467_v15 = vpop.f32.mrf.mxu0  ;;  %v10469_v22 = vpop.f32.mrf.mxu1 }
 0x36f   :  { %v10471_v28 = vpop.f32.mrf.mxu0  ;;  %v10473_v44 = vpop.f32.mrf.mxu1 }
 0x371   :  { %v10475_v38 = vpop.f32.mrf.mxu0  ;;  %v10477_v14 = vpop.f32.mrf.mxu1 }
 0x373   :  { %v2352_v32 = vpop.f32.mrf.mxu0  ;;  %v2425_v53 = vpop.f32.mrf.mxu1 }
 0x375   :  { %v2356_v21 = vpop.f32.mrf.mxu0  ;;  %v2429_v23 = vpop.f32.mrf.mxu1 }
 0x377   :  { %v2358_v54 = vpop.f32.mrf.mxu0  ;;  %v2431_v6 = vpop.f32.mrf.mxu1 }
 0x379   :  { %v10479_v46 = vpop.f32.mrf.mxu0  ;;  %v10481_v48 = vpop.f32.mrf.mxu1 }
 0x37b   :  { %v10483_v35 = vpop.f32.mrf.mxu0  ;;  %v10485_v4 = vpop.f32.mrf.mxu1 }
 0x39d   :  { %v2472_v5 = vpop.f32.mrf.mxu0  ;;  %v2545_v13 = vpop.f32.mrf.mxu1 }
 0x39e   :  { %v2473_v12 = vadd.f32 %v2472_v5, %v2400_v57 }
 0x39f   :  { %v2474_v58 = vpop.f32.mrf.mxu0  ;;  %v2547_v37 = vpop.f32.mrf.mxu1 }
 0x3a0   :  { %v2546_v41 = vadd.f32 %v2545_v13, %v2473_v12  ;;  %v2475_v34 = vadd.f32 %v2474_v58, %v2402_v50 }
 0x3a1   :  { %v2476_v63 = vpop.f32.mrf.mxu0  ;;  %v2549_v0 = vpop.f32.mrf.mxu1 }
 0x3a2   :  { %v2477_v20 = vadd.f32 %v2476_v63, %v2404_v47  ;;  %v2600_v55 = vmul.f32 0.2, %v2546_v41  ;;  %v2548_v7 = vadd.f32 %v2547_v37, %v2475_v34  ;;  %vm2584_vm11 = vcmp.gt.f32.partialorder %v2546_v41, 0.0 }
 0x3a3   :  { %v2478_v16 = vpop.f32.mrf.mxu0  ;;  %v2551_v17 = vpop.f32.mrf.mxu1 }
 0x3a4   :  { %v2550_v24 = vadd.f32 %v2549_v0, %v2477_v20  ;;  %v2479_v45 = vadd.f32 %v2478_v16, %v2406_v61  ;;  %v2616_v11 = vsel %vm2584_vm11, %v2546_v41, %v2600_v55  ;;  %v2601_v42 = vmul.f32 0.2, %v2548_v7 }
 0x3a5   :  { %v2482_v25 = vpop.f32.mrf.mxu0  ;;  %v2555_v26 = vpop.f32.mrf.mxu1  ;;  %vm2585_vm13 = vcmp.gt.f32.partialorder %v2548_v7, 0.0  ;;  %v2426_v41 = vadd.f32 %v2425_v53, %v2352_v32  ;;  %v2410_v0 = vadd.f32 %v10453_v51, %v10451_v3  ;;  %v2412_v20 = vadd.f32 %v10457_v36, %v10455_v43 }
 0x3a6   :  { %vm2586_vm12 = vcmp.gt.f32.partialorder %v2550_v24, 0.0  ;;  %v2602_v10 = vmul.f32 0.2, %v2550_v24  ;;  %v2552_v31 = vadd.f32 %v2551_v17, %v2479_v45  ;;  %v2617_v2 = vsel %vm2585_vm13, %v2548_v7, %v2601_v42 }
 0x3a7   :  { %v2484_v29 = vpop.f32.mrf.mxu0  ;;  %v2557_v62 = vpop.f32.mrf.mxu1  ;;  %v2430_v61 = vadd.f32 %v2429_v23, %v2356_v21  ;;  %v2432_v16 = vadd.f32 %v2431_v6, %v2358_v54  ;;  %v2414_v17 = vadd.f32 %v10461_v56, %v10459_v40  ;;  %v2416_v55 = vadd.f32 %v10465_v60, %v10463_v59 }
 0x3a8   :  { %v2618_v19 = vsel %vm2586_vm12, %v2550_v24, %v2602_v10  ;;  %vm2587_vm14 = vcmp.gt.f32.partialorder %v2552_v31, 0.0  ;;  %v2603_v33 = vmul.f32 0.2, %v2552_v31  ;;  %v2422_v7 = vadd.f32 %v10473_v44, %v10471_v28 }
 0x3a9   :  { %v10487_v18 = vpack.c.bf16 %v2618_v19, %v2616_v11  ;;  %v2486_v30 = vpop.f32.mrf.mxu0  ;;  %v2559_v57 = vpop.f32.mrf.mxu1  ;;  %v2424_v3 = vadd.f32 %v10477_v14, %v10475_v38  ;;  %v2434_v51 = vadd.f32 %v10481_v48, %v10479_v46  ;;  %v2420_v40 = vadd.f32 %v10469_v22, %v10467_v15 }
 0x3aa   :  { %v2619_v50 = vsel %vm2587_vm14, %v2552_v31, %v2603_v33  ;;  %v2483_v56 = vadd.f32 %v2482_v25, %v2410_v0  ;;  %v2485_v21 = vadd.f32 %v2484_v29, %v2412_v20  ;;  %v2487_v23 = vadd.f32 %v2486_v30, %v2414_v17 }
 0x3ab   :  { %v2488_v52 = vpop.f32.mrf.mxu0  ;;  %v2561_v49 = vpop.f32.mrf.mxu1  ;;  %v10489_v8 = vpack.c.bf16 %v2619_v50, %v2617_v2  ;;  %v2436_v38 = vadd.f32 %v10485_v4, %v10483_v35  ;;  %vm2658_vm14 = vcmask 523264  }
 0x3ac   :  { %v2489_v28 = vadd.f32 %v2488_v52, %v2416_v55  ;;  %v2556_v11 = vadd.f32 %v2555_v26, %v2483_v56  ;;  %v2558_v15 = vadd.f32 %v2557_v62, %v2485_v21  ;;  %v2560_v29 = vadd.f32 %v2559_v57, %v2487_v23  ;;  %v11159_v56 = vld [vmem:[#allocation50_spill] sm:$0xff]  ;;  %v11161_v23 = vld [vmem:[#allocation53_spill] sm:$0xff] }
 0x3ad   :  { %v2492_v39 = vpop.f32.mrf.mxu0  ;;  %v2565_v47 = vpop.f32.mrf.mxu1  ;;  %v2791_v21 = vand.u32 15, %v11159_v56 }
 0x3ae   :  { %v2493_v48 = vadd.f32 %v2492_v39, %v2420_v40  ;;  %v2562_v42 = vadd.f32 %v2561_v49, %v2489_v28  ;;  %vm2589_vm11 = vcmp.gt.f32.partialorder %v2558_v15, 0.0  ;;  %vm2590_vm12 = vcmp.gt.f32.partialorder %v2560_v29, 0.0  ;;  %v8025_v40 = vld [vmem:[#allocation9 + $0x8] sm:$0xff]  }
 0x3af   :  { %v2494_v9 = vpop.f32.mrf.mxu0  ;;  %v2567_v5 = vpop.f32.mrf.mxu1  ;;  %vm2588_vm13 = vcmp.gt.f32.partialorder %v2556_v11, 0.0  ;;  %v2805_v28 = vand.u32 15, %v11161_v23 }
 0x3b0   :  { %v2495_v59 = vadd.f32 %v2494_v9, %v2422_v7  ;;  %v2566_v35 = vadd.f32 %v2565_v47, %v2493_v48  ;;  %v2607_v62 = vmul.f32 0.2, %v2562_v42  ;;  %vm2591_vm9 = vcmp.gt.f32.partialorder %v2562_v42, 0.0 }
 0x3b1   :  { %v2496_v13 = vpop.f32.mrf.mxu0  ;;  %v2569_v12 = vpop.f32.mrf.mxu1  ;;  %v2605_v47 = vmul.f32 0.2, %v2558_v15 }
 0x3b2   :  { %v2497_v44 = vadd.f32 %v2496_v13, %v2424_v3  ;;  %v2568_v22 = vadd.f32 %v2567_v5, %v2495_v59  ;;  %vm2592_vm10 = vcmp.gt.f32.partialorder %v2566_v35, 0.0  ;;  %v11160_v59 = vld [vmem:[#allocation52_spill] sm:$0xff] }
 0x3b3   :  { %v2498_v58 = vpop.f32.mrf.mxu0  ;;  %v2571_v37 = vpop.f32.mrf.mxu1  ;;  %v2621_v7 = vsel %vm2589_vm11, %v2558_v15, %v2605_v47 }
 0x3b4   :  { %v2499_v32 = vadd.f32 %v2498_v58, %v2426_v41  ;;  %v2570_v19 = vadd.f32 %v2569_v12, %v2497_v44  ;;  %v2609_v39 = vmul.f32 0.2, %v2568_v22  ;;  %vm2593_vm7 = vcmp.gt.f32.partialorder %v2568_v22, 0.0 }
 0x3b5   :  { %v2502_v34 = vpop.f32.mrf.mxu0  ;;  %v2575_v63 = vpop.f32.mrf.mxu1  ;;  %v2608_v12 = vmul.f32 0.2, %v2566_v35  ;;  %v2812_v44 = vand.u32 15, %v10057_v27 }
 0x3b6   :  { %v2503_v43 = vadd.f32 %v2502_v34, %v2430_v61  ;;  %v2572_v14 = vadd.f32 %v2571_v37, %v2499_v32  ;;  %v2610_v9 = vmul.f32 0.2, %v2570_v19  ;;  %vm2594_vm8 = vcmp.gt.f32.partialorder %v2570_v19, 0.0 }
 0x3b7   :  { %v2504_v53 = vpop.f32.mrf.mxu0  ;;  %v2577_v24 = vpop.f32.mrf.mxu1  ;;  %v2625_v34 = vsel %vm2593_vm7, %v2568_v22, %v2609_v39  ;;  %v2623_v61 = vsel %vm2591_vm9, %v2562_v42, %v2607_v62  ;;  %v2624_v17 = vsel %vm2592_vm10, %v2566_v35, %v2608_v12 }
 0x3b8   :  { %v2505_v36 = vadd.f32 %v2504_v53, %v2432_v16  ;;  %v2576_v10 = vadd.f32 %v2575_v63, %v2503_v43  ;;  %v2611_v52 = vmul.f32 0.2, %v2572_v14  ;;  %vm2595_vm2 = vcmp.gt.f32.partialorder %v2572_v14, 0.0  ;;  %v8023_v43 = vld [vmem:[#allocation8 + $0x8] sm:$0xff]  }
 0x3b9   :  { %v2506_v60 = vpop.f32.mrf.mxu0  ;;  %v2579_v6 = vpop.f32.mrf.mxu1  ;;  %v2606_v63 = vmul.f32 0.2, %v2560_v29  ;;  %v2626_v0 = vsel %vm2594_vm8, %v2570_v19, %v2610_v9  ;;  %v2604_v16 = vmul.f32 0.2, %v2556_v11  ;;  %v2635_v53 = vpack.c.bf16 %v2623_v61, %v2621_v7 }
 0x3ba   :  { %v2507_v54 = vadd.f32 %v2506_v60, %v2434_v51  ;;  %v2578_v45 = vadd.f32 %v2577_v24, %v2505_v36  ;;  %v2612_v4 = vmul.f32 0.2, %v2576_v10  ;;  %vm2596_vm5 = vcmp.gt.f32.partialorder %v2576_v10, 0.0  ;;  %v8022_v51 = vld [vmem:[#allocation8] sm:$0xff]   ;;  %v8024_v36 = vld [vmem:[#allocation9] sm:$0xff]  }
 0x3bb   :  { %v2508_v46 = vpop.f32.mrf.mxu0  ;;  %v2581_v30 = vpop.f32.mrf.mxu1  ;;  %v2627_v13 = vsel %vm2595_vm2, %v2572_v14, %v2611_v52  ;;  %v2636_v55 = vpack.c.bf16 %v2626_v0, %v2624_v17  ;;  %v2622_v32 = vsel %vm2590_vm12, %v2560_v29, %v2606_v63  ;;  %v2620_v24 = vsel %vm2588_vm13, %v2556_v11, %v2604_v16 }
 0x3bc   :  { %v2580_v31 = vadd.f32 %v2579_v6, %v2507_v54  ;;  %v2509_v25 = vadd.f32 %v2508_v46, %v2436_v38  ;;  %v2613_v50 = vmul.f32 0.2, %v2578_v45  ;;  %vm2597_vm4 = vcmp.gt.f32.partialorder %v2578_v45, 0.0 }
 0x3bd   :  { %v2628_v58 = vsel %vm2596_vm5, %v2576_v10, %v2612_v4  ;;  %v2637_v20 = vpack.c.bf16 %v2627_v13, %v2625_v34  ;;  %v2634_v3 = vpack.c.bf16 %v2622_v32, %v2620_v24  ;;  %v2798_v60 = vand.u32 15, %v11160_v59 }
 0x3be   :  { %v2614_v33 = vmul.f32 0.2, %v2580_v31  ;;  %vm2598_vm15 = vcmp.gt.f32.partialorder %v2580_v31, 0.0  ;;  %v2582_v2 = vadd.f32 %v2581_v30, %v2509_v25  ;;  %v2629_v49 = vsel %vm2597_vm4, %v2578_v45, %v2613_v50 }
 0x3c0   :  { %vm2599_vm6 = vcmp.gt.f32.partialorder %v2582_v2, 0.0  ;;  %v2615_v26 = vmul.f32 0.2, %v2582_v2  ;;  %v2630_v57 = vsel %vm2598_vm15, %v2580_v31, %v2614_v33 }
 0x3c1   :  { %v2638_v41 = vpack.c.bf16 %v2630_v57, %v2628_v58 }
 0x3c2   :  { %v2631_v5 = vsel %vm2599_vm6, %v2582_v2, %v2615_v26 }
 0x3c3   :  { %v2639_v37 = vpack.c.bf16 %v2631_v5, %v2629_v49 }
 0x3c5   :  { %2673 = vmatprep.subr.bf16.mxu1 %v2639_v37 }
 0x3c6   :  { %2674 = vmatpush1.bf16.msra.mxu1 %v2638_v41 }
 0x3c7   :  { %2675 = vmatprep.subr.bf16.mxu1 %v2637_v20 }
 0x3ca   :  { %2676 = vmatpush1.bf16.msra.mxu1 %v2636_v55 }
 0x3cb   :  { %2677 = vmatprep.subr.bf16.mxu1 %v2635_v53 }
 0x3ce   :  { %2678 = vmatpush1.bf16.msra.mxu1 %v2634_v3 }
 0x3cf   :  { %2679 = vmatprep.subr.bf16.mxu1 %v10489_v8 }
 0x3d2   :  { %2680 = vmatpush1.bf16.msra.mxu1 %v10487_v18 }
 0x3d3   :  { %2742 = vmatprep.subr.bf16.mxu1 %v2639_v37 }
 0x3d5   :  { %7277 = vmatmul.mubr.msk.bf16.vlgmr.msra.gmra.mxu1 %vm2658_vm14, %v8022_v51 }
 0x3d6   :  { %2743 = vmatpush1.bf16.msra.mxu1 %v2638_v41  ;;  %2707 = vmatprep.mubr.bf16.mxu1 %v11158_v1 }
 0x3d7   :  { %2744 = vmatprep.subr.bf16.mxu1 %v2637_v20 }
 0x3da   :  { %2745 = vmatpush1.bf16.msra.mxu1 %v2636_v55 }
 0x3db   :  { %2746 = vmatprep.subr.bf16.mxu1 %v2635_v53 }
 0x3dd   :  { %7278 = vmatmul.mubr.msk.bf16.gmra.mxu1 %vm2658_vm14, %v8023_v43 }
 0x3de   :  { %2747 = vmatpush1.bf16.msra.mxu1 %v2634_v3  ;;  %2766 = vmatprep.mubr.bf16.mxu1 %v11158_v1 }
 0x3df   :  { %2748 = vmatprep.subr.bf16.mxu1 %v10489_v8 }
 0x3e2   :  { %2749 = vmatpush1.bf16.msra.mxu1 %v10487_v18 }
 0x3e5   :  { %7281 = vmatmul.mubr.msk.bf16.vlgmr.msra.gmra.mxu1 %vm2658_vm14, %v8024_v36 }
 0x3e6   :  { %2776 = vmatprep.mubr.bf16.mxu1 %v11158_v1 }
 0x3ed   :  { %7282 = vmatmul.mubr.msk.bf16.gmra.mxu1 %vm2658_vm14, %v8025_v40 }
 0x495   :  { %v10524_v54 = vpop.f32.mrf.mxu1 }
 0x496   :  { %v2893_v18 = vrot.slane %v10524_v54, 1 }
 0x497   :  { %v2701_v8 = vpop.f32.mrf.mxu1 }
 0x498   :  { %v2896_v46 = vrot.slane %v2701_v8, 1 }
 0x499   :  { %v10526_v6 = vpop.f32.mrf.mxu1 }
 0x49a   :  { %v2894_v38 = vrot.slane %v10526_v6, 1  ;;  %v2931_v14 = vpack.c.bf16 %v10526_v6, %v10524_v54 }
 0x49b   :  { %v2705_v45 = vpop.f32.mrf.mxu1 }
 0x49c   :  { %v10533_v48 = vsel %vm1421_vm1, %v2893_v18, %v2894_v38  ;;  %v2897_v10 = vrot.slane %v2705_v45, 1  ;;  %v2932_v31 = vpack.c.bf16 %v2705_v45, %v2701_v8 }
 0x49d   :  { %v10535_v11 = vpop.f32.mrf.mxu1 }
 0x49e   :  { %v10538_v15 = vsel %vm1421_vm1, %v2896_v46, %v2897_v10  ;;  %v2899_v22 = vrot.slane %v10535_v11, 1 }
 0x49f   :  { %v10541_v25 = vpop.f32.mrf.mxu1 }
 0x4a0   :  { %v10544_v29 = vsel %vm1421_vm1, %v2894_v38, %v2899_v22  ;;  %v2901_v42 = vrot.slane %v10541_v25, 1 }
 0x4a1   :  { %v10547_v19 = vpop.f32.mrf.mxu1 }
 0x4a2   :  { %v10550_v33 = vsel %vm1421_vm1, %v2897_v10, %v2901_v42  ;;  %v2903_v30 = vrot.slane %v10547_v19, 1  ;;  %v2933_v52 = vpack.c.bf16 %v10547_v19, %v10535_v11 }
 0x4a3   :  { %v10555_v50 = vpop.f32.mrf.mxu1 }
 0x4a4   :  { %v10558_v2 = vsel %vm1421_vm1, %v2899_v22, %v2903_v30  ;;  %v10561_v35 = vsel %vm1421_vm1, %v2903_v30, %v2893_v18  ;;  %v2905_v4 = vrot.slane %v10555_v50, 1  ;;  %v2934_v39 = vpack.c.bf16 %v10555_v50, %v10541_v25 }
 0x4a5   :  { %v10566_v26 = vpop.f32.mrf.mxu1 }
 0x4a6   :  { %v10569_v62 = vsel %vm1421_vm1, %v2901_v42, %v2905_v4  ;;  %v10572_v9 = vsel %vm1421_vm1, %v2905_v4, %v2896_v46  ;;  %v2851_v5 = vrot.slane %v10566_v26, 7 }
 0x4a7   :  { %v10574_v57 = vpop.f32.mrf.mxu1 }
 0x4a8   :  { %v2852_v37 = vrot.slane %v10574_v57, 7 }
 0x4a9   :  { %v10576_v49 = vpop.f32.mrf.mxu1 }
 0x4aa   :  { %v2853_v13 = vrot.slane %v10576_v49, 7  ;;  %v2935_v12 = vpack.c.bf16 %v10576_v49, %v10566_v26 }
 0x4ab   :  { %v10582_v58 = vpop.f32.mrf.mxu1 }
 0x4ac   :  { %v10586_v47 = vsel %vm1334_vm0, %v2851_v5, %v2853_v13  ;;  %v2855_v41 = vrot.slane %v10582_v58, 7  ;;  %v2936_v34 = vpack.c.bf16 %v10582_v58, %v10574_v57 }
 0x4ad   :  { %v10591_v63 = vpop.f32.mrf.mxu1 }
 0x4ae   :  { %v2856_v0 = vsel %vm1334_vm0, %v2852_v37, %v2855_v41  ;;  %v2857_v20 = vrot.slane %v10591_v63, 7 }
 0x4af   :  { %v10595_v61 = vpop.f32.mrf.mxu1 }
 0x4b0   :  { %v10598_v16 = vsel %vm1334_vm0, %v2853_v13, %v2857_v20  ;;  %v2859_v17 = vrot.slane %v10595_v61, 7 }
 0x4b1   :  { %v10601_v55 = vpop.f32.mrf.mxu1 }
 0x4b2   :  { %v10604_v7 = vsel %vm1334_vm0, %v2855_v41, %v2859_v17  ;;  %v2841_v32 = vrot.slane %v10601_v55, 7  ;;  %v2937_v53 = vpack.c.bf16 %v10601_v55, %v10591_v63 }
 0x4b3   :  { %v10609_v24 = vpop.f32.mrf.mxu1 }
 0x4b4   :  { %v10612_v3 = vsel %vm1334_vm0, %v2857_v20, %v2841_v32  ;;  %v10615_v51 = vsel %vm1334_vm0, %v2841_v32, %v2851_v5  ;;  %v2842_v43 = vrot.slane %v10609_v24, 7  ;;  %v2938_v36 = vpack.c.bf16 %v10609_v24, %v10595_v61 }
 0x4b6   :  { %v10621_v40 = vsel %vm1334_vm0, %v2859_v17, %v2842_v43  ;;  %v2872_v8 = vsel %vm1334_vm0, %v2842_v43, %v2852_v37 }
 0x4b7   :  { %8996 = dma.done.wait [#allocation3 + $0x1], 16384 }
 0x4b8   :  { %8997 = vsyncadd [#allocation3 + $0x1], 4294950912  ;;  %vm7754_vm15 = vcmp.ne.s32.totalorder %v2791_v21, 0  ;;  %v7413_v18 = vpack.c.bf16 %v2856_v0, %v2872_v8  ;;  %3798 = vmatprep.mubr.bf16.mxu1 %v2932_v31  ;;  %v8026_v45 = vld [vmem:[#allocation2 + $0x474] ss:$8 sps:$4 sm:$0xff]   ;;  %vm7755_vm4 = vcmp.ne.s32.totalorder %v2805_v28, 0  ;;  %v7425_v54 = vpack.c.bf16 %v10612_v3, %v10598_v16 }
 0x4b9   :  { %vm10625_vm2 = vmpackc.low %vm9026_vm3, %vm7754_vm15  ;;  %v8028_v46 = vld [vmem:[#allocation2 + $0x574] ss:$8 sps:$4 sm:$0xff]   ;;  %3713 = vmatprep.subr.bf16.mxu0 %v8026_v45  ;;  %v8030_v10 = vld [vmem:[#allocation2 + $0x470] ss:$8 sps:$4 sm:$0xff]   ;;  %vm7756_vm6 = vcmp.ne.s32.totalorder %v2798_v60, 15  ;;  %v7429_v11 = vpack.c.bf16 %v10550_v33, %v10538_v15  ;;  %vm7757_vm8 = vcmp.ne.s32.totalorder %v2812_v44, 15  ;;  %v7441_v27 = vpack.c.bf16 %v10561_v35, %v10558_v2 }
 0x4ba   :  { %7414 = vmatprep.mubr.msk.bf16.mxu0 %vm10625_vm2, %v7413_v18  ;;  %v8031_v22 = vld [vmem:[#allocation2 + $0x570] ss:$8 sps:$4 sm:$0xff]   ;;  %3766 = vmatprep.subr.bf16.mxu1 %v8028_v46  ;;  %v8032_v42 = vld [vmem:[#allocation2 + $0x464] ss:$8 sps:$4 sm:$0xff]   ;;  %v8036_v30 = vld [vmem:[#allocation2 + $0x460] ss:$8 sps:$4 sm:$0xff]  }
 0x4bb   :  { %3714 = vmatpush1.bf16.msra.mxu0 %v8030_v10  ;;  %3767 = vmatpush1.bf16.msra.mxu1 %v8031_v22  ;;  %v8034_v21 = vld [vmem:[#allocation2 + $0x564] ss:$8 sps:$4 sm:$0xff]   ;;  %v8037_v31 = vld [vmem:[#allocation2 + $0x560] ss:$8 sps:$4 sm:$0xff]   ;;  %v8038_v4 = vld [vmem:[#allocation2 + $0x454] ss:$8 sps:$4 sm:$0xff]  }
 0x4bc   :  { %3715 = vmatprep.subr.bf16.mxu0 %v8032_v42  ;;  %3768 = vmatprep.subr.bf16.mxu1 %v8034_v21  ;;  %v8040_v5 = vld [vmem:[#allocation2 + $0x554] ss:$8 sps:$4 sm:$0xff]   ;;  %v8042_v13 = vld [vmem:[#allocation2 + $0x450] ss:$8 sps:$4 sm:$0xff]   ;;  %v8044_v41 = vld [vmem:[#allocation2 + $0x444] ss:$8 sps:$4 sm:$0xff]  }
 0x4bd   :  { %v8043_v37 = vld [vmem:[#allocation2 + $0x550] ss:$8 sps:$4 sm:$0xff]   ;;  %v8046_v0 = vld [vmem:[#allocation2 + $0x544] ss:$8 sps:$4 sm:$0xff]   ;;  %v8048_v20 = vld [vmem:[#allocation2 + $0x440] ss:$8 sps:$4 sm:$0xff]  }
 0x4be   :  { %v8049_v17 = vld [vmem:[#allocation2 + $0x540] ss:$8 sps:$4 sm:$0xff]   ;;  %v8050_v32 = vld [vmem:[#allocation2 + $0x434] ss:$8 sps:$4 sm:$0xff]   ;;  %v8054_v8 = vld [vmem:[#allocation2 + $0x430] ss:$8 sps:$4 sm:$0xff]  }
 0x4bf   :  { %3716 = vmatpush1.bf16.msra.mxu0 %v8036_v30  ;;  %3769 = vmatpush1.bf16.msra.mxu1 %v8037_v31  ;;  %v8052_v43 = vld [vmem:[#allocation2 + $0x534] ss:$8 sps:$4 sm:$0xff]   ;;  %v8055_v18 = vld [vmem:[#allocation2 + $0x530] ss:$8 sps:$4 sm:$0xff]   ;;  %v8056_v45 = vld [vmem:[#allocation2 + $0x424] ss:$8 sps:$4 sm:$0xff]  }
 0x4c0   :  { %3717 = vmatprep.subr.bf16.mxu0 %v8038_v4  ;;  %3770 = vmatprep.subr.bf16.mxu1 %v8040_v5  ;;  %v8058_v46 = vld [vmem:[#allocation2 + $0x524] ss:$8 sps:$4 sm:$0xff]   ;;  %v8060_v10 = vld [vmem:[#allocation2 + $0x420] ss:$8 sps:$4 sm:$0xff]   ;;  %v8062_v42 = vld [vmem:[#allocation2 + $0x414] ss:$8 sps:$4 sm:$0xff]  }
 0x4c1   :  { %v8061_v22 = vld [vmem:[#allocation2 + $0x520] ss:$8 sps:$4 sm:$0xff]   ;;  %v8064_v21 = vld [vmem:[#allocation2 + $0x514] ss:$8 sps:$4 sm:$0xff]   ;;  %v8066_v30 = vld [vmem:[#allocation2 + $0x410] ss:$8 sps:$4 sm:$0xff]  }
 0x4c2   :  { %v8067_v31 = vld [vmem:[#allocation2 + $0x510] ss:$8 sps:$4 sm:$0xff]   ;;  %v8068_v4 = vld [vmem:[#allocation2 + $0x404] ss:$8 sps:$4 sm:$0xff]   ;;  %vm10636_vm5 = vmpackc.low %vm9026_vm3, %vm7755_vm4  ;;  %vm4238_vm4 = vcmask 261120  }
 0x4c3   :  { %3718 = vmatpush1.bf16.msra.mxu0 %v8042_v13  ;;  %3771 = vmatpush1.bf16.msra.mxu1 %v8043_v37  ;;  %v8070_v5 = vld [vmem:[#allocation2 + $0x504] ss:$8 sps:$4 sm:$0xff]   ;;  %v8072_v13 = vld [vmem:[#allocation2 + $0x400] ss:$8 sps:$4 sm:$0xff]   ;;  %v8148_v25 = vld [vmem:[#allocation2 + $0x634] ss:$8 sps:$4 sm:$0xff]  }
 0x4c4   :  { %3719 = vmatprep.subr.bf16.mxu0 %v8044_v41  ;;  %3772 = vmatprep.subr.bf16.mxu1 %v8046_v0  ;;  %v8073_v37 = vld [vmem:[#allocation2 + $0x500] ss:$8 sps:$4 sm:$0xff]   ;;  %v8074_v41 = vld [vmem:[#allocation2 + $0x4f4] ss:$8 sps:$4 sm:$0xff]   ;;  %v8142_v6 = vld [vmem:[#allocation2 + $0x644] ss:$8 sps:$4 sm:$0xff]  }
 0x4c5   :  { %v8076_v0 = vld [vmem:[#allocation2 + $0x5f4] ss:$8 sps:$4 sm:$0xff]   ;;  %v8128_v23 = vld [vmem:[#allocation2 + $0x660] ss:$8 sps:$4 sm:$0xff]   ;;  %v8149_v16 = vld [vmem:[#allocation2 + $0x730] ss:$8 sps:$4 sm:$0xff]  }
 0x4c6   :  { %v8131_v28 = vld [vmem:[#allocation2 + $0x760] ss:$8 sps:$4 sm:$0xff]   ;;  %v8151_v50 = vld [vmem:[#allocation2 + $0x734] ss:$8 sps:$4 sm:$0xff]   ;;  %v8154_v3 = vld [vmem:[#allocation2 + $0x624] ss:$8 sps:$4 sm:$0xff]  }
 0x4c7   :  { %3720 = vmatpush1.bf16.msra.mxu0 %v8048_v20  ;;  %3773 = vmatpush1.bf16.msra.mxu1 %v8049_v17  ;;  %v8078_v20 = vld [vmem:[#allocation2 + $0x4f0] ss:$8 sps:$4 sm:$0xff]   ;;  %v8140_v38 = vld [vmem:[#allocation2 + $0x640] ss:$8 sps:$4 sm:$0xff]   ;;  %v8160_v57 = vld [vmem:[#allocation2 + $0x614] ss:$8 sps:$4 sm:$0xff]  }
 0x4c8   :  { %3721 = vmatprep.subr.bf16.mxu0 %v8050_v32  ;;  %3774 = vmatprep.subr.bf16.mxu1 %v8052_v43  ;;  %v8079_v17 = vld [vmem:[#allocation2 + $0x5f0] ss:$8 sps:$4 sm:$0xff]   ;;  %v8080_v32 = vld [vmem:[#allocation2 + $0x4e4] ss:$8 sps:$4 sm:$0xff]   ;;  %v8152_v19 = vld [vmem:[#allocation2 + $0x620] ss:$8 sps:$4 sm:$0xff]  }
 0x4c9   :  { %v8082_v43 = vld [vmem:[#allocation2 + $0x5e4] ss:$8 sps:$4 sm:$0xff]   ;;  %v8163_v58 = vld [vmem:[#allocation2 + $0x714] ss:$8 sps:$4 sm:$0xff]   ;;  %vm10667_vm7 = vmpackc.low %vm7756_vm6, %vm9026_vm3 }
 0x4ca   :  { %v8158_v60 = vld [vmem:[#allocation2 + $0x610] ss:$8 sps:$4 sm:$0xff]   ;;  %v8166_v33 = vld [vmem:[#allocation2 + $0x604] ss:$8 sps:$4 sm:$0xff]   ;;  %vm7436_vm9 = vmpackc.low %vm7757_vm8, %vm9026_vm3 }
 0x4cb   :  { %3722 = vmatpush1.bf16.msra.mxu0 %v8054_v8  ;;  %3775 = vmatpush1.bf16.msra.mxu1 %v8055_v18  ;;  %v8084_v8 = vld [vmem:[#allocation2 + $0x4e0] ss:$8 sps:$4 sm:$0xff]   ;;  %v8161_v15 = vld [vmem:[#allocation2 + $0x710] ss:$8 sps:$4 sm:$0xff]  }
 0x4cc   :  { %3723 = vmatprep.subr.bf16.mxu0 %v8056_v45  ;;  %3776 = vmatprep.subr.bf16.mxu1 %v8058_v46  ;;  %v8085_v18 = vld [vmem:[#allocation2 + $0x5e0] ss:$8 sps:$4 sm:$0xff]   ;;  %v8086_v45 = vld [vmem:[#allocation2 + $0x4d4] ss:$8 sps:$4 sm:$0xff]  }
 0x4cd   :  { %v8088_v46 = vld [vmem:[#allocation2 + $0x5d4] ss:$8 sps:$4 sm:$0xff]   ;;  %v3999_v26 = vld [vmem:[#allocation11 + $0xe0] sm:$0xff]  ;;  %v3996_v49 = vld [vmem:[#allocation11 + $0xc8] sm:$0xff] }
 0x4ce   :  { %v4002_v44 = vld [vmem:[#allocation11 + $0xf8] sm:$0xff]  ;;  %v3995_v2 = vld [vmem:[#allocation11 + $0xc0] sm:$0xff]  ;;  %v3992_v63 = vld [vmem:[#allocation11 + $0xa8] sm:$0xff] }
 0x4cf   :  { %3724 = vmatpush1.bf16.msra.mxu0 %v8060_v10  ;;  %3777 = vmatpush1.bf16.msra.mxu1 %v8061_v22  ;;  %v8090_v10 = vld [vmem:[#allocation2 + $0x4d0] ss:$8 sps:$4 sm:$0xff]   ;;  %v3991_v61 = vld [vmem:[#allocation11 + $0xa0] sm:$0xff]  ;;  %v3988_v24 = vld [vmem:[#allocation11 + $0x88] sm:$0xff] }
 0x4d0   :  { %3725 = vmatprep.subr.bf16.mxu0 %v8062_v42  ;;  %3778 = vmatprep.subr.bf16.mxu1 %v8064_v21  ;;  %v8091_v22 = vld [vmem:[#allocation2 + $0x5d0] ss:$8 sps:$4 sm:$0xff]   ;;  %v8092_v42 = vld [vmem:[#allocation2 + $0x4c4] ss:$8 sps:$4 sm:$0xff]  }
 0x4d1   :  { %v8094_v21 = vld [vmem:[#allocation2 + $0x5c4] ss:$8 sps:$4 sm:$0xff]   ;;  %v3994_v35 = vld [vmem:[#allocation11 + $0xb8] sm:$0xff] }
 0x4d2   :  { %v3990_v55 = vld [vmem:[#allocation11 + $0x98] sm:$0xff] }
 0x4d3   :  { %3726 = vmatpush1.bf16.msra.mxu0 %v8066_v30  ;;  %3779 = vmatpush1.bf16.msra.mxu1 %v8067_v31  ;;  %v8096_v30 = vld [vmem:[#allocation2 + $0x4c0] ss:$8 sps:$4 sm:$0xff]  }
 0x4d4   :  { %3727 = vmatprep.subr.bf16.mxu0 %v8068_v4  ;;  %3780 = vmatprep.subr.bf16.mxu1 %v8070_v5  ;;  %v8097_v31 = vld [vmem:[#allocation2 + $0x5c0] ss:$8 sps:$4 sm:$0xff]   ;;  %v8098_v4 = vld [vmem:[#allocation2 + $0x4b4] ss:$8 sps:$4 sm:$0xff]  }
 0x4d5   :  { %v8100_v5 = vld [vmem:[#allocation2 + $0x5b4] ss:$8 sps:$4 sm:$0xff]  }
 0x4d7   :  { %3728 = vmatpush1.bf16.msra.mxu0 %v8072_v13  ;;  %3781 = vmatpush1.bf16.msra.mxu1 %v8073_v37  ;;  %v8102_v13 = vld [vmem:[#allocation2 + $0x4b0] ss:$8 sps:$4 sm:$0xff]  }
 0x4d8   :  { %3729 = vmatprep.subr.bf16.mxu0 %v8074_v41  ;;  %3782 = vmatprep.subr.bf16.mxu1 %v8076_v0  ;;  %v8103_v37 = vld [vmem:[#allocation2 + $0x5b0] ss:$8 sps:$4 sm:$0xff]   ;;  %v8104_v41 = vld [vmem:[#allocation2 + $0x4a4] ss:$8 sps:$4 sm:$0xff]  }
 0x4d9   :  { %v8106_v0 = vld [vmem:[#allocation2 + $0x5a4] ss:$8 sps:$4 sm:$0xff]  }
 0x4db   :  { %3730 = vmatpush2.bf16.msra.mxu0 %v8078_v20  ;;  %3783 = vmatpush2.bf16.msra.mxu1 %v8079_v17  ;;  %v8108_v20 = vld [vmem:[#allocation2 + $0x4a0] ss:$8 sps:$4 sm:$0xff]  }
 0x4dc   :  { %3731 = vmatprep.subr.bf16.mxu0 %v8080_v32  ;;  %3784 = vmatprep.subr.bf16.mxu1 %v8082_v43  ;;  %v8109_v17 = vld [vmem:[#allocation2 + $0x5a0] ss:$8 sps:$4 sm:$0xff]   ;;  %v8110_v32 = vld [vmem:[#allocation2 + $0x494] ss:$8 sps:$4 sm:$0xff]  }
 0x4dd   :  { %v8112_v43 = vld [vmem:[#allocation2 + $0x594] ss:$8 sps:$4 sm:$0xff]  }
 0x4df   :  { %3732 = vmatpush2.bf16.msra.mxu0 %v8084_v8  ;;  %3785 = vmatpush2.bf16.msra.mxu1 %v8085_v18  ;;  %v8114_v8 = vld [vmem:[#allocation2 + $0x490] ss:$8 sps:$4 sm:$0xff]  }
 0x4e0   :  { %3733 = vmatprep.subr.bf16.mxu0 %v8086_v45  ;;  %3786 = vmatprep.subr.bf16.mxu1 %v8088_v46  ;;  %v8115_v18 = vld [vmem:[#allocation2 + $0x590] ss:$8 sps:$4 sm:$0xff]   ;;  %v8116_v45 = vld [vmem:[#allocation2 + $0x484] ss:$8 sps:$4 sm:$0xff]  }
 0x4e1   :  { %v8118_v46 = vld [vmem:[#allocation2 + $0x584] ss:$8 sps:$4 sm:$0xff]  }
 0x4e3   :  { %3734 = vmatpush2.bf16.msra.mxu0 %v8090_v10  ;;  %3787 = vmatpush2.bf16.msra.mxu1 %v8091_v22  ;;  %v8120_v10 = vld [vmem:[#allocation2 + $0x480] ss:$8 sps:$4 sm:$0xff]  }
 0x4e4   :  { %3735 = vmatprep.subr.bf16.mxu0 %v8092_v42  ;;  %3788 = vmatprep.subr.bf16.mxu1 %v8094_v21  ;;  %v8121_v22 = vld [vmem:[#allocation2 + $0x580] ss:$8 sps:$4 sm:$0xff]   ;;  %v8124_v42 = vld [vmem:[#allocation2 + $0x674] ss:$8 sps:$4 sm:$0xff]  }
 0x4e5   :  { %v8127_v21 = vld [vmem:[#allocation2 + $0x774] ss:$8 sps:$4 sm:$0xff]  }
 0x4e7   :  { %3736 = vmatpush2.bf16.msra.mxu0 %v8096_v30  ;;  %3789 = vmatpush2.bf16.msra.mxu1 %v8097_v31  ;;  %v7417_v30 = vpack.c.bf16 %v10586_v47, %v10615_v51  ;;  %v8122_v31 = vld [vmem:[#allocation2 + $0x670] ss:$8 sps:$4 sm:$0xff]   ;;  %v8136_v47 = vld [vmem:[#allocation2 + $0x654] ss:$8 sps:$4 sm:$0xff]  }
 0x4e8   :  { %3737 = vmatprep.subr.bf16.mxu0 %v8098_v4  ;;  %3790 = vmatprep.subr.bf16.mxu1 %v8100_v5  ;;  %v8125_v4 = vld [vmem:[#allocation2 + $0x770] ss:$8 sps:$4 sm:$0xff]   ;;  %v8130_v5 = vld [vmem:[#allocation2 + $0x664] ss:$8 sps:$4 sm:$0xff]   ;;  %v8139_v51 = vld [vmem:[#allocation2 + $0x754] ss:$8 sps:$4 sm:$0xff]  }
 0x4eb   :  { %3738 = vmatpush2.bf16.msra.mxu0 %v8102_v13  ;;  %3791 = vmatpush2.bf16.msra.mxu1 %v8103_v37  ;;  %v8133_v13 = vld [vmem:[#allocation2 + $0x764] ss:$8 sps:$4 sm:$0xff]  }
 0x4ec   :  { %3739 = vmatprep.subr.bf16.mxu0 %v8104_v41  ;;  %3792 = vmatprep.subr.bf16.mxu1 %v8106_v0  ;;  %v7421_v41 = vpack.c.bf16 %v10621_v40, %v10604_v7  ;;  %v8134_v7 = vld [vmem:[#allocation2 + $0x650] ss:$8 sps:$4 sm:$0xff]   ;;  %v8143_v0 = vld [vmem:[#allocation2 + $0x740] ss:$8 sps:$4 sm:$0xff]   ;;  %v8193_v37 = vld [vmem:[#allocation2 + $0x7c4] ss:$8 sps:$4 sm:$0xff]  }
 0x4ed   :  { %v8137_v40 = vld [vmem:[#allocation2 + $0x750] ss:$8 sps:$4 sm:$0xff]  }
 0x4ef   :  { %3740 = vmatpush2.bf16.msra.mxu0 %v8108_v20  ;;  %3793 = vmatpush2.bf16.msra.mxu1 %v8109_v17  ;;  %v8157_v20 = vld [vmem:[#allocation2 + $0x724] ss:$8 sps:$4 sm:$0xff]  }
 0x4f0   :  { %3741 = vmatprep.subr.bf16.mxu0 %v8110_v32  ;;  %3794 = vmatprep.subr.bf16.mxu1 %v8112_v43  ;;  %v8169_v17 = vld [vmem:[#allocation2 + $0x704] ss:$8 sps:$4 sm:$0xff]   ;;  %v8164_v32 = vld [vmem:[#allocation2 + $0x600] ss:$8 sps:$4 sm:$0xff]  }
 0x4f1   :  { %v8167_v43 = vld [vmem:[#allocation2 + $0x700] ss:$8 sps:$4 sm:$0xff]  }
 0x4f3   :  { %3742 = vmatpush2.bf16.msra.mxu0 %v8114_v8  ;;  %3795 = vmatpush2.bf16.msra.mxu1 %v8115_v18  ;;  %v8172_v8 = vld [vmem:[#allocation2 + $0x6f4] ss:$8 sps:$4 sm:$0xff]  }
 0x4f4   :  { %3743 = vmatprep.subr.bf16.mxu0 %v8116_v45  ;;  %3796 = vmatprep.subr.bf16.mxu1 %v8118_v46  ;;  %v8175_v18 = vld [vmem:[#allocation2 + $0x7f4] ss:$8 sps:$4 sm:$0xff]   ;;  %v8170_v45 = vld [vmem:[#allocation2 + $0x6f0] ss:$8 sps:$4 sm:$0xff]  }
 0x4f5   :  { %v8173_v46 = vld [vmem:[#allocation2 + $0x7f0] ss:$8 sps:$4 sm:$0xff]  }
 0x4f7   :  { %3744 = vmatpush2.bf16.msra.mxu0 %v8120_v10  ;;  %3797 = vmatpush2.bf16.msra.mxu1 %v8121_v22  ;;  %v8178_v10 = vld [vmem:[#allocation2 + $0x6e4] ss:$8 sps:$4 sm:$0xff]  }
 0x4f8   :  { %3819 = vmatprep.subr.bf16.mxu0 %v8124_v42  ;;  %3872 = vmatprep.subr.bf16.mxu1 %v8127_v21  ;;  %v8181_v22 = vld [vmem:[#allocation2 + $0x7e4] ss:$8 sps:$4 sm:$0xff]   ;;  %v8176_v42 = vld [vmem:[#allocation2 + $0x6e0] ss:$8 sps:$4 sm:$0xff]  }
 0x4f9   :  { %v8179_v21 = vld [vmem:[#allocation2 + $0x7e0] ss:$8 sps:$4 sm:$0xff]  }
 0x4fa   :  { %7418 = vmatmul.mubr.msk.bf16.vlgmr.msra.gmra.mxu0 %vm10625_vm2, %v7417_v30  ;;  %3799 = vmatmul.mubr.bf16.vlgmr.msra.gmra.mxu1 %v2931_v14  ;;  %v8145_v14 = vld [vmem:[#allocation2 + $0x744] ss:$8 sps:$4 sm:$0xff]   ;;  %v8184_v30 = vld [vmem:[#allocation2 + $0x6d4] ss:$8 sps:$4 sm:$0xff]  }
 0x4fb   :  { %3820 = vmatpush1.bf16.msra.mxu0 %v8122_v31  ;;  %3873 = vmatpush1.bf16.msra.mxu1 %v8125_v4  ;;  %v8187_v31 = vld [vmem:[#allocation2 + $0x7d4] ss:$8 sps:$4 sm:$0xff]   ;;  %v8182_v4 = vld [vmem:[#allocation2 + $0x6d0] ss:$8 sps:$4 sm:$0xff]  }
 0x4fc   :  { %3821 = vmatprep.subr.bf16.mxu0 %v8130_v5  ;;  %3874 = vmatprep.subr.bf16.mxu1 %v8133_v13  ;;  %v8185_v5 = vld [vmem:[#allocation2 + $0x7d0] ss:$8 sps:$4 sm:$0xff]   ;;  %v8190_v13 = vld [vmem:[#allocation2 + $0x6c4] ss:$8 sps:$4 sm:$0xff]  }
 0x4fd   :  { %7422 = vmatprep.mubr.msk.bf16.mxu0 %vm10636_vm5, %v7421_v41  ;;  %3808 = vmatprep.mubr.bf16.mxu1 %v2934_v39  ;;  %v8146_v39 = vld [vmem:[#allocation2 + $0x630] ss:$8 sps:$4 sm:$0xff]   ;;  %v8188_v41 = vld [vmem:[#allocation2 + $0x6c0] ss:$8 sps:$4 sm:$0xff]  }
 0x4ff   :  { %3822 = vmatpush1.bf16.msra.mxu0 %v8128_v23  ;;  %3875 = vmatpush1.bf16.msra.mxu1 %v8131_v28  ;;  %v8191_v23 = vld [vmem:[#allocation2 + $0x7c0] ss:$8 sps:$4 sm:$0xff]   ;;  %v8196_v28 = vld [vmem:[#allocation2 + $0x6b4] ss:$8 sps:$4 sm:$0xff]  }
 0x500   :  { %3823 = vmatprep.subr.bf16.mxu0 %v8136_v47  ;;  %3876 = vmatprep.subr.bf16.mxu1 %v8139_v51  ;;  %v8199_v47 = vld [vmem:[#allocation2 + $0x7b4] ss:$8 sps:$4 sm:$0xff]   ;;  %v8194_v51 = vld [vmem:[#allocation2 + $0x6b0] ss:$8 sps:$4 sm:$0xff]  }
 0x502   :  { %7426 = vmatmul.mubr.msk.bf16.gmra.mxu0 %vm10636_vm5, %v7425_v54  ;;  %3809 = vmatmul.mubr.bf16.gmra.mxu1 %v2933_v52  ;;  %v8155_v52 = vld [vmem:[#allocation2 + $0x720] ss:$8 sps:$4 sm:$0xff]   ;;  %v8205_v54 = vld [vmem:[#allocation2 + $0x7a4] ss:$8 sps:$4 sm:$0xff]  }
 0x503   :  { %3824 = vmatpush1.bf16.msra.mxu0 %v8134_v7  ;;  %3877 = vmatpush1.bf16.msra.mxu1 %v8137_v40  ;;  %v8197_v7 = vld [vmem:[#allocation2 + $0x7b0] ss:$8 sps:$4 sm:$0xff]   ;;  %v8202_v40 = vld [vmem:[#allocation2 + $0x6a4] ss:$8 sps:$4 sm:$0xff]  }
 0x504   :  { %3825 = vmatprep.subr.bf16.mxu0 %v8142_v6  ;;  %3878 = vmatprep.subr.bf16.mxu1 %v8145_v14  ;;  %v8200_v6 = vld [vmem:[#allocation2 + $0x6a0] ss:$8 sps:$4 sm:$0xff]  }
 0x505   :  { %3851 = vmatprep.mubr.bf16.mxu0 %v2936_v34  ;;  %7430 = vmatprep.mubr.msk.bf16.mxu1 %vm10667_vm7, %v7429_v11  ;;  %v8203_v14 = vld [vmem:[#allocation2 + $0x7a0] ss:$8 sps:$4 sm:$0xff]   ;;  %v7433_v11 = vpack.c.bf16 %v10544_v29, %v10533_v48  ;;  %v4001_v48 = vld [vmem:[#allocation11 + $0xf0] sm:$0xff] }
 0x506   :  { %v4000_v29 = vld [vmem:[#allocation11 + $0xe8] sm:$0xff]  ;;  %v3983_v34 = vld [vmem:[#allocation11 + $0x60] sm:$0xff] }
 0x507   :  { %3826 = vmatpush1.bf16.msra.mxu0 %v8140_v38  ;;  %3879 = vmatpush1.bf16.msra.mxu1 %v8143_v0  ;;  %v8208_v38 = vld [vmem:[#allocation2 + $0x694] ss:$8 sps:$4 sm:$0xff]  }
 0x508   :  { %3827 = vmatprep.subr.bf16.mxu0 %v8148_v25  ;;  %3880 = vmatprep.subr.bf16.mxu1 %v8151_v50  ;;  %v8211_v0 = vld [vmem:[#allocation2 + $0x794] ss:$8 sps:$4 sm:$0xff]   ;;  %v8206_v25 = vld [vmem:[#allocation2 + $0x690] ss:$8 sps:$4 sm:$0xff]  }
 0x509   :  { %v8209_v50 = vld [vmem:[#allocation2 + $0x790] ss:$8 sps:$4 sm:$0xff]  }
 0x50b   :  { %3828 = vmatpush1.bf16.msra.mxu0 %v8146_v39  ;;  %3881 = vmatpush1.bf16.msra.mxu1 %v8149_v16  ;;  %v8214_v39 = vld [vmem:[#allocation2 + $0x684] ss:$8 sps:$4 sm:$0xff]  }
 0x50c   :  { %3829 = vmatprep.subr.bf16.mxu0 %v8154_v3  ;;  %3882 = vmatprep.subr.bf16.mxu1 %v8157_v20  ;;  %v8217_v16 = vld [vmem:[#allocation2 + $0x784] ss:$8 sps:$4 sm:$0xff]   ;;  %v8212_v3 = vld [vmem:[#allocation2 + $0x680] ss:$8 sps:$4 sm:$0xff]  }
 0x50d   :  { %v8215_v20 = vld [vmem:[#allocation2 + $0x780] ss:$8 sps:$4 sm:$0xff]  }
 0x50f   :  { %3830 = vmatpush1.bf16.msra.mxu0 %v8152_v19  ;;  %3883 = vmatpush1.bf16.msra.mxu1 %v8155_v52  ;;  %v7437_v19 = vpack.c.bf16 %v10572_v9, %v10569_v62  ;;  %v3998_v62 = vld [vmem:[#allocation11 + $0xd8] sm:$0xff]  ;;  %v3997_v9 = vld [vmem:[#allocation11 + $0xd0] sm:$0xff] }
 0x510   :  { %3831 = vmatprep.subr.bf16.mxu0 %v8160_v57  ;;  %3884 = vmatprep.subr.bf16.mxu1 %v8163_v58  ;;  %v3986_v52 = vld [vmem:[#allocation11 + $0x78] sm:$0xff]  ;;  %v3985_v57 = vld [vmem:[#allocation11 + $0x70] sm:$0xff]  ;;  %v3984_v58 = vld [vmem:[#allocation11 + $0x68] sm:$0xff] }
 0x513   :  { %3832 = vmatpush1.bf16.msra.mxu0 %v8158_v60  ;;  %3885 = vmatpush1.bf16.msra.mxu1 %v8161_v15  ;;  %v3982_v60 = vld [vmem:[#allocation11 + $0x58] sm:$0xff]  ;;  %v3981_v15 = vld [vmem:[#allocation11 + $0x50] sm:$0xff] }
 0x514   :  { %3833 = vmatprep.subr.bf16.mxu0 %v8166_v33  ;;  %3886 = vmatprep.subr.bf16.mxu1 %v8169_v17  ;;  %v3980_v33 = vld [vmem:[#allocation11 + $0x48] sm:$0xff]  ;;  %v3979_v17 = vld [vmem:[#allocation11 + $0x40] sm:$0xff] }
 0x517   :  { %3834 = vmatpush1.bf16.msra.mxu0 %v8164_v32  ;;  %3887 = vmatpush1.bf16.msra.mxu1 %v8167_v43  ;;  %v3978_v32 = vld [vmem:[#allocation11 + $0x38] sm:$0xff]  ;;  %v3977_v43 = vld [vmem:[#allocation11 + $0x30] sm:$0xff] }
 0x518   :  { %3835 = vmatprep.subr.bf16.mxu0 %v8172_v8  ;;  %3888 = vmatprep.subr.bf16.mxu1 %v8175_v18  ;;  %v3976_v8 = vld [vmem:[#allocation11 + $0x28] sm:$0xff]  ;;  %v3975_v18 = vld [vmem:[#allocation11 + $0x20] sm:$0xff] }
 0x51b   :  { %3836 = vmatpush2.bf16.msra.mxu0 %v8170_v45  ;;  %3889 = vmatpush2.bf16.msra.mxu1 %v8173_v46  ;;  %v3974_v45 = vld [vmem:[#allocation11 + $0x18] sm:$0xff]  ;;  %v3973_v46 = vld [vmem:[#allocation11 + $0x10] sm:$0xff] }
 0x51c   :  { %3837 = vmatprep.subr.bf16.mxu0 %v8178_v10  ;;  %3890 = vmatprep.subr.bf16.mxu1 %v8181_v22  ;;  %v3972_v10 = vld [vmem:[#allocation11 + $0x8] sm:$0xff]  ;;  %v3971_v22 = vld [vmem:[#allocation11] sm:$0xff] }
 0x51f   :  { %3838 = vmatpush2.bf16.msra.mxu0 %v8176_v42  ;;  %3891 = vmatpush2.bf16.msra.mxu1 %v8179_v21  ;;  %v4034_v42 = vld [vmem:[#allocation11 + $0x1f8] sm:$0xff]  ;;  %v4033_v21 = vld [vmem:[#allocation11 + $0x1f0] sm:$0xff] }
 0x520   :  { %3839 = vmatprep.subr.bf16.mxu0 %v8184_v30  ;;  %3892 = vmatprep.subr.bf16.mxu1 %v8187_v31  ;;  %v4032_v30 = vld [vmem:[#allocation11 + $0x1e8] sm:$0xff]  ;;  %v4031_v31 = vld [vmem:[#allocation11 + $0x1e0] sm:$0xff] }
 0x523   :  { %3840 = vmatpush2.bf16.msra.mxu0 %v8182_v4  ;;  %3893 = vmatpush2.bf16.msra.mxu1 %v8185_v5  ;;  %v4030_v4 = vld [vmem:[#allocation11 + $0x1d8] sm:$0xff]  ;;  %v4029_v5 = vld [vmem:[#allocation11 + $0x1d0] sm:$0xff] }
 0x524   :  { %3841 = vmatprep.subr.bf16.mxu0 %v8190_v13  ;;  %3894 = vmatprep.subr.bf16.mxu1 %v8193_v37  ;;  %v4028_v13 = vld [vmem:[#allocation11 + $0x1c8] sm:$0xff]  ;;  %v4027_v37 = vld [vmem:[#allocation11 + $0x1c0] sm:$0xff] }
 0x527   :  { %3842 = vmatpush2.bf16.msra.mxu0 %v8188_v41  ;;  %3895 = vmatpush2.bf16.msra.mxu1 %v8191_v23  ;;  %v4026_v41 = vld [vmem:[#allocation11 + $0x1b8] sm:$0xff]  ;;  %v4025_v23 = vld [vmem:[#allocation11 + $0x1b0] sm:$0xff] }
 0x528   :  { %3843 = vmatprep.subr.bf16.mxu0 %v8196_v28  ;;  %3896 = vmatprep.subr.bf16.mxu1 %v8199_v47  ;;  %v4024_v28 = vld [vmem:[#allocation11 + $0x1a8] sm:$0xff]  ;;  %v4023_v47 = vld [vmem:[#allocation11 + $0x1a0] sm:$0xff] }
 0x52b   :  { %3844 = vmatpush2.bf16.msra.mxu0 %v8194_v51  ;;  %3897 = vmatpush2.bf16.msra.mxu1 %v8197_v7  ;;  %v4022_v51 = vld [vmem:[#allocation11 + $0x198] sm:$0xff]  ;;  %v4021_v7 = vld [vmem:[#allocation11 + $0x190] sm:$0xff] }
 0x52c   :  { %3845 = vmatprep.subr.bf16.mxu0 %v8202_v40  ;;  %3898 = vmatprep.subr.bf16.mxu1 %v8205_v54  ;;  %v4020_v40 = vld [vmem:[#allocation11 + $0x188] sm:$0xff]  ;;  %v4019_v54 = vld [vmem:[#allocation11 + $0x180] sm:$0xff] }
 0x52f   :  { %3846 = vmatpush2.bf16.msra.mxu0 %v8200_v6  ;;  %3899 = vmatpush2.bf16.msra.mxu1 %v8203_v14  ;;  %v4018_v6 = vld [vmem:[#allocation11 + $0x178] sm:$0xff]  ;;  %v4017_v14 = vld [vmem:[#allocation11 + $0x170] sm:$0xff] }
 0x530   :  { %3847 = vmatprep.subr.bf16.mxu0 %v8208_v38  ;;  %3900 = vmatprep.subr.bf16.mxu1 %v8211_v0  ;;  %v4016_v38 = vld [vmem:[#allocation11 + $0x168] sm:$0xff]  ;;  %v4015_v0 = vld [vmem:[#allocation11 + $0x160] sm:$0xff] }
 0x533   :  { %3848 = vmatpush2.bf16.msra.mxu0 %v8206_v25  ;;  %3901 = vmatpush2.bf16.msra.mxu1 %v8209_v50  ;;  %v4014_v25 = vld [vmem:[#allocation11 + $0x158] sm:$0xff]  ;;  %v4013_v50 = vld [vmem:[#allocation11 + $0x150] sm:$0xff] }
 0x534   :  { %3849 = vmatprep.subr.bf16.mxu0 %v8214_v39  ;;  %3902 = vmatprep.subr.bf16.mxu1 %v8217_v16  ;;  %v4012_v39 = vld [vmem:[#allocation11 + $0x148] sm:$0xff]  ;;  %v4011_v16 = vld [vmem:[#allocation11 + $0x140] sm:$0xff] }
 0x537   :  { %3850 = vmatpush2.bf16.msra.mxu0 %v8212_v3  ;;  %3903 = vmatpush2.bf16.msra.mxu1 %v8215_v20  ;;  %v4010_v3 = vld [vmem:[#allocation11 + $0x138] sm:$0xff]  ;;  %v4009_v20 = vld [vmem:[#allocation11 + $0x130] sm:$0xff] }
 0x538   :  { %4035 = vmatprep.subr.mxu0 %v4002_v44  ;;  %v4005_v44 = vld [vmem:[#allocation11 + $0x110] sm:$0xff] }
 0x53a   :  { %3852 = vmatmul.mubr.bf16.vlgmr.msra.gmra.mxu0 %v2935_v12  ;;  %7434 = vmatmul.mubr.msk.bf16.vlgmr.msra.gmra.mxu1 %vm10667_vm7, %v7433_v11  ;;  %v3993_v12 = vld [vmem:[#allocation11 + $0xb0] sm:$0xff]  ;;  %v4008_v11 = vld [vmem:[#allocation11 + $0x128] sm:$0xff] }
 0x53b   :  { %3861 = vmatprep.mubr.bf16.mxu0 %v2938_v36  ;;  %7438 = vmatprep.mubr.msk.bf16.mxu1 %vm7436_vm9, %v7437_v19  ;;  %v3987_v36 = vld [vmem:[#allocation11 + $0x80] sm:$0xff] }
 0x53c   :  { %4036 = vmatpush1.msra.mxu0 %v4001_v48  ;;  %v4007_v19 = vld [vmem:[#allocation11 + $0x120] sm:$0xff]  ;;  %v4004_v48 = vld [vmem:[#allocation11 + $0x108] sm:$0xff] }
 0x53d   :  { %4037 = vmatprep.subr.mxu0 %v4000_v29  ;;  %v4003_v29 = vld [vmem:[#allocation11 + $0x100] sm:$0xff] }
 0x53e   :  { %4038 = vmatpush1.msra.mxu0 %v3999_v26 }
 0x53f   :  { %4039 = vmatprep.subr.mxu0 %v3998_v62 }
 0x540   :  { %4040 = vmatpush1.msra.mxu0 %v3997_v9 }
 0x541   :  { %4041 = vmatprep.subr.mxu0 %v3996_v49 }
 0x542   :  { %3862 = vmatmul.mubr.bf16.gmra.mxu0 %v2937_v53  ;;  %7442 = vmatmul.mubr.msk.bf16.gmra.mxu1 %vm7436_vm9, %v7441_v27  ;;  %v3989_v53 = vld [vmem:[#allocation11 + $0x90] sm:$0xff]  ;;  %v4006_v27 = vld [vmem:[#allocation11 + $0x118] sm:$0xff] }
 0x543   :  { %4274 = vmatprep.mubr.bf16.mxu1 %v11158_v1  ;;  %4042 = vmatpush1.msra.mxu0 %v3995_v2 }
 0x544   :  { %4043 = vmatprep.subr.mxu0 %v3994_v35 }
 0x545   :  { %4044 = vmatpush1.msra.mxu0 %v3993_v12 }
 0x546   :  { %4045 = vmatprep.subr.mxu0 %v3992_v63 }
 0x547   :  { %4046 = vmatpush1.msra.mxu0 %v3991_v61 }
 0x548   :  { %4047 = vmatprep.subr.mxu0 %v3990_v55 }
 0x549   :  { %4048 = vmatpush1.msra.mxu0 %v3989_v53 }
 0x54a   :  { %4049 = vmatprep.subr.mxu0 %v3988_v24 }
 0x54b   :  { %4050 = vmatpush1.msra.mxu0 %v3987_v36 }
 0x54c   :  { %4051 = vmatprep.subr.mxu0 %v3986_v52 }
 0x54d   :  { %4052 = vmatpush1.msra.mxu0 %v3985_v57 }
 0x54e   :  { %4053 = vmatprep.subr.mxu0 %v3984_v58 }
 0x54f   :  { %4054 = vmatpush1.msra.mxu0 %v3983_v34 }
 0x550   :  { %4055 = vmatprep.subr.mxu0 %v3982_v60 }
 0x551   :  { %4056 = vmatpush1.msra.mxu0 %v3981_v15 }
 0x552   :  { %4057 = vmatprep.subr.mxu0 %v3980_v33 }
 0x553   :  { %4058 = vmatpush1.msra.mxu0 %v3979_v17 }
 0x554   :  { %4059 = vmatprep.subr.mxu0 %v3978_v32 }
 0x555   :  { %4060 = vmatpush1.msra.mxu0 %v3977_v43 }
 0x556   :  { %4061 = vmatprep.subr.mxu0 %v3976_v8 }
 0x557   :  { %4062 = vmatpush1.msra.mxu0 %v3975_v18 }
 0x558   :  { %4063 = vmatprep.subr.mxu0 %v3974_v45 }
 0x559   :  { %4064 = vmatpush1.msra.mxu0 %v3973_v46 }
 0x55a   :  { %4065 = vmatprep.subr.mxu0 %v3972_v10 }
 0x55b   :  { %4066 = vmatpush1.msra.mxu0 %v3971_v22 }
 0x55c   :  { %4067 = vmatprep.subr.mxu0 %v4034_v42 }
 0x55d   :  { %4068 = vmatpush2.msra.mxu0 %v4033_v21 }
 0x55e   :  { %4069 = vmatprep.subr.mxu0 %v4032_v30 }
 0x55f   :  { %4070 = vmatpush2.msra.mxu0 %v4031_v31 }
 0x560   :  { %4071 = vmatprep.subr.mxu0 %v4030_v4 }
 0x561   :  { %4072 = vmatpush2.msra.mxu0 %v4029_v5 }
 0x562   :  { %4073 = vmatprep.subr.mxu0 %v4028_v13 }
 0x563   :  { %4074 = vmatpush2.msra.mxu0 %v4027_v37 }
 0x564   :  { %4075 = vmatprep.subr.mxu0 %v4026_v41 }
 0x565   :  { %4076 = vmatpush2.msra.mxu0 %v4025_v23 }
 0x566   :  { %4077 = vmatprep.subr.mxu0 %v4024_v28 }
 0x567   :  { %4078 = vmatpush2.msra.mxu0 %v4023_v47 }
 0x568   :  { %4079 = vmatprep.subr.mxu0 %v4022_v51 }
 0x569   :  { %4080 = vmatpush2.msra.mxu0 %v4021_v7 }
 0x56a   :  { %4081 = vmatprep.subr.mxu0 %v4020_v40 }
 0x56b   :  { %4082 = vmatpush2.msra.mxu0 %v4019_v54 }
 0x56c   :  { %4083 = vmatprep.subr.mxu0 %v4018_v6 }
 0x56d   :  { %4084 = vmatpush2.msra.mxu0 %v4017_v14 }
 0x56e   :  { %4085 = vmatprep.subr.mxu0 %v4016_v38 }
 0x56f   :  { %4086 = vmatpush2.msra.mxu0 %v4015_v0 }
 0x570   :  { %4087 = vmatprep.subr.mxu0 %v4014_v25 }
 0x571   :  { %4088 = vmatpush2.msra.mxu0 %v4013_v50 }
 0x572   :  { %4089 = vmatprep.subr.mxu0 %v4012_v39 }
 0x573   :  { %4090 = vmatpush2.msra.mxu0 %v4011_v16 }
 0x574   :  { %4091 = vmatprep.subr.mxu0 %v4010_v3 }
 0x575   :  { %4092 = vmatpush2.msra.mxu0 %v4009_v20 }
 0x576   :  { %4093 = vmatprep.subr.mxu0 %v4008_v11 }
 0x577   :  { %4094 = vmatpush2.msra.mxu0 %v4007_v19 }
 0x578   :  { %4095 = vmatprep.subr.mxu0 %v4006_v27 }
 0x579   :  { %4096 = vmatpush2.msra.mxu0 %v4005_v44 }
 0x57a   :  { %4097 = vmatprep.subr.mxu0 %v4004_v48 }
 0x57b   :  { %4098 = vmatpush2.msra.mxu0 %v4003_v29 }
 0x5ba   :  { %v3747_v26 = vpop.f32.mrf.mxu0  ;;  %v3800_v62 = vpop.f32.mrf.mxu1 }
 0x5bb   :  { %v3801_v15 = vadd.f32 %v3800_v62, %v3747_v26 }
 0x5bc   :  { %v3749_v9 = vpop.f32.mrf.mxu0  ;;  %v3802_v49 = vpop.f32.mrf.mxu1 }
 0x5bd   :  { %v3803_v43 = vadd.f32 %v3802_v49, %v3749_v9 }
 0x5be   :  { %v3751_v2 = vpop.f32.mrf.mxu0  ;;  %v3804_v35 = vpop.f32.mrf.mxu1 }
 0x5bf   :  { %v3805_v32 = vadd.f32 %v3804_v35, %v3751_v2 }
 0x5c0   :  { %v3753_v12 = vpop.f32.mrf.mxu0  ;;  %v3806_v63 = vpop.f32.mrf.mxu1 }
 0x5c1   :  { %v3807_v46 = vadd.f32 %v3806_v63, %v3753_v12 }
 0x5c2   :  { %v3757_v61 = vpop.f32.mrf.mxu0  ;;  %v3810_v55 = vpop.f32.mrf.mxu1 }
 0x5c3   :  { %v3811_v30 = vadd.f32 %v3810_v55, %v3757_v61 }
 0x5c4   :  { %v3759_v53 = vpop.f32.mrf.mxu0  ;;  %v3812_v24 = vpop.f32.mrf.mxu1 }
 0x5c5   :  { %v3813_v28 = vadd.f32 %v3812_v24, %v3759_v53 }
 0x5c6   :  { %v3761_v36 = vpop.f32.mrf.mxu0  ;;  %v3814_v52 = vpop.f32.mrf.mxu1 }
 0x5c7   :  { %v3815_v54 = vadd.f32 %v3814_v52, %v3761_v36 }
 0x5c8   :  { %v3763_v57 = vpop.f32.mrf.mxu0  ;;  %v3816_v58 = vpop.f32.mrf.mxu1 }
 0x5c9   :  { %v3817_v39 = vadd.f32 %v3816_v58, %v3763_v57 }
 0x5fa   :  { %v3853_v34 = vpop.f32.mrf.mxu0  ;;  %v3906_v60 = vpop.f32.mrf.mxu1 }
 0x5fb   :  { %v3854_v8 = vadd.f32 %v3853_v34, %v3801_v15 }
 0x5fc   :  { %v3855_v33 = vpop.f32.mrf.mxu0  ;;  %v3908_v17 = vpop.f32.mrf.mxu1 }
 0x5fd   :  { %v3856_v22 = vadd.f32 %v3855_v33, %v3803_v43  ;;  %v10696_v5 = vadd.f32 %v3906_v60, %v3854_v8 }
 0x5fe   :  { %v3857_v18 = vpop.f32.mrf.mxu0  ;;  %v3910_v45 = vpop.f32.mrf.mxu1 }
 0x5ff   :  { %v3858_v10 = vadd.f32 %v3857_v18, %v3805_v32  ;;  %v10700_v47 = vadd.f32 %v3908_v17, %v3856_v22  ;;  %v3943_v14 = vmul.f32 %v10696_v5, %v10696_v5 }
 0x600   :  { %v3859_v42 = vpop.f32.mrf.mxu0  ;;  %v3912_v21 = vpop.f32.mrf.mxu1 }
 0x601   :  { %v10694_v31 = vadd.f32 %v3910_v45, %v3858_v10  ;;  %v3860_v4 = vadd.f32 %v3859_v42, %v3807_v46  ;;  %v3944_v11 = vmul.f32 %v10700_v47, %v10700_v47 }
 0x602   :  { %v3863_v13 = vpop.f32.mrf.mxu0  ;;  %v3916_v37 = vpop.f32.mrf.mxu1 }
 0x603   :  { %v10698_v41 = vadd.f32 %v3912_v21, %v3860_v4  ;;  %v3864_v23 = vadd.f32 %v3863_v13, %v3811_v30  ;;  %v3945_v51 = vmul.f32 %v10694_v31, %v10694_v31  ;;  %v3925_v16 = vadd.f32 %v10694_v31, %v10696_v5 }
 0x604   :  { %v3865_v7 = vpop.f32.mrf.mxu0  ;;  %v3918_v40 = vpop.f32.mrf.mxu1 }
 0x605   :  { %v10704_v6 = vadd.f32 %v3916_v37, %v3864_v23  ;;  %v3946_v38 = vmul.f32 %v10698_v41, %v10698_v41  ;;  %v3866_v0 = vadd.f32 %v3865_v7, %v3813_v28  ;;  %v3951_v19 = vadd.f32 %v3945_v51, %v3943_v14 }
 0x606   :  { %v3867_v25 = vpop.f32.mrf.mxu0  ;;  %v3920_v50 = vpop.f32.mrf.mxu1  ;;  %v3934_v48 = vadd.f32 %v10698_v41, %v10700_v47 }
 0x607   :  { %v3947_v3 = vmul.f32 %v10704_v6, %v10704_v6  ;;  %v3868_v20 = vadd.f32 %v3867_v25, %v3815_v54  ;;  %v10716_v27 = vadd.f32 %v3918_v40, %v3866_v0  ;;  %v3926_v29 = vadd.f32 %v3925_v16, %v10704_v6 }
 0x608   :  { %v3869_v44 = vpop.f32.mrf.mxu0  ;;  %v3960_v9 = vadd.f32 %v3946_v38, %v3944_v11  ;;  %v3922_v35 = vpop.f32.mrf.mxu1 }
 0x609   :  { %v10721_v26 = vadd.f32 %v3920_v50, %v3868_v20  ;;  %v3870_v62 = vadd.f32 %v3869_v44, %v3817_v39  ;;  %v3952_v49 = vadd.f32 %v3951_v19, %v3947_v3  ;;  %v3948_v2 = vmul.f32 %v10716_v27, %v10716_v27 }
 0x60a   :  { %v3935_v12 = vadd.f32 %v3934_v48, %v10716_v27  ;;  %v9027_v19 = vmov 1966171168  }
 0x60b   :  { %v3927_v63 = vadd.f32 %v3926_v29, %v10721_v26  ;;  %v3949_v61 = vmul.f32 %v10721_v26, %v10721_v26  ;;  %v10729_v55 = vadd.f32 %v3922_v35, %v3870_v62  ;;  %v3961_v53 = vadd.f32 %v3960_v9, %v3948_v2 }
 0x60c   :  { %v4125_v44 = vunpack.c.l.s4 %v9027_v19  ;;  %v8218_v19 = vld [vmem:[#allocation15] sm:$0xff]  }
 0x60d   :  { %v3928_v24 = vrot.slane %v3927_v63, 4  ;;  %v3953_v36 = vadd.f32 %v3952_v49, %v3949_v61  ;;  %v3936_v52 = vadd.f32 %v3935_v12, %v10729_v55  ;;  %v3950_v57 = vmul.f32 %v10729_v55, %v10729_v55  ;;  %v4116_v12 = vld [vmem:[#allocation12] sm:$0x3] }
 0x60e   :  { %v4126_v48 = vunpack.c.0.s8 %v4125_v44  ;;  %v10742_v61 = vsub.s32 0, %v11159_v56  ;;  %v8219_v44 = vld [vmem:[#allocation17] sm:$0xff]  }
 0x60f   :  { %v3929_v58 = vadd.f32 %v3928_v24, %v3927_v63  ;;  %v3954_v34 = vrot.slane %v3953_v36, 4  ;;  %v3937_v60 = vrot.slane %v3936_v52, 4  ;;  %v3962_v15 = vadd.f32 %v3961_v53, %v3950_v57 }
 0x610   :  { %v10737_v62 = vsub.s32 %v4126_v48, %v11159_v56  ;;  %v10745_v53 = vsub.s32 1, %v11159_v56  ;;  %v4340_v48 = vand.u32 7, %v11159_v56 }
 0x611   :  { %v3930_v33 = vrot.slane %v3929_v58, 2  ;;  %v3955_v17 = vadd.f32 %v3954_v34, %v3953_v36  ;;  %v3938_v32 = vadd.f32 %v3937_v60, %v3936_v52  ;;  %v3963_v43 = vrot.slane %v3962_v15, 4 }
 0x613   :  { %v3956_v8 = vrot.slane %v3955_v17, 2  ;;  %v3939_v18 = vrot.slane %v3938_v32, 2  ;;  %v3964_v45 = vadd.f32 %v3963_v43, %v3962_v15  ;;  %v3931_v46 = vadd.f32 %v3930_v33, %v3929_v58  ;;  %v4141_v15 = vld [vmem:[#allocation14] sm:$0x3] }
 0x615   :  { %v3940_v10 = vadd.f32 %v3939_v18, %v3938_v32  ;;  %v3965_v22 = vrot.slane %v3964_v45, 2  ;;  %v3957_v42 = vadd.f32 %v3956_v8, %v3955_v17  ;;  %v3932_v13 = vrot.slane %v3931_v46, 1 }
 0x617   :  { %v3941_v21 = vrot.slane %v3940_v10, 1  ;;  %v3966_v30 = vadd.f32 %v3965_v22, %v3964_v45  ;;  %v3958_v4 = vrot.slane %v3957_v42, 1  ;;  %v3933_v7 = vadd.f32 %v3932_v13, %v3931_v46 }
 0x619   :  { %v3967_v37 = vrot.slane %v3966_v30, 1  ;;  %v3959_v23 = vadd.f32 %v3958_v4, %v3957_v42  ;;  %v3942_v28 = vadd.f32 %v3941_v21, %v3940_v10 }
 0x61b   :  { %v3968_v51 = vadd.f32 %v3967_v37, %v3966_v30  ;;  %v3969_v54 = vsel %vm1334_vm0, %v3933_v7, %v3959_v23 }
 0x61d   :  { %v3970_v40 = vsel %vm1334_vm0, %v3942_v28, %v3968_v51 }
 0x61e   :  { %4099 = vmatprep.mubr.f32.mxu0 %v3970_v40 }
 0x61f   :  { %4100 = vmatmul.mubr.f32.vlgmr.msra.gmra.mxu0 %v3969_v54 }
 0x6df   :  { %v4101_v14 = vpop.f32.mrf.mxu0 }
 0x6e0   :  { %v4106_v38 = vmul.f32 %v4101_v14, %v4101_v14 }
 0x6e1   :  { %v4103_v0 = vpop.f32.mrf.mxu0 }
 0x6e2   :  { %v4110_v25 = vrot.slane %v4106_v38, 7  ;;  %v4107_v50 = vmul.f32 %v4103_v0, %v4103_v0 }
 0x6e4   :  { %v4114_v39 = vsub.f32 %v4101_v14, %v4110_v25  ;;  %v4111_v16 = vrot.slane %v4107_v50, 7 }
 0x6e6   :  { %v4117_v3 = vadd.f32 1e-05, %v4114_v39  ;;  %v4115_v20 = vsub.f32 %v4103_v0, %v4111_v16 }
 0x6e8   :  { %v4118_v11 = vadd.f32 1e-05, %v4115_v20  ;;  %8220 = vrsqrt.f32 %v4117_v3 }
 0x6ea   :  { %8222 = vrsqrt.f32 %v4118_v11 }
 0x6f5   :  { %v8221_v29 = vpop.eup %8220 }
 0x6f7   :  { %v8223_v9 = vpop.eup %8222 }
 0x6f8   :  { %v4123_v49 = vcombine.low %v8221_v29, %v8223_v9  ;;  %v4347_v29 = vand.u32 7, %v11160_v59 }
 0x6fa   :  { %v4130_v2 = vrot.slane %v4123_v49, %v10737_v62 }
 0x6fc   :  { %v4131_v35 = vcombine.high %v4130_v2, %v4130_v2 }
 0x6fe   :  { %v4138_v63 = vrot.slane %v4131_v35, %v10737_v62 }
 0x700   :  { %v4140_v24 = vmul.f32 %v4138_v63, %v4116_v12 }
 0x702   :  { %v4146_v36 = vrot.slane %v4140_v24, %v10742_v61  ;;  %v4150_v52 = vrot.slane %v4140_v24, %v10745_v53 }
 0x704   :  { %v4153_v57 = vmul.f32 %v4146_v36, %v4101_v14  ;;  %v4154_v58 = vmul.f32 %v4150_v52, %v4103_v0  ;;  %v4179_v32 = vmul.f32 %v4150_v52, %v10716_v27  ;;  %v4181_v43 = vmul.f32 %v4150_v52, %v10729_v55 }
 0x705   :  { %v4178_v45 = vmul.f32 %v4146_v36, %v10704_v6  ;;  %v4180_v46 = vmul.f32 %v4146_v36, %v10721_v26  ;;  %v4175_v10 = vmul.f32 %v4150_v52, %v10700_v47  ;;  %v4177_v22 = vmul.f32 %v4150_v52, %v10698_v41 }
 0x706   :  { %v4157_v34 = vcombine.low %v4153_v57, %v4154_v58  ;;  %v4174_v42 = vmul.f32 %v4146_v36, %v10696_v5  ;;  %v4176_v21 = vmul.f32 %v4146_v36, %v10694_v31 }
 0x708   :  { %v4164_v60 = vrot.slane %v4157_v34, %v10737_v62 }
 0x70a   :  { %v4171_v33 = vrot.slane %v4164_v60, %v10737_v62 }
 0x70c   :  { %v4173_v17 = vsub.f32 %v4141_v15, %v4171_v33 }
 0x70e   :  { %v4186_v8 = vrot.slane %v4173_v17, %v10742_v61  ;;  %v4190_v18 = vrot.slane %v4173_v17, %v10745_v53 }
 0x710   :  { %v4198_v30 = vadd.f32 %v4190_v18, %v4179_v32  ;;  %v4200_v27 = vadd.f32 %v4190_v18, %v4181_v43  ;;  %v4197_v4 = vadd.f32 %v4186_v8, %v4178_v45  ;;  %v4199_v55 = vadd.f32 %v4186_v8, %v4180_v46 }
 0x711   :  { %v4194_v13 = vadd.f32 %v4190_v18, %v4175_v10  ;;  %v4196_v37 = vadd.f32 %v4190_v18, %v4177_v22  ;;  %v4193_v23 = vadd.f32 %v4186_v8, %v4174_v42  ;;  %v4195_v28 = vadd.f32 %v4186_v8, %v4176_v21 }
 0x712   :  { %vm4206_vm3 = vcmp.gt.f32.partialorder %v4198_v30, 0.0  ;;  %vm4208_vm10 = vcmp.gt.f32.partialorder %v4200_v27, 0.0  ;;  %v4214_v6 = vmul.f32 0.2, %v4198_v30  ;;  %v4216_v26 = vmul.f32 0.2, %v4200_v27 }
 0x713   :  { %vm4205_vm11 = vcmp.gt.f32.partialorder %v4197_v4, 0.0  ;;  %vm4207_vm12 = vcmp.gt.f32.partialorder %v4199_v55, 0.0  ;;  %v4213_v47 = vmul.f32 0.2, %v4197_v4  ;;  %v4215_v41 = vmul.f32 0.2, %v4199_v55 }
 0x714   :  { %v4222_v51 = vsel %vm4206_vm3, %v4198_v30, %v4214_v6  ;;  %v4224_v5 = vsel %vm4208_vm10, %v4200_v27, %v4216_v26  ;;  %vm4202_vm13 = vcmp.gt.f32.partialorder %v4194_v13, 0.0  ;;  %vm4204_vm14 = vcmp.gt.f32.partialorder %v4196_v37, 0.0 }
 0x715   :  { %v4228_v31 = vpack.c.bf16 %v4224_v5, %v4222_v51  ;;  %v4221_v7 = vsel %vm4205_vm11, %v4197_v4, %v4213_v47  ;;  %v4223_v40 = vsel %vm4207_vm12, %v4199_v55, %v4215_v41  ;;  %v4210_v54 = vmul.f32 0.2, %v4194_v13 }
 0x716   :  { %v4227_v14 = vpack.c.bf16 %v4223_v40, %v4221_v7  ;;  %v4212_v38 = vmul.f32 0.2, %v4196_v37  ;;  %vm4201_vm15 = vcmp.gt.f32.partialorder %v4193_v23, 0.0  ;;  %vm4203_vm2 = vcmp.gt.f32.partialorder %v4195_v28, 0.0 }
 0x717   :  { %4254 = vmatprep.subr.bf16.mxu1 %v4228_v31  ;;  %v4218_v0 = vsel %vm4202_vm13, %v4194_v13, %v4210_v54  ;;  %v4209_v25 = vmul.f32 0.2, %v4193_v23  ;;  %v4211_v50 = vmul.f32 0.2, %v4195_v28 }
 0x718   :  { %4255 = vmatpush1.bf16.msra.mxu1 %v4227_v14  ;;  %v4220_v39 = vsel %vm4204_vm14, %v4196_v37, %v4212_v38 }
 0x719   :  { %v4226_v16 = vpack.c.bf16 %v4220_v39, %v4218_v0  ;;  %v4217_v3 = vsel %vm4201_vm15, %v4193_v23, %v4209_v25  ;;  %v4219_v20 = vsel %vm4203_vm2, %v4195_v28, %v4211_v50 }
 0x71a   :  { %v4225_v11 = vpack.c.bf16 %v4219_v20, %v4217_v3 }
 0x71b   :  { %4256 = vmatprep.subr.bf16.mxu1 %v4226_v16 }
 0x71c   :  { %4257 = vmatpush1.bf16.msra.mxu1 %v4225_v11 }
 0x71d   :  { %4305 = vmatprep.subr.bf16.mxu1 %v4228_v31 }
 0x71f   :  { %7444 = vmatmul.mubr.msk.bf16.vlgmr.msra.gmra.mxu1 %vm4238_vm4, %v8218_v19 }
 0x720   :  { %4306 = vmatpush1.bf16.msra.mxu1 %v4227_v14  ;;  %4325 = vmatprep.mubr.bf16.mxu1 %v11158_v1 }
 0x721   :  { %4307 = vmatprep.subr.bf16.mxu1 %v4226_v16 }
 0x724   :  { %4308 = vmatpush1.bf16.msra.mxu1 %v4225_v11 }
 0x727   :  { %7446 = vmatmul.mubr.msk.bf16.vlgmr.msra.gmra.mxu1 %vm4238_vm4, %v8219_v44 }
 0x7df   :  { %v10764_v9 = vpop.f32.mrf.mxu1 }
 0x7e0   :  { %v4390_v35 = vrot.slane %v10764_v9, 1 }
 0x7e1   :  { %v4278_v49 = vpop.f32.mrf.mxu1 }
 0x7e2   :  { %v4393_v24 = vrot.slane %v4278_v49, 1 }
 0x7e3   :  { %v10766_v2 = vpop.f32.mrf.mxu1 }
 0x7e4   :  { %v4391_v12 = vrot.slane %v10766_v2, 1  ;;  %v4410_v63 = vpack.c.bf16 %v10766_v2, %v10764_v9 }
 0x7e5   :  { %v4282_v36 = vpop.f32.mrf.mxu1 }
 0x7e6   :  { %v10773_v52 = vsel %vm1421_vm1, %v4390_v35, %v4391_v12  ;;  %v10776_v57 = vsel %vm1421_vm1, %v4391_v12, %v4390_v35  ;;  %v4394_v58 = vrot.slane %v4282_v36, 1  ;;  %v4411_v34 = vpack.c.bf16 %v4282_v36, %v4278_v49 }
 0x7e7   :  { %v10778_v60 = vpop.f32.mrf.mxu1 }
 0x7e8   :  { %v10781_v15 = vsel %vm1421_vm1, %v4393_v24, %v4394_v58  ;;  %v10784_v33 = vsel %vm1421_vm1, %v4394_v58, %v4393_v24  ;;  %v4370_v43 = vrot.slane %v10778_v60, 7 }
 0x7e9   :  { %v10786_v17 = vpop.f32.mrf.mxu1 }
 0x7ea   :  { %v4371_v45 = vrot.slane %v10786_v17, 7 }
 0x7eb   :  { %v10788_v32 = vpop.f32.mrf.mxu1 }
 0x7ec   :  { %v4364_v8 = vrot.slane %v10788_v32, 7  ;;  %v4412_v18 = vpack.c.bf16 %v10788_v32, %v10778_v60 }
 0x7ed   :  { %v10795_v46 = vpop.f32.mrf.mxu1 }
 0x7ee   :  { %v10798_v10 = vsel %vm1334_vm0, %v4370_v43, %v4364_v8  ;;  %v10801_v22 = vsel %vm1334_vm0, %v4364_v8, %v4370_v43  ;;  %v4365_v42 = vrot.slane %v10795_v46, 7  ;;  %v4413_v21 = vpack.c.bf16 %v10795_v46, %v10786_v17 }
 0x7f0   :  { %v4373_v30 = vsel %vm1334_vm0, %v4371_v45, %v4365_v42  ;;  %v4379_v27 = vsel %vm1334_vm0, %v4365_v42, %v4371_v45 }
 0x7f1   :  { %8998 = dma.done.wait [#allocation3 + $0x2], 16384 }
 0x7f2   :  { %8999 = vsyncadd [#allocation3 + $0x2], 4294950912  ;;  %vm10810_vm1 = vcmp.ne.s32.totalorder %v4347_v29, 0  ;;  %vm10816_vm5 = vcmp.ne.s32.totalorder %v4340_v48, 0  ;;  %v7578_v13 = vpack.c.bf16 %v4373_v30, %v4379_v27  ;;  %5261 = vmatprep.mubr.bf16.mxu0 %v4411_v34  ;;  %v8224_v37 = vld [vmem:[#allocation2 + $0x874] ss:$8 sps:$4 sm:$0xff]  }
 0x7f3   :  { %vm7577_vm6 = vmpackc.low %vm10810_vm1, %vm10816_vm5  ;;  %v8226_v23 = vld [vmem:[#allocation2 + $0x974] ss:$8 sps:$4 sm:$0xff]   ;;  %5186 = vmatprep.subr.bf16.mxu1 %v8224_v37  ;;  %v8228_v28 = vld [vmem:[#allocation2 + $0x870] ss:$8 sps:$4 sm:$0xff]   ;;  %vm10844_vm7 = vcmp.ne.s32.totalorder %v4347_v29, 7  ;;  %vm10850_vm8 = vcmp.ne.s32.totalorder %v4340_v48, 7 }
 0x7f4   :  { %7579 = vmatprep.mubr.msk.bf16.mxu1 %vm7577_vm6, %v7578_v13  ;;  %v8229_v6 = vld [vmem:[#allocation2 + $0x970] ss:$8 sps:$4 sm:$0xff]   ;;  %5229 = vmatprep.subr.bf16.mxu0 %v8226_v23  ;;  %v8230_v26 = vld [vmem:[#allocation2 + $0x864] ss:$8 sps:$4 sm:$0xff]   ;;  %v8234_v41 = vld [vmem:[#allocation2 + $0x860] ss:$8 sps:$4 sm:$0xff]  }
 0x7f5   :  { %5187 = vmatpush1.bf16.msra.mxu1 %v8228_v28  ;;  %5230 = vmatpush1.bf16.msra.mxu0 %v8229_v6  ;;  %v8232_v47 = vld [vmem:[#allocation2 + $0x964] ss:$8 sps:$4 sm:$0xff]   ;;  %v8235_v51 = vld [vmem:[#allocation2 + $0x960] ss:$8 sps:$4 sm:$0xff]   ;;  %v8236_v5 = vld [vmem:[#allocation2 + $0x854] ss:$8 sps:$4 sm:$0xff]  }
 0x7f6   :  { %5188 = vmatprep.subr.bf16.mxu1 %v8230_v26  ;;  %5231 = vmatprep.subr.bf16.mxu0 %v8232_v47  ;;  %v8238_v31 = vld [vmem:[#allocation2 + $0x954] ss:$8 sps:$4 sm:$0xff]   ;;  %v8240_v7 = vld [vmem:[#allocation2 + $0x850] ss:$8 sps:$4 sm:$0xff]   ;;  %v8242_v54 = vld [vmem:[#allocation2 + $0x844] ss:$8 sps:$4 sm:$0xff]  }
 0x7f7   :  { %v8241_v40 = vld [vmem:[#allocation2 + $0x950] ss:$8 sps:$4 sm:$0xff]   ;;  %v8244_v14 = vld [vmem:[#allocation2 + $0x944] ss:$8 sps:$4 sm:$0xff]   ;;  %v8246_v38 = vld [vmem:[#allocation2 + $0x840] ss:$8 sps:$4 sm:$0xff]  }
 0x7f8   :  { %v8247_v0 = vld [vmem:[#allocation2 + $0x940] ss:$8 sps:$4 sm:$0xff]   ;;  %v8248_v25 = vld [vmem:[#allocation2 + $0x834] ss:$8 sps:$4 sm:$0xff]   ;;  %v8252_v39 = vld [vmem:[#allocation2 + $0x830] ss:$8 sps:$4 sm:$0xff]  }
 0x7f9   :  { %5189 = vmatpush1.bf16.msra.mxu1 %v8234_v41  ;;  %5232 = vmatpush1.bf16.msra.mxu0 %v8235_v51  ;;  %v8250_v50 = vld [vmem:[#allocation2 + $0x934] ss:$8 sps:$4 sm:$0xff]   ;;  %v8253_v16 = vld [vmem:[#allocation2 + $0x930] ss:$8 sps:$4 sm:$0xff]   ;;  %v8254_v3 = vld [vmem:[#allocation2 + $0x824] ss:$8 sps:$4 sm:$0xff]  }
 0x7fa   :  { %5190 = vmatprep.subr.bf16.mxu1 %v8236_v5  ;;  %5233 = vmatprep.subr.bf16.mxu0 %v8238_v31  ;;  %v8256_v20 = vld [vmem:[#allocation2 + $0x924] ss:$8 sps:$4 sm:$0xff]   ;;  %v8258_v11 = vld [vmem:[#allocation2 + $0x820] ss:$8 sps:$4 sm:$0xff]   ;;  %v8260_v44 = vld [vmem:[#allocation2 + $0x814] ss:$8 sps:$4 sm:$0xff]  }
 0x7fb   :  { %v8259_v19 = vld [vmem:[#allocation2 + $0x920] ss:$8 sps:$4 sm:$0xff]   ;;  %v8262_v49 = vld [vmem:[#allocation2 + $0x914] ss:$8 sps:$4 sm:$0xff]   ;;  %v8264_v35 = vld [vmem:[#allocation2 + $0x810] ss:$8 sps:$4 sm:$0xff]  }
 0x7fc   :  { %v8265_v12 = vld [vmem:[#allocation2 + $0x910] ss:$8 sps:$4 sm:$0xff]   ;;  %v8266_v24 = vld [vmem:[#allocation2 + $0x804] ss:$8 sps:$4 sm:$0xff]   ;;  %v8270_v58 = vld [vmem:[#allocation2 + $0x800] ss:$8 sps:$4 sm:$0xff]  }
 0x7fd   :  { %5191 = vmatpush1.bf16.msra.mxu1 %v8240_v7  ;;  %5234 = vmatpush1.bf16.msra.mxu0 %v8241_v40  ;;  %v8268_v36 = vld [vmem:[#allocation2 + $0x904] ss:$8 sps:$4 sm:$0xff]   ;;  %v8271_v34 = vld [vmem:[#allocation2 + $0x900] ss:$8 sps:$4 sm:$0xff]   ;;  %v8272_v43 = vld [vmem:[#allocation2 + $0x8f4] ss:$8 sps:$4 sm:$0xff]  }
 0x7fe   :  { %5192 = vmatprep.subr.bf16.mxu1 %v8242_v54  ;;  %5235 = vmatprep.subr.bf16.mxu0 %v8244_v14  ;;  %v8274_v8 = vld [vmem:[#allocation2 + $0x9f4] ss:$8 sps:$4 sm:$0xff]   ;;  %v8276_v45 = vld [vmem:[#allocation2 + $0x8f0] ss:$8 sps:$4 sm:$0xff]   ;;  %v8278_v30 = vld [vmem:[#allocation2 + $0x8e4] ss:$8 sps:$4 sm:$0xff]  }
 0x7ff   :  { %v8277_v42 = vld [vmem:[#allocation2 + $0x9f0] ss:$8 sps:$4 sm:$0xff]   ;;  %v8280_v27 = vld [vmem:[#allocation2 + $0x9e4] ss:$8 sps:$4 sm:$0xff]   ;;  %v8282_v13 = vld [vmem:[#allocation2 + $0x8e0] ss:$8 sps:$4 sm:$0xff]  }
 0x800   :  { %v8283_v37 = vld [vmem:[#allocation2 + $0x9e0] ss:$8 sps:$4 sm:$0xff]   ;;  %v8284_v23 = vld [vmem:[#allocation2 + $0x8d4] ss:$8 sps:$4 sm:$0xff]   ;;  %v8288_v6 = vld [vmem:[#allocation2 + $0x8d0] ss:$8 sps:$4 sm:$0xff]  }
 0x801   :  { %5193 = vmatpush1.bf16.msra.mxu1 %v8246_v38  ;;  %5236 = vmatpush1.bf16.msra.mxu0 %v8247_v0  ;;  %v8286_v28 = vld [vmem:[#allocation2 + $0x9d4] ss:$8 sps:$4 sm:$0xff]   ;;  %v8289_v26 = vld [vmem:[#allocation2 + $0x9d0] ss:$8 sps:$4 sm:$0xff]   ;;  %v8290_v47 = vld [vmem:[#allocation2 + $0x8c4] ss:$8 sps:$4 sm:$0xff]  }
 0x802   :  { %5194 = vmatprep.subr.bf16.mxu1 %v8248_v25  ;;  %5237 = vmatprep.subr.bf16.mxu0 %v8250_v50  ;;  %v8292_v41 = vld [vmem:[#allocation2 + $0x9c4] ss:$8 sps:$4 sm:$0xff]   ;;  %v8294_v51 = vld [vmem:[#allocation2 + $0x8c0] ss:$8 sps:$4 sm:$0xff]   ;;  %v8296_v31 = vld [vmem:[#allocation2 + $0x8b4] ss:$8 sps:$4 sm:$0xff]  }
 0x803   :  { %v8295_v5 = vld [vmem:[#allocation2 + $0x9c0] ss:$8 sps:$4 sm:$0xff]   ;;  %v8298_v7 = vld [vmem:[#allocation2 + $0x9b4] ss:$8 sps:$4 sm:$0xff]   ;;  %v8300_v40 = vld [vmem:[#allocation2 + $0x8b0] ss:$8 sps:$4 sm:$0xff]  }
 0x804   :  { %v8301_v54 = vld [vmem:[#allocation2 + $0x9b0] ss:$8 sps:$4 sm:$0xff]   ;;  %v8302_v14 = vld [vmem:[#allocation2 + $0x8a4] ss:$8 sps:$4 sm:$0xff]   ;;  %v8306_v0 = vld [vmem:[#allocation2 + $0x8a0] ss:$8 sps:$4 sm:$0xff]  }
 0x805   :  { %5195 = vmatpush1.bf16.msra.mxu1 %v8252_v39  ;;  %5238 = vmatpush1.bf16.msra.mxu0 %v8253_v16  ;;  %v8304_v38 = vld [vmem:[#allocation2 + $0x9a4] ss:$8 sps:$4 sm:$0xff]   ;;  %v8307_v25 = vld [vmem:[#allocation2 + $0x9a0] ss:$8 sps:$4 sm:$0xff]   ;;  %v8308_v50 = vld [vmem:[#allocation2 + $0x894] ss:$8 sps:$4 sm:$0xff]  }
 0x806   :  { %5196 = vmatprep.subr.bf16.mxu1 %v8254_v3  ;;  %5239 = vmatprep.subr.bf16.mxu0 %v8256_v20  ;;  %v8310_v39 = vld [vmem:[#allocation2 + $0x994] ss:$8 sps:$4 sm:$0xff]   ;;  %v8312_v16 = vld [vmem:[#allocation2 + $0x890] ss:$8 sps:$4 sm:$0xff]   ;;  %v8314_v20 = vld [vmem:[#allocation2 + $0x884] ss:$8 sps:$4 sm:$0xff]  }
 0x807   :  { %v8313_v3 = vld [vmem:[#allocation2 + $0x990] ss:$8 sps:$4 sm:$0xff]   ;;  %v8343_v9 = vld [vmem:[#allocation2 + $0xb44] ss:$8 sps:$4 sm:$0xff]   ;;  %v8338_v2 = vld [vmem:[#allocation2 + $0xa40] ss:$8 sps:$4 sm:$0xff]  }
 0x808   :  { %v8332_v4 = vld [vmem:[#allocation2 + $0xa50] ss:$8 sps:$4 sm:$0xff]   ;;  %v8352_v17 = vld [vmem:[#allocation2 + $0xa24] ss:$8 sps:$4 sm:$0xff]   ;;  %v8358_v59 = vld [vmem:[#allocation2 + $0xa14] ss:$8 sps:$4 sm:$0xff]  }
 0x809   :  { %5197 = vmatpush1.bf16.msra.mxu1 %v8258_v11  ;;  %5240 = vmatpush1.bf16.msra.mxu0 %v8259_v19  ;;  %v8316_v11 = vld [vmem:[#allocation2 + $0x984] ss:$8 sps:$4 sm:$0xff]   ;;  %v8318_v19 = vld [vmem:[#allocation2 + $0x880] ss:$8 sps:$4 sm:$0xff]   ;;  %v8335_v55 = vld [vmem:[#allocation2 + $0xb50] ss:$8 sps:$4 sm:$0xff]  }
 0x80a   :  { %5198 = vmatprep.subr.bf16.mxu1 %v8260_v44  ;;  %5241 = vmatprep.subr.bf16.mxu0 %v8262_v49  ;;  %v8319_v44 = vld [vmem:[#allocation2 + $0x980] ss:$8 sps:$4 sm:$0xff]   ;;  %v8322_v49 = vld [vmem:[#allocation2 + $0xa74] ss:$8 sps:$4 sm:$0xff]   ;;  %v8355_v46 = vld [vmem:[#allocation2 + $0xb24] ss:$8 sps:$4 sm:$0xff]  }
 0x80b   :  { %v8361_v29 = vld [vmem:[#allocation2 + $0xb14] ss:$8 sps:$4 sm:$0xff]   ;;  %vm7587_vm9 = vmpackc.low %vm10844_vm7, %vm10850_vm8  ;;  %v8356_v48 = vld [vmem:[#allocation2 + $0xa10] ss:$8 sps:$4 sm:$0xff]   ;;  %vm5630_vm13 = vcmask 130048  }
 0x80c   :  { %v5417_v60 = vld [vmem:[#allocation18 + $0xc8] sm:$0xff]  ;;  %v5416_v32 = vld [vmem:[#allocation18 + $0xc0] sm:$0xff] }
 0x80d   :  { %5199 = vmatpush1.bf16.msra.mxu1 %v8264_v35  ;;  %5242 = vmatpush1.bf16.msra.mxu0 %v8265_v12  ;;  %v8325_v35 = vld [vmem:[#allocation2 + $0xb74] ss:$8 sps:$4 sm:$0xff]   ;;  %v7583_v12 = vpack.c.bf16 %v10798_v10, %v10801_v22  ;;  %v8329_v10 = vld [vmem:[#allocation2 + $0xb60] ss:$8 sps:$4 sm:$0xff]  }
 0x80e   :  { %5200 = vmatprep.subr.bf16.mxu1 %v8266_v24  ;;  %5243 = vmatprep.subr.bf16.mxu0 %v8268_v36  ;;  %v8320_v24 = vld [vmem:[#allocation2 + $0xa70] ss:$8 sps:$4 sm:$0xff]   ;;  %v8334_v22 = vld [vmem:[#allocation2 + $0xa54] ss:$8 sps:$4 sm:$0xff]  }
 0x80f   :  { %v8323_v36 = vld [vmem:[#allocation2 + $0xb70] ss:$8 sps:$4 sm:$0xff]  }
 0x811   :  { %5201 = vmatpush1.bf16.msra.mxu1 %v8270_v58  ;;  %5244 = vmatpush1.bf16.msra.mxu0 %v8271_v34  ;;  %v8328_v58 = vld [vmem:[#allocation2 + $0xa64] ss:$8 sps:$4 sm:$0xff]  }
 0x812   :  { %5202 = vmatprep.subr.bf16.mxu1 %v8272_v43  ;;  %5245 = vmatprep.subr.bf16.mxu0 %v8274_v8  ;;  %v8331_v34 = vld [vmem:[#allocation2 + $0xb64] ss:$8 sps:$4 sm:$0xff]   ;;  %v8326_v43 = vld [vmem:[#allocation2 + $0xa60] ss:$8 sps:$4 sm:$0xff]   ;;  %v8337_v8 = vld [vmem:[#allocation2 + $0xb54] ss:$8 sps:$4 sm:$0xff]  }
 0x815   :  { %5203 = vmatpush2.bf16.msra.mxu1 %v8276_v45  ;;  %5246 = vmatpush2.bf16.msra.mxu0 %v8277_v42  ;;  %v8340_v45 = vld [vmem:[#allocation2 + $0xa44] ss:$8 sps:$4 sm:$0xff]   ;;  %v8346_v42 = vld [vmem:[#allocation2 + $0xa34] ss:$8 sps:$4 sm:$0xff]  }
 0x816   :  { %5204 = vmatprep.subr.bf16.mxu1 %v8278_v30  ;;  %5247 = vmatprep.subr.bf16.mxu0 %v8280_v27  ;;  %v8349_v30 = vld [vmem:[#allocation2 + $0xb34] ss:$8 sps:$4 sm:$0xff]   ;;  %v8344_v27 = vld [vmem:[#allocation2 + $0xa30] ss:$8 sps:$4 sm:$0xff]  }
 0x819   :  { %5205 = vmatpush2.bf16.msra.mxu1 %v8282_v13  ;;  %5248 = vmatpush2.bf16.msra.mxu0 %v8283_v37  ;;  %v8347_v13 = vld [vmem:[#allocation2 + $0xb30] ss:$8 sps:$4 sm:$0xff]   ;;  %v5409_v37 = vld [vmem:[#allocation18 + $0x88] sm:$0xff] }
 0x81a   :  { %5206 = vmatprep.subr.bf16.mxu1 %v8284_v23  ;;  %5249 = vmatprep.subr.bf16.mxu0 %v8286_v28  ;;  %v7588_v23 = vpack.c.bf16 %v10784_v33, %v10781_v15  ;;  %v8350_v28 = vld [vmem:[#allocation2 + $0xa20] ss:$8 sps:$4 sm:$0xff]   ;;  %v8359_v15 = vld [vmem:[#allocation2 + $0xb10] ss:$8 sps:$4 sm:$0xff]   ;;  %v8364_v33 = vld [vmem:[#allocation2 + $0xa04] ss:$8 sps:$4 sm:$0xff]  }
 0x81d   :  { %5207 = vmatpush2.bf16.msra.mxu1 %v8288_v6  ;;  %5250 = vmatpush2.bf16.msra.mxu0 %v8289_v26  ;;  %v8353_v6 = vld [vmem:[#allocation2 + $0xb20] ss:$8 sps:$4 sm:$0xff]   ;;  %v8367_v26 = vld [vmem:[#allocation2 + $0xb04] ss:$8 sps:$4 sm:$0xff]  }
 0x81e   :  { %5208 = vmatprep.subr.bf16.mxu1 %v8290_v47  ;;  %5251 = vmatprep.subr.bf16.mxu0 %v8292_v41  ;;  %v8362_v47 = vld [vmem:[#allocation2 + $0xa00] ss:$8 sps:$4 sm:$0xff]  }
 0x81f   :  { %v8365_v41 = vld [vmem:[#allocation2 + $0xb00] ss:$8 sps:$4 sm:$0xff]  }
 0x821   :  { %5209 = vmatpush2.bf16.msra.mxu1 %v8294_v51  ;;  %5252 = vmatpush2.bf16.msra.mxu0 %v8295_v5  ;;  %v8370_v51 = vld [vmem:[#allocation2 + $0xaf4] ss:$8 sps:$4 sm:$0xff]  }
 0x822   :  { %5210 = vmatprep.subr.bf16.mxu1 %v8296_v31  ;;  %5253 = vmatprep.subr.bf16.mxu0 %v8298_v7  ;;  %v8373_v5 = vld [vmem:[#allocation2 + $0xbf4] ss:$8 sps:$4 sm:$0xff]   ;;  %v8368_v31 = vld [vmem:[#allocation2 + $0xaf0] ss:$8 sps:$4 sm:$0xff]  }
 0x823   :  { %v8371_v7 = vld [vmem:[#allocation2 + $0xbf0] ss:$8 sps:$4 sm:$0xff]  }
 0x825   :  { %5211 = vmatpush2.bf16.msra.mxu1 %v8300_v40  ;;  %5254 = vmatpush2.bf16.msra.mxu0 %v8301_v54  ;;  %v8376_v40 = vld [vmem:[#allocation2 + $0xae4] ss:$8 sps:$4 sm:$0xff]  }
 0x826   :  { %5212 = vmatprep.subr.bf16.mxu1 %v8302_v14  ;;  %5255 = vmatprep.subr.bf16.mxu0 %v8304_v38  ;;  %v8379_v54 = vld [vmem:[#allocation2 + $0xbe4] ss:$8 sps:$4 sm:$0xff]   ;;  %v8374_v14 = vld [vmem:[#allocation2 + $0xae0] ss:$8 sps:$4 sm:$0xff]  }
 0x827   :  { %v8377_v38 = vld [vmem:[#allocation2 + $0xbe0] ss:$8 sps:$4 sm:$0xff]  }
 0x829   :  { %5213 = vmatpush2.bf16.msra.mxu1 %v8306_v0  ;;  %5256 = vmatpush2.bf16.msra.mxu0 %v8307_v25  ;;  %v8382_v0 = vld [vmem:[#allocation2 + $0xad4] ss:$8 sps:$4 sm:$0xff]  }
 0x82a   :  { %5214 = vmatprep.subr.bf16.mxu1 %v8308_v50  ;;  %5257 = vmatprep.subr.bf16.mxu0 %v8310_v39  ;;  %v8385_v25 = vld [vmem:[#allocation2 + $0xbd4] ss:$8 sps:$4 sm:$0xff]   ;;  %v8380_v50 = vld [vmem:[#allocation2 + $0xad0] ss:$8 sps:$4 sm:$0xff]  }
 0x82b   :  { %v8383_v39 = vld [vmem:[#allocation2 + $0xbd0] ss:$8 sps:$4 sm:$0xff]  }
 0x82d   :  { %5215 = vmatpush2.bf16.msra.mxu1 %v8312_v16  ;;  %5258 = vmatpush2.bf16.msra.mxu0 %v8313_v3  ;;  %v8388_v16 = vld [vmem:[#allocation2 + $0xac4] ss:$8 sps:$4 sm:$0xff]  }
 0x82e   :  { %5216 = vmatprep.subr.bf16.mxu1 %v8314_v20  ;;  %5259 = vmatprep.subr.bf16.mxu0 %v8316_v11  ;;  %v8391_v3 = vld [vmem:[#allocation2 + $0xbc4] ss:$8 sps:$4 sm:$0xff]   ;;  %v8386_v20 = vld [vmem:[#allocation2 + $0xac0] ss:$8 sps:$4 sm:$0xff]  }
 0x82f   :  { %v8389_v11 = vld [vmem:[#allocation2 + $0xbc0] ss:$8 sps:$4 sm:$0xff]  }
 0x831   :  { %5217 = vmatpush2.bf16.msra.mxu1 %v8318_v19  ;;  %5260 = vmatpush2.bf16.msra.mxu0 %v8319_v44  ;;  %v8394_v19 = vld [vmem:[#allocation2 + $0xab4] ss:$8 sps:$4 sm:$0xff]  }
 0x832   :  { %5272 = vmatprep.subr.bf16.mxu1 %v8322_v49  ;;  %5315 = vmatprep.subr.bf16.mxu0 %v8325_v35  ;;  %v8397_v44 = vld [vmem:[#allocation2 + $0xbb4] ss:$8 sps:$4 sm:$0xff]   ;;  %v8392_v49 = vld [vmem:[#allocation2 + $0xab0] ss:$8 sps:$4 sm:$0xff]  }
 0x833   :  { %v8395_v35 = vld [vmem:[#allocation2 + $0xbb0] ss:$8 sps:$4 sm:$0xff]  }
 0x834   :  { %7584 = vmatmul.mubr.msk.bf16.vlgmr.msra.gmra.mxu1 %vm7577_vm6, %v7583_v12  ;;  %5262 = vmatmul.mubr.bf16.vlgmr.msra.gmra.mxu0 %v4410_v63  ;;  %v8341_v63 = vld [vmem:[#allocation2 + $0xb40] ss:$8 sps:$4 sm:$0xff]   ;;  %v8400_v12 = vld [vmem:[#allocation2 + $0xaa4] ss:$8 sps:$4 sm:$0xff]  }
 0x835   :  { %5273 = vmatpush1.bf16.msra.mxu1 %v8320_v24  ;;  %5316 = vmatpush1.bf16.msra.mxu0 %v8323_v36  ;;  %v8403_v24 = vld [vmem:[#allocation2 + $0xba4] ss:$8 sps:$4 sm:$0xff]   ;;  %v8398_v36 = vld [vmem:[#allocation2 + $0xaa0] ss:$8 sps:$4 sm:$0xff]  }
 0x836   :  { %5274 = vmatprep.subr.bf16.mxu1 %v8328_v58  ;;  %5317 = vmatprep.subr.bf16.mxu0 %v8331_v34  ;;  %v8401_v58 = vld [vmem:[#allocation2 + $0xba0] ss:$8 sps:$4 sm:$0xff]   ;;  %v8406_v34 = vld [vmem:[#allocation2 + $0xa94] ss:$8 sps:$4 sm:$0xff]  }
 0x837   :  { %5304 = vmatprep.mubr.bf16.mxu1 %v4413_v21  ;;  %7589 = vmatprep.mubr.msk.bf16.mxu0 %vm7587_vm9, %v7588_v23  ;;  %v5410_v21 = vld [vmem:[#allocation18 + $0x90] sm:$0xff]  ;;  %v5408_v23 = vld [vmem:[#allocation18 + $0x80] sm:$0xff] }
 0x839   :  { %5275 = vmatpush1.bf16.msra.mxu1 %v8326_v43  ;;  %5318 = vmatpush1.bf16.msra.mxu0 %v8329_v10  ;;  %v8409_v43 = vld [vmem:[#allocation2 + $0xb94] ss:$8 sps:$4 sm:$0xff]   ;;  %v8404_v10 = vld [vmem:[#allocation2 + $0xa90] ss:$8 sps:$4 sm:$0xff]  }
 0x83a   :  { %5276 = vmatprep.subr.bf16.mxu1 %v8334_v22  ;;  %5319 = vmatprep.subr.bf16.mxu0 %v8337_v8  ;;  %v8407_v22 = vld [vmem:[#allocation2 + $0xb90] ss:$8 sps:$4 sm:$0xff]   ;;  %v8412_v8 = vld [vmem:[#allocation2 + $0xa84] ss:$8 sps:$4 sm:$0xff]  }
 0x83d   :  { %5277 = vmatpush1.bf16.msra.mxu1 %v8332_v4  ;;  %5320 = vmatpush1.bf16.msra.mxu0 %v8335_v55  ;;  %v8415_v4 = vld [vmem:[#allocation2 + $0xb84] ss:$8 sps:$4 sm:$0xff]   ;;  %v8410_v55 = vld [vmem:[#allocation2 + $0xa80] ss:$8 sps:$4 sm:$0xff]  }
 0x83e   :  { %5278 = vmatprep.subr.bf16.mxu1 %v8340_v45  ;;  %5321 = vmatprep.subr.bf16.mxu0 %v8343_v9  ;;  %v8413_v45 = vld [vmem:[#allocation2 + $0xb80] ss:$8 sps:$4 sm:$0xff]   ;;  %v7593_v9 = vpack.c.bf16 %v10776_v57, %v10773_v52  ;;  %v5419_v52 = vld [vmem:[#allocation18 + $0xd8] sm:$0xff] }
 0x83f   :  { %v5418_v57 = vld [vmem:[#allocation18 + $0xd0] sm:$0xff] }
 0x841   :  { %5279 = vmatpush1.bf16.msra.mxu1 %v8338_v2  ;;  %5322 = vmatpush1.bf16.msra.mxu0 %v8341_v63  ;;  %v5423_v2 = vld [vmem:[#allocation18 + $0xf8] sm:$0xff]  ;;  %v5422_v63 = vld [vmem:[#allocation18 + $0xf0] sm:$0xff] }
 0x842   :  { %5280 = vmatprep.subr.bf16.mxu1 %v8346_v42  ;;  %5323 = vmatprep.subr.bf16.mxu0 %v8349_v30  ;;  %v5421_v42 = vld [vmem:[#allocation18 + $0xe8] sm:$0xff]  ;;  %v5420_v30 = vld [vmem:[#allocation18 + $0xe0] sm:$0xff] }
 0x845   :  { %5281 = vmatpush1.bf16.msra.mxu1 %v8344_v27  ;;  %5324 = vmatpush1.bf16.msra.mxu0 %v8347_v13  ;;  %v5414_v27 = vld [vmem:[#allocation18 + $0xb0] sm:$0xff]  ;;  %v5413_v13 = vld [vmem:[#allocation18 + $0xa8] sm:$0xff] }
 0x846   :  { %5282 = vmatprep.subr.bf16.mxu1 %v8352_v17  ;;  %5325 = vmatprep.subr.bf16.mxu0 %v8355_v46  ;;  %v5412_v17 = vld [vmem:[#allocation18 + $0xa0] sm:$0xff]  ;;  %v5411_v46 = vld [vmem:[#allocation18 + $0x98] sm:$0xff] }
 0x849   :  { %5283 = vmatpush1.bf16.msra.mxu1 %v8350_v28  ;;  %5326 = vmatpush1.bf16.msra.mxu0 %v8353_v6  ;;  %v5407_v28 = vld [vmem:[#allocation18 + $0x78] sm:$0xff]  ;;  %v5406_v6 = vld [vmem:[#allocation18 + $0x70] sm:$0xff] }
 0x84a   :  { %5284 = vmatprep.subr.bf16.mxu1 %v8358_v59  ;;  %5327 = vmatprep.subr.bf16.mxu0 %v8361_v29  ;;  %v5405_v59 = vld [vmem:[#allocation18 + $0x68] sm:$0xff]  ;;  %v5404_v29 = vld [vmem:[#allocation18 + $0x60] sm:$0xff] }
 0x84d   :  { %5285 = vmatpush1.bf16.msra.mxu1 %v8356_v48  ;;  %5328 = vmatpush1.bf16.msra.mxu0 %v8359_v15  ;;  %v5403_v48 = vld [vmem:[#allocation18 + $0x58] sm:$0xff]  ;;  %v5402_v15 = vld [vmem:[#allocation18 + $0x50] sm:$0xff] }
 0x84e   :  { %5286 = vmatprep.subr.bf16.mxu1 %v8364_v33  ;;  %5329 = vmatprep.subr.bf16.mxu0 %v8367_v26  ;;  %v5401_v33 = vld [vmem:[#allocation18 + $0x48] sm:$0xff]  ;;  %v5400_v26 = vld [vmem:[#allocation18 + $0x40] sm:$0xff] }
 0x851   :  { %5287 = vmatpush1.bf16.msra.mxu1 %v8362_v47  ;;  %5330 = vmatpush1.bf16.msra.mxu0 %v8365_v41  ;;  %v5399_v47 = vld [vmem:[#allocation18 + $0x38] sm:$0xff]  ;;  %v5398_v41 = vld [vmem:[#allocation18 + $0x30] sm:$0xff] }
 0x852   :  { %5288 = vmatprep.subr.bf16.mxu1 %v8370_v51  ;;  %5331 = vmatprep.subr.bf16.mxu0 %v8373_v5  ;;  %v5397_v51 = vld [vmem:[#allocation18 + $0x28] sm:$0xff]  ;;  %v5396_v5 = vld [vmem:[#allocation18 + $0x20] sm:$0xff] }
 0x855   :  { %5289 = vmatpush2.bf16.msra.mxu1 %v8368_v31  ;;  %5332 = vmatpush2.bf16.msra.mxu0 %v8371_v7  ;;  %v5395_v31 = vld [vmem:[#allocation18 + $0x18] sm:$0xff]  ;;  %v5394_v7 = vld [vmem:[#allocation18 + $0x10] sm:$0xff] }
 0x856   :  { %5290 = vmatprep.subr.bf16.mxu1 %v8376_v40  ;;  %5333 = vmatprep.subr.bf16.mxu0 %v8379_v54  ;;  %v5393_v40 = vld [vmem:[#allocation18 + $0x8] sm:$0xff]  ;;  %v5392_v54 = vld [vmem:[#allocation18] sm:$0xff] }
 0x859   :  { %5291 = vmatpush2.bf16.msra.mxu1 %v8374_v14  ;;  %5334 = vmatpush2.bf16.msra.mxu0 %v8377_v38  ;;  %v5455_v14 = vld [vmem:[#allocation18 + $0x1f8] sm:$0xff]  ;;  %v5454_v38 = vld [vmem:[#allocation18 + $0x1f0] sm:$0xff] }
 0x85a   :  { %5292 = vmatprep.subr.bf16.mxu1 %v8382_v0  ;;  %5335 = vmatprep.subr.bf16.mxu0 %v8385_v25  ;;  %v5453_v0 = vld [vmem:[#allocation18 + $0x1e8] sm:$0xff]  ;;  %v5452_v25 = vld [vmem:[#allocation18 + $0x1e0] sm:$0xff] }
 0x85d   :  { %5293 = vmatpush2.bf16.msra.mxu1 %v8380_v50  ;;  %5336 = vmatpush2.bf16.msra.mxu0 %v8383_v39  ;;  %v5451_v50 = vld [vmem:[#allocation18 + $0x1d8] sm:$0xff]  ;;  %v5450_v39 = vld [vmem:[#allocation18 + $0x1d0] sm:$0xff] }
 0x85e   :  { %5294 = vmatprep.subr.bf16.mxu1 %v8388_v16  ;;  %5337 = vmatprep.subr.bf16.mxu0 %v8391_v3  ;;  %v5449_v16 = vld [vmem:[#allocation18 + $0x1c8] sm:$0xff]  ;;  %v5448_v3 = vld [vmem:[#allocation18 + $0x1c0] sm:$0xff] }
 0x861   :  { %5295 = vmatpush2.bf16.msra.mxu1 %v8386_v20  ;;  %5338 = vmatpush2.bf16.msra.mxu0 %v8389_v11  ;;  %v5447_v20 = vld [vmem:[#allocation18 + $0x1b8] sm:$0xff]  ;;  %v5446_v11 = vld [vmem:[#allocation18 + $0x1b0] sm:$0xff] }
 0x862   :  { %5296 = vmatprep.subr.bf16.mxu1 %v8394_v19  ;;  %5339 = vmatprep.subr.bf16.mxu0 %v8397_v44  ;;  %v5445_v19 = vld [vmem:[#allocation18 + $0x1a8] sm:$0xff]  ;;  %v5444_v44 = vld [vmem:[#allocation18 + $0x1a0] sm:$0xff] }
 0x865   :  { %5297 = vmatpush2.bf16.msra.mxu1 %v8392_v49  ;;  %5340 = vmatpush2.bf16.msra.mxu0 %v8395_v35  ;;  %v5443_v49 = vld [vmem:[#allocation18 + $0x198] sm:$0xff]  ;;  %v5442_v35 = vld [vmem:[#allocation18 + $0x190] sm:$0xff] }
 0x866   :  { %5298 = vmatprep.subr.bf16.mxu1 %v8400_v12  ;;  %5341 = vmatprep.subr.bf16.mxu0 %v8403_v24  ;;  %v5441_v12 = vld [vmem:[#allocation18 + $0x188] sm:$0xff]  ;;  %v5440_v24 = vld [vmem:[#allocation18 + $0x180] sm:$0xff] }
 0x869   :  { %5299 = vmatpush2.bf16.msra.mxu1 %v8398_v36  ;;  %5342 = vmatpush2.bf16.msra.mxu0 %v8401_v58  ;;  %v5439_v36 = vld [vmem:[#allocation18 + $0x178] sm:$0xff]  ;;  %v5438_v58 = vld [vmem:[#allocation18 + $0x170] sm:$0xff] }
 0x86a   :  { %5300 = vmatprep.subr.bf16.mxu1 %v8406_v34  ;;  %5343 = vmatprep.subr.bf16.mxu0 %v8409_v43  ;;  %v5437_v34 = vld [vmem:[#allocation18 + $0x168] sm:$0xff]  ;;  %v5436_v43 = vld [vmem:[#allocation18 + $0x160] sm:$0xff] }
 0x86d   :  { %5301 = vmatpush2.bf16.msra.mxu1 %v8404_v10  ;;  %5344 = vmatpush2.bf16.msra.mxu0 %v8407_v22  ;;  %v5435_v10 = vld [vmem:[#allocation18 + $0x158] sm:$0xff]  ;;  %v5434_v22 = vld [vmem:[#allocation18 + $0x150] sm:$0xff] }
 0x86e   :  { %5302 = vmatprep.subr.bf16.mxu1 %v8412_v8  ;;  %5345 = vmatprep.subr.bf16.mxu0 %v8415_v4  ;;  %v5433_v8 = vld [vmem:[#allocation18 + $0x148] sm:$0xff]  ;;  %v5432_v4 = vld [vmem:[#allocation18 + $0x140] sm:$0xff] }
 0x871   :  { %5303 = vmatpush2.bf16.msra.mxu1 %v8410_v55  ;;  %5346 = vmatpush2.bf16.msra.mxu0 %v8413_v45  ;;  %v5431_v55 = vld [vmem:[#allocation18 + $0x138] sm:$0xff]  ;;  %v5430_v45 = vld [vmem:[#allocation18 + $0x130] sm:$0xff] }
 0x872   :  { %5456 = vmatprep.subr.mxu1 %v5423_v2  ;;  %v5428_v2 = vld [vmem:[#allocation18 + $0x120] sm:$0xff] }
 0x874   :  { %5305 = vmatmul.mubr.bf16.vlgmr.msra.gmra.mxu1 %v4412_v18  ;;  %7594 = vmatmul.mubr.msk.bf16.vlgmr.msra.gmra.mxu0 %vm7587_vm9, %v7593_v9  ;;  %v5415_v18 = vld [vmem:[#allocation18 + $0xb8] sm:$0xff]  ;;  %v5429_v9 = vld [vmem:[#allocation18 + $0x128] sm:$0xff] }
 0x875   :  { %5666 = vmatprep.mubr.bf16.mxu0 %v11158_v1  ;;  %5457 = vmatpush1.msra.mxu1 %v5422_v63  ;;  %v5427_v63 = vld [vmem:[#allocation18 + $0x118] sm:$0xff] }
 0x876   :  { %5458 = vmatprep.subr.mxu1 %v5421_v42  ;;  %v5426_v42 = vld [vmem:[#allocation18 + $0x110] sm:$0xff] }
 0x877   :  { %5459 = vmatpush1.msra.mxu1 %v5420_v30  ;;  %v5425_v30 = vld [vmem:[#allocation18 + $0x108] sm:$0xff] }
 0x878   :  { %5460 = vmatprep.subr.mxu1 %v5419_v52  ;;  %v5424_v52 = vld [vmem:[#allocation18 + $0x100] sm:$0xff] }
 0x879   :  { %5461 = vmatpush1.msra.mxu1 %v5418_v57 }
 0x87a   :  { %5462 = vmatprep.subr.mxu1 %v5417_v60 }
 0x87b   :  { %5463 = vmatpush1.msra.mxu1 %v5416_v32 }
 0x87c   :  { %5464 = vmatprep.subr.mxu1 %v5415_v18 }
 0x87d   :  { %5465 = vmatpush1.msra.mxu1 %v5414_v27 }
 0x87e   :  { %5466 = vmatprep.subr.mxu1 %v5413_v13 }
 0x87f   :  { %5467 = vmatpush1.msra.mxu1 %v5412_v17 }
 0x880   :  { %5468 = vmatprep.subr.mxu1 %v5411_v46 }
 0x881   :  { %5469 = vmatpush1.msra.mxu1 %v5410_v21 }
 0x882   :  { %5470 = vmatprep.subr.mxu1 %v5409_v37 }
 0x883   :  { %5471 = vmatpush1.msra.mxu1 %v5408_v23 }
 0x884   :  { %5472 = vmatprep.subr.mxu1 %v5407_v28 }
 0x885   :  { %5473 = vmatpush1.msra.mxu1 %v5406_v6 }
 0x886   :  { %5474 = vmatprep.subr.mxu1 %v5405_v59 }
 0x887   :  { %5475 = vmatpush1.msra.mxu1 %v5404_v29 }
 0x888   :  { %5476 = vmatprep.subr.mxu1 %v5403_v48 }
 0x889   :  { %5477 = vmatpush1.msra.mxu1 %v5402_v15 }
 0x88a   :  { %5478 = vmatprep.subr.mxu1 %v5401_v33 }
 0x88b   :  { %5479 = vmatpush1.msra.mxu1 %v5400_v26 }
 0x88c   :  { %5480 = vmatprep.subr.mxu1 %v5399_v47 }
 0x88d   :  { %5481 = vmatpush1.msra.mxu1 %v5398_v41 }
 0x88e   :  { %5482 = vmatprep.subr.mxu1 %v5397_v51 }
 0x88f   :  { %5483 = vmatpush1.msra.mxu1 %v5396_v5 }
 0x890   :  { %5484 = vmatprep.subr.mxu1 %v5395_v31 }
 0x891   :  { %5485 = vmatpush1.msra.mxu1 %v5394_v7 }
 0x892   :  { %5486 = vmatprep.subr.mxu1 %v5393_v40 }
 0x893   :  { %5487 = vmatpush1.msra.mxu1 %v5392_v54 }
 0x894   :  { %5488 = vmatprep.subr.mxu1 %v5455_v14 }
 0x895   :  { %5489 = vmatpush2.msra.mxu1 %v5454_v38 }
 0x896   :  { %5490 = vmatprep.subr.mxu1 %v5453_v0 }
 0x897   :  { %5491 = vmatpush2.msra.mxu1 %v5452_v25 }
 0x898   :  { %5492 = vmatprep.subr.mxu1 %v5451_v50 }
 0x899   :  { %5493 = vmatpush2.msra.mxu1 %v5450_v39 }
 0x89a   :  { %5494 = vmatprep.subr.mxu1 %v5449_v16 }
 0x89b   :  { %5495 = vmatpush2.msra.mxu1 %v5448_v3 }
 0x89c   :  { %5496 = vmatprep.subr.mxu1 %v5447_v20 }
 0x89d   :  { %5497 = vmatpush2.msra.mxu1 %v5446_v11 }
 0x89e   :  { %5498 = vmatprep.subr.mxu1 %v5445_v19 }
 0x89f   :  { %5499 = vmatpush2.msra.mxu1 %v5444_v44 }
 0x8a0   :  { %5500 = vmatprep.subr.mxu1 %v5443_v49 }
 0x8a1   :  { %5501 = vmatpush2.msra.mxu1 %v5442_v35 }
 0x8a2   :  { %5502 = vmatprep.subr.mxu1 %v5441_v12 }
 0x8a3   :  { %5503 = vmatpush2.msra.mxu1 %v5440_v24 }
 0x8a4   :  { %5504 = vmatprep.subr.mxu1 %v5439_v36 }
 0x8a5   :  { %5505 = vmatpush2.msra.mxu1 %v5438_v58 }
 0x8a6   :  { %5506 = vmatprep.subr.mxu1 %v5437_v34 }
 0x8a7   :  { %5507 = vmatpush2.msra.mxu1 %v5436_v43 }
 0x8a8   :  { %5508 = vmatprep.subr.mxu1 %v5435_v10 }
 0x8a9   :  { %5509 = vmatpush2.msra.mxu1 %v5434_v22 }
 0x8aa   :  { %5510 = vmatprep.subr.mxu1 %v5433_v8 }
 0x8ab   :  { %5511 = vmatpush2.msra.mxu1 %v5432_v4 }
 0x8ac   :  { %5512 = vmatprep.subr.mxu1 %v5431_v55 }
 0x8ad   :  { %5513 = vmatpush2.msra.mxu1 %v5430_v45 }
 0x8ae   :  { %5514 = vmatprep.subr.mxu1 %v5429_v9 }
 0x8af   :  { %5515 = vmatpush2.msra.mxu1 %v5428_v2 }
 0x8b0   :  { %5516 = vmatprep.subr.mxu1 %v5427_v63 }
 0x8b1   :  { %5517 = vmatpush2.msra.mxu1 %v5426_v42 }
 0x8b2   :  { %5518 = vmatprep.subr.mxu1 %v5425_v30 }
 0x8b3   :  { %5519 = vmatpush2.msra.mxu1 %v5424_v52 }
 0x8f4   :  { %v5220_v57 = vpop.f32.mrf.mxu1  ;;  %v5263_v60 = vpop.f32.mrf.mxu0 }
 0x8f5   :  { %v5264_v21 = vadd.f32 %v5263_v60, %v5220_v57 }
 0x8f6   :  { %v5222_v32 = vpop.f32.mrf.mxu1  ;;  %v5265_v18 = vpop.f32.mrf.mxu0 }
 0x8f7   :  { %v5266_v28 = vadd.f32 %v5265_v18, %v5222_v32 }
 0x8f8   :  { %v5224_v27 = vpop.f32.mrf.mxu1  ;;  %v5267_v13 = vpop.f32.mrf.mxu0 }
 0x8f9   :  { %v5268_v48 = vadd.f32 %v5267_v13, %v5224_v27 }
 0x8fa   :  { %v5226_v17 = vpop.f32.mrf.mxu1  ;;  %v5269_v46 = vpop.f32.mrf.mxu0 }
 0x8fb   :  { %v5270_v47 = vadd.f32 %v5269_v46, %v5226_v17 }
 0x934   :  { %v5306_v37 = vpop.f32.mrf.mxu1  ;;  %v5349_v23 = vpop.f32.mrf.mxu0 }
 0x935   :  { %v5307_v6 = vadd.f32 %v5306_v37, %v5264_v21 }
 0x936   :  { %v5308_v59 = vpop.f32.mrf.mxu1  ;;  %v5351_v29 = vpop.f32.mrf.mxu0 }
 0x937   :  { %v5309_v15 = vadd.f32 %v5308_v59, %v5266_v28  ;;  %v10876_v41 = vadd.f32 %v5349_v23, %v5307_v6 }
 0x938   :  { %v5310_v33 = vpop.f32.mrf.mxu1  ;;  %v5353_v26 = vpop.f32.mrf.mxu0 }
 0x939   :  { %v5311_v51 = vadd.f32 %v5310_v33, %v5268_v48  ;;  %v10878_v5 = vadd.f32 %v5351_v29, %v5309_v15  ;;  %v5372_v14 = vmul.f32 %v10876_v41, %v10876_v41 }
 0x93a   :  { %v5312_v31 = vpop.f32.mrf.mxu1  ;;  %v5355_v54 = vpop.f32.mrf.mxu0 }
 0x93b   :  { %v10880_v7 = vadd.f32 %v5353_v26, %v5311_v51  ;;  %v5313_v40 = vadd.f32 %v5312_v31, %v5270_v47  ;;  %v5373_v50 = vmul.f32 %v10878_v5, %v10878_v5  ;;  %v5537_v26 = vld [vmem:[%s11035_s15] sm:$0x3] }
 0x93d   :  { %v5358_v38 = vadd.f32 %v10880_v7, %v10876_v41  ;;  %v5374_v0 = vmul.f32 %v10880_v7, %v10880_v7  ;;  %v10888_v25 = vadd.f32 %v5355_v54, %v5313_v40 }
 0x93f   :  { %v5359_v39 = vrot.slane %v5358_v38, 4  ;;  %v5376_v16 = vadd.f32 %v5374_v0, %v5372_v14  ;;  %v5365_v3 = vadd.f32 %v10888_v25, %v10878_v5  ;;  %v5375_v20 = vmul.f32 %v10888_v25, %v10888_v25 }
 0x941   :  { %v5360_v11 = vadd.f32 %v5359_v39, %v5358_v38  ;;  %v5377_v19 = vrot.slane %v5376_v16, 4  ;;  %v5366_v44 = vrot.slane %v5365_v3, 4  ;;  %v5383_v49 = vadd.f32 %v5375_v20, %v5373_v50  ;;  %v5562_v50 = vld [vmem:[#allocation20] sm:$0x3] }
 0x943   :  { %v5361_v35 = vrot.slane %v5360_v11, 2  ;;  %v5378_v12 = vadd.f32 %v5377_v19, %v5376_v16  ;;  %v5367_v24 = vadd.f32 %v5366_v44, %v5365_v3  ;;  %v5384_v36 = vrot.slane %v5383_v49, 4 }
 0x945   :  { %v5368_v58 = vrot.slane %v5367_v24, 2  ;;  %v5385_v34 = vadd.f32 %v5384_v36, %v5383_v49  ;;  %v5379_v43 = vrot.slane %v5378_v12, 2  ;;  %v5362_v10 = vadd.f32 %v5361_v35, %v5360_v11 }
 0x947   :  { %v5369_v22 = vadd.f32 %v5368_v58, %v5367_v24  ;;  %v5386_v8 = vrot.slane %v5385_v34, 2  ;;  %v5380_v4 = vadd.f32 %v5379_v43, %v5378_v12  ;;  %v5363_v2 = vrot.slane %v5362_v10, 1 }
 0x949   :  { %v5370_v55 = vrot.slane %v5369_v22, 1  ;;  %v5387_v45 = vadd.f32 %v5386_v8, %v5385_v34  ;;  %v5381_v9 = vrot.slane %v5380_v4, 1  ;;  %v5364_v57 = vadd.f32 %v5363_v2, %v5362_v10 }
 0x94b   :  { %v5388_v63 = vrot.slane %v5387_v45, 1  ;;  %v5382_v42 = vadd.f32 %v5381_v9, %v5380_v4  ;;  %v5371_v30 = vadd.f32 %v5370_v55, %v5369_v22  ;;  %v5628_v4 = vld [vmem:[%s11037_s17] sm:$0xf]  ;;  %v5629_v55 = vld [vmem:[#allocation21] sm:$0xf] }
 0x94d   :  { %v5389_v52 = vadd.f32 %v5388_v63, %v5387_v45  ;;  %v5390_v32 = vsel %vm1334_vm0, %v5364_v57, %v5382_v42  ;;  %v5723_v45 = vand.u32 3, %v11159_v56 }
 0x94f   :  { %v5391_v60 = vsel %vm1334_vm0, %v5371_v30, %v5389_v52 }
 0x950   :  { %5520 = vmatprep.mubr.f32.mxu1 %v5391_v60 }
 0x951   :  { %5521 = vmatmul.mubr.f32.vlgmr.msra.gmra.mxu1 %v5390_v32 }
 0xa11   :  { %v5522_v18 = vpop.f32.mrf.mxu1 }
 0xa12   :  { %v5527_v27 = vmul.f32 %v5522_v18, %v5522_v18 }
 0xa13   :  { %v5524_v13 = vpop.f32.mrf.mxu1 }
 0xa14   :  { %v5531_v17 = vrot.slane %v5527_v27, 7  ;;  %v5528_v46 = vmul.f32 %v5524_v13, %v5524_v13 }
 0xa16   :  { %v5535_v21 = vsub.f32 %v5522_v18, %v5531_v17  ;;  %v5532_v37 = vrot.slane %v5528_v46, 7 }
 0xa18   :  { %v5538_v23 = vadd.f32 1e-05, %v5535_v21  ;;  %v5536_v28 = vsub.f32 %v5524_v13, %v5532_v37 }
 0xa1a   :  { %v5539_v6 = vadd.f32 1e-05, %v5536_v28  ;;  %8416 = vrsqrt.f32 %v5538_v23 }
 0xa1c   :  { %8418 = vrsqrt.f32 %v5539_v6 }
 0xa27   :  { %v8417_v59 = vpop.eup %8416 }
 0xa29   :  { %v8419_v29 = vpop.eup %8418 }
 0xa2a   :  { %v5544_v48 = vcombine.low %v8417_v59, %v8419_v29 }
 0xa2c   :  { %v5551_v15 = vrot.slane %v5544_v48, %v10737_v62 }
 0xa2e   :  { %v5552_v33 = vcombine.high %v5551_v15, %v5551_v15 }
 0xa30   :  { %v5559_v47 = vrot.slane %v5552_v33, %v10737_v62 }
 0xa32   :  { %v5561_v51 = vmul.f32 %v5559_v47, %v5537_v26 }
 0xa34   :  { %v5567_v31 = vrot.slane %v5561_v51, %v10742_v61  ;;  %v5571_v40 = vrot.slane %v5561_v51, %v10745_v53 }
 0xa36   :  { %v5574_v54 = vmul.f32 %v5567_v31, %v5522_v18  ;;  %v5575_v14 = vmul.f32 %v5571_v40, %v5524_v13  ;;  %v5595_v3 = vmul.f32 %v5567_v31, %v10876_v41  ;;  %v5596_v20 = vmul.f32 %v5571_v40, %v10878_v5 }
 0xa37   :  { %v5597_v11 = vmul.f32 %v5567_v31, %v10880_v7  ;;  %v5598_v19 = vmul.f32 %v5571_v40, %v10888_v25 }
 0xa38   :  { %v5578_v38 = vcombine.low %v5574_v54, %v5575_v14 }
 0xa3a   :  { %v5585_v0 = vrot.slane %v5578_v38, %v10737_v62 }
 0xa3c   :  { %v5592_v39 = vrot.slane %v5585_v0, %v10737_v62 }
 0xa3e   :  { %v5594_v16 = vsub.f32 %v5562_v50, %v5592_v39 }
 0xa40   :  { %v5603_v44 = vrot.slane %v5594_v16, %v10742_v61  ;;  %v5607_v49 = vrot.slane %v5594_v16, %v10745_v53 }
 0xa42   :  { %v5610_v35 = vadd.f32 %v5603_v44, %v5595_v3  ;;  %v5612_v12 = vadd.f32 %v5603_v44, %v5597_v11  ;;  %v5611_v24 = vadd.f32 %v5607_v49, %v5596_v20  ;;  %v5613_v36 = vadd.f32 %v5607_v49, %v5598_v19 }
 0xa44   :  { %vm5615_vm3 = vcmp.gt.f32.partialorder %v5611_v24, 0.0  ;;  %vm5617_vm10 = vcmp.gt.f32.partialorder %v5613_v36, 0.0  ;;  %v5619_v58 = vmul.f32 0.2, %v5611_v24  ;;  %v5621_v34 = vmul.f32 0.2, %v5613_v36 }
 0xa45   :  { %vm5614_vm11 = vcmp.gt.f32.partialorder %v5610_v35, 0.0  ;;  %vm5616_vm12 = vcmp.gt.f32.partialorder %v5612_v12, 0.0  ;;  %v5618_v41 = vmul.f32 0.2, %v5610_v35  ;;  %v5620_v5 = vmul.f32 0.2, %v5612_v12 }
 0xa46   :  { %v5623_v43 = vsel %vm5615_vm3, %v5611_v24, %v5619_v58  ;;  %v5625_v7 = vsel %vm5617_vm10, %v5613_v36, %v5621_v34 }
 0xa47   :  { %v5627_v10 = vpack.c.bf16 %v5625_v7, %v5623_v43  ;;  %v5622_v25 = vsel %vm5614_vm11, %v5610_v35, %v5618_v41  ;;  %v5624_v22 = vsel %vm5616_vm12, %v5612_v12, %v5620_v5 }
 0xa48   :  { %v5626_v8 = vpack.c.bf16 %v5624_v22, %v5622_v25 }
 0xa49   :  { %5648 = vmatprep.subr.bf16.mxu0 %v5627_v10 }
 0xa4a   :  { %5649 = vmatpush1.bf16.msra.mxu0 %v5626_v8 }
 0xa4b   :  { %5692 = vmatprep.subr.bf16.mxu0 %v5627_v10 }
 0xa4d   :  { %7595 = vmatmul.mubr.msk.bf16.vlgmr.msra.gmra.mxu0 %vm5630_vm13, %v5628_v4 }
 0xa4e   :  { %5693 = vmatpush1.bf16.msra.mxu0 %v5626_v8  ;;  %5710 = vmatprep.mubr.bf16.mxu0 %v11158_v1 }
 0xa55   :  { %7596 = vmatmul.mubr.msk.bf16.vlgmr.msra.gmra.mxu0 %vm5630_vm13, %v5629_v55 }
 0xb0d   :  { %v10918_v9 = vpop.f32.mrf.mxu0 }
 0xb0e   :  { %v5745_v2 = vrot.slane %v10918_v9, 1  ;;  %v5755_v63 = vpack.c.bf16 %v10918_v9, %v10918_v9 }
 0xb0f   :  { %v10923_v42 = vpop.f32.mrf.mxu0 }
 0xb10   :  { %v5746_v30 = vrot.slane %v10923_v42, 1  ;;  %v5756_v52 = vpack.c.bf16 %v10923_v42, %v10923_v42 }
 0xb11   :  { %v5672_v57 = vpop.f32.mrf.mxu0 }
 0xb13   :  { %v5673_v1 = vpop.f32.mrf.mxu0 }
 0xb15   :  { %v10928_v60 = vpop.f32.mrf.mxu0 }
 0xb16   :  { %v5734_v32 = vrot.slane %v10928_v60, 7  ;;  %v5757_v18 = vpack.c.bf16 %v10928_v60, %v10928_v60 }
 0xb17   :  { %v10933_v27 = vpop.f32.mrf.mxu0 }
 0xb18   :  { %v5735_v13 = vrot.slane %v10933_v27, 7  ;;  %v5758_v17 = vpack.c.bf16 %v10933_v27, %v10933_v27 }
 0xb19   :  { %v5716_v46 = vpop.f32.mrf.mxu0 }
 0xb1b   :  { %v5717_v21 = vpop.f32.mrf.mxu0 }
 0xb1c   :  { %9000 = dma.done.wait [#allocation3 + $0x3], 16384 }
 0xb1d   :  { %9001 = vsyncadd [#allocation3 + $0x3], 4294950912  ;;  %vm10940_vm14 = vcmp.ne.s32.totalorder %v5723_v45, 0  ;;  %v7728_v23 = vpack.c.bf16 %v5735_v13, %v5735_v13  ;;  %6604 = vmatprep.mubr.bf16.mxu1 %v5756_v52  ;;  %v8420_v28 = vld [vmem:[#allocation2 + $0xc74] ss:$8 sps:$4 sm:$0xff]   ;;  %vm10968_vm2 = vcmp.ne.s32.totalorder %v5723_v45, 3 }
 0xb1e   :  { %vm7727_vm15 = vmpackc.low %vm10940_vm14, %vm10940_vm14  ;;  %v8422_v6 = vld [vmem:[#allocation2 + $0xd74] ss:$8 sps:$4 sm:$0xff]   ;;  %6531 = vmatprep.subr.bf16.mxu0 %v8420_v28  ;;  %v8424_v59 = vld [vmem:[#allocation2 + $0xc70] ss:$8 sps:$4 sm:$0xff]   ;;  %vm9029_vm5 = vmmov 0   ;;  %vm6959_vm6 = vcmask 64512  }
 0xb1f   :  { %7729 = vmatprep.mubr.msk.bf16.mxu0 %vm7727_vm15, %v7728_v23  ;;  %v8425_v29 = vld [vmem:[#allocation2 + $0xd70] ss:$8 sps:$4 sm:$0xff]   ;;  %6572 = vmatprep.subr.bf16.mxu1 %v8422_v6  ;;  %v8426_v48 = vld [vmem:[#allocation2 + $0xc64] ss:$8 sps:$4 sm:$0xff]   ;;  %v8430_v33 = vld [vmem:[#allocation2 + $0xc60] ss:$8 sps:$4 sm:$0xff]  }
 0xb20   :  { %6532 = vmatpush1.bf16.msra.mxu0 %v8424_v59  ;;  %6573 = vmatpush1.bf16.msra.mxu1 %v8425_v29  ;;  %v8428_v15 = vld [vmem:[#allocation2 + $0xd64] ss:$8 sps:$4 sm:$0xff]   ;;  %v8431_v26 = vld [vmem:[#allocation2 + $0xd60] ss:$8 sps:$4 sm:$0xff]   ;;  %v8432_v47 = vld [vmem:[#allocation2 + $0xc54] ss:$8 sps:$4 sm:$0xff]  }
 0xb21   :  { %6533 = vmatprep.subr.bf16.mxu0 %v8426_v48  ;;  %6574 = vmatprep.subr.bf16.mxu1 %v8428_v15  ;;  %v8434_v51 = vld [vmem:[#allocation2 + $0xd54] ss:$8 sps:$4 sm:$0xff]   ;;  %v8436_v31 = vld [vmem:[#allocation2 + $0xc50] ss:$8 sps:$4 sm:$0xff]   ;;  %v8438_v54 = vld [vmem:[#allocation2 + $0xc44] ss:$8 sps:$4 sm:$0xff]  }
 0xb22   :  { %v8437_v40 = vld [vmem:[#allocation2 + $0xd50] ss:$8 sps:$4 sm:$0xff]   ;;  %v8440_v14 = vld [vmem:[#allocation2 + $0xd44] ss:$8 sps:$4 sm:$0xff]   ;;  %v8442_v38 = vld [vmem:[#allocation2 + $0xc40] ss:$8 sps:$4 sm:$0xff]  }
 0xb23   :  { %v8443_v0 = vld [vmem:[#allocation2 + $0xd40] ss:$8 sps:$4 sm:$0xff]   ;;  %v8444_v50 = vld [vmem:[#allocation2 + $0xc34] ss:$8 sps:$4 sm:$0xff]   ;;  %v8448_v16 = vld [vmem:[#allocation2 + $0xc30] ss:$8 sps:$4 sm:$0xff]  }
 0xb24   :  { %6534 = vmatpush1.bf16.msra.mxu0 %v8430_v33  ;;  %6575 = vmatpush1.bf16.msra.mxu1 %v8431_v26  ;;  %v8446_v39 = vld [vmem:[#allocation2 + $0xd34] ss:$8 sps:$4 sm:$0xff]   ;;  %v8449_v3 = vld [vmem:[#allocation2 + $0xd30] ss:$8 sps:$4 sm:$0xff]   ;;  %v8450_v20 = vld [vmem:[#allocation2 + $0xc24] ss:$8 sps:$4 sm:$0xff]  }
 0xb25   :  { %6535 = vmatprep.subr.bf16.mxu0 %v8432_v47  ;;  %6576 = vmatprep.subr.bf16.mxu1 %v8434_v51  ;;  %v8452_v11 = vld [vmem:[#allocation2 + $0xd24] ss:$8 sps:$4 sm:$0xff]   ;;  %v8454_v19 = vld [vmem:[#allocation2 + $0xc20] ss:$8 sps:$4 sm:$0xff]   ;;  %v8456_v49 = vld [vmem:[#allocation2 + $0xc14] ss:$8 sps:$4 sm:$0xff]  }
 0xb26   :  { %v8455_v44 = vld [vmem:[#allocation2 + $0xd20] ss:$8 sps:$4 sm:$0xff]   ;;  %v8458_v35 = vld [vmem:[#allocation2 + $0xd14] ss:$8 sps:$4 sm:$0xff]   ;;  %v8460_v12 = vld [vmem:[#allocation2 + $0xc10] ss:$8 sps:$4 sm:$0xff]  }
 0xb27   :  { %v8461_v24 = vld [vmem:[#allocation2 + $0xd10] ss:$8 sps:$4 sm:$0xff]   ;;  %v8462_v36 = vld [vmem:[#allocation2 + $0xc04] ss:$8 sps:$4 sm:$0xff]   ;;  %v8466_v34 = vld [vmem:[#allocation2 + $0xc00] ss:$8 sps:$4 sm:$0xff]  }
 0xb28   :  { %6536 = vmatpush1.bf16.msra.mxu0 %v8436_v31  ;;  %6577 = vmatpush1.bf16.msra.mxu1 %v8437_v40  ;;  %v8464_v58 = vld [vmem:[#allocation2 + $0xd04] ss:$8 sps:$4 sm:$0xff]   ;;  %v8467_v41 = vld [vmem:[#allocation2 + $0xd00] ss:$8 sps:$4 sm:$0xff]   ;;  %v8468_v5 = vld [vmem:[#allocation2 + $0xcf4] ss:$8 sps:$4 sm:$0xff]  }
 0xb29   :  { %6537 = vmatprep.subr.bf16.mxu0 %v8438_v54  ;;  %6578 = vmatprep.subr.bf16.mxu1 %v8440_v14  ;;  %v8470_v43 = vld [vmem:[#allocation2 + $0xdf4] ss:$8 sps:$4 sm:$0xff]   ;;  %v8472_v7 = vld [vmem:[#allocation2 + $0xcf0] ss:$8 sps:$4 sm:$0xff]   ;;  %v8474_v25 = vld [vmem:[#allocation2 + $0xce4] ss:$8 sps:$4 sm:$0xff]  }
 0xb2a   :  { %v8473_v10 = vld [vmem:[#allocation2 + $0xdf0] ss:$8 sps:$4 sm:$0xff]   ;;  %v8476_v22 = vld [vmem:[#allocation2 + $0xde4] ss:$8 sps:$4 sm:$0xff]   ;;  %v8478_v8 = vld [vmem:[#allocation2 + $0xce0] ss:$8 sps:$4 sm:$0xff]  }
 0xb2b   :  { %v8479_v4 = vld [vmem:[#allocation2 + $0xde0] ss:$8 sps:$4 sm:$0xff]   ;;  %v8480_v55 = vld [vmem:[#allocation2 + $0xcd4] ss:$8 sps:$4 sm:$0xff]   ;;  %v8484_v57 = vld [vmem:[#allocation2 + $0xcd0] ss:$8 sps:$4 sm:$0xff]  }
 0xb2c   :  { %6538 = vmatpush1.bf16.msra.mxu0 %v8442_v38  ;;  %6579 = vmatpush1.bf16.msra.mxu1 %v8443_v0  ;;  %v8482_v52 = vld [vmem:[#allocation2 + $0xdd4] ss:$8 sps:$4 sm:$0xff]   ;;  %v8485_v1 = vld [vmem:[#allocation2 + $0xdd0] ss:$8 sps:$4 sm:$0xff]   ;;  %v8486_v13 = vld [vmem:[#allocation2 + $0xcc4] ss:$8 sps:$4 sm:$0xff]  }
 0xb2d   :  { %6539 = vmatprep.subr.bf16.mxu0 %v8444_v50  ;;  %6580 = vmatprep.subr.bf16.mxu1 %v8446_v39  ;;  %v8488_v46 = vld [vmem:[#allocation2 + $0xdc4] ss:$8 sps:$4 sm:$0xff]   ;;  %v8490_v21 = vld [vmem:[#allocation2 + $0xcc0] ss:$8 sps:$4 sm:$0xff]   ;;  %v8492_v28 = vld [vmem:[#allocation2 + $0xcb4] ss:$8 sps:$4 sm:$0xff]  }
 0xb2e   :  { %v8491_v23 = vld [vmem:[#allocation2 + $0xdc0] ss:$8 sps:$4 sm:$0xff]   ;;  %v8494_v6 = vld [vmem:[#allocation2 + $0xdb4] ss:$8 sps:$4 sm:$0xff]   ;;  %v8496_v59 = vld [vmem:[#allocation2 + $0xcb0] ss:$8 sps:$4 sm:$0xff]  }
 0xb2f   :  { %v8497_v29 = vld [vmem:[#allocation2 + $0xdb0] ss:$8 sps:$4 sm:$0xff]   ;;  %v8498_v48 = vld [vmem:[#allocation2 + $0xca4] ss:$8 sps:$4 sm:$0xff]   ;;  %v8502_v33 = vld [vmem:[#allocation2 + $0xca0] ss:$8 sps:$4 sm:$0xff]  }
 0xb30   :  { %6540 = vmatpush1.bf16.msra.mxu0 %v8448_v16  ;;  %6581 = vmatpush1.bf16.msra.mxu1 %v8449_v3  ;;  %v8500_v15 = vld [vmem:[#allocation2 + $0xda4] ss:$8 sps:$4 sm:$0xff]   ;;  %v8503_v26 = vld [vmem:[#allocation2 + $0xda0] ss:$8 sps:$4 sm:$0xff]   ;;  %v8504_v47 = vld [vmem:[#allocation2 + $0xc94] ss:$8 sps:$4 sm:$0xff]   ;;  %v7733_v16 = vpack.c.bf16 %v5734_v32, %v5734_v32 }
 0xb31   :  { %6541 = vmatprep.subr.bf16.mxu0 %v8450_v20  ;;  %6582 = vmatprep.subr.bf16.mxu1 %v8452_v11  ;;  %v8506_v51 = vld [vmem:[#allocation2 + $0xd94] ss:$8 sps:$4 sm:$0xff]   ;;  %v8508_v31 = vld [vmem:[#allocation2 + $0xc90] ss:$8 sps:$4 sm:$0xff]   ;;  %v8510_v54 = vld [vmem:[#allocation2 + $0xc84] ss:$8 sps:$4 sm:$0xff]  }
 0xb32   :  { %v8509_v40 = vld [vmem:[#allocation2 + $0xd90] ss:$8 sps:$4 sm:$0xff]   ;;  %v8512_v14 = vld [vmem:[#allocation2 + $0xd84] ss:$8 sps:$4 sm:$0xff]   ;;  %v8514_v38 = vld [vmem:[#allocation2 + $0xc80] ss:$8 sps:$4 sm:$0xff]  }
 0xb33   :  { %v8515_v0 = vld [vmem:[#allocation2 + $0xd80] ss:$8 sps:$4 sm:$0xff]   ;;  %v8518_v50 = vld [vmem:[#allocation2 + $0xe74] ss:$8 sps:$4 sm:$0xff]   ;;  %v8516_v3 = vld [vmem:[#allocation2 + $0xe70] ss:$8 sps:$4 sm:$0xff]  }
 0xb34   :  { %6542 = vmatpush1.bf16.msra.mxu0 %v8454_v19  ;;  %6583 = vmatpush1.bf16.msra.mxu1 %v8455_v44  ;;  %v8521_v39 = vld [vmem:[#allocation2 + $0xf74] ss:$8 sps:$4 sm:$0xff]   ;;  %v8519_v20 = vld [vmem:[#allocation2 + $0xf70] ss:$8 sps:$4 sm:$0xff]   ;;  %v8524_v11 = vld [vmem:[#allocation2 + $0xe64] ss:$8 sps:$4 sm:$0xff]  }
 0xb35   :  { %6543 = vmatprep.subr.bf16.mxu0 %v8456_v49  ;;  %6584 = vmatprep.subr.bf16.mxu1 %v8458_v35  ;;  %v8527_v19 = vld [vmem:[#allocation2 + $0xf64] ss:$8 sps:$4 sm:$0xff]   ;;  %v8522_v44 = vld [vmem:[#allocation2 + $0xe60] ss:$8 sps:$4 sm:$0xff]   ;;  %v8530_v49 = vld [vmem:[#allocation2 + $0xe54] ss:$8 sps:$4 sm:$0xff]  }
 0xb36   :  { %v8525_v32 = vld [vmem:[#allocation2 + $0xf60] ss:$8 sps:$4 sm:$0xff]   ;;  %v8533_v35 = vld [vmem:[#allocation2 + $0xf54] ss:$8 sps:$4 sm:$0xff]   ;;  %v8531_v37 = vld [vmem:[#allocation2 + $0xf50] ss:$8 sps:$4 sm:$0xff]  }
 0xb37   :  { %v8548_v27 = vld [vmem:[#allocation2 + $0xe24] ss:$8 sps:$4 sm:$0xff]   ;;  %vm7737_vm4 = vmpackc.low %vm10968_vm2, %vm10968_vm2  ;;  %v8552_v56 = vld [vmem:[#allocation2 + $0xe10] ss:$8 sps:$4 sm:$0xff]   ;;  %vm7033_vm7 = vcmask 1024  }
 0xb38   :  { %6544 = vmatpush1.bf16.msra.mxu0 %v8460_v12  ;;  %6585 = vmatpush1.bf16.msra.mxu1 %v8461_v24  ;;  %v8528_v12 = vld [vmem:[#allocation2 + $0xe50] ss:$8 sps:$4 sm:$0xff]   ;;  %v8536_v24 = vld [vmem:[#allocation2 + $0xe44] ss:$8 sps:$4 sm:$0xff]  }
 0xb39   :  { %6545 = vmatprep.subr.bf16.mxu0 %v8462_v36  ;;  %6586 = vmatprep.subr.bf16.mxu1 %v8464_v58  ;;  %v8534_v36 = vld [vmem:[#allocation2 + $0xe40] ss:$8 sps:$4 sm:$0xff]   ;;  %v8555_v45 = vld [vmem:[#allocation2 + $0xf10] ss:$8 sps:$4 sm:$0xff]   ;;  %v8560_v42 = vld [vmem:[#allocation2 + $0xe04] ss:$8 sps:$4 sm:$0xff]  }
 0xb3a   :  { %v8537_v58 = vld [vmem:[#allocation2 + $0xf40] ss:$8 sps:$4 sm:$0xff]   ;;  %v6750_v9 = vld [vmem:[#allocation23 + $0xd8] sm:$0xff] }
 0xb3b   :  { %v6747_v60 = vld [vmem:[#allocation23 + $0xc0] sm:$0xff] }
 0xb3c   :  { %6546 = vmatpush1.bf16.msra.mxu0 %v8466_v34  ;;  %6587 = vmatpush1.bf16.msra.mxu1 %v8467_v41  ;;  %v8542_v34 = vld [vmem:[#allocation2 + $0xe34] ss:$8 sps:$4 sm:$0xff]  }
 0xb3d   :  { %6547 = vmatprep.subr.bf16.mxu0 %v8468_v5  ;;  %6588 = vmatprep.subr.bf16.mxu1 %v8470_v43  ;;  %v8545_v41 = vld [vmem:[#allocation2 + $0xf34] ss:$8 sps:$4 sm:$0xff]   ;;  %v8540_v5 = vld [vmem:[#allocation2 + $0xe30] ss:$8 sps:$4 sm:$0xff]  }
 0xb3e   :  { %v8543_v43 = vld [vmem:[#allocation2 + $0xf30] ss:$8 sps:$4 sm:$0xff]  }
 0xb40   :  { %6548 = vmatpush2.bf16.msra.mxu0 %v8472_v7  ;;  %6589 = vmatpush2.bf16.msra.mxu1 %v8473_v10  ;;  %v7738_v10 = vpack.c.bf16 %v5746_v30, %v5746_v30  ;;  %v8563_v30 = vld [vmem:[#allocation2 + $0xf04] ss:$8 sps:$4 sm:$0xff]   ;;  %v6738_v7 = vld [vmem:[#allocation23 + $0x78] sm:$0xff] }
 0xb41   :  { %6549 = vmatprep.subr.bf16.mxu0 %v8474_v25  ;;  %6590 = vmatprep.subr.bf16.mxu1 %v8476_v22  ;;  %v8546_v25 = vld [vmem:[#allocation2 + $0xe20] ss:$8 sps:$4 sm:$0xff]  }
 0xb42   :  { %v8549_v22 = vld [vmem:[#allocation2 + $0xf20] ss:$8 sps:$4 sm:$0xff]  }
 0xb44   :  { %6550 = vmatpush2.bf16.msra.mxu0 %v8478_v8  ;;  %6591 = vmatpush2.bf16.msra.mxu1 %v8479_v4  ;;  %v8554_v8 = vld [vmem:[#allocation2 + $0xe14] ss:$8 sps:$4 sm:$0xff]  }
 0xb45   :  { %6551 = vmatprep.subr.bf16.mxu0 %v8480_v55  ;;  %6592 = vmatprep.subr.bf16.mxu1 %v8482_v52  ;;  %v8557_v4 = vld [vmem:[#allocation2 + $0xf14] ss:$8 sps:$4 sm:$0xff]   ;;  %v8558_v55 = vld [vmem:[#allocation2 + $0xe00] ss:$8 sps:$4 sm:$0xff]  }
 0xb46   :  { %v8561_v52 = vld [vmem:[#allocation2 + $0xf00] ss:$8 sps:$4 sm:$0xff]  }
 0xb48   :  { %6552 = vmatpush2.bf16.msra.mxu0 %v8484_v57  ;;  %6593 = vmatpush2.bf16.msra.mxu1 %v8485_v1  ;;  %v8566_v57 = vld [vmem:[#allocation2 + $0xef4] ss:$8 sps:$4 sm:$0xff]  }
 0xb49   :  { %6553 = vmatprep.subr.bf16.mxu0 %v8486_v13  ;;  %6594 = vmatprep.subr.bf16.mxu1 %v8488_v46  ;;  %v8569_v1 = vld [vmem:[#allocation2 + $0xff4] ss:$8 sps:$4 sm:$0xff]   ;;  %v8564_v13 = vld [vmem:[#allocation2 + $0xef0] ss:$8 sps:$4 sm:$0xff]  }
 0xb4a   :  { %v8567_v46 = vld [vmem:[#allocation2 + $0xff0] ss:$8 sps:$4 sm:$0xff]  }
 0xb4c   :  { %6554 = vmatpush2.bf16.msra.mxu0 %v8490_v21  ;;  %6595 = vmatpush2.bf16.msra.mxu1 %v8491_v23  ;;  %v8572_v21 = vld [vmem:[#allocation2 + $0xee4] ss:$8 sps:$4 sm:$0xff]  }
 0xb4d   :  { %6555 = vmatprep.subr.bf16.mxu0 %v8492_v28  ;;  %6596 = vmatprep.subr.bf16.mxu1 %v8494_v6  ;;  %v8575_v23 = vld [vmem:[#allocation2 + $0xfe4] ss:$8 sps:$4 sm:$0xff]   ;;  %v8570_v28 = vld [vmem:[#allocation2 + $0xee0] ss:$8 sps:$4 sm:$0xff]  }
 0xb4e   :  { %v8573_v6 = vld [vmem:[#allocation2 + $0xfe0] ss:$8 sps:$4 sm:$0xff]  }
 0xb50   :  { %6556 = vmatpush2.bf16.msra.mxu0 %v8496_v59  ;;  %6597 = vmatpush2.bf16.msra.mxu1 %v8497_v29  ;;  %v8578_v59 = vld [vmem:[#allocation2 + $0xed4] ss:$8 sps:$4 sm:$0xff]  }
 0xb51   :  { %6557 = vmatprep.subr.bf16.mxu0 %v8498_v48  ;;  %6598 = vmatprep.subr.bf16.mxu1 %v8500_v15  ;;  %v8581_v29 = vld [vmem:[#allocation2 + $0xfd4] ss:$8 sps:$4 sm:$0xff]   ;;  %v8576_v48 = vld [vmem:[#allocation2 + $0xed0] ss:$8 sps:$4 sm:$0xff]  }
 0xb52   :  { %v8579_v15 = vld [vmem:[#allocation2 + $0xfd0] ss:$8 sps:$4 sm:$0xff]  }
 0xb54   :  { %6558 = vmatpush2.bf16.msra.mxu0 %v8502_v33  ;;  %6599 = vmatpush2.bf16.msra.mxu1 %v8503_v26  ;;  %v8584_v33 = vld [vmem:[#allocation2 + $0xec4] ss:$8 sps:$4 sm:$0xff]  }
 0xb55   :  { %6559 = vmatprep.subr.bf16.mxu0 %v8504_v47  ;;  %6600 = vmatprep.subr.bf16.mxu1 %v8506_v51  ;;  %v8587_v26 = vld [vmem:[#allocation2 + $0xfc4] ss:$8 sps:$4 sm:$0xff]   ;;  %v8582_v47 = vld [vmem:[#allocation2 + $0xec0] ss:$8 sps:$4 sm:$0xff]  }
 0xb56   :  { %v8585_v51 = vld [vmem:[#allocation2 + $0xfc0] ss:$8 sps:$4 sm:$0xff]  }
 0xb58   :  { %6560 = vmatpush2.bf16.msra.mxu0 %v8508_v31  ;;  %6601 = vmatpush2.bf16.msra.mxu1 %v8509_v40  ;;  %v8590_v31 = vld [vmem:[#allocation2 + $0xeb4] ss:$8 sps:$4 sm:$0xff]  }
 0xb59   :  { %6561 = vmatprep.subr.bf16.mxu0 %v8510_v54  ;;  %6602 = vmatprep.subr.bf16.mxu1 %v8512_v14  ;;  %v8593_v40 = vld [vmem:[#allocation2 + $0xfb4] ss:$8 sps:$4 sm:$0xff]   ;;  %v8588_v54 = vld [vmem:[#allocation2 + $0xeb0] ss:$8 sps:$4 sm:$0xff]  }
 0xb5a   :  { %v8591_v14 = vld [vmem:[#allocation2 + $0xfb0] ss:$8 sps:$4 sm:$0xff]  }
 0xb5c   :  { %6562 = vmatpush2.bf16.msra.mxu0 %v8514_v38  ;;  %6603 = vmatpush2.bf16.msra.mxu1 %v8515_v0  ;;  %v8596_v38 = vld [vmem:[#allocation2 + $0xea4] ss:$8 sps:$4 sm:$0xff]  }
 0xb5d   :  { %6613 = vmatprep.subr.bf16.mxu0 %v8518_v50  ;;  %6654 = vmatprep.subr.bf16.mxu1 %v8521_v39  ;;  %v8599_v0 = vld [vmem:[#allocation2 + $0xfa4] ss:$8 sps:$4 sm:$0xff]   ;;  %v8594_v50 = vld [vmem:[#allocation2 + $0xea0] ss:$8 sps:$4 sm:$0xff]  }
 0xb5e   :  { %v8597_v39 = vld [vmem:[#allocation2 + $0xfa0] ss:$8 sps:$4 sm:$0xff]  }
 0xb5f   :  { %7734 = vmatmul.mubr.msk.bf16.vlgmr.msra.gmra.mxu0 %vm7727_vm15, %v7733_v16  ;;  %6605 = vmatmul.mubr.bf16.vlgmr.msra.gmra.mxu1 %v5755_v63  ;;  %v8539_v63 = vld [vmem:[#allocation2 + $0xf44] ss:$8 sps:$4 sm:$0xff]   ;;  %v8602_v16 = vld [vmem:[#allocation2 + $0xe94] ss:$8 sps:$4 sm:$0xff]  }
 0xb60   :  { %6614 = vmatpush1.bf16.msra.mxu0 %v8516_v3  ;;  %6655 = vmatpush1.bf16.msra.mxu1 %v8519_v20  ;;  %v8605_v3 = vld [vmem:[#allocation2 + $0xf94] ss:$8 sps:$4 sm:$0xff]   ;;  %v8600_v20 = vld [vmem:[#allocation2 + $0xe90] ss:$8 sps:$4 sm:$0xff]  }
 0xb61   :  { %6615 = vmatprep.subr.bf16.mxu0 %v8524_v11  ;;  %6656 = vmatprep.subr.bf16.mxu1 %v8527_v19  ;;  %v8603_v11 = vld [vmem:[#allocation2 + $0xf90] ss:$8 sps:$4 sm:$0xff]   ;;  %v8608_v19 = vld [vmem:[#allocation2 + $0xe84] ss:$8 sps:$4 sm:$0xff]  }
 0xb62   :  { %6645 = vmatprep.mubr.bf16.mxu0 %v5758_v17  ;;  %v8551_v17 = vld [vmem:[#allocation2 + $0xf24] ss:$8 sps:$4 sm:$0xff]   ;;  %7739 = vmatprep.mubr.msk.bf16.mxu1 %vm7737_vm4, %v7738_v10 }
 0xb63   :  { %v6737_v10 = vld [vmem:[#allocation23 + $0x70] sm:$0xff] }
 0xb64   :  { %6616 = vmatpush1.bf16.msra.mxu0 %v8522_v44  ;;  %6657 = vmatpush1.bf16.msra.mxu1 %v8525_v32  ;;  %v8611_v44 = vld [vmem:[#allocation2 + $0xf84] ss:$8 sps:$4 sm:$0xff]   ;;  %v8606_v32 = vld [vmem:[#allocation2 + $0xe80] ss:$8 sps:$4 sm:$0xff]  }
 0xb65   :  { %6617 = vmatprep.subr.bf16.mxu0 %v8530_v49  ;;  %6658 = vmatprep.subr.bf16.mxu1 %v8533_v35  ;;  %v8609_v49 = vld [vmem:[#allocation2 + $0xf80] ss:$8 sps:$4 sm:$0xff]   ;;  %v7743_v35 = vpack.c.bf16 %v5745_v2, %v5745_v2 }
 0xb66   :  { %v6749_v2 = vld [vmem:[#allocation23 + $0xd0] sm:$0xff] }
 0xb68   :  { %6618 = vmatpush1.bf16.msra.mxu0 %v8528_v12  ;;  %6659 = vmatpush1.bf16.msra.mxu1 %v8531_v37  ;;  %v6754_v12 = vld [vmem:[#allocation23 + $0xf8] sm:$0xff]  ;;  %v6753_v37 = vld [vmem:[#allocation23 + $0xf0] sm:$0xff] }
 0xb69   :  { %6619 = vmatprep.subr.bf16.mxu0 %v8536_v24  ;;  %6660 = vmatprep.subr.bf16.mxu1 %v8539_v63  ;;  %v6752_v24 = vld [vmem:[#allocation23 + $0xe8] sm:$0xff]  ;;  %v6751_v63 = vld [vmem:[#allocation23 + $0xe0] sm:$0xff] }
 0xb6c   :  { %6620 = vmatpush1.bf16.msra.mxu0 %v8534_v36  ;;  %6661 = vmatpush1.bf16.msra.mxu1 %v8537_v58  ;;  %v6748_v36 = vld [vmem:[#allocation23 + $0xc8] sm:$0xff]  ;;  %v6745_v58 = vld [vmem:[#allocation23 + $0xb0] sm:$0xff] }
 0xb6d   :  { %6621 = vmatprep.subr.bf16.mxu0 %v8542_v34  ;;  %6662 = vmatprep.subr.bf16.mxu1 %v8545_v41  ;;  %v6744_v34 = vld [vmem:[#allocation23 + $0xa8] sm:$0xff]  ;;  %v6743_v41 = vld [vmem:[#allocation23 + $0xa0] sm:$0xff] }
 0xb70   :  { %6622 = vmatpush1.bf16.msra.mxu0 %v8540_v5  ;;  %6663 = vmatpush1.bf16.msra.mxu1 %v8543_v43  ;;  %v6742_v5 = vld [vmem:[#allocation23 + $0x98] sm:$0xff]  ;;  %v6741_v43 = vld [vmem:[#allocation23 + $0x90] sm:$0xff] }
 0xb71   :  { %6623 = vmatprep.subr.bf16.mxu0 %v8548_v27  ;;  %6664 = vmatprep.subr.bf16.mxu1 %v8551_v17  ;;  %v6740_v27 = vld [vmem:[#allocation23 + $0x88] sm:$0xff]  ;;  %v6739_v17 = vld [vmem:[#allocation23 + $0x80] sm:$0xff] }
 0xb74   :  { %6624 = vmatpush1.bf16.msra.mxu0 %v8546_v25  ;;  %6665 = vmatpush1.bf16.msra.mxu1 %v8549_v22  ;;  %v6736_v25 = vld [vmem:[#allocation23 + $0x68] sm:$0xff]  ;;  %v6735_v22 = vld [vmem:[#allocation23 + $0x60] sm:$0xff] }
 0xb75   :  { %6625 = vmatprep.subr.bf16.mxu0 %v8554_v8  ;;  %6666 = vmatprep.subr.bf16.mxu1 %v8557_v4  ;;  %v6734_v8 = vld [vmem:[#allocation23 + $0x58] sm:$0xff]  ;;  %v6733_v4 = vld [vmem:[#allocation23 + $0x50] sm:$0xff] }
 0xb78   :  { %6626 = vmatpush1.bf16.msra.mxu0 %v8552_v56  ;;  %6667 = vmatpush1.bf16.msra.mxu1 %v8555_v45  ;;  %v6732_v56 = vld [vmem:[#allocation23 + $0x48] sm:$0xff]  ;;  %v6731_v45 = vld [vmem:[#allocation23 + $0x40] sm:$0xff] }
 0xb79   :  { %6627 = vmatprep.subr.bf16.mxu0 %v8560_v42  ;;  %6668 = vmatprep.subr.bf16.mxu1 %v8563_v30  ;;  %v6730_v42 = vld [vmem:[#allocation23 + $0x38] sm:$0xff]  ;;  %v6729_v30 = vld [vmem:[#allocation23 + $0x30] sm:$0xff] }
 0xb7c   :  { %6628 = vmatpush1.bf16.msra.mxu0 %v8558_v55  ;;  %6669 = vmatpush1.bf16.msra.mxu1 %v8561_v52  ;;  %v6728_v55 = vld [vmem:[#allocation23 + $0x28] sm:$0xff]  ;;  %v6727_v52 = vld [vmem:[#allocation23 + $0x20] sm:$0xff] }
 0xb7d   :  { %6629 = vmatprep.subr.bf16.mxu0 %v8566_v57  ;;  %6670 = vmatprep.subr.bf16.mxu1 %v8569_v1  ;;  %v6726_v57 = vld [vmem:[#allocation23 + $0x18] sm:$0xff]  ;;  %v6725_v1 = vld [vmem:[#allocation23 + $0x10] sm:$0xff] }
 0xb80   :  { %6630 = vmatpush2.bf16.msra.mxu0 %v8564_v13  ;;  %6671 = vmatpush2.bf16.msra.mxu1 %v8567_v46  ;;  %v6724_v13 = vld [vmem:[#allocation23 + $0x8] sm:$0xff]  ;;  %v6723_v46 = vld [vmem:[#allocation23] sm:$0xff] }
 0xb81   :  { %6631 = vmatprep.subr.bf16.mxu0 %v8572_v21  ;;  %6672 = vmatprep.subr.bf16.mxu1 %v8575_v23  ;;  %v6786_v21 = vld [vmem:[#allocation23 + $0x1f8] sm:$0xff]  ;;  %v6785_v23 = vld [vmem:[#allocation23 + $0x1f0] sm:$0xff] }
 0xb84   :  { %6632 = vmatpush2.bf16.msra.mxu0 %v8570_v28  ;;  %6673 = vmatpush2.bf16.msra.mxu1 %v8573_v6  ;;  %v6784_v28 = vld [vmem:[#allocation23 + $0x1e8] sm:$0xff]  ;;  %v6783_v6 = vld [vmem:[#allocation23 + $0x1e0] sm:$0xff] }
 0xb85   :  { %6633 = vmatprep.subr.bf16.mxu0 %v8578_v59  ;;  %6674 = vmatprep.subr.bf16.mxu1 %v8581_v29  ;;  %v6782_v59 = vld [vmem:[#allocation23 + $0x1d8] sm:$0xff]  ;;  %v6781_v29 = vld [vmem:[#allocation23 + $0x1d0] sm:$0xff] }
 0xb88   :  { %6634 = vmatpush2.bf16.msra.mxu0 %v8576_v48  ;;  %6675 = vmatpush2.bf16.msra.mxu1 %v8579_v15  ;;  %v6780_v48 = vld [vmem:[#allocation23 + $0x1c8] sm:$0xff]  ;;  %v6779_v15 = vld [vmem:[#allocation23 + $0x1c0] sm:$0xff] }
 0xb89   :  { %6635 = vmatprep.subr.bf16.mxu0 %v8584_v33  ;;  %6676 = vmatprep.subr.bf16.mxu1 %v8587_v26  ;;  %v6778_v33 = vld [vmem:[#allocation23 + $0x1b8] sm:$0xff]  ;;  %v6777_v26 = vld [vmem:[#allocation23 + $0x1b0] sm:$0xff] }
 0xb8c   :  { %6636 = vmatpush2.bf16.msra.mxu0 %v8582_v47  ;;  %6677 = vmatpush2.bf16.msra.mxu1 %v8585_v51  ;;  %v6776_v47 = vld [vmem:[#allocation23 + $0x1a8] sm:$0xff]  ;;  %v6775_v51 = vld [vmem:[#allocation23 + $0x1a0] sm:$0xff] }
 0xb8d   :  { %6637 = vmatprep.subr.bf16.mxu0 %v8590_v31  ;;  %6678 = vmatprep.subr.bf16.mxu1 %v8593_v40  ;;  %v6774_v31 = vld [vmem:[#allocation23 + $0x198] sm:$0xff]  ;;  %v6773_v40 = vld [vmem:[#allocation23 + $0x190] sm:$0xff] }
 0xb90   :  { %6638 = vmatpush2.bf16.msra.mxu0 %v8588_v54  ;;  %6679 = vmatpush2.bf16.msra.mxu1 %v8591_v14  ;;  %v6772_v54 = vld [vmem:[#allocation23 + $0x188] sm:$0xff]  ;;  %v6771_v14 = vld [vmem:[#allocation23 + $0x180] sm:$0xff] }
 0xb91   :  { %6639 = vmatprep.subr.bf16.mxu0 %v8596_v38  ;;  %6680 = vmatprep.subr.bf16.mxu1 %v8599_v0  ;;  %v6770_v38 = vld [vmem:[#allocation23 + $0x178] sm:$0xff]  ;;  %v6769_v0 = vld [vmem:[#allocation23 + $0x170] sm:$0xff] }
 0xb94   :  { %6640 = vmatpush2.bf16.msra.mxu0 %v8594_v50  ;;  %6681 = vmatpush2.bf16.msra.mxu1 %v8597_v39  ;;  %v6768_v50 = vld [vmem:[#allocation23 + $0x168] sm:$0xff]  ;;  %v6767_v39 = vld [vmem:[#allocation23 + $0x160] sm:$0xff] }
 0xb95   :  { %6641 = vmatprep.subr.bf16.mxu0 %v8602_v16  ;;  %6682 = vmatprep.subr.bf16.mxu1 %v8605_v3  ;;  %v6766_v16 = vld [vmem:[#allocation23 + $0x158] sm:$0xff]  ;;  %v6765_v3 = vld [vmem:[#allocation23 + $0x150] sm:$0xff] }
 0xb98   :  { %6642 = vmatpush2.bf16.msra.mxu0 %v8600_v20  ;;  %6683 = vmatpush2.bf16.msra.mxu1 %v8603_v11  ;;  %v6764_v20 = vld [vmem:[#allocation23 + $0x148] sm:$0xff]  ;;  %v6763_v11 = vld [vmem:[#allocation23 + $0x140] sm:$0xff] }
 0xb99   :  { %6643 = vmatprep.subr.bf16.mxu0 %v8608_v19  ;;  %6684 = vmatprep.subr.bf16.mxu1 %v8611_v44  ;;  %v6762_v19 = vld [vmem:[#allocation23 + $0x138] sm:$0xff]  ;;  %v6761_v44 = vld [vmem:[#allocation23 + $0x130] sm:$0xff] }
 0xb9c   :  { %6644 = vmatpush2.bf16.msra.mxu0 %v8606_v32  ;;  %6685 = vmatpush2.bf16.msra.mxu1 %v8609_v49  ;;  %v6760_v32 = vld [vmem:[#allocation23 + $0x128] sm:$0xff]  ;;  %v6759_v49 = vld [vmem:[#allocation23 + $0x120] sm:$0xff] }
 0xb9d   :  { %6787 = vmatprep.subr.mxu0 %v6754_v12  ;;  %v6757_v12 = vld [vmem:[#allocation23 + $0x110] sm:$0xff] }
 0xb9f   :  { %6646 = vmatmul.mubr.bf16.vlgmr.msra.gmra.mxu0 %v5757_v18  ;;  %7744 = vmatmul.mubr.msk.bf16.vlgmr.msra.gmra.mxu1 %vm7737_vm4, %v7743_v35  ;;  %v6746_v18 = vld [vmem:[#allocation23 + $0xb8] sm:$0xff] }
 0xba0   :  { %6788 = vmatpush1.msra.mxu0 %v6753_v37  ;;  %v6758_v35 = vld [vmem:[#allocation23 + $0x118] sm:$0xff]  ;;  %v6756_v37 = vld [vmem:[#allocation23 + $0x108] sm:$0xff] }
 0xba1   :  { %6789 = vmatprep.subr.mxu0 %v6752_v24  ;;  %v6755_v24 = vld [vmem:[#allocation23 + $0x100] sm:$0xff] }
 0xba2   :  { %6790 = vmatpush1.msra.mxu0 %v6751_v63 }
 0xba3   :  { %6791 = vmatprep.subr.mxu0 %v6750_v9 }
 0xba4   :  { %6792 = vmatpush1.msra.mxu0 %v6749_v2 }
 0xba5   :  { %6793 = vmatprep.subr.mxu0 %v6748_v36 }
 0xba6   :  { %6794 = vmatpush1.msra.mxu0 %v6747_v60 }
 0xba7   :  { %6795 = vmatprep.subr.mxu0 %v6746_v18 }
 0xba8   :  { %6796 = vmatpush1.msra.mxu0 %v6745_v58 }
 0xba9   :  { %6797 = vmatprep.subr.mxu0 %v6744_v34 }
 0xbaa   :  { %6798 = vmatpush1.msra.mxu0 %v6743_v41 }
 0xbab   :  { %6799 = vmatprep.subr.mxu0 %v6742_v5 }
 0xbac   :  { %6800 = vmatpush1.msra.mxu0 %v6741_v43 }
 0xbad   :  { %6801 = vmatprep.subr.mxu0 %v6740_v27 }
 0xbae   :  { %6802 = vmatpush1.msra.mxu0 %v6739_v17 }
 0xbaf   :  { %6803 = vmatprep.subr.mxu0 %v6738_v7 }
 0xbb0   :  { %6804 = vmatpush1.msra.mxu0 %v6737_v10 }
 0xbb1   :  { %6805 = vmatprep.subr.mxu0 %v6736_v25 }
 0xbb2   :  { %6806 = vmatpush1.msra.mxu0 %v6735_v22 }
 0xbb3   :  { %6807 = vmatprep.subr.mxu0 %v6734_v8 }
 0xbb4   :  { %6808 = vmatpush1.msra.mxu0 %v6733_v4 }
 0xbb5   :  { %6809 = vmatprep.subr.mxu0 %v6732_v56 }
 0xbb6   :  { %6810 = vmatpush1.msra.mxu0 %v6731_v45 }
 0xbb7   :  { %6811 = vmatprep.subr.mxu0 %v6730_v42 }
 0xbb8   :  { %6812 = vmatpush1.msra.mxu0 %v6729_v30 }
 0xbb9   :  { %6813 = vmatprep.subr.mxu0 %v6728_v55 }
 0xbba   :  { %6814 = vmatpush1.msra.mxu0 %v6727_v52 }
 0xbbb   :  { %6815 = vmatprep.subr.mxu0 %v6726_v57 }
 0xbbc   :  { %6816 = vmatpush1.msra.mxu0 %v6725_v1 }
 0xbbd   :  { %6817 = vmatprep.subr.mxu0 %v6724_v13 }
 0xbbe   :  { %6818 = vmatpush1.msra.mxu0 %v6723_v46 }
 0xbbf   :  { %6819 = vmatprep.subr.mxu0 %v6786_v21 }
 0xbc0   :  { %6820 = vmatpush2.msra.mxu0 %v6785_v23 }
 0xbc1   :  { %6821 = vmatprep.subr.mxu0 %v6784_v28 }
 0xbc2   :  { %6822 = vmatpush2.msra.mxu0 %v6783_v6 }
 0xbc3   :  { %6823 = vmatprep.subr.mxu0 %v6782_v59 }
 0xbc4   :  { %6824 = vmatpush2.msra.mxu0 %v6781_v29 }
 0xbc5   :  { %6825 = vmatprep.subr.mxu0 %v6780_v48 }
 0xbc6   :  { %6826 = vmatpush2.msra.mxu0 %v6779_v15 }
 0xbc7   :  { %6827 = vmatprep.subr.mxu0 %v6778_v33 }
 0xbc8   :  { %6828 = vmatpush2.msra.mxu0 %v6777_v26 }
 0xbc9   :  { %6829 = vmatprep.subr.mxu0 %v6776_v47 }
 0xbca   :  { %6830 = vmatpush2.msra.mxu0 %v6775_v51 }
 0xbcb   :  { %6831 = vmatprep.subr.mxu0 %v6774_v31 }
 0xbcc   :  { %6832 = vmatpush2.msra.mxu0 %v6773_v40 }
 0xbcd   :  { %6833 = vmatprep.subr.mxu0 %v6772_v54 }
 0xbce   :  { %6834 = vmatpush2.msra.mxu0 %v6771_v14 }
 0xbcf   :  { %6835 = vmatprep.subr.mxu0 %v6770_v38 }
 0xbd0   :  { %6836 = vmatpush2.msra.mxu0 %v6769_v0 }
 0xbd1   :  { %6837 = vmatprep.subr.mxu0 %v6768_v50 }
 0xbd2   :  { %6838 = vmatpush2.msra.mxu0 %v6767_v39 }
 0xbd3   :  { %6839 = vmatprep.subr.mxu0 %v6766_v16 }
 0xbd4   :  { %6840 = vmatpush2.msra.mxu0 %v6765_v3 }
 0xbd5   :  { %6841 = vmatprep.subr.mxu0 %v6764_v20 }
 0xbd6   :  { %6842 = vmatpush2.msra.mxu0 %v6763_v11 }
 0xbd7   :  { %6843 = vmatprep.subr.mxu0 %v6762_v19 }
 0xbd8   :  { %6844 = vmatpush2.msra.mxu0 %v6761_v44 }
 0xbd9   :  { %6845 = vmatprep.subr.mxu0 %v6760_v32 }
 0xbda   :  { %6846 = vmatpush2.msra.mxu0 %v6759_v49 }
 0xbdb   :  { %6847 = vmatprep.subr.mxu0 %v6758_v35 }
 0xbdc   :  { %6848 = vmatpush2.msra.mxu0 %v6757_v12 }
 0xbdd   :  { %6849 = vmatprep.subr.mxu0 %v6756_v37 }
 0xbde   :  { %6850 = vmatpush2.msra.mxu0 %v6755_v24 }
 0xc1f   :  { %v6565_v63 = vpop.f32.mrf.mxu0  ;;  %v6606_v9 = vpop.f32.mrf.mxu1 }
 0xc20   :  { %v6607_v2 = vadd.f32 %v6606_v9, %v6565_v63 }
 0xc21   :  { %v6567_v36 = vpop.f32.mrf.mxu0  ;;  %v6608_v60 = vpop.f32.mrf.mxu1 }
 0xc22   :  { %v6609_v27 = vadd.f32 %v6608_v60, %v6567_v36  ;;  %v6868_v60 = vld [vmem:[#allocation24] sm:$0x3] }
 0xc23   :  { %v6569_v18 = vpop.f32.mrf.mxu0  ;;  %v6610_v58 = vpop.f32.mrf.mxu1 }
 0xc25   :  { %v6570_v34 = vpop.f32.mrf.mxu0  ;;  %v6611_v41 = vpop.f32.mrf.mxu1 }
 0xc5f   :  { %v6647_v5 = vpop.f32.mrf.mxu0  ;;  %v6688_v43 = vpop.f32.mrf.mxu1 }
 0xc60   :  { %v6648_v17 = vadd.f32 %v6647_v5, %v6607_v2 }
 0xc61   :  { %v6649_v7 = vpop.f32.mrf.mxu0  ;;  %v6690_v10 = vpop.f32.mrf.mxu1 }
 0xc62   :  { %v10994_v25 = vadd.f32 %v6688_v43, %v6648_v17  ;;  %v6650_v22 = vadd.f32 %v6649_v7, %v6609_v27  ;;  %v6893_v7 = vld [vmem:[#allocation26] sm:$0x3] }
 0xc63   :  { %v6651_v8 = vpop.f32.mrf.mxu0  ;;  %v6692_v4 = vpop.f32.mrf.mxu1 }
 0xc64   :  { %v6695_v56 = vrot.slane %v10994_v25, 4  ;;  %v6707_v45 = vmul.f32 %v10994_v25, %v10994_v25  ;;  %v6691_v42 = vadd.f32 %v6690_v10, %v6650_v22 }
 0xc65   :  { %v6652_v30 = vpop.f32.mrf.mxu0  ;;  %v6693_v55 = vpop.f32.mrf.mxu1 }
 0xc66   :  { %v6696_v52 = vadd.f32 %v6695_v56, %v10994_v25  ;;  %v6709_v57 = vrot.slane %v6707_v45, 4  ;;  %v6701_v1 = vrot.slane %v6691_v42, 4  ;;  %v6708_v13 = vmul.f32 %v6691_v42, %v6691_v42 }
 0xc68   :  { %v6702_v46 = vadd.f32 %v6701_v1, %v6691_v42  ;;  %v6715_v21 = vrot.slane %v6708_v13, 4  ;;  %v6697_v23 = vrot.slane %v6696_v52, 2  ;;  %v6710_v28 = vadd.f32 %v6709_v57, %v6707_v45 }
 0xc6a   :  { %v6703_v6 = vrot.slane %v6702_v46, 2  ;;  %v6716_v59 = vadd.f32 %v6715_v21, %v6708_v13  ;;  %v6711_v29 = vrot.slane %v6710_v28, 2  ;;  %v6698_v48 = vadd.f32 %v6697_v23, %v6696_v52 }
 0xc6c   :  { %v6704_v15 = vadd.f32 %v6703_v6, %v6702_v46  ;;  %v6717_v33 = vrot.slane %v6716_v59, 2  ;;  %v6712_v26 = vadd.f32 %v6711_v29, %v6710_v28  ;;  %v6699_v40 = vrot.slane %v6698_v48, 1 }
 0xc6d   :  { %v9028_v6 = vmov 0.0  }
 0xc6e   :  { %v6705_v47 = vrot.slane %v6704_v15, 1  ;;  %v6718_v51 = vadd.f32 %v6717_v33, %v6716_v59  ;;  %v6713_v31 = vrot.slane %v6712_v26, 1  ;;  %v6700_v50 = vadd.f32 %v6699_v40, %v6698_v48  ;;  %7766 = vmatprep.subr.mxu1 %v9028_v6  ;;  %7768 = vmatprep.mubr.msk.f32.mxu1 %vm9029_vm5, %v9028_v6  ;;  %v6951_v59 = vld [vmem:[#allocation27] sm:$0x3] }
 0xc70   :  { %v6719_v54 = vrot.slane %v6718_v51, 1  ;;  %v6714_v14 = vadd.f32 %v6713_v31, %v6712_v26  ;;  %v6706_v38 = vadd.f32 %v6705_v47, %v6704_v15 }
 0xc72   :  { %v6720_v0 = vadd.f32 %v6719_v54, %v6718_v51  ;;  %v6721_v16 = vsel %vm1334_vm0, %v6700_v50, %v6714_v14 }
 0xc74   :  { %v6722_v39 = vsel %vm1334_vm0, %v6706_v38, %v6720_v0 }
 0xc75   :  { %6851 = vmatprep.mubr.f32.mxu0 %v6722_v39 }
 0xc76   :  { %6852 = vmatmul.mubr.f32.vlgmr.msra.gmra.mxu0 %v6721_v16 }
 0xd36   :  { %v6853_v3 = vpop.f32.mrf.mxu0 }
 0xd37   :  { %v6858_v20 = vmul.f32 %v6853_v3, %v6853_v3 }
 0xd38   :  { %v6855_v11 = vpop.f32.mrf.mxu0 }
 0xd39   :  { %v6862_v19 = vrot.slane %v6858_v20, 7  ;;  %v6859_v44 = vmul.f32 %v6855_v11, %v6855_v11 }
 0xd3b   :  { %v6866_v32 = vsub.f32 %v6853_v3, %v6862_v19  ;;  %v6863_v49 = vrot.slane %v6859_v44, 7 }
 0xd3d   :  { %v6869_v35 = vadd.f32 1e-05, %v6866_v32  ;;  %v6867_v12 = vsub.f32 %v6855_v11, %v6863_v49 }
 0xd3f   :  { %v6870_v37 = vadd.f32 1e-05, %v6867_v12  ;;  %8612 = vrsqrt.f32 %v6869_v35 }
 0xd41   :  { %8614 = vrsqrt.f32 %v6870_v37 }
 0xd4c   :  { %v8613_v24 = vpop.eup %8612 }
 0xd4e   :  { %v8615_v63 = vpop.eup %8614 }
 0xd4f   :  { %v6875_v9 = vcombine.low %v8613_v24, %v8615_v63 }
 0xd51   :  { %v6882_v2 = vrot.slane %v6875_v9, %v10737_v62 }
 0xd53   :  { %v6883_v36 = vcombine.high %v6882_v2, %v6882_v2 }
 0xd55   :  { %v6890_v18 = vrot.slane %v6883_v36, %v10737_v62 }
 0xd57   :  { %v6892_v58 = vmul.f32 %v6890_v18, %v6868_v60 }
 0xd59   :  { %v6898_v34 = vrot.slane %v6892_v58, %v10742_v61  ;;  %v6902_v41 = vrot.slane %v6892_v58, %v10745_v53 }
 0xd5b   :  { %v6905_v5 = vmul.f32 %v6898_v34, %v6853_v3  ;;  %v6906_v43 = vmul.f32 %v6902_v41, %v6855_v11  ;;  %v6926_v8 = vmul.f32 %v6898_v34, %v10994_v25  ;;  %v6927_v4 = vmul.f32 %v6902_v41, %v6691_v42 }
 0xd5d   :  { %v6909_v27 = vcombine.low %v6905_v5, %v6906_v43 }
 0xd5f   :  { %v6916_v17 = vrot.slane %v6909_v27, %v10737_v62 }
 0xd61   :  { %v6923_v10 = vrot.slane %v6916_v17, %v10737_v62  ;;  %v6949_v62 = vld [vmem:[%s11042_s22] sm:$0xff] }
 0xd63   :  { %v6925_v22 = vsub.f32 %v6893_v7, %v6923_v10 }
 0xd65   :  { %v6932_v56 = vrot.slane %v6925_v22, %v10742_v61  ;;  %v6936_v45 = vrot.slane %v6925_v22, %v10745_v53  ;;  %v6950_v61 = vld [vmem:[%s11042_s22 + $0x8] sm:$0xff] }
 0xd67   :  { %v6940_v30 = vadd.f32 %v6936_v45, %v6927_v4  ;;  %v6939_v55 = vadd.f32 %v6932_v56, %v6926_v8 }
 0xd69   :  { %vm6941_vm0 = vcmp.gt.f32.partialorder %v6939_v55, 0.0  ;;  %vm6942_vm1 = vcmp.gt.f32.partialorder %v6940_v30, 0.0  ;;  %v6943_v52 = vmul.f32 0.2, %v6939_v55  ;;  %v6944_v57 = vmul.f32 0.2, %v6940_v30 }
 0xd6b   :  { %v6945_v1 = vsel %vm6941_vm0, %v6939_v55, %v6943_v52  ;;  %v6946_v13 = vsel %vm6942_vm1, %v6940_v30, %v6944_v57 }
 0xd6c   :  { %v6947_v46 = vpack.c.bf16 %v6945_v1, %v6945_v1  ;;  %v6948_v21 = vpack.c.bf16 %v6946_v13, %v6946_v13 }
 0xd6e   :  { %v6952_v25 = vunpack.c.l.bf16 %v6947_v46  ;;  %v6953_v53 = vunpack.c.l.bf16 %v6948_v21 }
 0xd70   :  { %v6954_v42 = vmul.f32 %v6952_v25, %v6949_v62  ;;  %v6955_v23 = vmul.f32 %v6953_v53, %v6950_v61 }
 0xd72   :  { %v6956_v28 = vadd.f32 %v6955_v23, %v6954_v42 }
 0xd74   :  { %6957 = vadd.xlane.f32.xlu0 %v6956_v28 }
 0xdfd   :  { %v6958_v29 = vpop.xlane.xlu0 %6957 }
 0xdfe   :  { %7767 = vmatpush3.msra.mxu1 %v6958_v29 }
 0xdff   :  { %7769 = vmatmul.mubr.msk.f32.vlgmr.msra.gmra.mxu1 %vm6959_vm6, %v6951_v59 }
 0xebf   :  { %v7029_v48 = vpop.f32.mrf.mxu1 }
 0xec0   :  { %7034 = vst.msk [vmem:[%s11044_s24] sm:$0x3] %vm7033_vm7, %v7029_v48 }
 0xec1   :  { %v7770_v15 = vpop.f32.mrf.mxu1 }
 0xec2   :  { %7039 = vsyncpa [#allocation5], 1 }
 0xec3   :  { %7040 = vsyncpa [#allocation7], 1 }
 0xec4   :  { %7041 = vsyncpa [#allocation10], 1 }
 0xec5   :  { %7042 = vsyncpa [#allocation13], 1 }
 0xec6   :  { %7043 = vsyncpa [#allocation16], 1 }
 0xec7   :  { %7044 = vsyncpa [#allocation19], 1 }
 0xec8   :  { %7045 = vsyncpa [#allocation22], 1 }
 0xec9   :  { %7046 = vsyncpa [#allocation25], 1 }
 0xeca   :  { %7047 = vsyncpa [#allocation28], 1 }
 0xecb   :  { %7048 = vsyncmov [#allocation3] }
 0xece   :  { %s7049_s22 = vpop.sfrf %7048 }
 0xecf   :  { %p7746_p6 = scmp.ne.s32.totalorder %s7049_s22, 0 }
 0xed1   :  { %7053 = shalt.err (%p7746_p6)  }
 0xed2   :  { %7055 = vsyncmov [#allocation3 + $0x1] }
 0xed5   :  { %s7056_s1 = vpop.sfrf %7055 }
 0xed6   :  { %p7747_p7 = scmp.ne.s32.totalorder %s7056_s1, 0 }
 0xed8   :  { %7060 = shalt.err (%p7747_p7)  }
 0xed9   :  { %7062 = vsyncmov [#allocation3 + $0x2] }
 0xedc   :  { %s7063_s24 = vpop.sfrf %7062 }
 0xedd   :  { %p7748_p8 = scmp.ne.s32.totalorder %s7063_s24, 0 }
 0xedf   :  { %7067 = shalt.err (%p7748_p8)  }
 0xee0   :  { %7069 = vsyncmov [#allocation3 + $0x3] }
 0xee3   :  { %s7070_s26 = vpop.sfrf %7069 }
 0xee4   :  { %p7749_p9 = scmp.ne.s32.totalorder %s7070_s26, 0 }
 0xee6   :  { %7074 = shalt.err (%p7749_p9)  }

</bundles_post_ra>
